<compile_context>
chip_gen: v7x
topology: tpu7x:2x2x1
jax: 0.10.0
libtpu: 0.0.40
codegen_flags: <defaults>
</compile_context>

<pallas_src>
from functools import partial

import jax
import jax.numpy as jnp
from jax import lax
from jax.experimental import pallas as pl
from jax.experimental.pallas import tpu as pltpu


COUT = 64            # conv output channels (fixed by architecture_config)
CPAD = 128           # lane-padded conv channels
BN_EPS = 1e-5
FC1_SPLITS = 2       # output-dim split of the fused FC kernel (2 TCs on v7x)
FC1_TK = 512         # K tile of the FC1 reduction


# ---------------------------------------------------------------------------
# Pass 1: tiled conv GEMM + per-channel sum / sum-of-squares (2-pass BatchNorm)
# ---------------------------------------------------------------------------
def conv_gemm_stats_kernel(p_ref, w_ref, y_ref, sum_ref, sq_ref):
    i = pl.program_id(0)

    y = jnp.dot(p_ref[...], w_ref[...], preferred_element_type=jnp.float32)
    y_ref[...] = y

    @pl.when(i == 0)
    def _():
        sum_ref[...] = jnp.zeros_like(sum_ref)
        sq_ref[...] = jnp.zeros_like(sq_ref)

    sum_ref[...] += jnp.sum(y, axis=0, keepdims=True)        # (1, CPAD)
    sq_ref[...] += jnp.sum(y * y, axis=0, keepdims=True)     # (1, CPAD)


# ---------------------------------------------------------------------------
# Pass 2: BatchNorm normalize + affine + LeakyReLU(0.1) + MaxPool2d(2,2) fused
# ---------------------------------------------------------------------------
def bn_lrelu_pool_kernel(y_ref, sum_ref, sq_ref, g_ref, b_ref, o_ref, *,
                         m_total, ph_out):
    inv_m = 1.0 / m_total
    mean = sum_ref[...] * inv_m                              # (1, CPAD)
    var = sq_ref[...] * inv_m - mean * mean                  # biased variance
    scale = g_ref[...] * lax.rsqrt(var + BN_EPS)
    shift = b_ref[...] - mean * scale

    y = y_ref[...]                                           # (OH, 2, PW, CPAD)
    y = y * scale + shift                                    # batchnorm affine
    y = jnp.where(y >= 0.0, y, 0.1 * y)                      # LeakyReLU(0.1)

    pw, cp = y.shape[2], y.shape[3]
    y6 = y.reshape(ph_out, 2, 2, pw, cp)                     # split OH -> (PH, row-in-window)
    o_ref[...] = jnp.maximum(jnp.maximum(y6[:, 0, 0], y6[:, 0, 1]),
                             jnp.maximum(y6[:, 1, 0], y6[:, 1, 1]))


# ---------------------------------------------------------------------------
# Pass 3: FC1 (K-tiled) + bias + Dropout(0.0)=id + LeakyReLU + fused FC2 (+bias)
# ---------------------------------------------------------------------------
def fc_fused_kernel(x_ref, w1_ref, b1_ref, w2_ref, b2_ref, o_ref, acc_ref):
    j = pl.program_id(0)
    k = pl.program_id(1)

    @pl.when(k == 0)
    def _():
        acc_ref[...] = jnp.zeros_like(acc_ref)

    acc_ref[...] += jnp.dot(x_ref[...], w1_ref[...],
                            preferred_element_type=jnp.float32)

    @pl.when(k == pl.num_programs(1) - 1)
    def _():
        h = acc_ref[...] + b1_ref[...]                       # Linear-1 bias
        h = jnp.where(h >= 0.0, h, 0.1 * h)                  # Dropout(0.0)=id + LeakyReLU
        part = jnp.dot(h, w2_ref[...], preferred_element_type=jnp.float32)
        part = part + b2_ref[...] * jnp.where(j == 0, 1.0, 0.0)   # add b2 only once
        o_ref[...] = part


# ---------------------------------------------------------------------------
# Glue
# ---------------------------------------------------------------------------
def _im2col(x, kh, kw, stride, pad, out_h, out_w):
    """NCHW -> im2col. Rows ordered (n, oh, ow%2, ow//2); cols ordered (cin, kh, kw)."""
    n, cin, _, _ = x.shape
    xp = jnp.pad(x, ((0, 0), (0, 0), (pad, pad), (pad, pad)))
    cols = []
    for dh in range(kh):
        for dw in range(kw):
            cols.append(xp[:, :, dh:dh + stride * out_h:stride,
                              dw:dw + stride * out_w:stride])
    p = jnp.stack(cols, axis=2)                              # (N, Cin, KH*KW, OH, OW)
    p = p.transpose(0, 3, 4, 1, 2)                           # (N, OH, OW, Cin, KH*KW)
    k = cin * kh * kw
    p = p.reshape(n, out_h, out_w // 2, 2, k)                # split OW -> (PW, parity)
    p = p.transpose(0, 1, 3, 2, 4)                           # (N, OH, 2, PW, K)
    return p.reshape(n * out_h * out_w, k)


def prepare_params(raw, *, S, in_channels):
    """One-time conversion of PyTorch-layout params into padded / permuted kernel layouts."""
    KH = KW = 7
    kc = in_channels * KH * KW
    kc_pad = pl.cdiv(kc, 128) * 128
    PH = PW = 4 * S                                          # pooled spatial (H=W=16*S)

    # conv weight (Cout, Cin, KH, KW) -> (K, Cout), zero-padded to (kc_pad, CPAD)
    w_conv = raw["conv_w"].reshape(COUT, kc).T
    w_conv = jnp.pad(w_conv, ((0, kc_pad - kc), (0, CPAD - COUT)))

    gamma = jnp.pad(raw["bn_gamma"].reshape(1, COUT), ((0, 0), (0, CPAD - COUT)))
    beta = jnp.pad(raw["bn_beta"].reshape(1, COUT), ((0, 0), (0, CPAD - COUT)))

    # fc1: PyTorch Linear weight (Nh, Kin) acts on an NCHW flatten (c, ph, pw).
    # Transpose to (Kin, Nh), permute rows to the NHWC flatten (ph, pw, c) produced on
    # chip, then zero-pad Nh to a multiple of 128*FC1_SPLITS.
    nh, kin = raw["fc1_w"].shape
    assert kin == COUT * PH * PW == 1024 * S * S
    w1 = raw["fc1_w"].T.reshape(COUT, PH, PW, nh).transpose(1, 2, 0, 3).reshape(kin, nh)
    nh_pad = pl.cdiv(nh, 128 * FC1_SPLITS) * (128 * FC1_SPLITS)
    w1 = jnp.pad(w1, ((0, 0), (0, nh_pad - nh)))
    b1 = jnp.pad(raw["fc1_b"].reshape(1, nh), ((0, 0), (0, nh_pad - nh)))

    # fc2: (Out, Nh) -> (nh_pad, out_pad); zero rows for padded hidden units.
    n_out = raw["fc2_w"].shape[0]
    out_pad = pl.cdiv(n_out, 128) * 128
    w2 = jnp.pad(raw["fc2_w"].T, ((0, nh_pad - nh), (0, out_pad - n_out)))
    b2 = jnp.pad(raw["fc2_b"].reshape(1, n_out), ((0, 0), (0, out_pad - n_out)))

    return {"conv_w": w_conv, "bn_gamma": gamma, "bn_beta": beta,
            "w1": w1, "b1": b1, "w2": w2, "b2": b2}


def yolov1_forward(x, params, *, S, out_features):
    """x: (N, Cin, H, W) float32, NCHW (PyTorch convention)."""
    N, Cin, H, W = x.shape
    KH = KW = 7
    stride, padd = 2, 3
    OH = (H + 2 * padd - KH) // stride + 1
    OW = (W + 2 * padd - KW) // stride + 1
    assert OH % 2 == 0 and OW % 2 == 0
    PH, PW = OH // 2, OW // 2
    M = N * OH * OW
    kc = Cin * KH * KW
    kc_pad = params["conv_w"].shape[0]

    # --- im2col (XLA glue) ---
    # TODO(synk): build the im2col patches on-chip (manual DMA from the padded NHWC
    # input) to avoid materializing the ~12x-duplicated patch matrix in HBM at large
    # resolutions; at these shapes it is small and streams fine.
    P = _im2col(x.astype(jnp.float32), KH, KW, stride, padd, OH, OW)
    P = jnp.pad(P, ((0, 0), (0, kc_pad - kc)))

    TM = min(512, M)
    M_pad = pl.cdiv(M, TM) * TM
    if M_pad != M:
        P = jnp.pad(P, ((0, M_pad - M), (0, 0)))   # zero rows: no effect on BN stats

    # --- pass 1: tiled conv GEMM + BN statistics ---
    y, csum, csq = pl.pallas_call(
        conv_gemm_stats_kernel,
        out_shape=(jax.ShapeDtypeStruct((M_pad, CPAD), jnp.float32),
                   jax.ShapeDtypeStruct((1, CPAD), jnp.float32),
                   jax.ShapeDtypeStruct((1, CPAD), jnp.float32)),
        grid=(M_pad // TM,),
        in_specs=[pl.BlockSpec((TM, kc_pad), lambda i: (i, 0)),
                  pl.BlockSpec((kc_pad, CPAD), lambda i: (0, 0))],
        out_specs=(pl.BlockSpec((TM, CPAD), lambda i: (i, 0)),
                   pl.BlockSpec((1, CPAD), lambda i: (0, 0)),
                   pl.BlockSpec((1, CPAD), lambda i: (0, 0))),
        compiler_params=pltpu.CompilerParams(
            dimension_semantics=("arbitrary",)),
    )(P, params["conv_w"])

    if M_pad != M:
        y = y[:M]
    y5 = y.reshape(N, OH, 2, PW, CPAD)             # rows were ordered (n, oh, ow%2, ow//2)

    # --- pass 2: BN normalize + affine + LeakyReLU + MaxPool2d(2,2), single read of y ---
    pooled = pl.pallas_call(
        partial(bn_lrelu_pool_kernel, m_total=float(M), ph_out=PH),
        out_shape=jax.ShapeDtypeStruct((N, PH, PW, CPAD), jnp.float32),
        grid=(N,),
        in_specs=[pl.BlockSpec((None, OH, 2, PW, CPAD), lambda n: (n, 0, 0, 0, 0)),
                  pl.BlockSpec((1, CPAD), lambda n: (0, 0)),
                  pl.BlockSpec((1, CPAD), lambda n: (0, 0)),
                  pl.BlockSpec((1, CPAD), lambda n: (0, 0)),
                  pl.BlockSpec((1, CPAD), lambda n: (0, 0))],
        out_specs=pl.BlockSpec((None, PH, PW, CPAD), lambda n: (n, 0, 0, 0)),
        compiler_params=pltpu.CompilerParams(
            dimension_semantics=("parallel",)),
    )(y5, csum, csq, params["bn_gamma"], params["bn_beta"])

    # NHWC flatten (matches the permuted w1 rows); drop the zero-padded channels.
    flat = pooled[..., :COUT].reshape(N, PH * PW * COUT)
    Kin = flat.shape[1]
    assert Kin == 1024 * S * S

    # --- pass 3: fused FC1 + LeakyReLU + FC2 ---
    w1p, b1p, w2p, b2p = params["w1"], params["b1"], params["w2"], params["b2"]
    assert w1p.shape[0] == Kin
    NhP, OutP = w1p.shape[1], w2p.shape[1]
    TN = NhP // FC1_SPLITS
    TK = min(FC1_TK, Kin)
    assert Kin % TK == 0

    partials = pl.pallas_call(
        fc_fused_kernel,
        out_shape=jax.ShapeDtypeStruct((FC1_SPLITS, N, OutP), jnp.float32),
        grid=(FC1_SPLITS, Kin // TK),
        in_specs=[pl.BlockSpec((N, TK), lambda j, k: (0, k)),
                  pl.BlockSpec((TK, TN), lambda j, k: (k, j)),
                  pl.BlockSpec((1, TN), lambda j, k: (0, j)),
                  pl.BlockSpec((TN, OutP), lambda j, k: (j, 0)),
                  pl.BlockSpec((1, OutP), lambda j, k: (0, 0))],
        out_specs=pl.BlockSpec((None, N, OutP), lambda j, k: (j, 0, 0)),
        scratch_shapes=[pltpu.VMEM((N, TN), jnp.float32)],
        compiler_params=pltpu.CompilerParams(
            dimension_semantics=("parallel", "arbitrary"),
            vmem_limit_bytes=32 * 1024 * 1024),
    )(flat, w1p, b1p, w2p, b2p)

    out = jnp.sum(partials, axis=0)                # tiny (FC1_SPLITS, N, OutP) reduce
    return out[:, :out_features]


# ---------------------------------------------------------------------------
# Main
# ---------------------------------------------------------------------------
if __name__ == "__main__":
    # Yolov1(in_channels=4, split_size=1, num_boxes=2, num_classes=3)
    S, B, C = 1, 2, 3
    in_channels = 4
    batch = 2
    # fcs hard-code in_features = 1024*S*S; with this truncated darknet the flattened
    # conv output is 64*(H/4)*(W/4), so H = W = 16*S is required.
    H = W = 16 * S
    out_features = S * S * (C + B * C)

    key = jax.random.PRNGKey(0)
    k = jax.random.split(key, 8)
    raw_params = {
        "conv_w": jax.random.normal(k[0], (COUT, in_channels, 7, 7), jnp.float32) * 0.05,
        "bn_gamma": 1.0 + 0.1 * jax.random.normal(k[1], (COUT,), jnp.float32),
        "bn_beta": 0.1 * jax.random.normal(k[2], (COUT,), jnp.float32),
        # PyTorch Linear layout: weight (out_features, in_features)
        "fc1_w": jax.random.normal(k[3], (4960, 1024 * S * S), jnp.float32) * 0.02,
        "fc1_b": jax.random.normal(k[4], (4960,), jnp.float32) * 0.02,
        "fc2_w": jax.random.normal(k[5], (out_features, 4960), jnp.float32) * 0.02,
        "fc2_b": jax.random.normal(k[6], (out_features,), jnp.float32) * 0.02,
    }
    params = prepare_params(raw_params, S=S, in_channels=in_channels)

    x = jax.random.normal(k[7], (batch, in_channels, H, W), jnp.float32)

    fwd = jax.jit(partial(yolov1_forward, S=S, out_features=out_features))
    out = fwd(x, params)
    jax.block_until_ready(out)
    assert out.shape == (batch, out_features), out.shape
    assert bool(jnp.all(jnp.isfinite(out)))
    print("KERNEL_OK")
</pallas_src>

<mosaic_0001>
module attributes {stable_mosaic.version = 11 : i64} {
  func.func @conv_gemm_stats_kernel(%arg0: i32, %arg1: memref<128x256xf32, #tpu.memory_space<vmem>>, %arg2: memref<256x128xf32, #tpu.memory_space<vmem>>, %arg3: memref<128x128xf32, #tpu.memory_space<vmem>>, %arg4: memref<1x128xf32, #tpu.memory_space<vmem>>, %arg5: memref<1x128xf32, #tpu.memory_space<vmem>>) attributes {dimension_semantics = [#tpu.dimension_semantics<arbitrary>], iteration_bounds = array<i64: 1>, scalar_prefetch = 0 : i64, scratch_operands = 0 : i64, tpu.core_type = #tpu.core_type<tc>, window_params = [{transform_indices = @transform_0, window_bounds = array<i64: 128, 256>}, {pipeline_mode = #tpu.pipeline_mode<synchronous>, transform_indices = @transform_1, window_bounds = array<i64: 256, 128>}, {transform_indices = @transform_2, window_bounds = array<i64: 128, 128>}, {pipeline_mode = #tpu.pipeline_mode<synchronous>, transform_indices = @transform_3, window_bounds = array<i64: 1, 128>}, {pipeline_mode = #tpu.pipeline_mode<synchronous>, transform_indices = @transform_4, window_bounds = array<i64: 1, 128>}]} {
    %c0 = arith.constant 0 : index
    %c0_0 = arith.constant 0 : index
    %0 = vector.load %arg1[%c0, %c0_0] : memref<128x256xf32, #tpu.memory_space<vmem>>, vector<128x256xf32>
    %c0_1 = arith.constant 0 : index
    %c0_2 = arith.constant 0 : index
    %1 = vector.load %arg2[%c0_1, %c0_2] : memref<256x128xf32, #tpu.memory_space<vmem>>, vector<256x128xf32>
    %cst = arith.constant dense<0.000000e+00> : vector<128x128xf32>
    %2 = tpu.matmul %0, %1, %cst {dimension_numbers = #tpu.dot_dimension_numbers<[1], [0], [0], [1], [0, 0, 1, 1], [], []>} : vector<128x256xf32>, vector<256x128xf32>, vector<128x128xf32> -> vector<128x128xf32>
    %c0_3 = arith.constant 0 : index
    %c0_4 = arith.constant 0 : index
    %3 = vector.load %arg3[%c0_3, %c0_4] : memref<128x128xf32, #tpu.memory_space<vmem>>, vector<128x128xf32>
    tpu.vector_store %arg3[%c0_3, %c0_4], %2 {strides = array<i32>} : memref<128x128xf32, #tpu.memory_space<vmem>>, vector<128x128xf32>,
    %c0_i32 = arith.constant 0 : i32
    %4 = arith.cmpi eq, %arg0, %c0_i32 : i32
    %5 = arith.extui %4 : i1 to i32
    %c0_i32_5 = arith.constant 0 : i32
    %6 = arith.cmpi ne, %5, %c0_i32_5 : i32
    scf.if %6 {
      %cst_16 = arith.constant 0.000000e+00 : f32
      %18 = vector.broadcast %cst_16 : f32 to vector<1x128xf32>
      %c0_17 = arith.constant 0 : index
      %c0_18 = arith.constant 0 : index
      %19 = vector.load %arg4[%c0_17, %c0_18] : memref<1x128xf32, #tpu.memory_space<vmem>>, vector<1x128xf32>
      tpu.vector_store %arg4[%c0_17, %c0_18], %18 {strides = array<i32>} : memref<1x128xf32, #tpu.memory_space<vmem>>, vector<1x128xf32>,
      %cst_19 = arith.constant 0.000000e+00 : f32
      %20 = vector.broadcast %cst_19 : f32 to vector<1x128xf32>
      %c0_20 = arith.constant 0 : index
      %c0_21 = arith.constant 0 : index
      %21 = vector.load %arg5[%c0_20, %c0_21] : memref<1x128xf32, #tpu.memory_space<vmem>>, vector<1x128xf32>
      tpu.vector_store %arg5[%c0_20, %c0_21], %20 {strides = array<i32>} : memref<1x128xf32, #tpu.memory_space<vmem>>, vector<1x128xf32>,
    } else {
    }
    %c0_6 = arith.constant 0 : index
    %c0_7 = arith.constant 0 : index
    %7 = vector.load %arg4[%c0_6, %c0_7] : memref<1x128xf32, #tpu.memory_space<vmem>>, vector<1x128xf32>
    %cst_8 = arith.constant dense<0.000000e+00> : vector<128xf32>
    %8 = vector.multi_reduction <add>, %2, %cst_8 [0] : vector<128x128xf32> to vector<128xf32>
    %9 = vector.shape_cast %8 : vector<128xf32> to vector<1x128xf32>
    %10 = arith.addf %7, %9 : vector<1x128xf32>
    %c0_9 = arith.constant 0 : index
    %c0_10 = arith.constant 0 : index
    %11 = vector.load %arg4[%c0_9, %c0_10] : memref<1x128xf32, #tpu.memory_space<vmem>>, vector<1x128xf32>
    tpu.vector_store %arg4[%c0_9, %c0_10], %10 {strides = array<i32>} : memref<1x128xf32, #tpu.memory_space<vmem>>, vector<1x128xf32>,
    %c0_11 = arith.constant 0 : index
    %c0_12 = arith.constant 0 : index
    %12 = vector.load %arg5[%c0_11, %c0_12] : memref<1x128xf32, #tpu.memory_space<vmem>>, vector<1x128xf32>
    %13 = arith.mulf %2, %2 : vector<128x128xf32>
    %cst_13 = arith.constant dense<0.000000e+00> : vector<128xf32>
    %14 = vector.multi_reduction <add>, %13, %cst_13 [0] : vector<128x128xf32> to vector<128xf32>
    %15 = vector.shape_cast %14 : vector<128xf32> to vector<1x128xf32>
    %16 = arith.addf %12, %15 : vector<1x128xf32>
    %c0_14 = arith.constant 0 : index
    %c0_15 = arith.constant 0 : index
    %17 = vector.load %arg5[%c0_14, %c0_15] : memref<1x128xf32, #tpu.memory_space<vmem>>, vector<1x128xf32>
    tpu.vector_store %arg5[%c0_14, %c0_15], %16 {strides = array<i32>} : memref<1x128xf32, #tpu.memory_space<vmem>>, vector<1x128xf32>,
    return
  }
  func.func @transform_0(%arg0: i32) -> (i32, i32) {
    %c0_i32 = arith.constant 0 : i32
    %c0_i32_0 = arith.constant 0 : i32
    return %arg0, %c0_i32 : i32, i32
  }
  func.func @transform_1(%arg0: i32) -> (i32, i32) {
    %c0_i32 = arith.constant 0 : i32
    %c0_i32_0 = arith.constant 0 : i32
    %c0_i32_1 = arith.constant 0 : i32
    return %c0_i32, %c0_i32_0 : i32, i32
  }
  func.func @transform_2(%arg0: i32) -> (i32, i32) {
    %c0_i32 = arith.constant 0 : i32
    %c0_i32_0 = arith.constant 0 : i32
    return %arg0, %c0_i32 : i32, i32
  }
  func.func @transform_3(%arg0: i32) -> (i32, i32) {
    %c0_i32 = arith.constant 0 : i32
    %c0_i32_0 = arith.constant 0 : i32
    %c0_i32_1 = arith.constant 0 : i32
    return %c0_i32, %c0_i32_0 : i32, i32
  }
  func.func @transform_4(%arg0: i32) -> (i32, i32) {
    %c0_i32 = arith.constant 0 : i32
    %c0_i32_0 = arith.constant 0 : i32
    %c0_i32_1 = arith.constant 0 : i32
    return %c0_i32, %c0_i32_0 : i32, i32
  }
}

module attributes {stable_mosaic.version = 11 : i64} {
  func.func @bn_lrelu_pool_kernel(%arg0: i32, %arg1: memref<1x8x2x4x128xf32, #tpu.memory_space<vmem>>, %arg2: memref<1x128xf32, #tpu.memory_space<vmem>>, %arg3: memref<1x128xf32, #tpu.memory_space<vmem>>, %arg4: memref<1x128xf32, #tpu.memory_space<vmem>>, %arg5: memref<1x128xf32, #tpu.memory_space<vmem>>, %arg6: memref<1x4x4x128xf32, #tpu.memory_space<vmem>>) attributes {dimension_semantics = [#tpu.dimension_semantics<parallel>], iteration_bounds = array<i64: 2>, scalar_prefetch = 0 : i64, scratch_operands = 0 : i64, tpu.core_type = #tpu.core_type<tc>, window_params = [{transform_indices = @transform_0, window_bounds = array<i64: 1, 8, 2, 4, 128>}, {pipeline_mode = #tpu.pipeline_mode<synchronous>, transform_indices = @transform_1, window_bounds = array<i64: 1, 128>}, {pipeline_mode = #tpu.pipeline_mode<synchronous>, transform_indices = @transform_2, window_bounds = array<i64: 1, 128>}, {pipeline_mode = #tpu.pipeline_mode<synchronous>, transform_indices = @transform_3, window_bounds = array<i64: 1, 128>}, {pipeline_mode = #tpu.pipeline_mode<synchronous>, transform_indices = @transform_4, window_bounds = array<i64: 1, 128>}, {transform_indices = @transform_5, window_bounds = array<i64: 1, 4, 4, 128>}]} {
    %c0 = arith.constant 0 : index
    %c0_0 = arith.constant 0 : index
    %0 = vector.load %arg2[%c0, %c0_0] : memref<1x128xf32, #tpu.memory_space<vmem>>, vector<1x128xf32>
    %cst = arith.constant 7.812500e-03 : f32
    %1 = vector.broadcast %cst : f32 to vector<1x128xf32>
    %2 = arith.mulf %0, %1 : vector<1x128xf32>
    %c0_1 = arith.constant 0 : index
    %c0_2 = arith.constant 0 : index
    %3 = vector.load %arg3[%c0_1, %c0_2] : memref<1x128xf32, #tpu.memory_space<vmem>>, vector<1x128xf32>
    %cst_3 = arith.constant 7.812500e-03 : f32
    %4 = vector.broadcast %cst_3 : f32 to vector<1x128xf32>
    %5 = arith.mulf %3, %4 : vector<1x128xf32>
    %6 = arith.mulf %2, %2 : vector<1x128xf32>
    %7 = arith.subf %5, %6 : vector<1x128xf32>
    %c0_4 = arith.constant 0 : index
    %c0_5 = arith.constant 0 : index
    %8 = vector.load %arg4[%c0_4, %c0_5] : memref<1x128xf32, #tpu.memory_space<vmem>>, vector<1x128xf32>
    %cst_6 = arith.constant 9.99999974E-6 : f32
    %9 = vector.broadcast %cst_6 : f32 to vector<1x128xf32>
    %10 = arith.addf %7, %9 : vector<1x128xf32>
    %11 = math.rsqrt %10 : vector<1x128xf32>
    %12 = arith.mulf %8, %11 : vector<1x128xf32>
    %c0_7 = arith.constant 0 : index
    %c0_8 = arith.constant 0 : index
    %13 = vector.load %arg5[%c0_7, %c0_8] : memref<1x128xf32, #tpu.memory_space<vmem>>, vector<1x128xf32>
    %14 = arith.mulf %2, %12 : vector<1x128xf32>
    %15 = arith.subf %13, %14 : vector<1x128xf32>
    %c0_9 = arith.constant 0 : index
    %c0_10 = arith.constant 0 : index
    %c0_11 = arith.constant 0 : index
    %c0_12 = arith.constant 0 : index
    %c0_13 = arith.constant 0 : index
    %16 = vector.load %arg1[%c0_9, %c0_10, %c0_11, %c0_12, %c0_13] : memref<1x8x2x4x128xf32, #tpu.memory_space<vmem>>, vector<1x8x2x4x128xf32>
    %17 = vector.shape_cast %16 : vector<1x8x2x4x128xf32> to vector<8x2x4x128xf32>
    %18 = vector.shape_cast %12 : vector<1x128xf32> to vector<1x1x1x128xf32>
    %19 = vector.broadcast %18 : vector<1x1x1x128xf32> to vector<8x2x4x128xf32>
    %20 = arith.mulf %17, %19 : vector<8x2x4x128xf32>
    %21 = vector.shape_cast %15 : vector<1x128xf32> to vector<1x1x1x128xf32>
    %22 = vector.broadcast %21 : vector<1x1x1x128xf32> to vector<8x2x4x128xf32>
    %23 = arith.addf %20, %22 : vector<8x2x4x128xf32>
    %cst_14 = arith.constant 0.000000e+00 : f32
    %24 = vector.broadcast %cst_14 : f32 to vector<8x2x4x128xf32>
    %25 = arith.cmpf oge, %23, %24 : vector<8x2x4x128xf32>
    %cst_15 = arith.constant 1.000000e-01 : f32
    %26 = vector.broadcast %cst_15 : f32 to vector<8x2x4x128xf32>
    %27 = arith.mulf %26, %23 : vector<8x2x4x128xf32>
    %28 = arith.select %25, %23, %27 : vector<8x2x4x128xi1>, vector<8x2x4x128xf32>
    %29 = vector.shape_cast %28 : vector<8x2x4x128xf32> to vector<4x2x2x4x128xf32>
    %30 = vector.extract_strided_slice %29 {offsets = [0, 0, 0, 0, 0], sizes = [4, 1, 1, 4, 128], strides = [1, 1, 1, 1, 1]} : vector<4x2x2x4x128xf32> to vector<4x1x1x4x128xf32>
    %31 = vector.shape_cast %30 : vector<4x1x1x4x128xf32> to vector<4x4x128xf32>
    %32 = vector.extract_strided_slice %29 {offsets = [0, 0, 1, 0, 0], sizes = [4, 1, 1, 4, 128], strides = [1, 1, 1, 1, 1]} : vector<4x2x2x4x128xf32> to vector<4x1x1x4x128xf32>
    %33 = vector.shape_cast %32 : vector<4x1x1x4x128xf32> to vector<4x4x128xf32>
    %34 = arith.maximumf %31, %33 : vector<4x4x128xf32>
    %35 = vector.extract_strided_slice %29 {offsets = [0, 1, 0, 0, 0], sizes = [4, 1, 1, 4, 128], strides = [1, 1, 1, 1, 1]} : vector<4x2x2x4x128xf32> to vector<4x1x1x4x128xf32>
    %36 = vector.shape_cast %35 : vector<4x1x1x4x128xf32> to vector<4x4x128xf32>
    %37 = vector.extract_strided_slice %29 {offsets = [0, 1, 1, 0, 0], sizes = [4, 1, 1, 4, 128], strides = [1, 1, 1, 1, 1]} : vector<4x2x2x4x128xf32> to vector<4x1x1x4x128xf32>
    %38 = vector.shape_cast %37 : vector<4x1x1x4x128xf32> to vector<4x4x128xf32>
    %39 = arith.maximumf %36, %38 : vector<4x4x128xf32>
    %40 = arith.maximumf %34, %39 : vector<4x4x128xf32>
    %c0_16 = arith.constant 0 : index
    %c0_17 = arith.constant 0 : index
    %c0_18 = arith.constant 0 : index
    %c0_19 = arith.constant 0 : index
    %41 = vector.load %arg6[%c0_16, %c0_17, %c0_18, %c0_19] : memref<1x4x4x128xf32, #tpu.memory_space<vmem>>, vector<1x4x4x128xf32>
    %42 = vector.shape_cast %41 : vector<1x4x4x128xf32> to vector<4x4x128xf32>
    %43 = vector.shape_cast %40 : vector<4x4x128xf32> to vector<1x4x4x128xf32>
    tpu.vector_store %arg6[%c0_16, %c0_17, %c0_18, %c0_19], %43 {strides = array<i32>} : memref<1x4x4x128xf32, #tpu.memory_space<vmem>>, vector<1x4x4x128xf32>,
    return
  }
  func.func @transform_0(%arg0: i32) -> (i32, i32, i32, i32, i32) {
    %c0_i32 = arith.constant 0 : i32
    %c0_i32_0 = arith.constant 0 : i32
    %c0_i32_1 = arith.constant 0 : i32
    %c0_i32_2 = arith.constant 0 : i32
    %c0_i32_3 = arith.constant 0 : i32
    return %arg0, %c0_i32, %c0_i32_0, %c0_i32_1, %c0_i32_2 : i32, i32, i32, i32, i32
  }
  func.func @transform_1(%arg0: i32) -> (i32, i32) {
    %c0_i32 = arith.constant 0 : i32
    %c0_i32_0 = arith.constant 0 : i32
    %c0_i32_1 = arith.constant 0 : i32
    return %c0_i32, %c0_i32_0 : i32, i32
  }
  func.func @transform_2(%arg0: i32) -> (i32, i32) {
    %c0_i32 = arith.constant 0 : i32
    %c0_i32_0 = arith.constant 0 : i32
    %c0_i32_1 = arith.constant 0 : i32
    return %c0_i32, %c0_i32_0 : i32, i32
  }
  func.func @transform_3(%arg0: i32) -> (i32, i32) {
    %c0_i32 = arith.constant 0 : i32
    %c0_i32_0 = arith.constant 0 : i32
    %c0_i32_1 = arith.constant 0 : i32
    return %c0_i32, %c0_i32_0 : i32, i32
  }
  func.func @transform_4(%arg0: i32) -> (i32, i32) {
    %c0_i32 = arith.constant 0 : i32
    %c0_i32_0 = arith.constant 0 : i32
    %c0_i32_1 = arith.constant 0 : i32
    return %c0_i32, %c0_i32_0 : i32, i32
  }
  func.func @transform_5(%arg0: i32) -> (i32, i32, i32, i32) {
    %c0_i32 = arith.constant 0 : i32
    %c0_i32_0 = arith.constant 0 : i32
    %c0_i32_1 = arith.constant 0 : i32
    %c0_i32_2 = arith.constant 0 : i32
    return %arg0, %c0_i32, %c0_i32_0, %c0_i32_1 : i32, i32, i32, i32
  }
}

module attributes {stable_mosaic.version = 11 : i64} {
  func.func @fc_fused_kernel(%arg0: i32, %arg1: i32, %arg2: memref<2x512xf32, #tpu.memory_space<vmem>>, %arg3: memref<512x2560xf32, #tpu.memory_space<vmem>>, %arg4: memref<1x2560xf32, #tpu.memory_space<vmem>>, %arg5: memref<2560x128xf32, #tpu.memory_space<vmem>>, %arg6: memref<1x128xf32, #tpu.memory_space<vmem>>, %arg7: memref<1x2x128xf32, #tpu.memory_space<vmem>>, %arg8: memref<2x2560xf32, #tpu.memory_space<vmem>>) attributes {dimension_semantics = [#tpu.dimension_semantics<parallel>, #tpu.dimension_semantics<arbitrary>], iteration_bounds = array<i64: 2, 2>, scalar_prefetch = 0 : i64, scratch_operands = 1 : i64, tpu.core_type = #tpu.core_type<tc>, window_params = [{transform_indices = @transform_0, window_bounds = array<i64: 2, 512>}, {transform_indices = @transform_1, window_bounds = array<i64: 512, 2560>}, {transform_indices = @transform_2, window_bounds = array<i64: 1, 2560>}, {transform_indices = @transform_3, window_bounds = array<i64: 2560, 128>}, {pipeline_mode = #tpu.pipeline_mode<synchronous>, transform_indices = @transform_4, window_bounds = array<i64: 1, 128>}, {transform_indices = @transform_5, window_bounds = array<i64: 1, 2, 128>}]} {
    %c0_i32 = arith.constant 0 : i32
    %0 = arith.cmpi eq, %arg1, %c0_i32 : i32
    %1 = arith.extui %0 : i1 to i32
    %c0_i32_0 = arith.constant 0 : i32
    %2 = arith.cmpi ne, %1, %c0_i32_0 : i32
    scf.if %2 {
      %cst_9 = arith.constant 0.000000e+00 : f32
      %12 = vector.broadcast %cst_9 : f32 to vector<2x2560xf32>
      %c0_10 = arith.constant 0 : index
      %c0_11 = arith.constant 0 : index
      %13 = vector.load %arg8[%c0_10, %c0_11] : memref<2x2560xf32, #tpu.memory_space<vmem>>, vector<2x2560xf32>
      tpu.vector_store %arg8[%c0_10, %c0_11], %12 {strides = array<i32>} : memref<2x2560xf32, #tpu.memory_space<vmem>>, vector<2x2560xf32>,
    } else {
    }
    %c0 = arith.constant 0 : index
    %c0_1 = arith.constant 0 : index
    %3 = vector.load %arg8[%c0, %c0_1] : memref<2x2560xf32, #tpu.memory_space<vmem>>, vector<2x2560xf32>
    %c0_2 = arith.constant 0 : index
    %c0_3 = arith.constant 0 : index
    %4 = vector.load %arg2[%c0_2, %c0_3] : memref<2x512xf32, #tpu.memory_space<vmem>>, vector<2x512xf32>
    %c0_4 = arith.constant 0 : index
    %c0_5 = arith.constant 0 : index
    %5 = vector.load %arg3[%c0_4, %c0_5] : memref<512x2560xf32, #tpu.memory_space<vmem>>, vector<512x2560xf32>
    %cst = arith.constant dense<0.000000e+00> : vector<2x2560xf32>
    %6 = tpu.matmul %4, %5, %cst {dimension_numbers = #tpu.dot_dimension_numbers<[1], [0], [0], [1], [0, 0, 1, 1], [], []>} : vector<2x512xf32>, vector<512x2560xf32>, vector<2x2560xf32> -> vector<2x2560xf32>
    %7 = arith.addf %3, %6 : vector<2x2560xf32>
    %c0_6 = arith.constant 0 : index
    %c0_7 = arith.constant 0 : index
    %8 = vector.load %arg8[%c0_6, %c0_7] : memref<2x2560xf32, #tpu.memory_space<vmem>>, vector<2x2560xf32>
    tpu.vector_store %arg8[%c0_6, %c0_7], %7 {strides = array<i32>} : memref<2x2560xf32, #tpu.memory_space<vmem>>, vector<2x2560xf32>,
    %c1_i32 = arith.constant 1 : i32
    %9 = arith.cmpi eq, %arg1, %c1_i32 : i32
    %10 = arith.extui %9 : i1 to i32
    %c0_i32_8 = arith.constant 0 : i32
    %11 = arith.cmpi ne, %10, %c0_i32_8 : i32
    scf.if %11 {
      %c0_9 = arith.constant 0 : index
      %c0_10 = arith.constant 0 : index
      %12 = vector.load %arg8[%c0_9, %c0_10] : memref<2x2560xf32, #tpu.memory_space<vmem>>, vector<2x2560xf32>
      %c0_11 = arith.constant 0 : index
      %c0_12 = arith.constant 0 : index
      %13 = vector.load %arg4[%c0_11, %c0_12] : memref<1x2560xf32, #tpu.memory_space<vmem>>, vector<1x2560xf32>
      %14 = vector.broadcast %13 : vector<1x2560xf32> to vector<2x2560xf32>
      %15 = arith.addf %12, %14 : vector<2x2560xf32>
      %cst_13 = arith.constant 0.000000e+00 : f32
      %16 = vector.broadcast %cst_13 : f32 to vector<2x2560xf32>
      %17 = arith.cmpf oge, %15, %16 : vector<2x2560xf32>
      %cst_14 = arith.constant 1.000000e-01 : f32
      %18 = vector.broadcast %cst_14 : f32 to vector<2x2560xf32>
      %19 = arith.mulf %18, %15 : vector<2x2560xf32>
      %20 = arith.select %17, %15, %19 : vector<2x2560xi1>, vector<2x2560xf32>
      %c0_15 = arith.constant 0 : index
      %c0_16 = arith.constant 0 : index
      %21 = vector.load %arg5[%c0_15, %c0_16] : memref<2560x128xf32, #tpu.memory_space<vmem>>, vector<2560x128xf32>
      %cst_17 = arith.constant dense<0.000000e+00> : vector<2x128xf32>
      %22 = tpu.matmul %20, %21, %cst_17 {dimension_numbers = #tpu.dot_dimension_numbers<[1], [0], [0], [1], [0, 0, 1, 1], [], []>} : vector<2x2560xf32>, vector<2560x128xf32>, vector<2x128xf32> -> vector<2x128xf32>
      %c0_18 = arith.constant 0 : index
      %c0_19 = arith.constant 0 : index
      %23 = vector.load %arg6[%c0_18, %c0_19] : memref<1x128xf32, #tpu.memory_space<vmem>>, vector<1x128xf32>
      %c0_i32_20 = arith.constant 0 : i32
      %24 = arith.cmpi eq, %arg0, %c0_i32_20 : i32
      %cst_21 = arith.constant 1.000000e+00 : f32
      %cst_22 = arith.constant 0.000000e+00 : f32
      %25 = arith.select %24, %cst_21, %cst_22 : f32
      %26 = vector.broadcast %25 : f32 to vector<1x128xf32>
      %27 = arith.mulf %23, %26 : vector<1x128xf32>
      %28 = vector.broadcast %27 : vector<1x128xf32> to vector<2x128xf32>
      %29 = arith.addf %22, %28 : vector<2x128xf32>
      %c0_23 = arith.constant 0 : index
      %c0_24 = arith.constant 0 : index
      %c0_25 = arith.constant 0 : index
      %30 = vector.load %arg7[%c0_23, %c0_24, %c0_25] : memref<1x2x128xf32, #tpu.memory_space<vmem>>, vector<1x2x128xf32>
      %31 = vector.shape_cast %30 : vector<1x2x128xf32> to vector<2x128xf32>
      %32 = vector.shape_cast %29 : vector<2x128xf32> to vector<1x2x128xf32>
      tpu.vector_store %arg7[%c0_23, %c0_24, %c0_25], %32 {strides = array<i32>} : memref<1x2x128xf32, #tpu.memory_space<vmem>>, vector<1x2x128xf32>,
    } else {
    }
    return
  }
  func.func @transform_0(%arg0: i32, %arg1: i32) -> (i32, i32) {
    %c0_i32 = arith.constant 0 : i32
    %c0_i32_0 = arith.constant 0 : i32
    return %c0_i32, %arg1 : i32, i32
  }
  func.func @transform_1(%arg0: i32, %arg1: i32) -> (i32, i32) {
    %c0_i32 = arith.constant 0 : i32
    return %arg1, %arg0 : i32, i32
  }
  func.func @transform_2(%arg0: i32, %arg1: i32) -> (i32, i32) {
    %c0_i32 = arith.constant 0 : i32
    %c0_i32_0 = arith.constant 0 : i32
    return %c0_i32, %arg0 : i32, i32
  }
  func.func @transform_3(%arg0: i32, %arg1: i32) -> (i32, i32) {
    %c0_i32 = arith.constant 0 : i32
    %c0_i32_0 = arith.constant 0 : i32
    return %arg0, %c0_i32 : i32, i32
  }
  func.func @transform_4(%arg0: i32, %arg1: i32) -> (i32, i32) {
    %c0_i32 = arith.constant 0 : i32
    %c0_i32_0 = arith.constant 0 : i32
    %c0_i32_1 = arith.constant 0 : i32
    return %c0_i32, %c0_i32_0 : i32, i32
  }
  func.func @transform_5(%arg0: i32, %arg1: i32) -> (i32, i32, i32) {
    %c0_i32 = arith.constant 0 : i32
    %c0_i32_0 = arith.constant 0 : i32
    %c0_i32_1 = arith.constant 0 : i32
    return %arg0, %c0_i32, %c0_i32_0 : i32, i32, i32
  }
}

</mosaic_0001>

<bundles_post_ra>
// kernel: yolov1_forward.4
= control target key start
LH: loop header
LB: loop body
LE: loop exit
PB: predicated region body
PF: predicated region fallthrough
CT: control target
= control target key end

     0   :  { %s478_s18 = smov 0   ;;  %s575_s0 = inlined_call_operand.vmem [shape: f32[2,8,2,4,128], index: 0, kind: input, shape index: {}]   ;;  %s576_s1 = inlined_call_operand.vmem [shape: f32[1,128], index: 1, kind: input, shape index: {}]   ;;  %s577_s2 = inlined_call_operand.vmem [shape: f32[1,128], index: 2, kind: input, shape index: {}]   ;;  %s578_s3 = inlined_call_operand.vmem [shape: f32[1,128], index: 3, kind: input, shape index: {}]   ;;  %s579_s4 = inlined_call_operand.vmem [shape: f32[1,128], index: 4, kind: input, shape index: {}]   ;;  %s580_s5 = inlined_call_operand.vmem [shape: f32[2,4,4,128], index: 5, kind: output, shape index: {}]  }
   0x1 LB: > { %s417_s19 = sadd.s32 4294967295, %s446_s18   ;;  %p421_p0 = scmp.ge.s32.totalorder %s446_s18, 1  ;;  %s446_s18 = sphi %s478_s18, %s15_s18  }
   0x2   : > { %p187_p1 = scmp.lt.s32.totalorder %s446_s18, 3 }
   0x4   : > { %p188_p2 = pnand %p421_p0, %p187_p1 }
   0x5   : > { %v225_v0 = vld [vmem:[%s576_s1] sm:$0x1] (!%p188_p2)  ;;  %p215_p3 = scmp.lt.s32.totalorder (!%p188_p2), %s417_s19, 1  ;;  %v255_v7 = vlaneseq (!%p188_p2) }
   0x6   : > { %191 = sbr.rel (%p188_p2) target bundleno = 58 (0x3a), region = 40  ;;  %v227_v1 = vld [vmem:[%s577_s2] sm:$0x1] (!%p188_p2)  ;;  %v226_v2 = vmul.f32 (!%p188_p2), 0.0078125, %v225_v0 }
   0x7   : > { %v228_v3 = vmul.f32 (!%p188_p2), 0.0078125, %v227_v1  ;;  %v256_v8 = vshrl.u32 (!%p188_p2), %v255_v7, 7  ;;  %v231_v9 = vld [vmem:[%s578_s3] sm:$0x1] (!%p188_p2) }
   0x8   : > { %v229_v4 = vmul.f32 (!%p188_p2), %v226_v2, %v226_v2  ;;  %v235_v13 = vld [vmem:[%s579_s4] sm:$0x1] (!%p188_p2) }
   0x9   : > { %v257_v10 = vsub.s32 (!%p188_p2), 0, %v256_v8 }
   0xa   : > { %v230_v5 = vsub.f32 (!%p188_p2), %v228_v3, %v229_v4 }
   0xc   : > { %v232_v6 = vadd.f32 (!%p188_p2), 1e-05, %v230_v5 }
   0xd   : > { %s582_s19 = smov (!%p215_p3, %s417_s19), 1 }
   0xe   : > { %438 = vrsqrt.f32 %v232_v6  ;;  %s428_s24 = sshll.u32 %s582_s19, 6  ;;  %s429_s7 = sshll.u32 %s582_s19, 4 }
   0xf   : > { %s498_s27 = scalar_lea.vmem %s575_s0, %s428_s24  ;;  %s552_s10 = scalar_lea.vmem %s580_s5, %s429_s7 }
  0x10   : > { %v238_v14 = vld [vmem:[%s498_s27] sm:$0xf]  ;;  %v239_v15 = vld [vmem:[%s498_s27 + $0x4] sm:$0xf]  ;;  %v240_v16 = vld [vmem:[%s498_s27 + $0x8] sm:$0xf] }
  0x11   : > { %v241_v17 = vld [vmem:[%s498_s27 + $0xc] sm:$0xf]  ;;  %v242_v18 = vld [vmem:[%s498_s27 + $0x10] sm:$0xf]  ;;  %v243_v21 = vld [vmem:[%s498_s27 + $0x14] sm:$0xf] }
  0x12   : > { %v244_v22 = vld [vmem:[%s498_s27 + $0x18] sm:$0xf]  ;;  %v245_v23 = vld [vmem:[%s498_s27 + $0x1c] sm:$0xf]  ;;  %v246_v24 = vld [vmem:[%s498_s27 + $0x20] sm:$0xf] }
  0x13   : > { %v247_v25 = vld [vmem:[%s498_s27 + $0x24] sm:$0xf]  ;;  %v248_v26 = vld [vmem:[%s498_s27 + $0x28] sm:$0xf]  ;;  %v249_v31 = vld [vmem:[%s498_s27 + $0x2c] sm:$0xf] }
  0x14   : > { %v250_v32 = vld [vmem:[%s498_s27 + $0x30] sm:$0xf]  ;;  %v251_v33 = vld [vmem:[%s498_s27 + $0x34] sm:$0xf] }
  0x18   : > { %v439_v11 = vpop.eup %438 }
  0x19   : > { %v234_v12 = vmul.f32 %v439_v11, %v231_v9 }
  0x1b   : > { %v236_v19 = vmul.f32 %v234_v12, %v226_v2  ;;  %v511_v20 = vrot.slane %v234_v12, %v257_v10 }
  0x1d   : > { %v237_v27 = vsub.f32 %v235_v13, %v236_v19  ;;  %v260_v28 = vmul.f32 %v511_v20, %v238_v14  ;;  %v261_v29 = vmul.f32 %v511_v20, %v239_v15  ;;  %v262_v30 = vmul.f32 %v511_v20, %v240_v16  ;;  %v253_v15 = vld [vmem:[%s498_s27 + $0x3c] sm:$0xf] }
  0x1e   : > { %v263_v34 = vmul.f32 %v511_v20, %v241_v17  ;;  %v264_v35 = vmul.f32 %v511_v20, %v242_v18  ;;  %v265_v36 = vmul.f32 %v511_v20, %v243_v21  ;;  %v266_v37 = vmul.f32 %v511_v20, %v244_v22 }
  0x1f   : > { %v529_v38 = vrot.slane %v237_v27, %v257_v10  ;;  %v267_v39 = vmul.f32 %v511_v20, %v245_v23  ;;  %v268_v40 = vmul.f32 %v511_v20, %v246_v24  ;;  %v269_v41 = vmul.f32 %v511_v20, %v247_v25  ;;  %v252_v10 = vld [vmem:[%s498_s27 + $0x38] sm:$0xf] }
  0x20   : > { %v270_v42 = vmul.f32 %v511_v20, %v248_v26  ;;  %v271_v43 = vmul.f32 %v511_v20, %v249_v31  ;;  %v272_v44 = vmul.f32 %v511_v20, %v250_v32  ;;  %v273_v45 = vmul.f32 %v511_v20, %v251_v33 }
  0x21   : > { %v282_v46 = vadd.f32 %v529_v38, %v260_v28  ;;  %v283_v47 = vadd.f32 %v529_v38, %v261_v29  ;;  %v284_v48 = vadd.f32 %v529_v38, %v262_v30  ;;  %v285_v49 = vadd.f32 %v529_v38, %v263_v34 }
  0x22   : > { %v286_v50 = vadd.f32 %v529_v38, %v264_v35  ;;  %v287_v51 = vadd.f32 %v529_v38, %v265_v36  ;;  %v288_v52 = vadd.f32 %v529_v38, %v266_v37  ;;  %v289_v53 = vadd.f32 %v529_v38, %v267_v39 }
  0x23   : > { %vm298_vm0 = vcmp.ge.f32.partialorder %v282_v46, 0.0  ;;  %vm299_vm1 = vcmp.ge.f32.partialorder %v283_v47, 0.0  ;;  %vm300_vm2 = vcmp.ge.f32.partialorder %v284_v48, 0.0  ;;  %vm301_vm3 = vcmp.ge.f32.partialorder %v285_v49, 0.0 }
  0x24   : > { %v314_v54 = vmul.f32 0.1, %v282_v46  ;;  %v315_v55 = vmul.f32 0.1, %v283_v47  ;;  %v316_v56 = vmul.f32 0.1, %v284_v48  ;;  %v290_v57 = vadd.f32 %v529_v38, %v268_v40 }
  0x25   : > { %v317_v58 = vmul.f32 0.1, %v285_v49  ;;  %vm302_vm4 = vcmp.ge.f32.partialorder %v286_v50, 0.0  ;;  %vm303_vm5 = vcmp.ge.f32.partialorder %v287_v51, 0.0  ;;  %vm304_vm6 = vcmp.ge.f32.partialorder %v288_v52, 0.0 }
  0x26   : > { %v330_v59 = vsel %vm298_vm0, %v282_v46, %v314_v54  ;;  %v331_v60 = vsel %vm299_vm1, %v283_v47, %v315_v55  ;;  %v332_v61 = vsel %vm300_vm2, %v284_v48, %v316_v56  ;;  %vm305_vm7 = vcmp.ge.f32.partialorder %v289_v53, 0.0 }
  0x27   : > { %v333_v62 = vsel %vm301_vm3, %v285_v49, %v317_v58  ;;  %v346_v63 = vmax.f32 %v330_v59, %v331_v60  ;;  %v318_v0 = vmul.f32 0.1, %v286_v50  ;;  %v319_v1 = vmul.f32 0.1, %v287_v51 }
  0x28   : > { %v350_v2 = vmax.f32 %v332_v61, %v333_v62  ;;  %v320_v3 = vmul.f32 0.1, %v288_v52  ;;  %v321_v4 = vmul.f32 0.1, %v289_v53  ;;  %v291_v5 = vadd.f32 %v529_v38, %v269_v41 }
  0x29   : > { %v334_v6 = vsel %vm302_vm4, %v286_v50, %v318_v0  ;;  %v335_v7 = vsel %vm303_vm5, %v287_v51, %v319_v1  ;;  %v292_v8 = vadd.f32 %v529_v38, %v270_v42  ;;  %v293_v9 = vadd.f32 %v529_v38, %v271_v43 }
  0x2a   : > { %v354_v11 = vmax.f32 %v346_v63, %v350_v2  ;;  %v336_v12 = vsel %vm304_vm6, %v288_v52, %v320_v3  ;;  %v337_v13 = vsel %vm305_vm7, %v289_v53, %v321_v4  ;;  %v347_v14 = vmax.f32 %v334_v6, %v335_v7 }
  0x2b   : > { %v351_v16 = vmax.f32 %v336_v12, %v337_v13  ;;  %vm306_vm8 = vcmp.ge.f32.partialorder %v290_v57, 0.0  ;;  %vm307_vm9 = vcmp.ge.f32.partialorder %v291_v5, 0.0  ;;  %vm308_vm10 = vcmp.ge.f32.partialorder %v292_v8, 0.0 }
  0x2c   : > { %358 = vst [vmem:[%s552_s10] sm:$0xf] %v354_v11  ;;  %vm309_vm11 = vcmp.ge.f32.partialorder %v293_v9, 0.0  ;;  %v322_v17 = vmul.f32 0.1, %v290_v57  ;;  %v323_v18 = vmul.f32 0.1, %v291_v5  ;;  %v274_v19 = vmul.f32 %v511_v20, %v252_v10 }
  0x2d   : > { %v355_v21 = vmax.f32 %v347_v14, %v351_v16  ;;  %v324_v22 = vmul.f32 0.1, %v292_v8  ;;  %v325_v23 = vmul.f32 0.1, %v293_v9  ;;  %v275_v24 = vmul.f32 %v511_v20, %v253_v15 }
  0x2e   : > { %v338_v25 = vsel %vm306_vm8, %v290_v57, %v322_v17  ;;  %v339_v26 = vsel %vm307_vm9, %v291_v5, %v323_v18  ;;  %v294_v27 = vadd.f32 %v529_v38, %v272_v44  ;;  %v295_v28 = vadd.f32 %v529_v38, %v273_v45 }
  0x2f   : > { %359 = vst [vmem:[%s552_s10 + $0x4] sm:$0xf] %v355_v21  ;;  %v340_v29 = vsel %vm308_vm10, %v292_v8, %v324_v22  ;;  %v341_v30 = vsel %vm309_vm11, %v293_v9, %v325_v23  ;;  %v348_v31 = vmax.f32 %v338_v25, %v339_v26  ;;  %v296_v32 = vadd.f32 %v529_v38, %v274_v19 }
  0x30   : > { %v352_v33 = vmax.f32 %v340_v29, %v341_v30  ;;  %v297_v34 = vadd.f32 %v529_v38, %v275_v24  ;;  %vm310_vm12 = vcmp.ge.f32.partialorder %v294_v27, 0.0  ;;  %vm311_vm13 = vcmp.ge.f32.partialorder %v295_v28, 0.0 }
  0x31   : > { %vm312_vm14 = vcmp.ge.f32.partialorder %v296_v32, 0.0  ;;  %v326_v20 = vmul.f32 0.1, %v294_v27  ;;  %v327_v35 = vmul.f32 0.1, %v295_v28 }
  0x32   : > { %v356_v36 = vmax.f32 %v348_v31, %v352_v33  ;;  %vm313_vm15 = vcmp.ge.f32.partialorder %v297_v34, 0.0  ;;  %v328_v37 = vmul.f32 0.1, %v296_v32  ;;  %v329_v39 = vmul.f32 0.1, %v297_v34 }
  0x33   : > { %v342_v40 = vsel %vm310_vm12, %v294_v27, %v326_v20  ;;  %v343_v41 = vsel %vm311_vm13, %v295_v28, %v327_v35 }
  0x34   : > { %360 = vst [vmem:[%s552_s10 + $0x8] sm:$0xf] %v356_v36  ;;  %v344_v42 = vsel %vm312_vm14, %v296_v32, %v328_v37  ;;  %v345_v43 = vsel %vm313_vm15, %v297_v34, %v329_v39  ;;  %v349_v44 = vmax.f32 %v342_v40, %v343_v41 }
  0x35   : > { %v353_v45 = vmax.f32 %v344_v42, %v345_v43 }
  0x37   : > { %v357_v46 = vmax.f32 %v349_v44, %v353_v45 }
  0x39   : > { %361 = vst [vmem:[%s552_s10 + $0xc] sm:$0xf] %v357_v46 }
  0x3a PF: > { %s15_s18 = sadd.s32 1, %s446_s18  }
  0x3b   : > { %p12_p4 = scmp.ge.s32.totalorder %s15_s18, 4  }
  0x3d   :  { %14 = sbr.rel (!%p12_p4) target bundleno = 1 (0x1), region = 70 }

// kernel: yolov1_forward.3
= control target key start
LH: loop header
LB: loop body
LE: loop exit
PB: predicated region body
PF: predicated region fallthrough
CT: control target
= control target key end

     0   :  { %10 = vsyncpa [#allocation3], 0  ;;  %s492_s15 = smov [#allocation2]   ;;  %s713_s0 = inlined_call_operand.vmem [shape: f32[128,256], index: 0, kind: input, shape index: {}]   ;;  %s714_s1 = inlined_call_operand.hbm [shape: f32[256,128], index: 1, kind: input, shape index: {}]   ;;  %s715_s2 = inlined_call_operand.vmem [shape: f32[128,128], index: 2, kind: output, shape index: {0}]   ;;  %s716_s3 = inlined_call_operand.vmem [shape: f32[1,128], index: 3, kind: output, shape index: {1}]   ;;  %s717_s4 = inlined_call_operand.vmem [shape: f32[1,128], index: 4, kind: output, shape index: {2}]  }
   0x1   :  { %s18_s16 = sshll.u32 %s492_s15, 4  ;;  %s468_s19 = scalar_lea.hbm %s714_s1, 4096  ;;  %s19_s16 = int_to_ptr.vmem [resolvable:$true] %s18_s16 }
   0x2   :  { %p469_p0 = scmp.ne.s32.totalorder %s714_s1, %s468_s19  ;;  %p472_p1 = scmp.lt.u32.totalorder %s468_s19, %s714_s1 }
   0x4   :  { %p474_p2 = pnand %p472_p1, %p469_p0 }
   0x6   :  { %477 = shalt.err (!%p474_p2)
}
   0x7   :  { %s478_s24 = scalar_lea.vmem %s19_s16, 4096  ;;  %p483_p4 = scmp.lt.s32.totalorder %s19_s16, %s19_s16 }
   0x8   :  { %p479_p3 = scmp.ne.s32.totalorder %s19_s16, %s478_s24  ;;  %p484_p5 = scmp.lt.s32.totalorder %s478_s24, %s478_s24 }
   0xa   :  { %p485_p6 = por %p484_p5, %p483_p4 }
   0xc   :  { %p486_p7 = pnand %p485_p6, %p479_p3 }
   0xe   :  { %489 = shalt.err (!%p486_p7)
}
   0xf   :  { %s493_s25 = smov 128   ;;  %s494_s26 = smov 8  }
  0x10   :  { %24 = dma.hbm_to_vmem [thread:$0]  %s714_s1, 4096, %s19_s16, [#allocation3], %s493_s25, %s493_s25, %s494_s26  }
  0x11   :  { %490 = dma.done.wait [#allocation3], 4096  }
  0x12   :  { %491 = vsyncadd [#allocation3], 4294963200  ;;  %v76_v0 = vld [vmem:[#allocation2 + $0x80] sm:$0xff]  ;;  %v77_v1 = vld [vmem:[#allocation2 + $0x88] sm:$0xff] }
  0x13   :  { %v60_v2 = vld [vmem:[#allocation2] sm:$0xff]  ;;  %v416_v3 = vpack.c.bf16 %v77_v1, %v76_v0  ;;  %v61_v4 = vld [vmem:[#allocation2 + $0x8] sm:$0xff]  ;;  %v78_v5 = vld [vmem:[#allocation2 + $0x90] sm:$0xff] }
  0x14   :  { %v79_v6 = vld [vmem:[#allocation2 + $0x98] sm:$0xff]  ;;  %v418_v7 = vpack.c.bf16 %v61_v4, %v60_v2  ;;  %v62_v9 = vld [vmem:[#allocation2 + $0x10] sm:$0xff]  ;;  %v80_v11 = vld [vmem:[#allocation2 + $0xa0] sm:$0xff] }
  0x15   :  { %v420_v8 = vpack.c.bf16 %v79_v6, %v78_v5  ;;  %v63_v10 = vld [vmem:[#allocation2 + $0x18] sm:$0xff]  ;;  %417 = vmatprep.subr.bf16.mxu0 %v416_v3  ;;  %v81_v12 = vld [vmem:[#allocation2 + $0xa8] sm:$0xff]  ;;  %448 = vmatprep.subr.bf16.mxu1 %v416_v3  ;;  %v64_v15 = vld [vmem:[#allocation2 + $0x20] sm:$0xff] }
  0x16   :  { %419 = vmatpush3.bf16.msra.mxu0 %v418_v7  ;;  %v422_v13 = vpack.c.bf16 %v63_v10, %v62_v9  ;;  %456 = vmatpush3.bf16.msra.mxu1 %v418_v7  ;;  %v424_v14 = vpack.c.bf16 %v81_v12, %v80_v11  ;;  %v65_v16 = vld [vmem:[#allocation2 + $0x28] sm:$0xff]  ;;  %v82_v17 = vld [vmem:[#allocation2 + $0xb0] sm:$0xff]  ;;  %v83_v18 = vld [vmem:[#allocation2 + $0xb8] sm:$0xff] }
  0x17   :  { %421 = vmatprep.subr.bf16.mxu0 %v420_v8  ;;  %449 = vmatprep.subr.bf16.mxu1 %v420_v8  ;;  %v426_v19 = vpack.c.bf16 %v65_v16, %v64_v15  ;;  %v428_v20 = vpack.c.bf16 %v83_v18, %v82_v17  ;;  %v66_v21 = vld [vmem:[#allocation2 + $0x30] sm:$0xff]  ;;  %v67_v22 = vld [vmem:[#allocation2 + $0x38] sm:$0xff]  ;;  %v84_v23 = vld [vmem:[#allocation2 + $0xc0] sm:$0xff]  ;;  %v495_v16 = vmov 0.0  }
  0x18   :  { %v85_v24 = vld [vmem:[#allocation2 + $0xc8] sm:$0xff]  ;;  %v430_v26 = vpack.c.bf16 %v67_v22, %v66_v21  ;;  %v68_v28 = vld [vmem:[#allocation2 + $0x40] sm:$0xff]  ;;  %v86_v31 = vld [vmem:[#allocation2 + $0xd0] sm:$0xff]  ;;  %257 = vst [vmem:[%s716_s3] sm:$0x1] %v495_v16 }
  0x19   :  { %v29_v25 = vld [vmem:[%s713_s0 + $0x8] sm:$0xff]  ;;  %v432_v27 = vpack.c.bf16 %v85_v24, %v84_v23  ;;  %v87_v32 = vld [vmem:[#allocation2 + $0xd8] sm:$0xff]  ;;  %v70_v35 = vld [vmem:[#allocation2 + $0x50] sm:$0xff]  ;;  %258 = vst [vmem:[%s717_s4] sm:$0x1] %v495_v16 }
  0x1a   :  { %423 = vmatpush3.bf16.msra.mxu0 %v422_v13  ;;  %457 = vmatpush3.bf16.msra.mxu1 %v422_v13  ;;  %v69_v29 = vld [vmem:[#allocation2 + $0x48] sm:$0xff]  ;;  %v436_v34 = vpack.c.bf16 %v87_v32, %v86_v31  ;;  %v71_v36 = vld [vmem:[#allocation2 + $0x58] sm:$0xff]  ;;  %v88_v37 = vld [vmem:[#allocation2 + $0xe0] sm:$0xff] }
  0x1b   :  { %425 = vmatprep.subr.bf16.mxu0 %v424_v14  ;;  %450 = vmatprep.subr.bf16.mxu1 %v424_v14  ;;  %v45_v30 = vld [vmem:[%s713_s0 + $0x88] sm:$0xff]  ;;  %v434_v33 = vpack.c.bf16 %v69_v29, %v68_v28  ;;  %v438_v39 = vpack.c.bf16 %v71_v36, %v70_v35  ;;  %v72_v41 = vld [vmem:[#allocation2 + $0x60] sm:$0xff]  ;;  %v90_v43 = vld [vmem:[#allocation2 + $0xf0] sm:$0xff] }
  0x1c   :  { %156 = vmatprep.mubr.f32.mxu0 %v29_v25  ;;  %196 = vmatprep.mubr.f32.mxu1 %v45_v30  ;;  %v89_v38 = vld [vmem:[#allocation2 + $0xe8] sm:$0xff]  ;;  %v91_v44 = vld [vmem:[#allocation2 + $0xf8] sm:$0xff]  ;;  %v74_v47 = vld [vmem:[#allocation2 + $0x70] sm:$0xff] }
  0x1d   :  { %v440_v40 = vpack.c.bf16 %v89_v38, %v88_v37  ;;  %v73_v42 = vld [vmem:[#allocation2 + $0x68] sm:$0xff]  ;;  %v444_v46 = vpack.c.bf16 %v91_v44, %v90_v43  ;;  %v75_v48 = vld [vmem:[#allocation2 + $0x78] sm:$0xff]  ;;  %v28_v50 = vld [vmem:[%s713_s0] sm:$0xff] }
  0x1e   :  { %427 = vmatpush3.bf16.msra.mxu0 %v426_v19  ;;  %458 = vmatpush3.bf16.msra.mxu1 %v426_v19  ;;  %v442_v45 = vpack.c.bf16 %v73_v42, %v72_v41  ;;  %v446_v49 = vpack.c.bf16 %v75_v48, %v74_v47  ;;  %v44_v51 = vld [vmem:[%s713_s0 + $0x80] sm:$0xff]  ;;  %v31_v52 = vld [vmem:[%s713_s0 + $0x18] sm:$0xff]  ;;  %v30_v54 = vld [vmem:[%s713_s0 + $0x10] sm:$0xff] }
  0x1f   :  { %429 = vmatprep.subr.bf16.mxu0 %v428_v20  ;;  %451 = vmatprep.subr.bf16.mxu1 %v428_v20  ;;  %v47_v53 = vld [vmem:[%s713_s0 + $0x98] sm:$0xff]  ;;  %v46_v55 = vld [vmem:[%s713_s0 + $0x90] sm:$0xff]  ;;  %v33_v56 = vld [vmem:[%s713_s0 + $0x28] sm:$0xff] }
  0x20   :  { %v49_v57 = vld [vmem:[%s713_s0 + $0xa8] sm:$0xff]  ;;  %v32_v58 = vld [vmem:[%s713_s0 + $0x20] sm:$0xff]  ;;  %v35_v60 = vld [vmem:[%s713_s0 + $0x38] sm:$0xff] }
  0x21   :  { %v48_v59 = vld [vmem:[%s713_s0 + $0xa0] sm:$0xff]  ;;  %v51_v61 = vld [vmem:[%s713_s0 + $0xb8] sm:$0xff]  ;;  %v34_v62 = vld [vmem:[%s713_s0 + $0x30] sm:$0xff] }
  0x22   :  { %431 = vmatpush3.bf16.msra.mxu0 %v430_v26  ;;  %459 = vmatpush3.bf16.msra.mxu1 %v430_v26  ;;  %v50_v63 = vld [vmem:[%s713_s0 + $0xb0] sm:$0xff]  ;;  %v37_v0 = vld [vmem:[%s713_s0 + $0x48] sm:$0xff]  ;;  %v36_v2 = vld [vmem:[%s713_s0 + $0x40] sm:$0xff] }
  0x23   :  { %433 = vmatprep.subr.bf16.mxu0 %v432_v27  ;;  %452 = vmatprep.subr.bf16.mxu1 %v432_v27  ;;  %v53_v1 = vld [vmem:[%s713_s0 + $0xc8] sm:$0xff]  ;;  %v52_v3 = vld [vmem:[%s713_s0 + $0xc0] sm:$0xff]  ;;  %v39_v4 = vld [vmem:[%s713_s0 + $0x58] sm:$0xff] }
  0x24   :  { %v55_v5 = vld [vmem:[%s713_s0 + $0xd8] sm:$0xff]  ;;  %v38_v6 = vld [vmem:[%s713_s0 + $0x50] sm:$0xff]  ;;  %v41_v8 = vld [vmem:[%s713_s0 + $0x68] sm:$0xff] }
  0x25   :  { %v54_v7 = vld [vmem:[%s713_s0 + $0xd0] sm:$0xff]  ;;  %v57_v9 = vld [vmem:[%s713_s0 + $0xe8] sm:$0xff]  ;;  %v40_v10 = vld [vmem:[%s713_s0 + $0x60] sm:$0xff] }
  0x26   :  { %435 = vmatpush3.bf16.msra.mxu0 %v434_v33  ;;  %460 = vmatpush3.bf16.msra.mxu1 %v434_v33  ;;  %v56_v11 = vld [vmem:[%s713_s0 + $0xe0] sm:$0xff]  ;;  %v43_v12 = vld [vmem:[%s713_s0 + $0x78] sm:$0xff]  ;;  %v42_v14 = vld [vmem:[%s713_s0 + $0x70] sm:$0xff] }
  0x27   :  { %437 = vmatprep.subr.bf16.mxu0 %v436_v34  ;;  %453 = vmatprep.subr.bf16.mxu1 %v436_v34  ;;  %v59_v13 = vld [vmem:[%s713_s0 + $0xf8] sm:$0xff]  ;;  %v58_v15 = vld [vmem:[%s713_s0 + $0xf0] sm:$0xff] }
  0x2a   :  { %439 = vmatpush3.bf16.msra.mxu0 %v438_v39  ;;  %461 = vmatpush3.bf16.msra.mxu1 %v438_v39 }
  0x2b   :  { %441 = vmatprep.subr.bf16.mxu0 %v440_v40  ;;  %454 = vmatprep.subr.bf16.mxu1 %v440_v40 }
  0x2e   :  { %443 = vmatpush3.bf16.msra.mxu0 %v442_v45  ;;  %462 = vmatpush3.bf16.msra.mxu1 %v442_v45 }
  0x2f   :  { %445 = vmatprep.subr.bf16.mxu0 %v444_v46  ;;  %455 = vmatprep.subr.bf16.mxu1 %v444_v46 }
  0x32   :  { %447 = vmatpush3.bf16.msra.mxu0 %v446_v49  ;;  %463 = vmatpush3.bf16.msra.mxu1 %v446_v49 }
  0x35   :  { %157 = vmatmul.mubr.f32.vlgmr.msra.gmra.mrb[0].mxu0 %v28_v50  ;;  %197 = vmatmul.mubr.f32.vlgmr.msra.gmra.mrb[0].mxu1 %v44_v51 }
  0x36   :  { %161 = vmatprep.mubr.f32.mxu0 %v31_v52  ;;  %201 = vmatprep.mubr.f32.mxu1 %v47_v53 }
  0x39   :  { %162 = vmatmul.mubr.f32.gmra.mrb[2].mxu0 %v30_v54  ;;  %202 = vmatmul.mubr.f32.gmra.mrb[2].mxu1 %v46_v55 }
  0x3a   :  { %166 = vmatprep.mubr.f32.mxu0 %v33_v56  ;;  %206 = vmatprep.mubr.f32.mxu1 %v49_v57 }
  0x3d   :  { %167 = vmatmul.mubr.f32.gmra.mrb[4].mxu0 %v32_v58  ;;  %207 = vmatmul.mubr.f32.gmra.mrb[4].mxu1 %v48_v59 }
  0x3e   :  { %171 = vmatprep.mubr.f32.mxu0 %v35_v60  ;;  %211 = vmatprep.mubr.f32.mxu1 %v51_v61 }
  0x41   :  { %172 = vmatmul.mubr.f32.gmra.mrb[6].mxu0 %v34_v62  ;;  %212 = vmatmul.mubr.f32.gmra.mrb[6].mxu1 %v50_v63 }
  0x42   :  { %176 = vmatprep.mubr.f32.mxu0 %v37_v0  ;;  %216 = vmatprep.mubr.f32.mxu1 %v53_v1 }
  0x45   :  { %177 = vmatmul.mubr.f32.gmra.mrb[8].mxu0 %v36_v2  ;;  %217 = vmatmul.mubr.f32.gmra.mrb[8].mxu1 %v52_v3 }
  0x46   :  { %181 = vmatprep.mubr.f32.mxu0 %v39_v4  ;;  %221 = vmatprep.mubr.f32.mxu1 %v55_v5 }
  0x49   :  { %182 = vmatmul.mubr.f32.gmra.mrb[10].mxu0 %v38_v6  ;;  %222 = vmatmul.mubr.f32.gmra.mrb[10].mxu1 %v54_v7 }
  0x4a   :  { %186 = vmatprep.mubr.f32.mxu0 %v41_v8  ;;  %226 = vmatprep.mubr.f32.mxu1 %v57_v9 }
  0x4d   :  { %187 = vmatmul.mubr.f32.gmra.mrb[12].mxu0 %v40_v10  ;;  %227 = vmatmul.mubr.f32.gmra.mrb[12].mxu1 %v56_v11 }
  0x4e   :  { %191 = vmatprep.mubr.f32.mxu0 %v43_v12  ;;  %231 = vmatprep.mubr.f32.mxu1 %v59_v13 }
  0x51   :  { %192 = vmatmul.mubr.f32.gmra.mrb[14].mxu0 %v42_v14  ;;  %232 = vmatmul.mubr.f32.gmra.mrb[14].mxu1 %v58_v15 }
 0x108   :  { %v368_v17 = vpop.f32.mrb[0].mxu0  ;;  %v392_v18 = vpop.f32.mrb[0].mxu1 }
 0x109   :  { %v369_v19 = vpop.f32.mrb[1].mxu0  ;;  %v393_v20 = vpop.f32.mrb[1].mxu1 }
 0x10a   :  { %v370_v21 = vadd.f32 %v369_v19, %v368_v17  ;;  %v635_v22 = vadd.f32 %v393_v20, %v392_v18 }
 0x10c   :  { %237 = vst [vmem:[%s715_s2] sm:$0xff] %v370_v21  ;;  %v371_v23 = vpop.f32.mrb[2].mxu0  ;;  %245 = vst [vmem:[%s715_s2 + $0x40] sm:$0xff] %v635_v22  ;;  %v395_v24 = vpop.f32.mrb[2].mxu1  ;;  %v284_v29 = vmul.f32 %v370_v21, %v370_v21 }
 0x10d   :  { %v372_v25 = vpop.f32.mrb[3].mxu0  ;;  %v396_v26 = vpop.f32.mrb[3].mxu1 }
 0x10e   :  { %v373_v27 = vadd.f32 %v372_v25, %v371_v23  ;;  %v644_v28 = vadd.f32 %v396_v26, %v395_v24  ;;  %v292_v23 = vmul.f32 %v635_v22, %v635_v22 }
 0x110   :  { %238 = vst [vmem:[%s715_s2 + $0x8] sm:$0xff] %v373_v27  ;;  %v260_v30 = vadd.f32 %v373_v27, %v370_v21  ;;  %v285_v31 = vmul.f32 %v373_v27, %v373_v27  ;;  %v374_v32 = vpop.f32.mrb[4].mxu0  ;;  %246 = vst [vmem:[%s715_s2 + $0x48] sm:$0xff] %v644_v28  ;;  %v398_v33 = vpop.f32.mrb[4].mxu1  ;;  %v293_v26 = vmul.f32 %v644_v28, %v644_v28 }
 0x111   :  { %v375_v34 = vpop.f32.mrb[5].mxu0  ;;  %v399_v35 = vpop.f32.mrb[5].mxu1 }
 0x112   :  { %v300_v36 = vadd.f32 %v285_v31, %v284_v29  ;;  %v376_v37 = vadd.f32 %v375_v34, %v374_v32  ;;  %v653_v38 = vadd.f32 %v399_v35, %v398_v33 }
 0x114   :  { %239 = vst [vmem:[%s715_s2 + $0x10] sm:$0xff] %v376_v37  ;;  %v261_v39 = vadd.f32 %v376_v37, %v260_v30  ;;  %v286_v40 = vmul.f32 %v376_v37, %v376_v37  ;;  %v377_v41 = vpop.f32.mrb[6].mxu0  ;;  %247 = vst [vmem:[%s715_s2 + $0x50] sm:$0xff] %v653_v38  ;;  %v401_v42 = vpop.f32.mrb[6].mxu1  ;;  %v294_v30 = vmul.f32 %v653_v38, %v653_v38 }
 0x115   :  { %v378_v43 = vpop.f32.mrb[7].mxu0  ;;  %v402_v44 = vpop.f32.mrb[7].mxu1 }
 0x116   :  { %v301_v45 = vadd.f32 %v300_v36, %v286_v40  ;;  %v379_v46 = vadd.f32 %v378_v43, %v377_v41  ;;  %v403_v47 = vadd.f32 %v402_v44, %v401_v42 }
 0x118   :  { %240 = vst [vmem:[%s715_s2 + $0x18] sm:$0xff] %v379_v46  ;;  %v262_v48 = vadd.f32 %v379_v46, %v261_v39  ;;  %v287_v49 = vmul.f32 %v379_v46, %v379_v46  ;;  %v380_v50 = vpop.f32.mrb[8].mxu0  ;;  %248 = vst [vmem:[%s715_s2 + $0x58] sm:$0xff] %v403_v47  ;;  %v404_v51 = vpop.f32.mrb[8].mxu1  ;;  %v295_v33 = vmul.f32 %v403_v47, %v403_v47 }
 0x119   :  { %v381_v52 = vpop.f32.mrb[9].mxu0  ;;  %v405_v53 = vpop.f32.mrb[9].mxu1 }
 0x11a   :  { %v302_v54 = vadd.f32 %v301_v45, %v287_v49  ;;  %v382_v55 = vadd.f32 %v381_v52, %v380_v50  ;;  %v406_v56 = vadd.f32 %v405_v53, %v404_v51 }
 0x11c   :  { %241 = vst [vmem:[%s715_s2 + $0x20] sm:$0xff] %v382_v55  ;;  %v263_v57 = vadd.f32 %v382_v55, %v262_v48  ;;  %v288_v58 = vmul.f32 %v382_v55, %v382_v55  ;;  %v383_v59 = vpop.f32.mrb[10].mxu0  ;;  %249 = vst [vmem:[%s715_s2 + $0x60] sm:$0xff] %v406_v56  ;;  %v407_v60 = vpop.f32.mrb[10].mxu1  ;;  %v296_v37 = vmul.f32 %v406_v56, %v406_v56 }
 0x11d   :  { %v384_v61 = vpop.f32.mrb[11].mxu0  ;;  %v408_v62 = vpop.f32.mrb[11].mxu1 }
 0x11e   :  { %v303_v63 = vadd.f32 %v302_v54, %v288_v58  ;;  %v385_v0 = vadd.f32 %v384_v61, %v383_v59  ;;  %v409_v1 = vadd.f32 %v408_v62, %v407_v60  ;;  %v283_v59 = vld [vmem:[%s717_s4] sm:$0x1] }
 0x120   :  { %242 = vst [vmem:[%s715_s2 + $0x28] sm:$0xff] %v385_v0  ;;  %v264_v2 = vadd.f32 %v385_v0, %v263_v57  ;;  %v289_v3 = vmul.f32 %v385_v0, %v385_v0  ;;  %v386_v4 = vpop.f32.mrb[12].mxu0  ;;  %250 = vst [vmem:[%s715_s2 + $0x68] sm:$0xff] %v409_v1  ;;  %v410_v5 = vpop.f32.mrb[12].mxu1  ;;  %v297_v41 = vmul.f32 %v409_v1, %v409_v1 }
 0x121   :  { %v387_v6 = vpop.f32.mrb[13].mxu0  ;;  %v411_v7 = vpop.f32.mrb[13].mxu1 }
 0x122   :  { %v304_v8 = vadd.f32 %v303_v63, %v289_v3  ;;  %v388_v9 = vadd.f32 %v387_v6, %v386_v4  ;;  %v412_v10 = vadd.f32 %v411_v7, %v410_v5 }
 0x124   :  { %243 = vst [vmem:[%s715_s2 + $0x30] sm:$0xff] %v388_v9  ;;  %v265_v11 = vadd.f32 %v388_v9, %v264_v2  ;;  %v290_v12 = vmul.f32 %v388_v9, %v388_v9  ;;  %v389_v13 = vpop.f32.mrb[14].mxu0  ;;  %251 = vst [vmem:[%s715_s2 + $0x70] sm:$0xff] %v412_v10  ;;  %v413_v14 = vpop.f32.mrb[14].mxu1  ;;  %v298_v44 = vmul.f32 %v412_v10, %v412_v10 }
 0x125   :  { %v390_v15 = vpop.f32.mrb[15].mxu0  ;;  %v414_v16 = vpop.f32.mrb[15].mxu1 }
 0x126   :  { %v305_v17 = vadd.f32 %v304_v8, %v290_v12  ;;  %v391_v18 = vadd.f32 %v390_v15, %v389_v13  ;;  %v415_v19 = vadd.f32 %v414_v16, %v413_v14 }
 0x128   :  { %244 = vst [vmem:[%s715_s2 + $0x38] sm:$0xff] %v391_v18  ;;  %v266_v20 = vadd.f32 %v391_v18, %v265_v11  ;;  %v291_v21 = vmul.f32 %v391_v18, %v391_v18  ;;  %252 = vst [vmem:[%s715_s2 + $0x78] sm:$0xff] %v415_v19 }
 0x12a   :  { %v267_v24 = vadd.f32 %v635_v22, %v266_v20  ;;  %v306_v25 = vadd.f32 %v305_v17, %v291_v21 }
 0x12c   :  { %v268_v27 = vadd.f32 %v644_v28, %v267_v24  ;;  %v307_v29 = vadd.f32 %v306_v25, %v292_v23  ;;  %v299_v28 = vmul.f32 %v415_v19, %v415_v19 }
 0x12e   :  { %v308_v31 = vadd.f32 %v307_v29, %v293_v26  ;;  %v269_v32 = vadd.f32 %v653_v38, %v268_v27 }
 0x130   :  { %v270_v34 = vadd.f32 %v403_v47, %v269_v32  ;;  %v309_v35 = vadd.f32 %v308_v31, %v294_v30 }
 0x132   :  { %v271_v36 = vadd.f32 %v406_v56, %v270_v34  ;;  %v310_v39 = vadd.f32 %v309_v35, %v295_v33  ;;  %v259_v56 = vld [vmem:[%s716_s3] sm:$0x1] }
 0x134   :  { %v311_v22 = vadd.f32 %v310_v39, %v296_v37  ;;  %v272_v40 = vadd.f32 %v409_v1, %v271_v36 }
 0x136   :  { %v312_v42 = vadd.f32 %v311_v22, %v297_v41  ;;  %v273_v43 = vadd.f32 %v412_v10, %v272_v40 }
 0x138   :  { %v313_v45 = vadd.f32 %v312_v42, %v298_v44  ;;  %v274_v46 = vadd.f32 %v415_v19, %v273_v43 }
 0x13a   :  { %v275_v48 = vrot.slane %v274_v46, 4  ;;  %v314_v49 = vadd.f32 %v313_v45, %v299_v28 }
 0x13c   :  { %v276_v50 = vadd.f32 %v275_v48, %v274_v46  ;;  %v315_v51 = vrot.slane %v314_v49, 4 }
 0x13e   :  { %v277_v38 = vrot.slane %v276_v50, 2  ;;  %v316_v52 = vadd.f32 %v315_v51, %v314_v49 }
 0x140   :  { %v278_v47 = vadd.f32 %v277_v38, %v276_v50  ;;  %v317_v53 = vrot.slane %v316_v52, 2 }
 0x142   :  { %v279_v54 = vrot.slane %v278_v47, 1  ;;  %v318_v55 = vadd.f32 %v317_v53, %v316_v52 }
 0x144   :  { %v280_v57 = vadd.f32 %v279_v54, %v278_v47  ;;  %v319_v58 = vrot.slane %v318_v55, 1 }
 0x146   :  { %v281_v60 = vadd.f32 %v280_v57, %v259_v56  ;;  %v320_v61 = vadd.f32 %v319_v58, %v318_v55 }
 0x148   :  { %282 = vst [vmem:[%s716_s3] sm:$0x1] %v281_v60  ;;  %v321_v62 = vadd.f32 %v320_v61, %v283_v59 }
 0x14a   :  { %322 = vst [vmem:[%s717_s4] sm:$0x1] %v321_v62 }
 0x14b   :  { %335 = vsyncpa [#allocation3], 1 }

// kernel: yolov1_forward.5
= control target key start
LH: loop header
LB: loop body
LE: loop exit
PB: predicated region body
PF: predicated region fallthrough
CT: control target
= control target key end

     0   :  { %s13988_s0 = inlined_call_operand.vmem [shape: f32[2,1024], index: 0, kind: input, shape index: {}]   ;;  %s13989_s1 = inlined_call_operand.vmem [shape: f32[1024,5120], index: 1, kind: input, shape index: {}]   ;;  %s13990_s2 = inlined_call_operand.hbm [shape: f32[1,5120], index: 2, kind: input, shape index: {}]   ;;  %s13991_s3 = inlined_call_operand.vmem [shape: f32[5120,128], index: 3, kind: input, shape index: {}]   ;;  %s13992_s4 = inlined_call_operand.vmem [shape: f32[1,128], index: 4, kind: input, shape index: {}]   ;;  %s13993_s5 = inlined_call_operand.vmem [shape: f32[2,2,128], index: 5, kind: output, shape index: {}]  }
   0x1   :  { %13997 = sst [smem:[#allocation9_spill]] %s13989_s1 }
   0x2   :  { %13998 = sst [smem:[#allocation10_spill]] %s13990_s2 }
   0x3   :  { %10 = vsyncpa [#allocation5], 0 }
   0x4   :  { %12 = vsyncpa [#allocation5 + $0x1], 0  ;;  %s9451_s18 = smov 0   ;;  %s9453_s19 = smov 0  }
   0x5   :  { %s9455_s20 = smov 0   ;;  %s9457_s21 = smov 0  }
   0x6   :  { %s9459_s22 = smov 0   ;;  %s9461_s23 = smov 0  }
   0x7   :  { %s9463_s24 = smov 0   ;;  %s9465_s25 = smov 0  }
   0x8   :  { %s9467_s26 = smov 0   ;;  %s9469_s27 = smov 0  }
   0x9 LB: > { %s7228_s28 = sadd.s32 4294967295, %s9416_s27   ;;  %s27_s29 = sadd.s32 1, %s9408_s25  ;;  %s9416_s27 = sphi %s9469_s27, %s18_s27   ;;  %s9412_s26 = sphi %s9467_s26, %s14017_s26   ;;  %s9408_s25 = sphi %s9465_s25, %s14016_s25   ;;  %s9404_s24 = sphi %s9463_s24, %s14015_s24   ;;  %s9400_s23 = sphi %s9461_s23, %s14014_s23   ;;  %s9396_s22 = sphi %s9459_s22, %s14013_s22   ;;  %s9392_s21 = sphi %s9457_s21, %s14012_s21   ;;  %s9388_s20 = sphi %s9455_s20, %s14011_s20   ;;  %s9384_s19 = sphi %s9453_s19, %s14010_s19   ;;  %s9380_s18 = sphi %s9451_s18, %s14009_s18  }
   0xa   : > { %p28_p0 = scmp.ge.s32.totalorder %s27_s29, 2  ;;  %s30_s30 = sadd.s32 1, %s9412_s26 }
   0xb   : > { %s65_s6 = sadd.s32 1, %s9396_s22  ;;  %p72_p1 = scmp.ne.s32.totalorder %s9396_s22, %s9392_s21 }
   0xc   : > { %s14019_s29 = smov (%p28_p0, %s27_s29), 0  ;;  %s14021_s30 = smov (!%p28_p0, %s30_s30), %s9412_s26 }
   0xd   : > { %13999 = sst [smem:[#allocation7_spill]] %s14019_s29  ;;  %s60_s7 = ssub.s32 %s9408_s25, %s14019_s29 }
   0xe   : > { %p73_p2 = scmp.eq.s32.totalorder %s9416_s27, 0  ;;  %p32_p3 = scmp.ge.s32.totalorder %s14021_s30, 2 }
   0xf   : > { %s91_s8 = sadd.s32 1, %s9388_s20  ;;  %p98_p5 = scmp.ne.s32.totalorder %s9388_s20, %s9384_s19 }
  0x10   : > { %p9514_p4 = por %p73_p2, %p72_p1  ;;  %s14023_s30 = smov (%p32_p3, %s14021_s30), 0 }
  0x11   : > { %14001 = sst [smem:[#allocation8_spill]] %s14023_s30  ;;  %p9522_p6 = por %p98_p5, %p73_p2 }
  0x12   : > { %p104_p7 = scmp.ne.s32.totalorder %s9384_s19, %s9380_s18  ;;  %s61_s11 = ssub.s32 %s9412_s26, %s14023_s30 }
  0x13   : > { %p105_p8 = scmp.eq.s32.totalorder %s7228_s28, 0  ;;  %s62_s12 = sor.u32 %s61_s11, %s60_s7 }
  0x14   : > { %p89_p9 = scmp.eq.s32.totalorder %s61_s11, 0  ;;  %p63_p10 = scmp.eq.s32.totalorder %s62_s12, 0 }
  0x15   : > { %p9530_p11 = por %p105_p8, %p104_p7  ;;  %p7231_p12 = scmp.ge.s32.totalorder %s9416_s27, 4 }
  0x16   : > { %s9535_s14 = scalar_select %p89_p9, %s9388_s20, %s91_s8  }
  0x17   : > { %s14003_s13 = scalar_select %p9530_p11, 1, 0 }
  0x18   : > { %s9538_s15 = scalar_select %p63_p10, %s9396_s22, %s65_s6  }
  0x19   : > { %200 = sbr.rel (%p7231_p12) target bundleno = 710 (0x2c6), region = 20 }
  0x20   : > { %212 = sbr.rel (!%p9514_p4) target bundleno = 681 (0x2a9), region = 28  ;;  %s214_s16 = sand.u32 (%p9514_p4), 1, %s9396_s22  }
  0x21   : > { %s218_s17 = smul.u32 (%p9514_p4), 20, %s9412_s26  ;;  %s14004_s1 = sld [smem:[#allocation9_spill]] (%p9514_p4) }
  0x22   : > { %s9216_s18 = smul.u32 (%p9514_p4), 10240, %s214_s16 }
  0x23   : > { %s9217_s28 = smul.u32 (%p9514_p4), 2560, %s9408_s25 }
  0x24   : > { %s9554_s9 = scalar_lea.vmem (%p9514_p4), [#allocation3], %s9216_s18 }
  0x25   : > { %s220_s7 = sadd.s32 (%p9514_p4), %s9217_s28, %s218_s17 }
  0x26   : > { %s7234_s11 = sshll.u32 (%p9514_p4), %s220_s7, 3 }
  0x27   : > { %s9549_s6 = scalar_lea.vmem %s14004_s1, %s7234_s11 }
  0x28   : > { %v235_v0 = vld [vmem:[%s9549_s6] sm:$0xff]  ;;  %v237_v1 = vld [vmem:[%s9549_s6 + $0x8] sm:$0xff]  ;;  %v239_v2 = vld [vmem:[%s9549_s6 + $0x10] sm:$0xff] }
  0x29   : > { %236 = vst [vmem:[%s9554_s9] sm:$0xff] %v235_v0  ;;  %238 = vst [vmem:[%s9554_s9 + $0x8] sm:$0xff] %v237_v1  ;;  %v241_v3 = vld [vmem:[%s9549_s6 + $0x18] sm:$0xff]  ;;  %v243_v4 = vld [vmem:[%s9549_s6 + $0x20] sm:$0xff] }
  0x2a   : > { %240 = vst [vmem:[%s9554_s9 + $0x10] sm:$0xff] %v239_v2  ;;  %v245_v5 = vld [vmem:[%s9549_s6 + $0x28] sm:$0xff]  ;;  %242 = vst [vmem:[%s9554_s9 + $0x18] sm:$0xff] %v241_v3  ;;  %v247_v6 = vld [vmem:[%s9549_s6 + $0x30] sm:$0xff] }
  0x2b   : > { %244 = vst [vmem:[%s9554_s9 + $0x20] sm:$0xff] %v243_v4  ;;  %246 = vst [vmem:[%s9554_s9 + $0x28] sm:$0xff] %v245_v5  ;;  %v249_v7 = vld [vmem:[%s9549_s6 + $0x38] sm:$0xff]  ;;  %v251_v8 = vld [vmem:[%s9549_s6 + $0x40] sm:$0xff] }
  0x2c   : > { %248 = vst [vmem:[%s9554_s9 + $0x30] sm:$0xff] %v247_v6  ;;  %250 = vst [vmem:[%s9554_s9 + $0x38] sm:$0xff] %v249_v7  ;;  %v253_v9 = vld [vmem:[%s9549_s6 + $0x48] sm:$0xff]  ;;  %v255_v10 = vld [vmem:[%s9549_s6 + $0x50] sm:$0xff] }
  0x2d   : > { %252 = vst [vmem:[%s9554_s9 + $0x40] sm:$0xff] %v251_v8  ;;  %v257_v11 = vld [vmem:[%s9549_s6 + $0x58] sm:$0xff]  ;;  %254 = vst [vmem:[%s9554_s9 + $0x48] sm:$0xff] %v253_v9  ;;  %v259_v12 = vld [vmem:[%s9549_s6 + $0x60] sm:$0xff] }
  0x2e   : > { %256 = vst [vmem:[%s9554_s9 + $0x50] sm:$0xff] %v255_v10  ;;  %258 = vst [vmem:[%s9554_s9 + $0x58] sm:$0xff] %v257_v11  ;;  %v261_v13 = vld [vmem:[%s9549_s6 + $0x68] sm:$0xff]  ;;  %v263_v14 = vld [vmem:[%s9549_s6 + $0x70] sm:$0xff] }
  0x2f   : > { %260 = vst [vmem:[%s9554_s9 + $0x60] sm:$0xff] %v259_v12  ;;  %262 = vst [vmem:[%s9554_s9 + $0x68] sm:$0xff] %v261_v13  ;;  %v265_v15 = vld [vmem:[%s9549_s6 + $0x78] sm:$0xff]  ;;  %v267_v16 = vld [vmem:[%s9549_s6 + $0x80] sm:$0xff] }
  0x30   : > { %264 = vst [vmem:[%s9554_s9 + $0x70] sm:$0xff] %v263_v14  ;;  %v269_v17 = vld [vmem:[%s9549_s6 + $0x88] sm:$0xff]  ;;  %266 = vst [vmem:[%s9554_s9 + $0x78] sm:$0xff] %v265_v15  ;;  %v271_v18 = vld [vmem:[%s9549_s6 + $0x90] sm:$0xff] }
  0x31   : > { %268 = vst [vmem:[%s9554_s9 + $0x80] sm:$0xff] %v267_v16  ;;  %270 = vst [vmem:[%s9554_s9 + $0x88] sm:$0xff] %v269_v17  ;;  %v273_v19 = vld [vmem:[%s9549_s6 + $0x98] sm:$0xff]  ;;  %v275_v20 = vld [vmem:[%s9549_s6 + $0x140] sm:$0xff] }
  0x32   : > { %272 = vst [vmem:[%s9554_s9 + $0x90] sm:$0xff] %v271_v18  ;;  %274 = vst [vmem:[%s9554_s9 + $0x98] sm:$0xff] %v273_v19  ;;  %v277_v21 = vld [vmem:[%s9549_s6 + $0x148] sm:$0xff]  ;;  %v279_v22 = vld [vmem:[%s9549_s6 + $0x150] sm:$0xff] }
  0x33   : > { %276 = vst [vmem:[%s9554_s9 + $0xa0] sm:$0xff] %v275_v20  ;;  %v281_v23 = vld [vmem:[%s9549_s6 + $0x158] sm:$0xff]  ;;  %278 = vst [vmem:[%s9554_s9 + $0xa8] sm:$0xff] %v277_v21  ;;  %v283_v24 = vld [vmem:[%s9549_s6 + $0x160] sm:$0xff] }
  0x34   : > { %280 = vst [vmem:[%s9554_s9 + $0xb0] sm:$0xff] %v279_v22  ;;  %282 = vst [vmem:[%s9554_s9 + $0xb8] sm:$0xff] %v281_v23  ;;  %v285_v25 = vld [vmem:[%s9549_s6 + $0x168] sm:$0xff]  ;;  %v287_v26 = vld [vmem:[%s9549_s6 + $0x170] sm:$0xff] }
  0x35   : > { %284 = vst [vmem:[%s9554_s9 + $0xc0] sm:$0xff] %v283_v24  ;;  %286 = vst [vmem:[%s9554_s9 + $0xc8] sm:$0xff] %v285_v25  ;;  %v289_v27 = vld [vmem:[%s9549_s6 + $0x178] sm:$0xff]  ;;  %v291_v28 = vld [vmem:[%s9549_s6 + $0x180] sm:$0xff] }
  0x36   : > { %288 = vst [vmem:[%s9554_s9 + $0xd0] sm:$0xff] %v287_v26  ;;  %v293_v29 = vld [vmem:[%s9549_s6 + $0x188] sm:$0xff]  ;;  %290 = vst [vmem:[%s9554_s9 + $0xd8] sm:$0xff] %v289_v27  ;;  %v295_v30 = vld [vmem:[%s9549_s6 + $0x190] sm:$0xff] }
  0x37   : > { %292 = vst [vmem:[%s9554_s9 + $0xe0] sm:$0xff] %v291_v28  ;;  %294 = vst [vmem:[%s9554_s9 + $0xe8] sm:$0xff] %v293_v29  ;;  %v297_v31 = vld [vmem:[%s9549_s6 + $0x198] sm:$0xff]  ;;  %v299_v32 = vld [vmem:[%s9549_s6 + $0x1a0] sm:$0xff] }
  0x38   : > { %296 = vst [vmem:[%s9554_s9 + $0xf0] sm:$0xff] %v295_v30  ;;  %298 = vst [vmem:[%s9554_s9 + $0xf8] sm:$0xff] %v297_v31  ;;  %v301_v33 = vld [vmem:[%s9549_s6 + $0x1a8] sm:$0xff]  ;;  %v303_v34 = vld [vmem:[%s9549_s6 + $0x1b0] sm:$0xff] }
  0x39   : > { %300 = vst [vmem:[%s9554_s9 + $0x100] sm:$0xff] %v299_v32  ;;  %v305_v35 = vld [vmem:[%s9549_s6 + $0x1b8] sm:$0xff]  ;;  %302 = vst [vmem:[%s9554_s9 + $0x108] sm:$0xff] %v301_v33  ;;  %v307_v36 = vld [vmem:[%s9549_s6 + $0x1c0] sm:$0xff] }
  0x3a   : > { %304 = vst [vmem:[%s9554_s9 + $0x110] sm:$0xff] %v303_v34  ;;  %306 = vst [vmem:[%s9554_s9 + $0x118] sm:$0xff] %v305_v35  ;;  %v309_v37 = vld [vmem:[%s9549_s6 + $0x1c8] sm:$0xff]  ;;  %v311_v38 = vld [vmem:[%s9549_s6 + $0x1d0] sm:$0xff] }
  0x3b   : > { %308 = vst [vmem:[%s9554_s9 + $0x120] sm:$0xff] %v307_v36  ;;  %310 = vst [vmem:[%s9554_s9 + $0x128] sm:$0xff] %v309_v37  ;;  %v313_v39 = vld [vmem:[%s9549_s6 + $0x1d8] sm:$0xff]  ;;  %v315_v40 = vld [vmem:[%s9549_s6 + $0x280] sm:$0xff] }
  0x3c   : > { %312 = vst [vmem:[%s9554_s9 + $0x130] sm:$0xff] %v311_v38  ;;  %v317_v41 = vld [vmem:[%s9549_s6 + $0x288] sm:$0xff]  ;;  %314 = vst [vmem:[%s9554_s9 + $0x138] sm:$0xff] %v313_v39  ;;  %v319_v42 = vld [vmem:[%s9549_s6 + $0x290] sm:$0xff] }
  0x3d   : > { %316 = vst [vmem:[%s9554_s9 + $0x140] sm:$0xff] %v315_v40  ;;  %318 = vst [vmem:[%s9554_s9 + $0x148] sm:$0xff] %v317_v41  ;;  %v321_v43 = vld [vmem:[%s9549_s6 + $0x298] sm:$0xff]  ;;  %v323_v44 = vld [vmem:[%s9549_s6 + $0x2a0] sm:$0xff] }
  0x3e   : > { %320 = vst [vmem:[%s9554_s9 + $0x150] sm:$0xff] %v319_v42  ;;  %322 = vst [vmem:[%s9554_s9 + $0x158] sm:$0xff] %v321_v43  ;;  %v325_v45 = vld [vmem:[%s9549_s6 + $0x2a8] sm:$0xff]  ;;  %v327_v46 = vld [vmem:[%s9549_s6 + $0x2b0] sm:$0xff] }
  0x3f   : > { %324 = vst [vmem:[%s9554_s9 + $0x160] sm:$0xff] %v323_v44  ;;  %v329_v47 = vld [vmem:[%s9549_s6 + $0x2b8] sm:$0xff]  ;;  %326 = vst [vmem:[%s9554_s9 + $0x168] sm:$0xff] %v325_v45  ;;  %v331_v48 = vld [vmem:[%s9549_s6 + $0x2c0] sm:$0xff] }
  0x40   : > { %328 = vst [vmem:[%s9554_s9 + $0x170] sm:$0xff] %v327_v46  ;;  %330 = vst [vmem:[%s9554_s9 + $0x178] sm:$0xff] %v329_v47  ;;  %v333_v49 = vld [vmem:[%s9549_s6 + $0x2c8] sm:$0xff]  ;;  %v335_v50 = vld [vmem:[%s9549_s6 + $0x2d0] sm:$0xff] }
  0x41   : > { %332 = vst [vmem:[%s9554_s9 + $0x180] sm:$0xff] %v331_v48  ;;  %334 = vst [vmem:[%s9554_s9 + $0x188] sm:$0xff] %v333_v49  ;;  %v337_v51 = vld [vmem:[%s9549_s6 + $0x2d8] sm:$0xff]  ;;  %v339_v52 = vld [vmem:[%s9549_s6 + $0x2e0] sm:$0xff] }
  0x42   : > { %336 = vst [vmem:[%s9554_s9 + $0x190] sm:$0xff] %v335_v50  ;;  %v341_v53 = vld [vmem:[%s9549_s6 + $0x2e8] sm:$0xff]  ;;  %338 = vst [vmem:[%s9554_s9 + $0x198] sm:$0xff] %v337_v51  ;;  %v343_v54 = vld [vmem:[%s9549_s6 + $0x2f0] sm:$0xff] }
  0x43   : > { %340 = vst [vmem:[%s9554_s9 + $0x1a0] sm:$0xff] %v339_v52  ;;  %342 = vst [vmem:[%s9554_s9 + $0x1a8] sm:$0xff] %v341_v53  ;;  %v345_v55 = vld [vmem:[%s9549_s6 + $0x2f8] sm:$0xff]  ;;  %v347_v56 = vld [vmem:[%s9549_s6 + $0x300] sm:$0xff] }
  0x44   : > { %344 = vst [vmem:[%s9554_s9 + $0x1b0] sm:$0xff] %v343_v54  ;;  %346 = vst [vmem:[%s9554_s9 + $0x1b8] sm:$0xff] %v345_v55  ;;  %v349_v57 = vld [vmem:[%s9549_s6 + $0x308] sm:$0xff]  ;;  %v351_v58 = vld [vmem:[%s9549_s6 + $0x310] sm:$0xff] }
  0x45   : > { %348 = vst [vmem:[%s9554_s9 + $0x1c0] sm:$0xff] %v347_v56  ;;  %v353_v59 = vld [vmem:[%s9549_s6 + $0x318] sm:$0xff]  ;;  %350 = vst [vmem:[%s9554_s9 + $0x1c8] sm:$0xff] %v349_v57  ;;  %v355_v60 = vld [vmem:[%s9549_s6 + $0x3c0] sm:$0xff] }
  0x46   : > { %352 = vst [vmem:[%s9554_s9 + $0x1d0] sm:$0xff] %v351_v58  ;;  %354 = vst [vmem:[%s9554_s9 + $0x1d8] sm:$0xff] %v353_v59  ;;  %v357_v61 = vld [vmem:[%s9549_s6 + $0x3c8] sm:$0xff]  ;;  %v359_v62 = vld [vmem:[%s9549_s6 + $0x3d0] sm:$0xff] }
  0x47   : > { %356 = vst [vmem:[%s9554_s9 + $0x1e0] sm:$0xff] %v355_v60  ;;  %358 = vst [vmem:[%s9554_s9 + $0x1e8] sm:$0xff] %v357_v61  ;;  %v361_v63 = vld [vmem:[%s9549_s6 + $0x3d8] sm:$0xff]  ;;  %v363_v0 = vld [vmem:[%s9549_s6 + $0x3e0] sm:$0xff] }
  0x48   : > { %360 = vst [vmem:[%s9554_s9 + $0x1f0] sm:$0xff] %v359_v62  ;;  %v365_v1 = vld [vmem:[%s9549_s6 + $0x3e8] sm:$0xff]  ;;  %362 = vst [vmem:[%s9554_s9 + $0x1f8] sm:$0xff] %v361_v63  ;;  %v367_v2 = vld [vmem:[%s9549_s6 + $0x3f0] sm:$0xff] }
  0x49   : > { %364 = vst [vmem:[%s9554_s9 + $0x200] sm:$0xff] %v363_v0  ;;  %366 = vst [vmem:[%s9554_s9 + $0x208] sm:$0xff] %v365_v1  ;;  %v369_v3 = vld [vmem:[%s9549_s6 + $0x3f8] sm:$0xff]  ;;  %v371_v4 = vld [vmem:[%s9549_s6 + $0x400] sm:$0xff] }
  0x4a   : > { %368 = vst [vmem:[%s9554_s9 + $0x210] sm:$0xff] %v367_v2  ;;  %370 = vst [vmem:[%s9554_s9 + $0x218] sm:$0xff] %v369_v3  ;;  %v373_v5 = vld [vmem:[%s9549_s6 + $0x408] sm:$0xff]  ;;  %v375_v6 = vld [vmem:[%s9549_s6 + $0x410] sm:$0xff] }
  0x4b   : > { %372 = vst [vmem:[%s9554_s9 + $0x220] sm:$0xff] %v371_v4  ;;  %v377_v7 = vld [vmem:[%s9549_s6 + $0x418] sm:$0xff]  ;;  %374 = vst [vmem:[%s9554_s9 + $0x228] sm:$0xff] %v373_v5  ;;  %v379_v8 = vld [vmem:[%s9549_s6 + $0x420] sm:$0xff] }
  0x4c   : > { %376 = vst [vmem:[%s9554_s9 + $0x230] sm:$0xff] %v375_v6  ;;  %378 = vst [vmem:[%s9554_s9 + $0x238] sm:$0xff] %v377_v7  ;;  %v381_v9 = vld [vmem:[%s9549_s6 + $0x428] sm:$0xff]  ;;  %v383_v10 = vld [vmem:[%s9549_s6 + $0x430] sm:$0xff] }
  0x4d   : > { %380 = vst [vmem:[%s9554_s9 + $0x240] sm:$0xff] %v379_v8  ;;  %382 = vst [vmem:[%s9554_s9 + $0x248] sm:$0xff] %v381_v9  ;;  %v385_v11 = vld [vmem:[%s9549_s6 + $0x438] sm:$0xff]  ;;  %v387_v12 = vld [vmem:[%s9549_s6 + $0x440] sm:$0xff] }
  0x4e   : > { %384 = vst [vmem:[%s9554_s9 + $0x250] sm:$0xff] %v383_v10  ;;  %v389_v13 = vld [vmem:[%s9549_s6 + $0x448] sm:$0xff]  ;;  %386 = vst [vmem:[%s9554_s9 + $0x258] sm:$0xff] %v385_v11  ;;  %v391_v14 = vld [vmem:[%s9549_s6 + $0x450] sm:$0xff] }
  0x4f   : > { %388 = vst [vmem:[%s9554_s9 + $0x260] sm:$0xff] %v387_v12  ;;  %390 = vst [vmem:[%s9554_s9 + $0x268] sm:$0xff] %v389_v13  ;;  %v393_v15 = vld [vmem:[%s9549_s6 + $0x458] sm:$0xff]  ;;  %v395_v16 = vld [vmem:[%s9549_s6 + $0x500] sm:$0xff] }
  0x50   : > { %392 = vst [vmem:[%s9554_s9 + $0x270] sm:$0xff] %v391_v14  ;;  %394 = vst [vmem:[%s9554_s9 + $0x278] sm:$0xff] %v393_v15  ;;  %v397_v17 = vld [vmem:[%s9549_s6 + $0x508] sm:$0xff]  ;;  %v399_v18 = vld [vmem:[%s9549_s6 + $0x510] sm:$0xff] }
  0x51   : > { %396 = vst [vmem:[%s9554_s9 + $0x280] sm:$0xff] %v395_v16  ;;  %v401_v19 = vld [vmem:[%s9549_s6 + $0x518] sm:$0xff]  ;;  %398 = vst [vmem:[%s9554_s9 + $0x288] sm:$0xff] %v397_v17  ;;  %v403_v20 = vld [vmem:[%s9549_s6 + $0x520] sm:$0xff] }
  0x52   : > { %400 = vst [vmem:[%s9554_s9 + $0x290] sm:$0xff] %v399_v18  ;;  %402 = vst [vmem:[%s9554_s9 + $0x298] sm:$0xff] %v401_v19  ;;  %v405_v21 = vld [vmem:[%s9549_s6 + $0x528] sm:$0xff]  ;;  %v407_v22 = vld [vmem:[%s9549_s6 + $0x530] sm:$0xff] }
  0x53   : > { %404 = vst [vmem:[%s9554_s9 + $0x2a0] sm:$0xff] %v403_v20  ;;  %406 = vst [vmem:[%s9554_s9 + $0x2a8] sm:$0xff] %v405_v21  ;;  %v409_v23 = vld [vmem:[%s9549_s6 + $0x538] sm:$0xff]  ;;  %v411_v24 = vld [vmem:[%s9549_s6 + $0x540] sm:$0xff] }
  0x54   : > { %408 = vst [vmem:[%s9554_s9 + $0x2b0] sm:$0xff] %v407_v22  ;;  %v413_v25 = vld [vmem:[%s9549_s6 + $0x548] sm:$0xff]  ;;  %410 = vst [vmem:[%s9554_s9 + $0x2b8] sm:$0xff] %v409_v23  ;;  %v415_v26 = vld [vmem:[%s9549_s6 + $0x550] sm:$0xff] }
  0x55   : > { %412 = vst [vmem:[%s9554_s9 + $0x2c0] sm:$0xff] %v411_v24  ;;  %414 = vst [vmem:[%s9554_s9 + $0x2c8] sm:$0xff] %v413_v25  ;;  %v417_v27 = vld [vmem:[%s9549_s6 + $0x558] sm:$0xff]  ;;  %v419_v28 = vld [vmem:[%s9549_s6 + $0x560] sm:$0xff] }
  0x56   : > { %416 = vst [vmem:[%s9554_s9 + $0x2d0] sm:$0xff] %v415_v26  ;;  %418 = vst [vmem:[%s9554_s9 + $0x2d8] sm:$0xff] %v417_v27  ;;  %v421_v29 = vld [vmem:[%s9549_s6 + $0x568] sm:$0xff]  ;;  %v423_v30 = vld [vmem:[%s9549_s6 + $0x570] sm:$0xff] }
  0x57   : > { %420 = vst [vmem:[%s9554_s9 + $0x2e0] sm:$0xff] %v419_v28  ;;  %v425_v31 = vld [vmem:[%s9549_s6 + $0x578] sm:$0xff]  ;;  %422 = vst [vmem:[%s9554_s9 + $0x2e8] sm:$0xff] %v421_v29  ;;  %v427_v32 = vld [vmem:[%s9549_s6 + $0x580] sm:$0xff] }
  0x58   : > { %424 = vst [vmem:[%s9554_s9 + $0x2f0] sm:$0xff] %v423_v30  ;;  %426 = vst [vmem:[%s9554_s9 + $0x2f8] sm:$0xff] %v425_v31  ;;  %v429_v33 = vld [vmem:[%s9549_s6 + $0x588] sm:$0xff]  ;;  %v431_v34 = vld [vmem:[%s9549_s6 + $0x590] sm:$0xff] }
  0x59   : > { %428 = vst [vmem:[%s9554_s9 + $0x300] sm:$0xff] %v427_v32  ;;  %430 = vst [vmem:[%s9554_s9 + $0x308] sm:$0xff] %v429_v33  ;;  %v433_v35 = vld [vmem:[%s9549_s6 + $0x598] sm:$0xff]  ;;  %v435_v36 = vld [vmem:[%s9549_s6 + $0x640] sm:$0xff] }
  0x5a   : > { %432 = vst [vmem:[%s9554_s9 + $0x310] sm:$0xff] %v431_v34  ;;  %v437_v37 = vld [vmem:[%s9549_s6 + $0x648] sm:$0xff]  ;;  %434 = vst [vmem:[%s9554_s9 + $0x318] sm:$0xff] %v433_v35  ;;  %v439_v38 = vld [vmem:[%s9549_s6 + $0x650] sm:$0xff] }
  0x5b   : > { %436 = vst [vmem:[%s9554_s9 + $0x320] sm:$0xff] %v435_v36  ;;  %438 = vst [vmem:[%s9554_s9 + $0x328] sm:$0xff] %v437_v37  ;;  %v441_v39 = vld [vmem:[%s9549_s6 + $0x658] sm:$0xff]  ;;  %v443_v40 = vld [vmem:[%s9549_s6 + $0x660] sm:$0xff] }
  0x5c   : > { %440 = vst [vmem:[%s9554_s9 + $0x330] sm:$0xff] %v439_v38  ;;  %442 = vst [vmem:[%s9554_s9 + $0x338] sm:$0xff] %v441_v39  ;;  %v445_v41 = vld [vmem:[%s9549_s6 + $0x668] sm:$0xff]  ;;  %v447_v42 = vld [vmem:[%s9549_s6 + $0x670] sm:$0xff] }
  0x5d   : > { %444 = vst [vmem:[%s9554_s9 + $0x340] sm:$0xff] %v443_v40  ;;  %v449_v43 = vld [vmem:[%s9549_s6 + $0x678] sm:$0xff]  ;;  %446 = vst [vmem:[%s9554_s9 + $0x348] sm:$0xff] %v445_v41  ;;  %v451_v44 = vld [vmem:[%s9549_s6 + $0x680] sm:$0xff] }
  0x5e   : > { %448 = vst [vmem:[%s9554_s9 + $0x350] sm:$0xff] %v447_v42  ;;  %450 = vst [vmem:[%s9554_s9 + $0x358] sm:$0xff] %v449_v43  ;;  %v453_v45 = vld [vmem:[%s9549_s6 + $0x688] sm:$0xff]  ;;  %v455_v46 = vld [vmem:[%s9549_s6 + $0x690] sm:$0xff] }
  0x5f   : > { %452 = vst [vmem:[%s9554_s9 + $0x360] sm:$0xff] %v451_v44  ;;  %454 = vst [vmem:[%s9554_s9 + $0x368] sm:$0xff] %v453_v45  ;;  %v457_v47 = vld [vmem:[%s9549_s6 + $0x698] sm:$0xff]  ;;  %v459_v48 = vld [vmem:[%s9549_s6 + $0x6a0] sm:$0xff] }
  0x60   : > { %456 = vst [vmem:[%s9554_s9 + $0x370] sm:$0xff] %v455_v46  ;;  %v461_v49 = vld [vmem:[%s9549_s6 + $0x6a8] sm:$0xff]  ;;  %458 = vst [vmem:[%s9554_s9 + $0x378] sm:$0xff] %v457_v47  ;;  %v463_v50 = vld [vmem:[%s9549_s6 + $0x6b0] sm:$0xff] }
  0x61   : > { %460 = vst [vmem:[%s9554_s9 + $0x380] sm:$0xff] %v459_v48  ;;  %462 = vst [vmem:[%s9554_s9 + $0x388] sm:$0xff] %v461_v49  ;;  %v465_v51 = vld [vmem:[%s9549_s6 + $0x6b8] sm:$0xff]  ;;  %v467_v52 = vld [vmem:[%s9549_s6 + $0x6c0] sm:$0xff] }
  0x62   : > { %464 = vst [vmem:[%s9554_s9 + $0x390] sm:$0xff] %v463_v50  ;;  %466 = vst [vmem:[%s9554_s9 + $0x398] sm:$0xff] %v465_v51  ;;  %v469_v53 = vld [vmem:[%s9549_s6 + $0x6c8] sm:$0xff]  ;;  %v471_v54 = vld [vmem:[%s9549_s6 + $0x6d0] sm:$0xff] }
  0x63   : > { %468 = vst [vmem:[%s9554_s9 + $0x3a0] sm:$0xff] %v467_v52  ;;  %v473_v55 = vld [vmem:[%s9549_s6 + $0x6d8] sm:$0xff]  ;;  %470 = vst [vmem:[%s9554_s9 + $0x3a8] sm:$0xff] %v469_v53  ;;  %v475_v56 = vld [vmem:[%s9549_s6 + $0x780] sm:$0xff] }
  0x64   : > { %472 = vst [vmem:[%s9554_s9 + $0x3b0] sm:$0xff] %v471_v54  ;;  %474 = vst [vmem:[%s9554_s9 + $0x3b8] sm:$0xff] %v473_v55  ;;  %v477_v57 = vld [vmem:[%s9549_s6 + $0x788] sm:$0xff]  ;;  %v479_v58 = vld [vmem:[%s9549_s6 + $0x790] sm:$0xff] }
  0x65   : > { %476 = vst [vmem:[%s9554_s9 + $0x3c0] sm:$0xff] %v475_v56  ;;  %478 = vst [vmem:[%s9554_s9 + $0x3c8] sm:$0xff] %v477_v57  ;;  %v481_v59 = vld [vmem:[%s9549_s6 + $0x798] sm:$0xff]  ;;  %v483_v60 = vld [vmem:[%s9549_s6 + $0x7a0] sm:$0xff] }
  0x66   : > { %480 = vst [vmem:[%s9554_s9 + $0x3d0] sm:$0xff] %v479_v58  ;;  %v485_v61 = vld [vmem:[%s9549_s6 + $0x7a8] sm:$0xff]  ;;  %482 = vst [vmem:[%s9554_s9 + $0x3d8] sm:$0xff] %v481_v59  ;;  %v487_v62 = vld [vmem:[%s9549_s6 + $0x7b0] sm:$0xff] }
  0x67   : > { %484 = vst [vmem:[%s9554_s9 + $0x3e0] sm:$0xff] %v483_v60  ;;  %486 = vst [vmem:[%s9554_s9 + $0x3e8] sm:$0xff] %v485_v61  ;;  %v489_v63 = vld [vmem:[%s9549_s6 + $0x7b8] sm:$0xff]  ;;  %v491_v0 = vld [vmem:[%s9549_s6 + $0x7c0] sm:$0xff] }
  0x68   : > { %488 = vst [vmem:[%s9554_s9 + $0x3f0] sm:$0xff] %v487_v62  ;;  %490 = vst [vmem:[%s9554_s9 + $0x3f8] sm:$0xff] %v489_v63  ;;  %v493_v1 = vld [vmem:[%s9549_s6 + $0x7c8] sm:$0xff]  ;;  %v495_v2 = vld [vmem:[%s9549_s6 + $0x7d0] sm:$0xff] }
  0x69   : > { %492 = vst [vmem:[%s9554_s9 + $0x400] sm:$0xff] %v491_v0  ;;  %v497_v3 = vld [vmem:[%s9549_s6 + $0x7d8] sm:$0xff]  ;;  %494 = vst [vmem:[%s9554_s9 + $0x408] sm:$0xff] %v493_v1  ;;  %v499_v4 = vld [vmem:[%s9549_s6 + $0x7e0] sm:$0xff] }
  0x6a   : > { %496 = vst [vmem:[%s9554_s9 + $0x410] sm:$0xff] %v495_v2  ;;  %498 = vst [vmem:[%s9554_s9 + $0x418] sm:$0xff] %v497_v3  ;;  %v501_v5 = vld [vmem:[%s9549_s6 + $0x7e8] sm:$0xff]  ;;  %v503_v6 = vld [vmem:[%s9549_s6 + $0x7f0] sm:$0xff] }
  0x6b   : > { %500 = vst [vmem:[%s9554_s9 + $0x420] sm:$0xff] %v499_v4  ;;  %502 = vst [vmem:[%s9554_s9 + $0x428] sm:$0xff] %v501_v5  ;;  %v505_v7 = vld [vmem:[%s9549_s6 + $0x7f8] sm:$0xff]  ;;  %v507_v8 = vld [vmem:[%s9549_s6 + $0x800] sm:$0xff] }
  0x6c   : > { %504 = vst [vmem:[%s9554_s9 + $0x430] sm:$0xff] %v503_v6  ;;  %v509_v9 = vld [vmem:[%s9549_s6 + $0x808] sm:$0xff]  ;;  %506 = vst [vmem:[%s9554_s9 + $0x438] sm:$0xff] %v505_v7  ;;  %v511_v10 = vld [vmem:[%s9549_s6 + $0x810] sm:$0xff] }
  0x6d   : > { %508 = vst [vmem:[%s9554_s9 + $0x440] sm:$0xff] %v507_v8  ;;  %510 = vst [vmem:[%s9554_s9 + $0x448] sm:$0xff] %v509_v9  ;;  %v513_v11 = vld [vmem:[%s9549_s6 + $0x818] sm:$0xff]  ;;  %v515_v12 = vld [vmem:[%s9549_s6 + $0x8c0] sm:$0xff] }
  0x6e   : > { %512 = vst [vmem:[%s9554_s9 + $0x450] sm:$0xff] %v511_v10  ;;  %514 = vst [vmem:[%s9554_s9 + $0x458] sm:$0xff] %v513_v11  ;;  %v517_v13 = vld [vmem:[%s9549_s6 + $0x8c8] sm:$0xff]  ;;  %v519_v14 = vld [vmem:[%s9549_s6 + $0x8d0] sm:$0xff] }
  0x6f   : > { %516 = vst [vmem:[%s9554_s9 + $0x460] sm:$0xff] %v515_v12  ;;  %v521_v15 = vld [vmem:[%s9549_s6 + $0x8d8] sm:$0xff]  ;;  %518 = vst [vmem:[%s9554_s9 + $0x468] sm:$0xff] %v517_v13  ;;  %v523_v16 = vld [vmem:[%s9549_s6 + $0x8e0] sm:$0xff] }
  0x70   : > { %520 = vst [vmem:[%s9554_s9 + $0x470] sm:$0xff] %v519_v14  ;;  %522 = vst [vmem:[%s9554_s9 + $0x478] sm:$0xff] %v521_v15  ;;  %v525_v17 = vld [vmem:[%s9549_s6 + $0x8e8] sm:$0xff]  ;;  %v527_v18 = vld [vmem:[%s9549_s6 + $0x8f0] sm:$0xff] }
  0x71   : > { %524 = vst [vmem:[%s9554_s9 + $0x480] sm:$0xff] %v523_v16  ;;  %526 = vst [vmem:[%s9554_s9 + $0x488] sm:$0xff] %v525_v17  ;;  %v529_v19 = vld [vmem:[%s9549_s6 + $0x8f8] sm:$0xff]  ;;  %v531_v20 = vld [vmem:[%s9549_s6 + $0x900] sm:$0xff] }
  0x72   : > { %528 = vst [vmem:[%s9554_s9 + $0x490] sm:$0xff] %v527_v18  ;;  %v533_v21 = vld [vmem:[%s9549_s6 + $0x908] sm:$0xff]  ;;  %530 = vst [vmem:[%s9554_s9 + $0x498] sm:$0xff] %v529_v19  ;;  %v535_v22 = vld [vmem:[%s9549_s6 + $0x910] sm:$0xff] }
  0x73   : > { %532 = vst [vmem:[%s9554_s9 + $0x4a0] sm:$0xff] %v531_v20  ;;  %534 = vst [vmem:[%s9554_s9 + $0x4a8] sm:$0xff] %v533_v21  ;;  %v537_v23 = vld [vmem:[%s9549_s6 + $0x918] sm:$0xff]  ;;  %v539_v24 = vld [vmem:[%s9549_s6 + $0x920] sm:$0xff] }
  0x74   : > { %536 = vst [vmem:[%s9554_s9 + $0x4b0] sm:$0xff] %v535_v22  ;;  %538 = vst [vmem:[%s9554_s9 + $0x4b8] sm:$0xff] %v537_v23  ;;  %v541_v25 = vld [vmem:[%s9549_s6 + $0x928] sm:$0xff]  ;;  %v543_v26 = vld [vmem:[%s9549_s6 + $0x930] sm:$0xff] }
  0x75   : > { %540 = vst [vmem:[%s9554_s9 + $0x4c0] sm:$0xff] %v539_v24  ;;  %v545_v27 = vld [vmem:[%s9549_s6 + $0x938] sm:$0xff]  ;;  %542 = vst [vmem:[%s9554_s9 + $0x4c8] sm:$0xff] %v541_v25  ;;  %v547_v28 = vld [vmem:[%s9549_s6 + $0x940] sm:$0xff] }
  0x76   : > { %544 = vst [vmem:[%s9554_s9 + $0x4d0] sm:$0xff] %v543_v26  ;;  %546 = vst [vmem:[%s9554_s9 + $0x4d8] sm:$0xff] %v545_v27  ;;  %v549_v29 = vld [vmem:[%s9549_s6 + $0x948] sm:$0xff]  ;;  %v551_v30 = vld [vmem:[%s9549_s6 + $0x950] sm:$0xff] }
  0x77   : > { %548 = vst [vmem:[%s9554_s9 + $0x4e0] sm:$0xff] %v547_v28  ;;  %550 = vst [vmem:[%s9554_s9 + $0x4e8] sm:$0xff] %v549_v29  ;;  %v553_v31 = vld [vmem:[%s9549_s6 + $0x958] sm:$0xff]  ;;  %v555_v32 = vld [vmem:[%s9549_s6 + $0xa00] sm:$0xff] }
  0x78   : > { %552 = vst [vmem:[%s9554_s9 + $0x4f0] sm:$0xff] %v551_v30  ;;  %v557_v33 = vld [vmem:[%s9549_s6 + $0xa08] sm:$0xff]  ;;  %554 = vst [vmem:[%s9554_s9 + $0x4f8] sm:$0xff] %v553_v31  ;;  %v559_v34 = vld [vmem:[%s9549_s6 + $0xa10] sm:$0xff] }
  0x79   : > { %556 = vst [vmem:[%s9554_s9 + $0x500] sm:$0xff] %v555_v32  ;;  %558 = vst [vmem:[%s9554_s9 + $0x508] sm:$0xff] %v557_v33  ;;  %v561_v35 = vld [vmem:[%s9549_s6 + $0xa18] sm:$0xff]  ;;  %v563_v36 = vld [vmem:[%s9549_s6 + $0xa20] sm:$0xff] }
  0x7a   : > { %560 = vst [vmem:[%s9554_s9 + $0x510] sm:$0xff] %v559_v34  ;;  %562 = vst [vmem:[%s9554_s9 + $0x518] sm:$0xff] %v561_v35  ;;  %v565_v37 = vld [vmem:[%s9549_s6 + $0xa28] sm:$0xff]  ;;  %v567_v38 = vld [vmem:[%s9549_s6 + $0xa30] sm:$0xff] }
  0x7b   : > { %564 = vst [vmem:[%s9554_s9 + $0x520] sm:$0xff] %v563_v36  ;;  %v569_v39 = vld [vmem:[%s9549_s6 + $0xa38] sm:$0xff]  ;;  %566 = vst [vmem:[%s9554_s9 + $0x528] sm:$0xff] %v565_v37  ;;  %v571_v40 = vld [vmem:[%s9549_s6 + $0xa40] sm:$0xff] }
  0x7c   : > { %568 = vst [vmem:[%s9554_s9 + $0x530] sm:$0xff] %v567_v38  ;;  %570 = vst [vmem:[%s9554_s9 + $0x538] sm:$0xff] %v569_v39  ;;  %v573_v41 = vld [vmem:[%s9549_s6 + $0xa48] sm:$0xff]  ;;  %v575_v42 = vld [vmem:[%s9549_s6 + $0xa50] sm:$0xff] }
  0x7d   : > { %572 = vst [vmem:[%s9554_s9 + $0x540] sm:$0xff] %v571_v40  ;;  %574 = vst [vmem:[%s9554_s9 + $0x548] sm:$0xff] %v573_v41  ;;  %v577_v43 = vld [vmem:[%s9549_s6 + $0xa58] sm:$0xff]  ;;  %v579_v44 = vld [vmem:[%s9549_s6 + $0xa60] sm:$0xff] }
  0x7e   : > { %576 = vst [vmem:[%s9554_s9 + $0x550] sm:$0xff] %v575_v42  ;;  %v581_v45 = vld [vmem:[%s9549_s6 + $0xa68] sm:$0xff]  ;;  %578 = vst [vmem:[%s9554_s9 + $0x558] sm:$0xff] %v577_v43  ;;  %v583_v46 = vld [vmem:[%s9549_s6 + $0xa70] sm:$0xff] }
  0x7f   : > { %580 = vst [vmem:[%s9554_s9 + $0x560] sm:$0xff] %v579_v44  ;;  %582 = vst [vmem:[%s9554_s9 + $0x568] sm:$0xff] %v581_v45  ;;  %v585_v47 = vld [vmem:[%s9549_s6 + $0xa78] sm:$0xff]  ;;  %v587_v48 = vld [vmem:[%s9549_s6 + $0xa80] sm:$0xff] }
  0x80   : > { %584 = vst [vmem:[%s9554_s9 + $0x570] sm:$0xff] %v583_v46  ;;  %586 = vst [vmem:[%s9554_s9 + $0x578] sm:$0xff] %v585_v47  ;;  %v589_v49 = vld [vmem:[%s9549_s6 + $0xa88] sm:$0xff]  ;;  %v591_v50 = vld [vmem:[%s9549_s6 + $0xa90] sm:$0xff] }
  0x81   : > { %588 = vst [vmem:[%s9554_s9 + $0x580] sm:$0xff] %v587_v48  ;;  %v593_v51 = vld [vmem:[%s9549_s6 + $0xa98] sm:$0xff]  ;;  %590 = vst [vmem:[%s9554_s9 + $0x588] sm:$0xff] %v589_v49  ;;  %v595_v52 = vld [vmem:[%s9549_s6 + $0xb40] sm:$0xff] }
  0x82   : > { %592 = vst [vmem:[%s9554_s9 + $0x590] sm:$0xff] %v591_v50  ;;  %594 = vst [vmem:[%s9554_s9 + $0x598] sm:$0xff] %v593_v51  ;;  %v597_v53 = vld [vmem:[%s9549_s6 + $0xb48] sm:$0xff]  ;;  %v599_v54 = vld [vmem:[%s9549_s6 + $0xb50] sm:$0xff] }
  0x83   : > { %596 = vst [vmem:[%s9554_s9 + $0x5a0] sm:$0xff] %v595_v52  ;;  %598 = vst [vmem:[%s9554_s9 + $0x5a8] sm:$0xff] %v597_v53  ;;  %v601_v55 = vld [vmem:[%s9549_s6 + $0xb58] sm:$0xff]  ;;  %v603_v56 = vld [vmem:[%s9549_s6 + $0xb60] sm:$0xff] }
  0x84   : > { %600 = vst [vmem:[%s9554_s9 + $0x5b0] sm:$0xff] %v599_v54  ;;  %v605_v57 = vld [vmem:[%s9549_s6 + $0xb68] sm:$0xff]  ;;  %602 = vst [vmem:[%s9554_s9 + $0x5b8] sm:$0xff] %v601_v55  ;;  %v607_v58 = vld [vmem:[%s9549_s6 + $0xb70] sm:$0xff] }
  0x85   : > { %604 = vst [vmem:[%s9554_s9 + $0x5c0] sm:$0xff] %v603_v56  ;;  %606 = vst [vmem:[%s9554_s9 + $0x5c8] sm:$0xff] %v605_v57  ;;  %v609_v59 = vld [vmem:[%s9549_s6 + $0xb78] sm:$0xff]  ;;  %v611_v60 = vld [vmem:[%s9549_s6 + $0xb80] sm:$0xff] }
  0x86   : > { %608 = vst [vmem:[%s9554_s9 + $0x5d0] sm:$0xff] %v607_v58  ;;  %610 = vst [vmem:[%s9554_s9 + $0x5d8] sm:$0xff] %v609_v59  ;;  %v613_v61 = vld [vmem:[%s9549_s6 + $0xb88] sm:$0xff]  ;;  %v615_v62 = vld [vmem:[%s9549_s6 + $0xb90] sm:$0xff] }
  0x87   : > { %612 = vst [vmem:[%s9554_s9 + $0x5e0] sm:$0xff] %v611_v60  ;;  %v617_v63 = vld [vmem:[%s9549_s6 + $0xb98] sm:$0xff]  ;;  %614 = vst [vmem:[%s9554_s9 + $0x5e8] sm:$0xff] %v613_v61  ;;  %v619_v0 = vld [vmem:[%s9549_s6 + $0xba0] sm:$0xff] }
  0x88   : > { %616 = vst [vmem:[%s9554_s9 + $0x5f0] sm:$0xff] %v615_v62  ;;  %618 = vst [vmem:[%s9554_s9 + $0x5f8] sm:$0xff] %v617_v63  ;;  %v621_v1 = vld [vmem:[%s9549_s6 + $0xba8] sm:$0xff]  ;;  %v623_v2 = vld [vmem:[%s9549_s6 + $0xbb0] sm:$0xff] }
  0x89   : > { %620 = vst [vmem:[%s9554_s9 + $0x600] sm:$0xff] %v619_v0  ;;  %622 = vst [vmem:[%s9554_s9 + $0x608] sm:$0xff] %v621_v1  ;;  %v625_v3 = vld [vmem:[%s9549_s6 + $0xbb8] sm:$0xff]  ;;  %v627_v4 = vld [vmem:[%s9549_s6 + $0xbc0] sm:$0xff] }
  0x8a   : > { %624 = vst [vmem:[%s9554_s9 + $0x610] sm:$0xff] %v623_v2  ;;  %v629_v5 = vld [vmem:[%s9549_s6 + $0xbc8] sm:$0xff]  ;;  %626 = vst [vmem:[%s9554_s9 + $0x618] sm:$0xff] %v625_v3  ;;  %v631_v6 = vld [vmem:[%s9549_s6 + $0xbd0] sm:$0xff] }
  0x8b   : > { %628 = vst [vmem:[%s9554_s9 + $0x620] sm:$0xff] %v627_v4  ;;  %630 = vst [vmem:[%s9554_s9 + $0x628] sm:$0xff] %v629_v5  ;;  %v633_v7 = vld [vmem:[%s9549_s6 + $0xbd8] sm:$0xff]  ;;  %v635_v8 = vld [vmem:[%s9549_s6 + $0xc80] sm:$0xff] }
  0x8c   : > { %632 = vst [vmem:[%s9554_s9 + $0x630] sm:$0xff] %v631_v6  ;;  %634 = vst [vmem:[%s9554_s9 + $0x638] sm:$0xff] %v633_v7  ;;  %v637_v9 = vld [vmem:[%s9549_s6 + $0xc88] sm:$0xff]  ;;  %v639_v10 = vld [vmem:[%s9549_s6 + $0xc90] sm:$0xff] }
  0x8d   : > { %636 = vst [vmem:[%s9554_s9 + $0x640] sm:$0xff] %v635_v8  ;;  %v641_v11 = vld [vmem:[%s9549_s6 + $0xc98] sm:$0xff]  ;;  %638 = vst [vmem:[%s9554_s9 + $0x648] sm:$0xff] %v637_v9  ;;  %v643_v12 = vld [vmem:[%s9549_s6 + $0xca0] sm:$0xff] }
  0x8e   : > { %640 = vst [vmem:[%s9554_s9 + $0x650] sm:$0xff] %v639_v10  ;;  %642 = vst [vmem:[%s9554_s9 + $0x658] sm:$0xff] %v641_v11  ;;  %v645_v13 = vld [vmem:[%s9549_s6 + $0xca8] sm:$0xff]  ;;  %v647_v14 = vld [vmem:[%s9549_s6 + $0xcb0] sm:$0xff] }
  0x8f   : > { %644 = vst [vmem:[%s9554_s9 + $0x660] sm:$0xff] %v643_v12  ;;  %646 = vst [vmem:[%s9554_s9 + $0x668] sm:$0xff] %v645_v13  ;;  %v649_v15 = vld [vmem:[%s9549_s6 + $0xcb8] sm:$0xff]  ;;  %v651_v16 = vld [vmem:[%s9549_s6 + $0xcc0] sm:$0xff] }
  0x90   : > { %648 = vst [vmem:[%s9554_s9 + $0x670] sm:$0xff] %v647_v14  ;;  %v653_v17 = vld [vmem:[%s9549_s6 + $0xcc8] sm:$0xff]  ;;  %650 = vst [vmem:[%s9554_s9 + $0x678] sm:$0xff] %v649_v15  ;;  %v655_v18 = vld [vmem:[%s9549_s6 + $0xcd0] sm:$0xff] }
  0x91   : > { %652 = vst [vmem:[%s9554_s9 + $0x680] sm:$0xff] %v651_v16  ;;  %654 = vst [vmem:[%s9554_s9 + $0x688] sm:$0xff] %v653_v17  ;;  %v657_v19 = vld [vmem:[%s9549_s6 + $0xcd8] sm:$0xff]  ;;  %v659_v20 = vld [vmem:[%s9549_s6 + $0xce0] sm:$0xff] }
  0x92   : > { %656 = vst [vmem:[%s9554_s9 + $0x690] sm:$0xff] %v655_v18  ;;  %658 = vst [vmem:[%s9554_s9 + $0x698] sm:$0xff] %v657_v19  ;;  %v661_v21 = vld [vmem:[%s9549_s6 + $0xce8] sm:$0xff]  ;;  %v663_v22 = vld [vmem:[%s9549_s6 + $0xcf0] sm:$0xff] }
  0x93   : > { %660 = vst [vmem:[%s9554_s9 + $0x6a0] sm:$0xff] %v659_v20  ;;  %v665_v23 = vld [vmem:[%s9549_s6 + $0xcf8] sm:$0xff]  ;;  %662 = vst [vmem:[%s9554_s9 + $0x6a8] sm:$0xff] %v661_v21  ;;  %v667_v24 = vld [vmem:[%s9549_s6 + $0xd00] sm:$0xff] }
  0x94   : > { %664 = vst [vmem:[%s9554_s9 + $0x6b0] sm:$0xff] %v663_v22  ;;  %666 = vst [vmem:[%s9554_s9 + $0x6b8] sm:$0xff] %v665_v23  ;;  %v669_v25 = vld [vmem:[%s9549_s6 + $0xd08] sm:$0xff]  ;;  %v671_v26 = vld [vmem:[%s9549_s6 + $0xd10] sm:$0xff] }
  0x95   : > { %668 = vst [vmem:[%s9554_s9 + $0x6c0] sm:$0xff] %v667_v24  ;;  %670 = vst [vmem:[%s9554_s9 + $0x6c8] sm:$0xff] %v669_v25  ;;  %v673_v27 = vld [vmem:[%s9549_s6 + $0xd18] sm:$0xff]  ;;  %v675_v28 = vld [vmem:[%s9549_s6 + $0xdc0] sm:$0xff] }
  0x96   : > { %672 = vst [vmem:[%s9554_s9 + $0x6d0] sm:$0xff] %v671_v26  ;;  %v677_v29 = vld [vmem:[%s9549_s6 + $0xdc8] sm:$0xff]  ;;  %674 = vst [vmem:[%s9554_s9 + $0x6d8] sm:$0xff] %v673_v27  ;;  %v679_v30 = vld [vmem:[%s9549_s6 + $0xdd0] sm:$0xff] }
  0x97   : > { %676 = vst [vmem:[%s9554_s9 + $0x6e0] sm:$0xff] %v675_v28  ;;  %678 = vst [vmem:[%s9554_s9 + $0x6e8] sm:$0xff] %v677_v29  ;;  %v681_v31 = vld [vmem:[%s9549_s6 + $0xdd8] sm:$0xff]  ;;  %v683_v32 = vld [vmem:[%s9549_s6 + $0xde0] sm:$0xff] }
  0x98   : > { %680 = vst [vmem:[%s9554_s9 + $0x6f0] sm:$0xff] %v679_v30  ;;  %682 = vst [vmem:[%s9554_s9 + $0x6f8] sm:$0xff] %v681_v31  ;;  %v685_v33 = vld [vmem:[%s9549_s6 + $0xde8] sm:$0xff]  ;;  %v687_v34 = vld [vmem:[%s9549_s6 + $0xdf0] sm:$0xff] }
  0x99   : > { %684 = vst [vmem:[%s9554_s9 + $0x700] sm:$0xff] %v683_v32  ;;  %v689_v35 = vld [vmem:[%s9549_s6 + $0xdf8] sm:$0xff]  ;;  %686 = vst [vmem:[%s9554_s9 + $0x708] sm:$0xff] %v685_v33  ;;  %v691_v36 = vld [vmem:[%s9549_s6 + $0xe00] sm:$0xff] }
  0x9a   : > { %688 = vst [vmem:[%s9554_s9 + $0x710] sm:$0xff] %v687_v34  ;;  %690 = vst [vmem:[%s9554_s9 + $0x718] sm:$0xff] %v689_v35  ;;  %v693_v37 = vld [vmem:[%s9549_s6 + $0xe08] sm:$0xff]  ;;  %v695_v38 = vld [vmem:[%s9549_s6 + $0xe10] sm:$0xff] }
  0x9b   : > { %692 = vst [vmem:[%s9554_s9 + $0x720] sm:$0xff] %v691_v36  ;;  %694 = vst [vmem:[%s9554_s9 + $0x728] sm:$0xff] %v693_v37  ;;  %v697_v39 = vld [vmem:[%s9549_s6 + $0xe18] sm:$0xff]  ;;  %v699_v40 = vld [vmem:[%s9549_s6 + $0xe20] sm:$0xff] }
  0x9c   : > { %696 = vst [vmem:[%s9554_s9 + $0x730] sm:$0xff] %v695_v38  ;;  %v701_v41 = vld [vmem:[%s9549_s6 + $0xe28] sm:$0xff]  ;;  %698 = vst [vmem:[%s9554_s9 + $0x738] sm:$0xff] %v697_v39  ;;  %v703_v42 = vld [vmem:[%s9549_s6 + $0xe30] sm:$0xff] }
  0x9d   : > { %700 = vst [vmem:[%s9554_s9 + $0x740] sm:$0xff] %v699_v40  ;;  %702 = vst [vmem:[%s9554_s9 + $0x748] sm:$0xff] %v701_v41  ;;  %v705_v43 = vld [vmem:[%s9549_s6 + $0xe38] sm:$0xff]  ;;  %v707_v44 = vld [vmem:[%s9549_s6 + $0xe40] sm:$0xff] }
  0x9e   : > { %704 = vst [vmem:[%s9554_s9 + $0x750] sm:$0xff] %v703_v42  ;;  %706 = vst [vmem:[%s9554_s9 + $0x758] sm:$0xff] %v705_v43  ;;  %v709_v45 = vld [vmem:[%s9549_s6 + $0xe48] sm:$0xff]  ;;  %v711_v46 = vld [vmem:[%s9549_s6 + $0xe50] sm:$0xff] }
  0x9f   : > { %708 = vst [vmem:[%s9554_s9 + $0x760] sm:$0xff] %v707_v44  ;;  %v713_v47 = vld [vmem:[%s9549_s6 + $0xe58] sm:$0xff]  ;;  %710 = vst [vmem:[%s9554_s9 + $0x768] sm:$0xff] %v709_v45  ;;  %v715_v48 = vld [vmem:[%s9549_s6 + $0xf00] sm:$0xff] }
  0xa0   : > { %712 = vst [vmem:[%s9554_s9 + $0x770] sm:$0xff] %v711_v46  ;;  %714 = vst [vmem:[%s9554_s9 + $0x778] sm:$0xff] %v713_v47  ;;  %v717_v49 = vld [vmem:[%s9549_s6 + $0xf08] sm:$0xff]  ;;  %v719_v50 = vld [vmem:[%s9549_s6 + $0xf10] sm:$0xff] }
  0xa1   : > { %716 = vst [vmem:[%s9554_s9 + $0x780] sm:$0xff] %v715_v48  ;;  %718 = vst [vmem:[%s9554_s9 + $0x788] sm:$0xff] %v717_v49  ;;  %v721_v51 = vld [vmem:[%s9549_s6 + $0xf18] sm:$0xff]  ;;  %v723_v52 = vld [vmem:[%s9549_s6 + $0xf20] sm:$0xff] }
  0xa2   : > { %720 = vst [vmem:[%s9554_s9 + $0x790] sm:$0xff] %v719_v50  ;;  %v725_v53 = vld [vmem:[%s9549_s6 + $0xf28] sm:$0xff]  ;;  %722 = vst [vmem:[%s9554_s9 + $0x798] sm:$0xff] %v721_v51  ;;  %v727_v54 = vld [vmem:[%s9549_s6 + $0xf30] sm:$0xff] }
  0xa3   : > { %724 = vst [vmem:[%s9554_s9 + $0x7a0] sm:$0xff] %v723_v52  ;;  %726 = vst [vmem:[%s9554_s9 + $0x7a8] sm:$0xff] %v725_v53  ;;  %v729_v55 = vld [vmem:[%s9549_s6 + $0xf38] sm:$0xff]  ;;  %v731_v56 = vld [vmem:[%s9549_s6 + $0xf40] sm:$0xff] }
  0xa4   : > { %728 = vst [vmem:[%s9554_s9 + $0x7b0] sm:$0xff] %v727_v54  ;;  %730 = vst [vmem:[%s9554_s9 + $0x7b8] sm:$0xff] %v729_v55  ;;  %v733_v57 = vld [vmem:[%s9549_s6 + $0xf48] sm:$0xff]  ;;  %v735_v58 = vld [vmem:[%s9549_s6 + $0xf50] sm:$0xff] }
  0xa5   : > { %732 = vst [vmem:[%s9554_s9 + $0x7c0] sm:$0xff] %v731_v56  ;;  %v737_v59 = vld [vmem:[%s9549_s6 + $0xf58] sm:$0xff]  ;;  %734 = vst [vmem:[%s9554_s9 + $0x7c8] sm:$0xff] %v733_v57  ;;  %v739_v60 = vld [vmem:[%s9549_s6 + $0xf60] sm:$0xff] }
  0xa6   : > { %736 = vst [vmem:[%s9554_s9 + $0x7d0] sm:$0xff] %v735_v58  ;;  %738 = vst [vmem:[%s9554_s9 + $0x7d8] sm:$0xff] %v737_v59  ;;  %v741_v61 = vld [vmem:[%s9549_s6 + $0xf68] sm:$0xff]  ;;  %v743_v62 = vld [vmem:[%s9549_s6 + $0xf70] sm:$0xff] }
  0xa7   : > { %740 = vst [vmem:[%s9554_s9 + $0x7e0] sm:$0xff] %v739_v60  ;;  %742 = vst [vmem:[%s9554_s9 + $0x7e8] sm:$0xff] %v741_v61  ;;  %v745_v63 = vld [vmem:[%s9549_s6 + $0xf78] sm:$0xff]  ;;  %v747_v0 = vld [vmem:[%s9549_s6 + $0xf80] sm:$0xff] }
  0xa8   : > { %744 = vst [vmem:[%s9554_s9 + $0x7f0] sm:$0xff] %v743_v62  ;;  %v749_v1 = vld [vmem:[%s9549_s6 + $0xf88] sm:$0xff]  ;;  %746 = vst [vmem:[%s9554_s9 + $0x7f8] sm:$0xff] %v745_v63  ;;  %v751_v2 = vld [vmem:[%s9549_s6 + $0xf90] sm:$0xff] }
  0xa9   : > { %748 = vst [vmem:[%s9554_s9 + $0x800] sm:$0xff] %v747_v0  ;;  %750 = vst [vmem:[%s9554_s9 + $0x808] sm:$0xff] %v749_v1  ;;  %v753_v3 = vld [vmem:[%s9549_s6 + $0xf98] sm:$0xff]  ;;  %v755_v4 = vld [vmem:[%s9549_s6 + $0x1040] sm:$0xff] }
  0xaa   : > { %752 = vst [vmem:[%s9554_s9 + $0x810] sm:$0xff] %v751_v2  ;;  %754 = vst [vmem:[%s9554_s9 + $0x818] sm:$0xff] %v753_v3  ;;  %v757_v5 = vld [vmem:[%s9549_s6 + $0x1048] sm:$0xff]  ;;  %v759_v6 = vld [vmem:[%s9549_s6 + $0x1050] sm:$0xff] }
  0xab   : > { %756 = vst [vmem:[%s9554_s9 + $0x820] sm:$0xff] %v755_v4  ;;  %v761_v7 = vld [vmem:[%s9549_s6 + $0x1058] sm:$0xff]  ;;  %758 = vst [vmem:[%s9554_s9 + $0x828] sm:$0xff] %v757_v5  ;;  %v763_v8 = vld [vmem:[%s9549_s6 + $0x1060] sm:$0xff] }
  0xac   : > { %760 = vst [vmem:[%s9554_s9 + $0x830] sm:$0xff] %v759_v6  ;;  %762 = vst [vmem:[%s9554_s9 + $0x838] sm:$0xff] %v761_v7  ;;  %v765_v9 = vld [vmem:[%s9549_s6 + $0x1068] sm:$0xff]  ;;  %v767_v10 = vld [vmem:[%s9549_s6 + $0x1070] sm:$0xff] }
  0xad   : > { %764 = vst [vmem:[%s9554_s9 + $0x840] sm:$0xff] %v763_v8  ;;  %766 = vst [vmem:[%s9554_s9 + $0x848] sm:$0xff] %v765_v9  ;;  %v769_v11 = vld [vmem:[%s9549_s6 + $0x1078] sm:$0xff]  ;;  %v771_v12 = vld [vmem:[%s9549_s6 + $0x1080] sm:$0xff] }
  0xae   : > { %768 = vst [vmem:[%s9554_s9 + $0x850] sm:$0xff] %v767_v10  ;;  %v773_v13 = vld [vmem:[%s9549_s6 + $0x1088] sm:$0xff]  ;;  %770 = vst [vmem:[%s9554_s9 + $0x858] sm:$0xff] %v769_v11  ;;  %v775_v14 = vld [vmem:[%s9549_s6 + $0x1090] sm:$0xff] }
  0xaf   : > { %772 = vst [vmem:[%s9554_s9 + $0x860] sm:$0xff] %v771_v12  ;;  %774 = vst [vmem:[%s9554_s9 + $0x868] sm:$0xff] %v773_v13  ;;  %v777_v15 = vld [vmem:[%s9549_s6 + $0x1098] sm:$0xff]  ;;  %v779_v16 = vld [vmem:[%s9549_s6 + $0x10a0] sm:$0xff] }
  0xb0   : > { %776 = vst [vmem:[%s9554_s9 + $0x870] sm:$0xff] %v775_v14  ;;  %778 = vst [vmem:[%s9554_s9 + $0x878] sm:$0xff] %v777_v15  ;;  %v781_v17 = vld [vmem:[%s9549_s6 + $0x10a8] sm:$0xff]  ;;  %v783_v18 = vld [vmem:[%s9549_s6 + $0x10b0] sm:$0xff] }
  0xb1   : > { %780 = vst [vmem:[%s9554_s9 + $0x880] sm:$0xff] %v779_v16  ;;  %v785_v19 = vld [vmem:[%s9549_s6 + $0x10b8] sm:$0xff]  ;;  %782 = vst [vmem:[%s9554_s9 + $0x888] sm:$0xff] %v781_v17  ;;  %v787_v20 = vld [vmem:[%s9549_s6 + $0x10c0] sm:$0xff] }
  0xb2   : > { %784 = vst [vmem:[%s9554_s9 + $0x890] sm:$0xff] %v783_v18  ;;  %786 = vst [vmem:[%s9554_s9 + $0x898] sm:$0xff] %v785_v19  ;;  %v789_v21 = vld [vmem:[%s9549_s6 + $0x10c8] sm:$0xff]  ;;  %v791_v22 = vld [vmem:[%s9549_s6 + $0x10d0] sm:$0xff] }
  0xb3   : > { %788 = vst [vmem:[%s9554_s9 + $0x8a0] sm:$0xff] %v787_v20  ;;  %790 = vst [vmem:[%s9554_s9 + $0x8a8] sm:$0xff] %v789_v21  ;;  %v793_v23 = vld [vmem:[%s9549_s6 + $0x10d8] sm:$0xff]  ;;  %v795_v24 = vld [vmem:[%s9549_s6 + $0x1180] sm:$0xff] }
  0xb4   : > { %792 = vst [vmem:[%s9554_s9 + $0x8b0] sm:$0xff] %v791_v22  ;;  %v797_v25 = vld [vmem:[%s9549_s6 + $0x1188] sm:$0xff]  ;;  %794 = vst [vmem:[%s9554_s9 + $0x8b8] sm:$0xff] %v793_v23  ;;  %v799_v26 = vld [vmem:[%s9549_s6 + $0x1190] sm:$0xff] }
  0xb5   : > { %796 = vst [vmem:[%s9554_s9 + $0x8c0] sm:$0xff] %v795_v24  ;;  %798 = vst [vmem:[%s9554_s9 + $0x8c8] sm:$0xff] %v797_v25  ;;  %v801_v27 = vld [vmem:[%s9549_s6 + $0x1198] sm:$0xff]  ;;  %v803_v28 = vld [vmem:[%s9549_s6 + $0x11a0] sm:$0xff] }
  0xb6   : > { %800 = vst [vmem:[%s9554_s9 + $0x8d0] sm:$0xff] %v799_v26  ;;  %802 = vst [vmem:[%s9554_s9 + $0x8d8] sm:$0xff] %v801_v27  ;;  %v805_v29 = vld [vmem:[%s9549_s6 + $0x11a8] sm:$0xff]  ;;  %v807_v30 = vld [vmem:[%s9549_s6 + $0x11b0] sm:$0xff] }
  0xb7   : > { %804 = vst [vmem:[%s9554_s9 + $0x8e0] sm:$0xff] %v803_v28  ;;  %v809_v31 = vld [vmem:[%s9549_s6 + $0x11b8] sm:$0xff]  ;;  %806 = vst [vmem:[%s9554_s9 + $0x8e8] sm:$0xff] %v805_v29  ;;  %v811_v32 = vld [vmem:[%s9549_s6 + $0x11c0] sm:$0xff] }
  0xb8   : > { %808 = vst [vmem:[%s9554_s9 + $0x8f0] sm:$0xff] %v807_v30  ;;  %810 = vst [vmem:[%s9554_s9 + $0x8f8] sm:$0xff] %v809_v31  ;;  %v813_v33 = vld [vmem:[%s9549_s6 + $0x11c8] sm:$0xff]  ;;  %v815_v34 = vld [vmem:[%s9549_s6 + $0x11d0] sm:$0xff] }
  0xb9   : > { %812 = vst [vmem:[%s9554_s9 + $0x900] sm:$0xff] %v811_v32  ;;  %814 = vst [vmem:[%s9554_s9 + $0x908] sm:$0xff] %v813_v33  ;;  %v817_v35 = vld [vmem:[%s9549_s6 + $0x11d8] sm:$0xff]  ;;  %v819_v36 = vld [vmem:[%s9549_s6 + $0x11e0] sm:$0xff] }
  0xba   : > { %816 = vst [vmem:[%s9554_s9 + $0x910] sm:$0xff] %v815_v34  ;;  %v821_v37 = vld [vmem:[%s9549_s6 + $0x11e8] sm:$0xff]  ;;  %818 = vst [vmem:[%s9554_s9 + $0x918] sm:$0xff] %v817_v35  ;;  %v823_v38 = vld [vmem:[%s9549_s6 + $0x11f0] sm:$0xff] }
  0xbb   : > { %820 = vst [vmem:[%s9554_s9 + $0x920] sm:$0xff] %v819_v36  ;;  %822 = vst [vmem:[%s9554_s9 + $0x928] sm:$0xff] %v821_v37  ;;  %v825_v39 = vld [vmem:[%s9549_s6 + $0x11f8] sm:$0xff]  ;;  %v827_v40 = vld [vmem:[%s9549_s6 + $0x1200] sm:$0xff] }
  0xbc   : > { %824 = vst [vmem:[%s9554_s9 + $0x930] sm:$0xff] %v823_v38  ;;  %826 = vst [vmem:[%s9554_s9 + $0x938] sm:$0xff] %v825_v39  ;;  %v829_v41 = vld [vmem:[%s9549_s6 + $0x1208] sm:$0xff]  ;;  %v831_v42 = vld [vmem:[%s9549_s6 + $0x1210] sm:$0xff] }
  0xbd   : > { %828 = vst [vmem:[%s9554_s9 + $0x940] sm:$0xff] %v827_v40  ;;  %v833_v43 = vld [vmem:[%s9549_s6 + $0x1218] sm:$0xff]  ;;  %830 = vst [vmem:[%s9554_s9 + $0x948] sm:$0xff] %v829_v41  ;;  %v835_v44 = vld [vmem:[%s9549_s6 + $0x12c0] sm:$0xff] }
  0xbe   : > { %832 = vst [vmem:[%s9554_s9 + $0x950] sm:$0xff] %v831_v42  ;;  %834 = vst [vmem:[%s9554_s9 + $0x958] sm:$0xff] %v833_v43  ;;  %v837_v45 = vld [vmem:[%s9549_s6 + $0x12c8] sm:$0xff]  ;;  %v839_v46 = vld [vmem:[%s9549_s6 + $0x12d0] sm:$0xff] }
  0xbf   : > { %836 = vst [vmem:[%s9554_s9 + $0x960] sm:$0xff] %v835_v44  ;;  %838 = vst [vmem:[%s9554_s9 + $0x968] sm:$0xff] %v837_v45  ;;  %v841_v47 = vld [vmem:[%s9549_s6 + $0x12d8] sm:$0xff]  ;;  %v843_v48 = vld [vmem:[%s9549_s6 + $0x12e0] sm:$0xff] }
  0xc0   : > { %840 = vst [vmem:[%s9554_s9 + $0x970] sm:$0xff] %v839_v46  ;;  %v845_v49 = vld [vmem:[%s9549_s6 + $0x12e8] sm:$0xff]  ;;  %842 = vst [vmem:[%s9554_s9 + $0x978] sm:$0xff] %v841_v47  ;;  %v847_v50 = vld [vmem:[%s9549_s6 + $0x12f0] sm:$0xff] }
  0xc1   : > { %844 = vst [vmem:[%s9554_s9 + $0x980] sm:$0xff] %v843_v48  ;;  %846 = vst [vmem:[%s9554_s9 + $0x988] sm:$0xff] %v845_v49  ;;  %v849_v51 = vld [vmem:[%s9549_s6 + $0x12f8] sm:$0xff]  ;;  %v851_v52 = vld [vmem:[%s9549_s6 + $0x1300] sm:$0xff] }
  0xc2   : > { %848 = vst [vmem:[%s9554_s9 + $0x990] sm:$0xff] %v847_v50  ;;  %850 = vst [vmem:[%s9554_s9 + $0x998] sm:$0xff] %v849_v51  ;;  %v853_v53 = vld [vmem:[%s9549_s6 + $0x1308] sm:$0xff]  ;;  %v855_v54 = vld [vmem:[%s9549_s6 + $0x1310] sm:$0xff] }
  0xc3   : > { %852 = vst [vmem:[%s9554_s9 + $0x9a0] sm:$0xff] %v851_v52  ;;  %v857_v55 = vld [vmem:[%s9549_s6 + $0x1318] sm:$0xff]  ;;  %854 = vst [vmem:[%s9554_s9 + $0x9a8] sm:$0xff] %v853_v53  ;;  %v859_v56 = vld [vmem:[%s9549_s6 + $0x1320] sm:$0xff] }
  0xc4   : > { %856 = vst [vmem:[%s9554_s9 + $0x9b0] sm:$0xff] %v855_v54  ;;  %858 = vst [vmem:[%s9554_s9 + $0x9b8] sm:$0xff] %v857_v55  ;;  %v861_v57 = vld [vmem:[%s9549_s6 + $0x1328] sm:$0xff]  ;;  %v863_v58 = vld [vmem:[%s9549_s6 + $0x1330] sm:$0xff] }
  0xc5   : > { %860 = vst [vmem:[%s9554_s9 + $0x9c0] sm:$0xff] %v859_v56  ;;  %862 = vst [vmem:[%s9554_s9 + $0x9c8] sm:$0xff] %v861_v57  ;;  %v865_v59 = vld [vmem:[%s9549_s6 + $0x1338] sm:$0xff]  ;;  %v867_v60 = vld [vmem:[%s9549_s6 + $0x1340] sm:$0xff] }
  0xc6   : > { %864 = vst [vmem:[%s9554_s9 + $0x9d0] sm:$0xff] %v863_v58  ;;  %v869_v61 = vld [vmem:[%s9549_s6 + $0x1348] sm:$0xff]  ;;  %866 = vst [vmem:[%s9554_s9 + $0x9d8] sm:$0xff] %v865_v59  ;;  %v871_v62 = vld [vmem:[%s9549_s6 + $0x1350] sm:$0xff] }
  0xc7   : > { %868 = vst [vmem:[%s9554_s9 + $0x9e0] sm:$0xff] %v867_v60  ;;  %870 = vst [vmem:[%s9554_s9 + $0x9e8] sm:$0xff] %v869_v61  ;;  %v873_v63 = vld [vmem:[%s9549_s6 + $0x1358] sm:$0xff]  ;;  %v875_v0 = vld [vmem:[%s9549_s6 + $0x1400] sm:$0xff] }
  0xc8   : > { %872 = vst [vmem:[%s9554_s9 + $0x9f0] sm:$0xff] %v871_v62  ;;  %874 = vst [vmem:[%s9554_s9 + $0x9f8] sm:$0xff] %v873_v63  ;;  %v877_v1 = vld [vmem:[%s9549_s6 + $0x1408] sm:$0xff]  ;;  %v879_v2 = vld [vmem:[%s9549_s6 + $0x1410] sm:$0xff] }
  0xc9   : > { %876 = vst [vmem:[%s9554_s9 + $0xa00] sm:$0xff] %v875_v0  ;;  %v881_v3 = vld [vmem:[%s9549_s6 + $0x1418] sm:$0xff]  ;;  %878 = vst [vmem:[%s9554_s9 + $0xa08] sm:$0xff] %v877_v1  ;;  %v883_v4 = vld [vmem:[%s9549_s6 + $0x1420] sm:$0xff] }
  0xca   : > { %880 = vst [vmem:[%s9554_s9 + $0xa10] sm:$0xff] %v879_v2  ;;  %882 = vst [vmem:[%s9554_s9 + $0xa18] sm:$0xff] %v881_v3  ;;  %v885_v5 = vld [vmem:[%s9549_s6 + $0x1428] sm:$0xff]  ;;  %v887_v6 = vld [vmem:[%s9549_s6 + $0x1430] sm:$0xff] }
  0xcb   : > { %884 = vst [vmem:[%s9554_s9 + $0xa20] sm:$0xff] %v883_v4  ;;  %886 = vst [vmem:[%s9554_s9 + $0xa28] sm:$0xff] %v885_v5  ;;  %v889_v7 = vld [vmem:[%s9549_s6 + $0x1438] sm:$0xff]  ;;  %v891_v8 = vld [vmem:[%s9549_s6 + $0x1440] sm:$0xff] }
  0xcc   : > { %888 = vst [vmem:[%s9554_s9 + $0xa30] sm:$0xff] %v887_v6  ;;  %v893_v9 = vld [vmem:[%s9549_s6 + $0x1448] sm:$0xff]  ;;  %890 = vst [vmem:[%s9554_s9 + $0xa38] sm:$0xff] %v889_v7  ;;  %v895_v10 = vld [vmem:[%s9549_s6 + $0x1450] sm:$0xff] }
  0xcd   : > { %892 = vst [vmem:[%s9554_s9 + $0xa40] sm:$0xff] %v891_v8  ;;  %894 = vst [vmem:[%s9554_s9 + $0xa48] sm:$0xff] %v893_v9  ;;  %v897_v11 = vld [vmem:[%s9549_s6 + $0x1458] sm:$0xff]  ;;  %v899_v12 = vld [vmem:[%s9549_s6 + $0x1460] sm:$0xff] }
  0xce   : > { %896 = vst [vmem:[%s9554_s9 + $0xa50] sm:$0xff] %v895_v10  ;;  %898 = vst [vmem:[%s9554_s9 + $0xa58] sm:$0xff] %v897_v11  ;;  %v901_v13 = vld [vmem:[%s9549_s6 + $0x1468] sm:$0xff]  ;;  %v903_v14 = vld [vmem:[%s9549_s6 + $0x1470] sm:$0xff] }
  0xcf   : > { %900 = vst [vmem:[%s9554_s9 + $0xa60] sm:$0xff] %v899_v12  ;;  %v905_v15 = vld [vmem:[%s9549_s6 + $0x1478] sm:$0xff]  ;;  %902 = vst [vmem:[%s9554_s9 + $0xa68] sm:$0xff] %v901_v13  ;;  %v907_v16 = vld [vmem:[%s9549_s6 + $0x1480] sm:$0xff] }
  0xd0   : > { %904 = vst [vmem:[%s9554_s9 + $0xa70] sm:$0xff] %v903_v14  ;;  %906 = vst [vmem:[%s9554_s9 + $0xa78] sm:$0xff] %v905_v15  ;;  %v909_v17 = vld [vmem:[%s9549_s6 + $0x1488] sm:$0xff]  ;;  %v911_v18 = vld [vmem:[%s9549_s6 + $0x1490] sm:$0xff] }
  0xd1   : > { %908 = vst [vmem:[%s9554_s9 + $0xa80] sm:$0xff] %v907_v16  ;;  %910 = vst [vmem:[%s9554_s9 + $0xa88] sm:$0xff] %v909_v17  ;;  %v913_v19 = vld [vmem:[%s9549_s6 + $0x1498] sm:$0xff]  ;;  %v915_v20 = vld [vmem:[%s9549_s6 + $0x1540] sm:$0xff] }
  0xd2   : > { %912 = vst [vmem:[%s9554_s9 + $0xa90] sm:$0xff] %v911_v18  ;;  %v917_v21 = vld [vmem:[%s9549_s6 + $0x1548] sm:$0xff]  ;;  %914 = vst [vmem:[%s9554_s9 + $0xa98] sm:$0xff] %v913_v19  ;;  %v919_v22 = vld [vmem:[%s9549_s6 + $0x1550] sm:$0xff] }
  0xd3   : > { %916 = vst [vmem:[%s9554_s9 + $0xaa0] sm:$0xff] %v915_v20  ;;  %918 = vst [vmem:[%s9554_s9 + $0xaa8] sm:$0xff] %v917_v21  ;;  %v921_v23 = vld [vmem:[%s9549_s6 + $0x1558] sm:$0xff]  ;;  %v923_v24 = vld [vmem:[%s9549_s6 + $0x1560] sm:$0xff] }
  0xd4   : > { %920 = vst [vmem:[%s9554_s9 + $0xab0] sm:$0xff] %v919_v22  ;;  %922 = vst [vmem:[%s9554_s9 + $0xab8] sm:$0xff] %v921_v23  ;;  %v925_v25 = vld [vmem:[%s9549_s6 + $0x1568] sm:$0xff]  ;;  %v927_v26 = vld [vmem:[%s9549_s6 + $0x1570] sm:$0xff] }
  0xd5   : > { %924 = vst [vmem:[%s9554_s9 + $0xac0] sm:$0xff] %v923_v24  ;;  %v929_v27 = vld [vmem:[%s9549_s6 + $0x1578] sm:$0xff]  ;;  %926 = vst [vmem:[%s9554_s9 + $0xac8] sm:$0xff] %v925_v25  ;;  %v931_v28 = vld [vmem:[%s9549_s6 + $0x1580] sm:$0xff] }
  0xd6   : > { %928 = vst [vmem:[%s9554_s9 + $0xad0] sm:$0xff] %v927_v26  ;;  %930 = vst [vmem:[%s9554_s9 + $0xad8] sm:$0xff] %v929_v27  ;;  %v933_v29 = vld [vmem:[%s9549_s6 + $0x1588] sm:$0xff]  ;;  %v935_v30 = vld [vmem:[%s9549_s6 + $0x1590] sm:$0xff] }
  0xd7   : > { %932 = vst [vmem:[%s9554_s9 + $0xae0] sm:$0xff] %v931_v28  ;;  %934 = vst [vmem:[%s9554_s9 + $0xae8] sm:$0xff] %v933_v29  ;;  %v937_v31 = vld [vmem:[%s9549_s6 + $0x1598] sm:$0xff]  ;;  %v939_v32 = vld [vmem:[%s9549_s6 + $0x15a0] sm:$0xff] }
  0xd8   : > { %936 = vst [vmem:[%s9554_s9 + $0xaf0] sm:$0xff] %v935_v30  ;;  %v941_v33 = vld [vmem:[%s9549_s6 + $0x15a8] sm:$0xff]  ;;  %938 = vst [vmem:[%s9554_s9 + $0xaf8] sm:$0xff] %v937_v31  ;;  %v943_v34 = vld [vmem:[%s9549_s6 + $0x15b0] sm:$0xff] }
  0xd9   : > { %940 = vst [vmem:[%s9554_s9 + $0xb00] sm:$0xff] %v939_v32  ;;  %942 = vst [vmem:[%s9554_s9 + $0xb08] sm:$0xff] %v941_v33  ;;  %v945_v35 = vld [vmem:[%s9549_s6 + $0x15b8] sm:$0xff]  ;;  %v947_v36 = vld [vmem:[%s9549_s6 + $0x15c0] sm:$0xff] }
  0xda   : > { %944 = vst [vmem:[%s9554_s9 + $0xb10] sm:$0xff] %v943_v34  ;;  %946 = vst [vmem:[%s9554_s9 + $0xb18] sm:$0xff] %v945_v35  ;;  %v949_v37 = vld [vmem:[%s9549_s6 + $0x15c8] sm:$0xff]  ;;  %v951_v38 = vld [vmem:[%s9549_s6 + $0x15d0] sm:$0xff] }
  0xdb   : > { %948 = vst [vmem:[%s9554_s9 + $0xb20] sm:$0xff] %v947_v36  ;;  %v953_v39 = vld [vmem:[%s9549_s6 + $0x15d8] sm:$0xff]  ;;  %950 = vst [vmem:[%s9554_s9 + $0xb28] sm:$0xff] %v949_v37  ;;  %v955_v40 = vld [vmem:[%s9549_s6 + $0x1680] sm:$0xff] }
  0xdc   : > { %952 = vst [vmem:[%s9554_s9 + $0xb30] sm:$0xff] %v951_v38  ;;  %954 = vst [vmem:[%s9554_s9 + $0xb38] sm:$0xff] %v953_v39  ;;  %v957_v41 = vld [vmem:[%s9549_s6 + $0x1688] sm:$0xff]  ;;  %v959_v42 = vld [vmem:[%s9549_s6 + $0x1690] sm:$0xff] }
  0xdd   : > { %956 = vst [vmem:[%s9554_s9 + $0xb40] sm:$0xff] %v955_v40  ;;  %958 = vst [vmem:[%s9554_s9 + $0xb48] sm:$0xff] %v957_v41  ;;  %v961_v43 = vld [vmem:[%s9549_s6 + $0x1698] sm:$0xff]  ;;  %v963_v44 = vld [vmem:[%s9549_s6 + $0x16a0] sm:$0xff] }
  0xde   : > { %960 = vst [vmem:[%s9554_s9 + $0xb50] sm:$0xff] %v959_v42  ;;  %v965_v45 = vld [vmem:[%s9549_s6 + $0x16a8] sm:$0xff]  ;;  %962 = vst [vmem:[%s9554_s9 + $0xb58] sm:$0xff] %v961_v43  ;;  %v967_v46 = vld [vmem:[%s9549_s6 + $0x16b0] sm:$0xff] }
  0xdf   : > { %964 = vst [vmem:[%s9554_s9 + $0xb60] sm:$0xff] %v963_v44  ;;  %966 = vst [vmem:[%s9554_s9 + $0xb68] sm:$0xff] %v965_v45  ;;  %v969_v47 = vld [vmem:[%s9549_s6 + $0x16b8] sm:$0xff]  ;;  %v971_v48 = vld [vmem:[%s9549_s6 + $0x16c0] sm:$0xff] }
  0xe0   : > { %968 = vst [vmem:[%s9554_s9 + $0xb70] sm:$0xff] %v967_v46  ;;  %970 = vst [vmem:[%s9554_s9 + $0xb78] sm:$0xff] %v969_v47  ;;  %v973_v49 = vld [vmem:[%s9549_s6 + $0x16c8] sm:$0xff]  ;;  %v975_v50 = vld [vmem:[%s9549_s6 + $0x16d0] sm:$0xff] }
  0xe1   : > { %972 = vst [vmem:[%s9554_s9 + $0xb80] sm:$0xff] %v971_v48  ;;  %v977_v51 = vld [vmem:[%s9549_s6 + $0x16d8] sm:$0xff]  ;;  %974 = vst [vmem:[%s9554_s9 + $0xb88] sm:$0xff] %v973_v49  ;;  %v979_v52 = vld [vmem:[%s9549_s6 + $0x16e0] sm:$0xff] }
  0xe2   : > { %976 = vst [vmem:[%s9554_s9 + $0xb90] sm:$0xff] %v975_v50  ;;  %978 = vst [vmem:[%s9554_s9 + $0xb98] sm:$0xff] %v977_v51  ;;  %v981_v53 = vld [vmem:[%s9549_s6 + $0x16e8] sm:$0xff]  ;;  %v983_v54 = vld [vmem:[%s9549_s6 + $0x16f0] sm:$0xff] }
  0xe3   : > { %980 = vst [vmem:[%s9554_s9 + $0xba0] sm:$0xff] %v979_v52  ;;  %982 = vst [vmem:[%s9554_s9 + $0xba8] sm:$0xff] %v981_v53  ;;  %v985_v55 = vld [vmem:[%s9549_s6 + $0x16f8] sm:$0xff]  ;;  %v987_v56 = vld [vmem:[%s9549_s6 + $0x1700] sm:$0xff] }
  0xe4   : > { %984 = vst [vmem:[%s9554_s9 + $0xbb0] sm:$0xff] %v983_v54  ;;  %v989_v57 = vld [vmem:[%s9549_s6 + $0x1708] sm:$0xff]  ;;  %986 = vst [vmem:[%s9554_s9 + $0xbb8] sm:$0xff] %v985_v55  ;;  %v991_v58 = vld [vmem:[%s9549_s6 + $0x1710] sm:$0xff] }
  0xe5   : > { %988 = vst [vmem:[%s9554_s9 + $0xbc0] sm:$0xff] %v987_v56  ;;  %990 = vst [vmem:[%s9554_s9 + $0xbc8] sm:$0xff] %v989_v57  ;;  %v993_v59 = vld [vmem:[%s9549_s6 + $0x1718] sm:$0xff]  ;;  %v995_v60 = vld [vmem:[%s9549_s6 + $0x17c0] sm:$0xff] }
  0xe6   : > { %992 = vst [vmem:[%s9554_s9 + $0xbd0] sm:$0xff] %v991_v58  ;;  %994 = vst [vmem:[%s9554_s9 + $0xbd8] sm:$0xff] %v993_v59  ;;  %v997_v61 = vld [vmem:[%s9549_s6 + $0x17c8] sm:$0xff]  ;;  %v999_v62 = vld [vmem:[%s9549_s6 + $0x17d0] sm:$0xff] }
  0xe7   : > { %996 = vst [vmem:[%s9554_s9 + $0xbe0] sm:$0xff] %v995_v60  ;;  %v1001_v63 = vld [vmem:[%s9549_s6 + $0x17d8] sm:$0xff]  ;;  %998 = vst [vmem:[%s9554_s9 + $0xbe8] sm:$0xff] %v997_v61  ;;  %v1003_v0 = vld [vmem:[%s9549_s6 + $0x17e0] sm:$0xff] }
  0xe8   : > { %1000 = vst [vmem:[%s9554_s9 + $0xbf0] sm:$0xff] %v999_v62  ;;  %1002 = vst [vmem:[%s9554_s9 + $0xbf8] sm:$0xff] %v1001_v63  ;;  %v1005_v1 = vld [vmem:[%s9549_s6 + $0x17e8] sm:$0xff]  ;;  %v1007_v2 = vld [vmem:[%s9549_s6 + $0x17f0] sm:$0xff] }
  0xe9   : > { %1004 = vst [vmem:[%s9554_s9 + $0xc00] sm:$0xff] %v1003_v0  ;;  %1006 = vst [vmem:[%s9554_s9 + $0xc08] sm:$0xff] %v1005_v1  ;;  %v1009_v3 = vld [vmem:[%s9549_s6 + $0x17f8] sm:$0xff]  ;;  %v1011_v4 = vld [vmem:[%s9549_s6 + $0x1800] sm:$0xff] }
  0xea   : > { %1008 = vst [vmem:[%s9554_s9 + $0xc10] sm:$0xff] %v1007_v2  ;;  %v1013_v5 = vld [vmem:[%s9549_s6 + $0x1808] sm:$0xff]  ;;  %1010 = vst [vmem:[%s9554_s9 + $0xc18] sm:$0xff] %v1009_v3  ;;  %v1015_v6 = vld [vmem:[%s9549_s6 + $0x1810] sm:$0xff] }
  0xeb   : > { %1012 = vst [vmem:[%s9554_s9 + $0xc20] sm:$0xff] %v1011_v4  ;;  %1014 = vst [vmem:[%s9554_s9 + $0xc28] sm:$0xff] %v1013_v5  ;;  %v1017_v7 = vld [vmem:[%s9549_s6 + $0x1818] sm:$0xff]  ;;  %v1019_v8 = vld [vmem:[%s9549_s6 + $0x1820] sm:$0xff] }
  0xec   : > { %1016 = vst [vmem:[%s9554_s9 + $0xc30] sm:$0xff] %v1015_v6  ;;  %1018 = vst [vmem:[%s9554_s9 + $0xc38] sm:$0xff] %v1017_v7  ;;  %v1021_v9 = vld [vmem:[%s9549_s6 + $0x1828] sm:$0xff]  ;;  %v1023_v10 = vld [vmem:[%s9549_s6 + $0x1830] sm:$0xff] }
  0xed   : > { %1020 = vst [vmem:[%s9554_s9 + $0xc40] sm:$0xff] %v1019_v8  ;;  %v1025_v11 = vld [vmem:[%s9549_s6 + $0x1838] sm:$0xff]  ;;  %1022 = vst [vmem:[%s9554_s9 + $0xc48] sm:$0xff] %v1021_v9  ;;  %v1027_v12 = vld [vmem:[%s9549_s6 + $0x1840] sm:$0xff] }
  0xee   : > { %1024 = vst [vmem:[%s9554_s9 + $0xc50] sm:$0xff] %v1023_v10  ;;  %1026 = vst [vmem:[%s9554_s9 + $0xc58] sm:$0xff] %v1025_v11  ;;  %v1029_v13 = vld [vmem:[%s9549_s6 + $0x1848] sm:$0xff]  ;;  %v1031_v14 = vld [vmem:[%s9549_s6 + $0x1850] sm:$0xff] }
  0xef   : > { %1028 = vst [vmem:[%s9554_s9 + $0xc60] sm:$0xff] %v1027_v12  ;;  %1030 = vst [vmem:[%s9554_s9 + $0xc68] sm:$0xff] %v1029_v13  ;;  %v1033_v15 = vld [vmem:[%s9549_s6 + $0x1858] sm:$0xff]  ;;  %v1035_v16 = vld [vmem:[%s9549_s6 + $0x1900] sm:$0xff] }
  0xf0   : > { %1032 = vst [vmem:[%s9554_s9 + $0xc70] sm:$0xff] %v1031_v14  ;;  %v1037_v17 = vld [vmem:[%s9549_s6 + $0x1908] sm:$0xff]  ;;  %1034 = vst [vmem:[%s9554_s9 + $0xc78] sm:$0xff] %v1033_v15  ;;  %v1039_v18 = vld [vmem:[%s9549_s6 + $0x1910] sm:$0xff] }
  0xf1   : > { %1036 = vst [vmem:[%s9554_s9 + $0xc80] sm:$0xff] %v1035_v16  ;;  %1038 = vst [vmem:[%s9554_s9 + $0xc88] sm:$0xff] %v1037_v17  ;;  %v1041_v19 = vld [vmem:[%s9549_s6 + $0x1918] sm:$0xff]  ;;  %v1043_v20 = vld [vmem:[%s9549_s6 + $0x1920] sm:$0xff] }
  0xf2   : > { %1040 = vst [vmem:[%s9554_s9 + $0xc90] sm:$0xff] %v1039_v18  ;;  %1042 = vst [vmem:[%s9554_s9 + $0xc98] sm:$0xff] %v1041_v19  ;;  %v1045_v21 = vld [vmem:[%s9549_s6 + $0x1928] sm:$0xff]  ;;  %v1047_v22 = vld [vmem:[%s9549_s6 + $0x1930] sm:$0xff] }
  0xf3   : > { %1044 = vst [vmem:[%s9554_s9 + $0xca0] sm:$0xff] %v1043_v20  ;;  %v1049_v23 = vld [vmem:[%s9549_s6 + $0x1938] sm:$0xff]  ;;  %1046 = vst [vmem:[%s9554_s9 + $0xca8] sm:$0xff] %v1045_v21  ;;  %v1051_v24 = vld [vmem:[%s9549_s6 + $0x1940] sm:$0xff] }
  0xf4   : > { %1048 = vst [vmem:[%s9554_s9 + $0xcb0] sm:$0xff] %v1047_v22  ;;  %1050 = vst [vmem:[%s9554_s9 + $0xcb8] sm:$0xff] %v1049_v23  ;;  %v1053_v25 = vld [vmem:[%s9549_s6 + $0x1948] sm:$0xff]  ;;  %v1055_v26 = vld [vmem:[%s9549_s6 + $0x1950] sm:$0xff] }
  0xf5   : > { %1052 = vst [vmem:[%s9554_s9 + $0xcc0] sm:$0xff] %v1051_v24  ;;  %1054 = vst [vmem:[%s9554_s9 + $0xcc8] sm:$0xff] %v1053_v25  ;;  %v1057_v27 = vld [vmem:[%s9549_s6 + $0x1958] sm:$0xff]  ;;  %v1059_v28 = vld [vmem:[%s9549_s6 + $0x1960] sm:$0xff] }
  0xf6   : > { %1056 = vst [vmem:[%s9554_s9 + $0xcd0] sm:$0xff] %v1055_v26  ;;  %v1061_v29 = vld [vmem:[%s9549_s6 + $0x1968] sm:$0xff]  ;;  %1058 = vst [vmem:[%s9554_s9 + $0xcd8] sm:$0xff] %v1057_v27  ;;  %v1063_v30 = vld [vmem:[%s9549_s6 + $0x1970] sm:$0xff] }
  0xf7   : > { %1060 = vst [vmem:[%s9554_s9 + $0xce0] sm:$0xff] %v1059_v28  ;;  %1062 = vst [vmem:[%s9554_s9 + $0xce8] sm:$0xff] %v1061_v29  ;;  %v1065_v31 = vld [vmem:[%s9549_s6 + $0x1978] sm:$0xff]  ;;  %v1067_v32 = vld [vmem:[%s9549_s6 + $0x1980] sm:$0xff] }
  0xf8   : > { %1064 = vst [vmem:[%s9554_s9 + $0xcf0] sm:$0xff] %v1063_v30  ;;  %1066 = vst [vmem:[%s9554_s9 + $0xcf8] sm:$0xff] %v1065_v31  ;;  %v1069_v33 = vld [vmem:[%s9549_s6 + $0x1988] sm:$0xff]  ;;  %v1071_v34 = vld [vmem:[%s9549_s6 + $0x1990] sm:$0xff] }
  0xf9   : > { %1068 = vst [vmem:[%s9554_s9 + $0xd00] sm:$0xff] %v1067_v32  ;;  %v1073_v35 = vld [vmem:[%s9549_s6 + $0x1998] sm:$0xff]  ;;  %1070 = vst [vmem:[%s9554_s9 + $0xd08] sm:$0xff] %v1069_v33  ;;  %v1075_v36 = vld [vmem:[%s9549_s6 + $0x1a40] sm:$0xff] }
  0xfa   : > { %1072 = vst [vmem:[%s9554_s9 + $0xd10] sm:$0xff] %v1071_v34  ;;  %1074 = vst [vmem:[%s9554_s9 + $0xd18] sm:$0xff] %v1073_v35  ;;  %v1077_v37 = vld [vmem:[%s9549_s6 + $0x1a48] sm:$0xff]  ;;  %v1079_v38 = vld [vmem:[%s9549_s6 + $0x1a50] sm:$0xff] }
  0xfb   : > { %1076 = vst [vmem:[%s9554_s9 + $0xd20] sm:$0xff] %v1075_v36  ;;  %1078 = vst [vmem:[%s9554_s9 + $0xd28] sm:$0xff] %v1077_v37  ;;  %v1081_v39 = vld [vmem:[%s9549_s6 + $0x1a58] sm:$0xff]  ;;  %v1083_v40 = vld [vmem:[%s9549_s6 + $0x1a60] sm:$0xff] }
  0xfc   : > { %1080 = vst [vmem:[%s9554_s9 + $0xd30] sm:$0xff] %v1079_v38  ;;  %v1085_v41 = vld [vmem:[%s9549_s6 + $0x1a68] sm:$0xff]  ;;  %1082 = vst [vmem:[%s9554_s9 + $0xd38] sm:$0xff] %v1081_v39  ;;  %v1087_v42 = vld [vmem:[%s9549_s6 + $0x1a70] sm:$0xff] }
  0xfd   : > { %1084 = vst [vmem:[%s9554_s9 + $0xd40] sm:$0xff] %v1083_v40  ;;  %1086 = vst [vmem:[%s9554_s9 + $0xd48] sm:$0xff] %v1085_v41  ;;  %v1089_v43 = vld [vmem:[%s9549_s6 + $0x1a78] sm:$0xff]  ;;  %v1091_v44 = vld [vmem:[%s9549_s6 + $0x1a80] sm:$0xff] }
  0xfe   : > { %1088 = vst [vmem:[%s9554_s9 + $0xd50] sm:$0xff] %v1087_v42  ;;  %1090 = vst [vmem:[%s9554_s9 + $0xd58] sm:$0xff] %v1089_v43  ;;  %v1093_v45 = vld [vmem:[%s9549_s6 + $0x1a88] sm:$0xff]  ;;  %v1095_v46 = vld [vmem:[%s9549_s6 + $0x1a90] sm:$0xff] }
  0xff   : > { %1092 = vst [vmem:[%s9554_s9 + $0xd60] sm:$0xff] %v1091_v44  ;;  %v1097_v47 = vld [vmem:[%s9549_s6 + $0x1a98] sm:$0xff]  ;;  %1094 = vst [vmem:[%s9554_s9 + $0xd68] sm:$0xff] %v1093_v45  ;;  %v1099_v48 = vld [vmem:[%s9549_s6 + $0x1aa0] sm:$0xff] }
 0x100   : > { %1096 = vst [vmem:[%s9554_s9 + $0xd70] sm:$0xff] %v1095_v46  ;;  %1098 = vst [vmem:[%s9554_s9 + $0xd78] sm:$0xff] %v1097_v47  ;;  %v1101_v49 = vld [vmem:[%s9549_s6 + $0x1aa8] sm:$0xff]  ;;  %v1103_v50 = vld [vmem:[%s9549_s6 + $0x1ab0] sm:$0xff] }
 0x101   : > { %1100 = vst [vmem:[%s9554_s9 + $0xd80] sm:$0xff] %v1099_v48  ;;  %1102 = vst [vmem:[%s9554_s9 + $0xd88] sm:$0xff] %v1101_v49  ;;  %v1105_v51 = vld [vmem:[%s9549_s6 + $0x1ab8] sm:$0xff]  ;;  %v1107_v52 = vld [vmem:[%s9549_s6 + $0x1ac0] sm:$0xff] }
 0x102   : > { %1104 = vst [vmem:[%s9554_s9 + $0xd90] sm:$0xff] %v1103_v50  ;;  %v1109_v53 = vld [vmem:[%s9549_s6 + $0x1ac8] sm:$0xff]  ;;  %1106 = vst [vmem:[%s9554_s9 + $0xd98] sm:$0xff] %v1105_v51  ;;  %v1111_v54 = vld [vmem:[%s9549_s6 + $0x1ad0] sm:$0xff] }
 0x103   : > { %1108 = vst [vmem:[%s9554_s9 + $0xda0] sm:$0xff] %v1107_v52  ;;  %1110 = vst [vmem:[%s9554_s9 + $0xda8] sm:$0xff] %v1109_v53  ;;  %v1113_v55 = vld [vmem:[%s9549_s6 + $0x1ad8] sm:$0xff]  ;;  %v1115_v56 = vld [vmem:[%s9549_s6 + $0x1b80] sm:$0xff] }
 0x104   : > { %1112 = vst [vmem:[%s9554_s9 + $0xdb0] sm:$0xff] %v1111_v54  ;;  %1114 = vst [vmem:[%s9554_s9 + $0xdb8] sm:$0xff] %v1113_v55  ;;  %v1117_v57 = vld [vmem:[%s9549_s6 + $0x1b88] sm:$0xff]  ;;  %v1119_v58 = vld [vmem:[%s9549_s6 + $0x1b90] sm:$0xff] }
 0x105   : > { %1116 = vst [vmem:[%s9554_s9 + $0xdc0] sm:$0xff] %v1115_v56  ;;  %v1121_v59 = vld [vmem:[%s9549_s6 + $0x1b98] sm:$0xff]  ;;  %1118 = vst [vmem:[%s9554_s9 + $0xdc8] sm:$0xff] %v1117_v57  ;;  %v1123_v60 = vld [vmem:[%s9549_s6 + $0x1ba0] sm:$0xff] }
 0x106   : > { %1120 = vst [vmem:[%s9554_s9 + $0xdd0] sm:$0xff] %v1119_v58  ;;  %1122 = vst [vmem:[%s9554_s9 + $0xdd8] sm:$0xff] %v1121_v59  ;;  %v1125_v61 = vld [vmem:[%s9549_s6 + $0x1ba8] sm:$0xff]  ;;  %v1127_v62 = vld [vmem:[%s9549_s6 + $0x1bb0] sm:$0xff] }
 0x107   : > { %1124 = vst [vmem:[%s9554_s9 + $0xde0] sm:$0xff] %v1123_v60  ;;  %1126 = vst [vmem:[%s9554_s9 + $0xde8] sm:$0xff] %v1125_v61  ;;  %v1129_v63 = vld [vmem:[%s9549_s6 + $0x1bb8] sm:$0xff]  ;;  %v1131_v0 = vld [vmem:[%s9549_s6 + $0x1bc0] sm:$0xff] }
 0x108   : > { %1128 = vst [vmem:[%s9554_s9 + $0xdf0] sm:$0xff] %v1127_v62  ;;  %v1133_v1 = vld [vmem:[%s9549_s6 + $0x1bc8] sm:$0xff]  ;;  %1130 = vst [vmem:[%s9554_s9 + $0xdf8] sm:$0xff] %v1129_v63  ;;  %v1135_v2 = vld [vmem:[%s9549_s6 + $0x1bd0] sm:$0xff] }
 0x109   : > { %1132 = vst [vmem:[%s9554_s9 + $0xe00] sm:$0xff] %v1131_v0  ;;  %1134 = vst [vmem:[%s9554_s9 + $0xe08] sm:$0xff] %v1133_v1  ;;  %v1137_v3 = vld [vmem:[%s9549_s6 + $0x1bd8] sm:$0xff]  ;;  %v1139_v4 = vld [vmem:[%s9549_s6 + $0x1be0] sm:$0xff] }
 0x10a   : > { %1136 = vst [vmem:[%s9554_s9 + $0xe10] sm:$0xff] %v1135_v2  ;;  %1138 = vst [vmem:[%s9554_s9 + $0xe18] sm:$0xff] %v1137_v3  ;;  %v1141_v5 = vld [vmem:[%s9549_s6 + $0x1be8] sm:$0xff]  ;;  %v1143_v6 = vld [vmem:[%s9549_s6 + $0x1bf0] sm:$0xff] }
 0x10b   : > { %1140 = vst [vmem:[%s9554_s9 + $0xe20] sm:$0xff] %v1139_v4  ;;  %v1145_v7 = vld [vmem:[%s9549_s6 + $0x1bf8] sm:$0xff]  ;;  %1142 = vst [vmem:[%s9554_s9 + $0xe28] sm:$0xff] %v1141_v5  ;;  %v1147_v8 = vld [vmem:[%s9549_s6 + $0x1c00] sm:$0xff] }
 0x10c   : > { %1144 = vst [vmem:[%s9554_s9 + $0xe30] sm:$0xff] %v1143_v6  ;;  %1146 = vst [vmem:[%s9554_s9 + $0xe38] sm:$0xff] %v1145_v7  ;;  %v1149_v9 = vld [vmem:[%s9549_s6 + $0x1c08] sm:$0xff]  ;;  %v1151_v10 = vld [vmem:[%s9549_s6 + $0x1c10] sm:$0xff] }
 0x10d   : > { %1148 = vst [vmem:[%s9554_s9 + $0xe40] sm:$0xff] %v1147_v8  ;;  %1150 = vst [vmem:[%s9554_s9 + $0xe48] sm:$0xff] %v1149_v9  ;;  %v1153_v11 = vld [vmem:[%s9549_s6 + $0x1c18] sm:$0xff]  ;;  %v1155_v12 = vld [vmem:[%s9549_s6 + $0x1cc0] sm:$0xff] }
 0x10e   : > { %1152 = vst [vmem:[%s9554_s9 + $0xe50] sm:$0xff] %v1151_v10  ;;  %v1157_v13 = vld [vmem:[%s9549_s6 + $0x1cc8] sm:$0xff]  ;;  %1154 = vst [vmem:[%s9554_s9 + $0xe58] sm:$0xff] %v1153_v11  ;;  %v1159_v14 = vld [vmem:[%s9549_s6 + $0x1cd0] sm:$0xff] }
 0x10f   : > { %1156 = vst [vmem:[%s9554_s9 + $0xe60] sm:$0xff] %v1155_v12  ;;  %1158 = vst [vmem:[%s9554_s9 + $0xe68] sm:$0xff] %v1157_v13  ;;  %v1161_v15 = vld [vmem:[%s9549_s6 + $0x1cd8] sm:$0xff]  ;;  %v1163_v16 = vld [vmem:[%s9549_s6 + $0x1ce0] sm:$0xff] }
 0x110   : > { %1160 = vst [vmem:[%s9554_s9 + $0xe70] sm:$0xff] %v1159_v14  ;;  %1162 = vst [vmem:[%s9554_s9 + $0xe78] sm:$0xff] %v1161_v15  ;;  %v1165_v17 = vld [vmem:[%s9549_s6 + $0x1ce8] sm:$0xff]  ;;  %v1167_v18 = vld [vmem:[%s9549_s6 + $0x1cf0] sm:$0xff] }
 0x111   : > { %1164 = vst [vmem:[%s9554_s9 + $0xe80] sm:$0xff] %v1163_v16  ;;  %v1169_v19 = vld [vmem:[%s9549_s6 + $0x1cf8] sm:$0xff]  ;;  %1166 = vst [vmem:[%s9554_s9 + $0xe88] sm:$0xff] %v1165_v17  ;;  %v1171_v20 = vld [vmem:[%s9549_s6 + $0x1d00] sm:$0xff] }
 0x112   : > { %1168 = vst [vmem:[%s9554_s9 + $0xe90] sm:$0xff] %v1167_v18  ;;  %1170 = vst [vmem:[%s9554_s9 + $0xe98] sm:$0xff] %v1169_v19  ;;  %v1173_v21 = vld [vmem:[%s9549_s6 + $0x1d08] sm:$0xff]  ;;  %v1175_v22 = vld [vmem:[%s9549_s6 + $0x1d10] sm:$0xff] }
 0x113   : > { %1172 = vst [vmem:[%s9554_s9 + $0xea0] sm:$0xff] %v1171_v20  ;;  %1174 = vst [vmem:[%s9554_s9 + $0xea8] sm:$0xff] %v1173_v21  ;;  %v1177_v23 = vld [vmem:[%s9549_s6 + $0x1d18] sm:$0xff]  ;;  %v1179_v24 = vld [vmem:[%s9549_s6 + $0x1d20] sm:$0xff] }
 0x114   : > { %1176 = vst [vmem:[%s9554_s9 + $0xeb0] sm:$0xff] %v1175_v22  ;;  %v1181_v25 = vld [vmem:[%s9549_s6 + $0x1d28] sm:$0xff]  ;;  %1178 = vst [vmem:[%s9554_s9 + $0xeb8] sm:$0xff] %v1177_v23  ;;  %v1183_v26 = vld [vmem:[%s9549_s6 + $0x1d30] sm:$0xff] }
 0x115   : > { %1180 = vst [vmem:[%s9554_s9 + $0xec0] sm:$0xff] %v1179_v24  ;;  %1182 = vst [vmem:[%s9554_s9 + $0xec8] sm:$0xff] %v1181_v25  ;;  %v1185_v27 = vld [vmem:[%s9549_s6 + $0x1d38] sm:$0xff]  ;;  %v1187_v28 = vld [vmem:[%s9549_s6 + $0x1d40] sm:$0xff] }
 0x116   : > { %1184 = vst [vmem:[%s9554_s9 + $0xed0] sm:$0xff] %v1183_v26  ;;  %1186 = vst [vmem:[%s9554_s9 + $0xed8] sm:$0xff] %v1185_v27  ;;  %v1189_v29 = vld [vmem:[%s9549_s6 + $0x1d48] sm:$0xff]  ;;  %v1191_v30 = vld [vmem:[%s9549_s6 + $0x1d50] sm:$0xff] }
 0x117   : > { %1188 = vst [vmem:[%s9554_s9 + $0xee0] sm:$0xff] %v1187_v28  ;;  %v1193_v31 = vld [vmem:[%s9549_s6 + $0x1d58] sm:$0xff]  ;;  %1190 = vst [vmem:[%s9554_s9 + $0xee8] sm:$0xff] %v1189_v29  ;;  %v1195_v32 = vld [vmem:[%s9549_s6 + $0x1e00] sm:$0xff] }
 0x118   : > { %1192 = vst [vmem:[%s9554_s9 + $0xef0] sm:$0xff] %v1191_v30  ;;  %1194 = vst [vmem:[%s9554_s9 + $0xef8] sm:$0xff] %v1193_v31  ;;  %v1197_v33 = vld [vmem:[%s9549_s6 + $0x1e08] sm:$0xff]  ;;  %v1199_v34 = vld [vmem:[%s9549_s6 + $0x1e10] sm:$0xff] }
 0x119   : > { %1196 = vst [vmem:[%s9554_s9 + $0xf00] sm:$0xff] %v1195_v32  ;;  %1198 = vst [vmem:[%s9554_s9 + $0xf08] sm:$0xff] %v1197_v33  ;;  %v1201_v35 = vld [vmem:[%s9549_s6 + $0x1e18] sm:$0xff]  ;;  %v1203_v36 = vld [vmem:[%s9549_s6 + $0x1e20] sm:$0xff] }
 0x11a   : > { %1200 = vst [vmem:[%s9554_s9 + $0xf10] sm:$0xff] %v1199_v34  ;;  %v1205_v37 = vld [vmem:[%s9549_s6 + $0x1e28] sm:$0xff]  ;;  %1202 = vst [vmem:[%s9554_s9 + $0xf18] sm:$0xff] %v1201_v35  ;;  %v1207_v38 = vld [vmem:[%s9549_s6 + $0x1e30] sm:$0xff] }
 0x11b   : > { %1204 = vst [vmem:[%s9554_s9 + $0xf20] sm:$0xff] %v1203_v36  ;;  %1206 = vst [vmem:[%s9554_s9 + $0xf28] sm:$0xff] %v1205_v37  ;;  %v1209_v39 = vld [vmem:[%s9549_s6 + $0x1e38] sm:$0xff]  ;;  %v1211_v40 = vld [vmem:[%s9549_s6 + $0x1e40] sm:$0xff] }
 0x11c   : > { %1208 = vst [vmem:[%s9554_s9 + $0xf30] sm:$0xff] %v1207_v38  ;;  %1210 = vst [vmem:[%s9554_s9 + $0xf38] sm:$0xff] %v1209_v39  ;;  %v1213_v41 = vld [vmem:[%s9549_s6 + $0x1e48] sm:$0xff]  ;;  %v1215_v42 = vld [vmem:[%s9549_s6 + $0x1e50] sm:$0xff] }
 0x11d   : > { %1212 = vst [vmem:[%s9554_s9 + $0xf40] sm:$0xff] %v1211_v40  ;;  %v1217_v43 = vld [vmem:[%s9549_s6 + $0x1e58] sm:$0xff]  ;;  %1214 = vst [vmem:[%s9554_s9 + $0xf48] sm:$0xff] %v1213_v41  ;;  %v1219_v44 = vld [vmem:[%s9549_s6 + $0x1e60] sm:$0xff] }
 0x11e   : > { %1216 = vst [vmem:[%s9554_s9 + $0xf50] sm:$0xff] %v1215_v42  ;;  %1218 = vst [vmem:[%s9554_s9 + $0xf58] sm:$0xff] %v1217_v43  ;;  %v1221_v45 = vld [vmem:[%s9549_s6 + $0x1e68] sm:$0xff]  ;;  %v1223_v46 = vld [vmem:[%s9549_s6 + $0x1e70] sm:$0xff] }
 0x11f   : > { %1220 = vst [vmem:[%s9554_s9 + $0xf60] sm:$0xff] %v1219_v44  ;;  %1222 = vst [vmem:[%s9554_s9 + $0xf68] sm:$0xff] %v1221_v45  ;;  %v1225_v47 = vld [vmem:[%s9549_s6 + $0x1e78] sm:$0xff]  ;;  %v1227_v48 = vld [vmem:[%s9549_s6 + $0x1e80] sm:$0xff] }
 0x120   : > { %1224 = vst [vmem:[%s9554_s9 + $0xf70] sm:$0xff] %v1223_v46  ;;  %v1229_v49 = vld [vmem:[%s9549_s6 + $0x1e88] sm:$0xff]  ;;  %1226 = vst [vmem:[%s9554_s9 + $0xf78] sm:$0xff] %v1225_v47  ;;  %v1231_v50 = vld [vmem:[%s9549_s6 + $0x1e90] sm:$0xff] }
 0x121   : > { %1228 = vst [vmem:[%s9554_s9 + $0xf80] sm:$0xff] %v1227_v48  ;;  %1230 = vst [vmem:[%s9554_s9 + $0xf88] sm:$0xff] %v1229_v49  ;;  %v1233_v51 = vld [vmem:[%s9549_s6 + $0x1e98] sm:$0xff]  ;;  %v1235_v52 = vld [vmem:[%s9549_s6 + $0x1f40] sm:$0xff] }
 0x122   : > { %1232 = vst [vmem:[%s9554_s9 + $0xf90] sm:$0xff] %v1231_v50  ;;  %1234 = vst [vmem:[%s9554_s9 + $0xf98] sm:$0xff] %v1233_v51  ;;  %v1237_v53 = vld [vmem:[%s9549_s6 + $0x1f48] sm:$0xff]  ;;  %v1239_v54 = vld [vmem:[%s9549_s6 + $0x1f50] sm:$0xff] }
 0x123   : > { %1236 = vst [vmem:[%s9554_s9 + $0xfa0] sm:$0xff] %v1235_v52  ;;  %v1241_v55 = vld [vmem:[%s9549_s6 + $0x1f58] sm:$0xff]  ;;  %1238 = vst [vmem:[%s9554_s9 + $0xfa8] sm:$0xff] %v1237_v53  ;;  %v1243_v56 = vld [vmem:[%s9549_s6 + $0x1f60] sm:$0xff] }
 0x124   : > { %1240 = vst [vmem:[%s9554_s9 + $0xfb0] sm:$0xff] %v1239_v54  ;;  %1242 = vst [vmem:[%s9554_s9 + $0xfb8] sm:$0xff] %v1241_v55  ;;  %v1245_v57 = vld [vmem:[%s9549_s6 + $0x1f68] sm:$0xff]  ;;  %v1247_v58 = vld [vmem:[%s9549_s6 + $0x1f70] sm:$0xff] }
 0x125   : > { %1244 = vst [vmem:[%s9554_s9 + $0xfc0] sm:$0xff] %v1243_v56  ;;  %1246 = vst [vmem:[%s9554_s9 + $0xfc8] sm:$0xff] %v1245_v57  ;;  %v1249_v59 = vld [vmem:[%s9549_s6 + $0x1f78] sm:$0xff]  ;;  %v1251_v60 = vld [vmem:[%s9549_s6 + $0x1f80] sm:$0xff] }
 0x126   : > { %1248 = vst [vmem:[%s9554_s9 + $0xfd0] sm:$0xff] %v1247_v58  ;;  %v1253_v61 = vld [vmem:[%s9549_s6 + $0x1f88] sm:$0xff]  ;;  %1250 = vst [vmem:[%s9554_s9 + $0xfd8] sm:$0xff] %v1249_v59  ;;  %v1255_v62 = vld [vmem:[%s9549_s6 + $0x1f90] sm:$0xff] }
 0x127   : > { %1252 = vst [vmem:[%s9554_s9 + $0xfe0] sm:$0xff] %v1251_v60  ;;  %1254 = vst [vmem:[%s9554_s9 + $0xfe8] sm:$0xff] %v1253_v61  ;;  %v1257_v63 = vld [vmem:[%s9549_s6 + $0x1f98] sm:$0xff]  ;;  %v1259_v0 = vld [vmem:[%s9549_s6 + $0x1fa0] sm:$0xff] }
 0x128   : > { %1256 = vst [vmem:[%s9554_s9 + $0xff0] sm:$0xff] %v1255_v62  ;;  %1258 = vst [vmem:[%s9554_s9 + $0xff8] sm:$0xff] %v1257_v63  ;;  %v1261_v1 = vld [vmem:[%s9549_s6 + $0x1fa8] sm:$0xff]  ;;  %v1263_v2 = vld [vmem:[%s9549_s6 + $0x1fb0] sm:$0xff] }
 0x129   : > { %1260 = vst [vmem:[%s9554_s9 + $0x1000] sm:$0xff] %v1259_v0  ;;  %v1265_v3 = vld [vmem:[%s9549_s6 + $0x1fb8] sm:$0xff]  ;;  %1262 = vst [vmem:[%s9554_s9 + $0x1008] sm:$0xff] %v1261_v1  ;;  %v1267_v4 = vld [vmem:[%s9549_s6 + $0x1fc0] sm:$0xff] }
 0x12a   : > { %1264 = vst [vmem:[%s9554_s9 + $0x1010] sm:$0xff] %v1263_v2  ;;  %1266 = vst [vmem:[%s9554_s9 + $0x1018] sm:$0xff] %v1265_v3  ;;  %v1269_v5 = vld [vmem:[%s9549_s6 + $0x1fc8] sm:$0xff]  ;;  %v1271_v6 = vld [vmem:[%s9549_s6 + $0x1fd0] sm:$0xff] }
 0x12b   : > { %1268 = vst [vmem:[%s9554_s9 + $0x1020] sm:$0xff] %v1267_v4  ;;  %1270 = vst [vmem:[%s9554_s9 + $0x1028] sm:$0xff] %v1269_v5  ;;  %v1273_v7 = vld [vmem:[%s9549_s6 + $0x1fd8] sm:$0xff]  ;;  %v1275_v8 = vld [vmem:[%s9549_s6 + $0x2080] sm:$0xff] }
 0x12c   : > { %1272 = vst [vmem:[%s9554_s9 + $0x1030] sm:$0xff] %v1271_v6  ;;  %v1277_v9 = vld [vmem:[%s9549_s6 + $0x2088] sm:$0xff]  ;;  %1274 = vst [vmem:[%s9554_s9 + $0x1038] sm:$0xff] %v1273_v7  ;;  %v1279_v10 = vld [vmem:[%s9549_s6 + $0x2090] sm:$0xff] }
 0x12d   : > { %1276 = vst [vmem:[%s9554_s9 + $0x1040] sm:$0xff] %v1275_v8  ;;  %1278 = vst [vmem:[%s9554_s9 + $0x1048] sm:$0xff] %v1277_v9  ;;  %v1281_v11 = vld [vmem:[%s9549_s6 + $0x2098] sm:$0xff]  ;;  %v1283_v12 = vld [vmem:[%s9549_s6 + $0x20a0] sm:$0xff] }
 0x12e   : > { %1280 = vst [vmem:[%s9554_s9 + $0x1050] sm:$0xff] %v1279_v10  ;;  %1282 = vst [vmem:[%s9554_s9 + $0x1058] sm:$0xff] %v1281_v11  ;;  %v1285_v13 = vld [vmem:[%s9549_s6 + $0x20a8] sm:$0xff]  ;;  %v1287_v14 = vld [vmem:[%s9549_s6 + $0x20b0] sm:$0xff] }
 0x12f   : > { %1284 = vst [vmem:[%s9554_s9 + $0x1060] sm:$0xff] %v1283_v12  ;;  %v1289_v15 = vld [vmem:[%s9549_s6 + $0x20b8] sm:$0xff]  ;;  %1286 = vst [vmem:[%s9554_s9 + $0x1068] sm:$0xff] %v1285_v13  ;;  %v1291_v16 = vld [vmem:[%s9549_s6 + $0x20c0] sm:$0xff] }
 0x130   : > { %1288 = vst [vmem:[%s9554_s9 + $0x1070] sm:$0xff] %v1287_v14  ;;  %1290 = vst [vmem:[%s9554_s9 + $0x1078] sm:$0xff] %v1289_v15  ;;  %v1293_v17 = vld [vmem:[%s9549_s6 + $0x20c8] sm:$0xff]  ;;  %v1295_v18 = vld [vmem:[%s9549_s6 + $0x20d0] sm:$0xff] }
 0x131   : > { %1292 = vst [vmem:[%s9554_s9 + $0x1080] sm:$0xff] %v1291_v16  ;;  %1294 = vst [vmem:[%s9554_s9 + $0x1088] sm:$0xff] %v1293_v17  ;;  %v1297_v19 = vld [vmem:[%s9549_s6 + $0x20d8] sm:$0xff]  ;;  %v1299_v20 = vld [vmem:[%s9549_s6 + $0x20e0] sm:$0xff] }
 0x132   : > { %1296 = vst [vmem:[%s9554_s9 + $0x1090] sm:$0xff] %v1295_v18  ;;  %v1301_v21 = vld [vmem:[%s9549_s6 + $0x20e8] sm:$0xff]  ;;  %1298 = vst [vmem:[%s9554_s9 + $0x1098] sm:$0xff] %v1297_v19  ;;  %v1303_v22 = vld [vmem:[%s9549_s6 + $0x20f0] sm:$0xff] }
 0x133   : > { %1300 = vst [vmem:[%s9554_s9 + $0x10a0] sm:$0xff] %v1299_v20  ;;  %1302 = vst [vmem:[%s9554_s9 + $0x10a8] sm:$0xff] %v1301_v21  ;;  %v1305_v23 = vld [vmem:[%s9549_s6 + $0x20f8] sm:$0xff]  ;;  %v1307_v24 = vld [vmem:[%s9549_s6 + $0x2100] sm:$0xff] }
 0x134   : > { %1304 = vst [vmem:[%s9554_s9 + $0x10b0] sm:$0xff] %v1303_v22  ;;  %1306 = vst [vmem:[%s9554_s9 + $0x10b8] sm:$0xff] %v1305_v23  ;;  %v1309_v25 = vld [vmem:[%s9549_s6 + $0x2108] sm:$0xff]  ;;  %v1311_v26 = vld [vmem:[%s9549_s6 + $0x2110] sm:$0xff] }
 0x135   : > { %1308 = vst [vmem:[%s9554_s9 + $0x10c0] sm:$0xff] %v1307_v24  ;;  %v1313_v27 = vld [vmem:[%s9549_s6 + $0x2118] sm:$0xff]  ;;  %1310 = vst [vmem:[%s9554_s9 + $0x10c8] sm:$0xff] %v1309_v25  ;;  %v1315_v28 = vld [vmem:[%s9549_s6 + $0x21c0] sm:$0xff] }
 0x136   : > { %1312 = vst [vmem:[%s9554_s9 + $0x10d0] sm:$0xff] %v1311_v26  ;;  %1314 = vst [vmem:[%s9554_s9 + $0x10d8] sm:$0xff] %v1313_v27  ;;  %v1317_v29 = vld [vmem:[%s9549_s6 + $0x21c8] sm:$0xff]  ;;  %v1319_v30 = vld [vmem:[%s9549_s6 + $0x21d0] sm:$0xff] }
 0x137   : > { %1316 = vst [vmem:[%s9554_s9 + $0x10e0] sm:$0xff] %v1315_v28  ;;  %1318 = vst [vmem:[%s9554_s9 + $0x10e8] sm:$0xff] %v1317_v29  ;;  %v1321_v31 = vld [vmem:[%s9549_s6 + $0x21d8] sm:$0xff]  ;;  %v1323_v32 = vld [vmem:[%s9549_s6 + $0x21e0] sm:$0xff] }
 0x138   : > { %1320 = vst [vmem:[%s9554_s9 + $0x10f0] sm:$0xff] %v1319_v30  ;;  %v1325_v33 = vld [vmem:[%s9549_s6 + $0x21e8] sm:$0xff]  ;;  %1322 = vst [vmem:[%s9554_s9 + $0x10f8] sm:$0xff] %v1321_v31  ;;  %v1327_v34 = vld [vmem:[%s9549_s6 + $0x21f0] sm:$0xff] }
 0x139   : > { %1324 = vst [vmem:[%s9554_s9 + $0x1100] sm:$0xff] %v1323_v32  ;;  %1326 = vst [vmem:[%s9554_s9 + $0x1108] sm:$0xff] %v1325_v33  ;;  %v1329_v35 = vld [vmem:[%s9549_s6 + $0x21f8] sm:$0xff]  ;;  %v1331_v36 = vld [vmem:[%s9549_s6 + $0x2200] sm:$0xff] }
 0x13a   : > { %1328 = vst [vmem:[%s9554_s9 + $0x1110] sm:$0xff] %v1327_v34  ;;  %1330 = vst [vmem:[%s9554_s9 + $0x1118] sm:$0xff] %v1329_v35  ;;  %v1333_v37 = vld [vmem:[%s9549_s6 + $0x2208] sm:$0xff]  ;;  %v1335_v38 = vld [vmem:[%s9549_s6 + $0x2210] sm:$0xff] }
 0x13b   : > { %1332 = vst [vmem:[%s9554_s9 + $0x1120] sm:$0xff] %v1331_v36  ;;  %v1337_v39 = vld [vmem:[%s9549_s6 + $0x2218] sm:$0xff]  ;;  %1334 = vst [vmem:[%s9554_s9 + $0x1128] sm:$0xff] %v1333_v37  ;;  %v1339_v40 = vld [vmem:[%s9549_s6 + $0x2220] sm:$0xff] }
 0x13c   : > { %1336 = vst [vmem:[%s9554_s9 + $0x1130] sm:$0xff] %v1335_v38  ;;  %1338 = vst [vmem:[%s9554_s9 + $0x1138] sm:$0xff] %v1337_v39  ;;  %v1341_v41 = vld [vmem:[%s9549_s6 + $0x2228] sm:$0xff]  ;;  %v1343_v42 = vld [vmem:[%s9549_s6 + $0x2230] sm:$0xff] }
 0x13d   : > { %1340 = vst [vmem:[%s9554_s9 + $0x1140] sm:$0xff] %v1339_v40  ;;  %1342 = vst [vmem:[%s9554_s9 + $0x1148] sm:$0xff] %v1341_v41  ;;  %v1345_v43 = vld [vmem:[%s9549_s6 + $0x2238] sm:$0xff]  ;;  %v1347_v44 = vld [vmem:[%s9549_s6 + $0x2240] sm:$0xff] }
 0x13e   : > { %1344 = vst [vmem:[%s9554_s9 + $0x1150] sm:$0xff] %v1343_v42  ;;  %v1349_v45 = vld [vmem:[%s9549_s6 + $0x2248] sm:$0xff]  ;;  %1346 = vst [vmem:[%s9554_s9 + $0x1158] sm:$0xff] %v1345_v43  ;;  %v1351_v46 = vld [vmem:[%s9549_s6 + $0x2250] sm:$0xff] }
 0x13f   : > { %1348 = vst [vmem:[%s9554_s9 + $0x1160] sm:$0xff] %v1347_v44  ;;  %1350 = vst [vmem:[%s9554_s9 + $0x1168] sm:$0xff] %v1349_v45  ;;  %v1353_v47 = vld [vmem:[%s9549_s6 + $0x2258] sm:$0xff]  ;;  %v1355_v48 = vld [vmem:[%s9549_s6 + $0x2300] sm:$0xff] }
 0x140   : > { %1352 = vst [vmem:[%s9554_s9 + $0x1170] sm:$0xff] %v1351_v46  ;;  %1354 = vst [vmem:[%s9554_s9 + $0x1178] sm:$0xff] %v1353_v47  ;;  %v1357_v49 = vld [vmem:[%s9549_s6 + $0x2308] sm:$0xff]  ;;  %v1359_v50 = vld [vmem:[%s9549_s6 + $0x2310] sm:$0xff] }
 0x141   : > { %1356 = vst [vmem:[%s9554_s9 + $0x1180] sm:$0xff] %v1355_v48  ;;  %v1361_v51 = vld [vmem:[%s9549_s6 + $0x2318] sm:$0xff]  ;;  %1358 = vst [vmem:[%s9554_s9 + $0x1188] sm:$0xff] %v1357_v49  ;;  %v1363_v52 = vld [vmem:[%s9549_s6 + $0x2320] sm:$0xff] }
 0x142   : > { %1360 = vst [vmem:[%s9554_s9 + $0x1190] sm:$0xff] %v1359_v50  ;;  %1362 = vst [vmem:[%s9554_s9 + $0x1198] sm:$0xff] %v1361_v51  ;;  %v1365_v53 = vld [vmem:[%s9549_s6 + $0x2328] sm:$0xff]  ;;  %v1367_v54 = vld [vmem:[%s9549_s6 + $0x2330] sm:$0xff] }
 0x143   : > { %1364 = vst [vmem:[%s9554_s9 + $0x11a0] sm:$0xff] %v1363_v52  ;;  %1366 = vst [vmem:[%s9554_s9 + $0x11a8] sm:$0xff] %v1365_v53  ;;  %v1369_v55 = vld [vmem:[%s9549_s6 + $0x2338] sm:$0xff]  ;;  %v1371_v56 = vld [vmem:[%s9549_s6 + $0x2340] sm:$0xff] }
 0x144   : > { %1368 = vst [vmem:[%s9554_s9 + $0x11b0] sm:$0xff] %v1367_v54  ;;  %v1373_v57 = vld [vmem:[%s9549_s6 + $0x2348] sm:$0xff]  ;;  %1370 = vst [vmem:[%s9554_s9 + $0x11b8] sm:$0xff] %v1369_v55  ;;  %v1375_v58 = vld [vmem:[%s9549_s6 + $0x2350] sm:$0xff] }
 0x145   : > { %1372 = vst [vmem:[%s9554_s9 + $0x11c0] sm:$0xff] %v1371_v56  ;;  %1374 = vst [vmem:[%s9554_s9 + $0x11c8] sm:$0xff] %v1373_v57  ;;  %v1377_v59 = vld [vmem:[%s9549_s6 + $0x2358] sm:$0xff]  ;;  %v1379_v60 = vld [vmem:[%s9549_s6 + $0x2360] sm:$0xff] }
 0x146   : > { %1376 = vst [vmem:[%s9554_s9 + $0x11d0] sm:$0xff] %v1375_v58  ;;  %1378 = vst [vmem:[%s9554_s9 + $0x11d8] sm:$0xff] %v1377_v59  ;;  %v1381_v61 = vld [vmem:[%s9549_s6 + $0x2368] sm:$0xff]  ;;  %v1383_v62 = vld [vmem:[%s9549_s6 + $0x2370] sm:$0xff] }
 0x147   : > { %1380 = vst [vmem:[%s9554_s9 + $0x11e0] sm:$0xff] %v1379_v60  ;;  %v1385_v63 = vld [vmem:[%s9549_s6 + $0x2378] sm:$0xff]  ;;  %1382 = vst [vmem:[%s9554_s9 + $0x11e8] sm:$0xff] %v1381_v61  ;;  %v1387_v0 = vld [vmem:[%s9549_s6 + $0x2380] sm:$0xff] }
 0x148   : > { %1384 = vst [vmem:[%s9554_s9 + $0x11f0] sm:$0xff] %v1383_v62  ;;  %1386 = vst [vmem:[%s9554_s9 + $0x11f8] sm:$0xff] %v1385_v63  ;;  %v1389_v1 = vld [vmem:[%s9549_s6 + $0x2388] sm:$0xff]  ;;  %v1391_v2 = vld [vmem:[%s9549_s6 + $0x2390] sm:$0xff] }
 0x149   : > { %1388 = vst [vmem:[%s9554_s9 + $0x1200] sm:$0xff] %v1387_v0  ;;  %1390 = vst [vmem:[%s9554_s9 + $0x1208] sm:$0xff] %v1389_v1  ;;  %v1393_v3 = vld [vmem:[%s9549_s6 + $0x2398] sm:$0xff]  ;;  %v1395_v4 = vld [vmem:[%s9549_s6 + $0x2440] sm:$0xff] }
 0x14a   : > { %1392 = vst [vmem:[%s9554_s9 + $0x1210] sm:$0xff] %v1391_v2  ;;  %v1397_v5 = vld [vmem:[%s9549_s6 + $0x2448] sm:$0xff]  ;;  %1394 = vst [vmem:[%s9554_s9 + $0x1218] sm:$0xff] %v1393_v3  ;;  %v1399_v6 = vld [vmem:[%s9549_s6 + $0x2450] sm:$0xff] }
 0x14b   : > { %1396 = vst [vmem:[%s9554_s9 + $0x1220] sm:$0xff] %v1395_v4  ;;  %1398 = vst [vmem:[%s9554_s9 + $0x1228] sm:$0xff] %v1397_v5  ;;  %v1401_v7 = vld [vmem:[%s9549_s6 + $0x2458] sm:$0xff]  ;;  %v1403_v8 = vld [vmem:[%s9549_s6 + $0x2460] sm:$0xff] }
 0x14c   : > { %1400 = vst [vmem:[%s9554_s9 + $0x1230] sm:$0xff] %v1399_v6  ;;  %1402 = vst [vmem:[%s9554_s9 + $0x1238] sm:$0xff] %v1401_v7  ;;  %v1405_v9 = vld [vmem:[%s9549_s6 + $0x2468] sm:$0xff]  ;;  %v1407_v10 = vld [vmem:[%s9549_s6 + $0x2470] sm:$0xff] }
 0x14d   : > { %1404 = vst [vmem:[%s9554_s9 + $0x1240] sm:$0xff] %v1403_v8  ;;  %v1409_v11 = vld [vmem:[%s9549_s6 + $0x2478] sm:$0xff]  ;;  %1406 = vst [vmem:[%s9554_s9 + $0x1248] sm:$0xff] %v1405_v9  ;;  %v1411_v12 = vld [vmem:[%s9549_s6 + $0x2480] sm:$0xff] }
 0x14e   : > { %1408 = vst [vmem:[%s9554_s9 + $0x1250] sm:$0xff] %v1407_v10  ;;  %1410 = vst [vmem:[%s9554_s9 + $0x1258] sm:$0xff] %v1409_v11  ;;  %v1413_v13 = vld [vmem:[%s9549_s6 + $0x2488] sm:$0xff]  ;;  %v1415_v14 = vld [vmem:[%s9549_s6 + $0x2490] sm:$0xff] }
 0x14f   : > { %1412 = vst [vmem:[%s9554_s9 + $0x1260] sm:$0xff] %v1411_v12  ;;  %1414 = vst [vmem:[%s9554_s9 + $0x1268] sm:$0xff] %v1413_v13  ;;  %v1417_v15 = vld [vmem:[%s9549_s6 + $0x2498] sm:$0xff]  ;;  %v1419_v16 = vld [vmem:[%s9549_s6 + $0x24a0] sm:$0xff] }
 0x150   : > { %1416 = vst [vmem:[%s9554_s9 + $0x1270] sm:$0xff] %v1415_v14  ;;  %v1421_v17 = vld [vmem:[%s9549_s6 + $0x24a8] sm:$0xff]  ;;  %1418 = vst [vmem:[%s9554_s9 + $0x1278] sm:$0xff] %v1417_v15  ;;  %v1423_v18 = vld [vmem:[%s9549_s6 + $0x24b0] sm:$0xff] }
 0x151   : > { %1420 = vst [vmem:[%s9554_s9 + $0x1280] sm:$0xff] %v1419_v16  ;;  %1422 = vst [vmem:[%s9554_s9 + $0x1288] sm:$0xff] %v1421_v17  ;;  %v1425_v19 = vld [vmem:[%s9549_s6 + $0x24b8] sm:$0xff]  ;;  %v1427_v20 = vld [vmem:[%s9549_s6 + $0x24c0] sm:$0xff] }
 0x152   : > { %1424 = vst [vmem:[%s9554_s9 + $0x1290] sm:$0xff] %v1423_v18  ;;  %1426 = vst [vmem:[%s9554_s9 + $0x1298] sm:$0xff] %v1425_v19  ;;  %v1429_v21 = vld [vmem:[%s9549_s6 + $0x24c8] sm:$0xff]  ;;  %v1431_v22 = vld [vmem:[%s9549_s6 + $0x24d0] sm:$0xff] }
 0x153   : > { %1428 = vst [vmem:[%s9554_s9 + $0x12a0] sm:$0xff] %v1427_v20  ;;  %v1433_v23 = vld [vmem:[%s9549_s6 + $0x24d8] sm:$0xff]  ;;  %1430 = vst [vmem:[%s9554_s9 + $0x12a8] sm:$0xff] %v1429_v21  ;;  %v1435_v24 = vld [vmem:[%s9549_s6 + $0x2580] sm:$0xff] }
 0x154   : > { %1432 = vst [vmem:[%s9554_s9 + $0x12b0] sm:$0xff] %v1431_v22  ;;  %1434 = vst [vmem:[%s9554_s9 + $0x12b8] sm:$0xff] %v1433_v23  ;;  %v1437_v25 = vld [vmem:[%s9549_s6 + $0x2588] sm:$0xff]  ;;  %v1439_v26 = vld [vmem:[%s9549_s6 + $0x2590] sm:$0xff] }
 0x155   : > { %1436 = vst [vmem:[%s9554_s9 + $0x12c0] sm:$0xff] %v1435_v24  ;;  %1438 = vst [vmem:[%s9554_s9 + $0x12c8] sm:$0xff] %v1437_v25  ;;  %v1441_v27 = vld [vmem:[%s9549_s6 + $0x2598] sm:$0xff]  ;;  %v1443_v28 = vld [vmem:[%s9549_s6 + $0x25a0] sm:$0xff] }
 0x156   : > { %1440 = vst [vmem:[%s9554_s9 + $0x12d0] sm:$0xff] %v1439_v26  ;;  %v1445_v29 = vld [vmem:[%s9549_s6 + $0x25a8] sm:$0xff]  ;;  %1442 = vst [vmem:[%s9554_s9 + $0x12d8] sm:$0xff] %v1441_v27  ;;  %v1447_v30 = vld [vmem:[%s9549_s6 + $0x25b0] sm:$0xff] }
 0x157   : > { %1444 = vst [vmem:[%s9554_s9 + $0x12e0] sm:$0xff] %v1443_v28  ;;  %1446 = vst [vmem:[%s9554_s9 + $0x12e8] sm:$0xff] %v1445_v29  ;;  %v1449_v31 = vld [vmem:[%s9549_s6 + $0x25b8] sm:$0xff]  ;;  %v1451_v32 = vld [vmem:[%s9549_s6 + $0x25c0] sm:$0xff] }
 0x158   : > { %1448 = vst [vmem:[%s9554_s9 + $0x12f0] sm:$0xff] %v1447_v30  ;;  %1450 = vst [vmem:[%s9554_s9 + $0x12f8] sm:$0xff] %v1449_v31  ;;  %v1453_v33 = vld [vmem:[%s9549_s6 + $0x25c8] sm:$0xff]  ;;  %v1455_v34 = vld [vmem:[%s9549_s6 + $0x25d0] sm:$0xff] }
 0x159   : > { %1452 = vst [vmem:[%s9554_s9 + $0x1300] sm:$0xff] %v1451_v32  ;;  %v1457_v35 = vld [vmem:[%s9549_s6 + $0x25d8] sm:$0xff]  ;;  %1454 = vst [vmem:[%s9554_s9 + $0x1308] sm:$0xff] %v1453_v33  ;;  %v1459_v36 = vld [vmem:[%s9549_s6 + $0x25e0] sm:$0xff] }
 0x15a   : > { %1456 = vst [vmem:[%s9554_s9 + $0x1310] sm:$0xff] %v1455_v34  ;;  %1458 = vst [vmem:[%s9554_s9 + $0x1318] sm:$0xff] %v1457_v35  ;;  %v1461_v37 = vld [vmem:[%s9549_s6 + $0x25e8] sm:$0xff]  ;;  %v1463_v38 = vld [vmem:[%s9549_s6 + $0x25f0] sm:$0xff] }
 0x15b   : > { %1460 = vst [vmem:[%s9554_s9 + $0x1320] sm:$0xff] %v1459_v36  ;;  %1462 = vst [vmem:[%s9554_s9 + $0x1328] sm:$0xff] %v1461_v37  ;;  %v1465_v39 = vld [vmem:[%s9549_s6 + $0x25f8] sm:$0xff]  ;;  %v1467_v40 = vld [vmem:[%s9549_s6 + $0x2600] sm:$0xff] }
 0x15c   : > { %1464 = vst [vmem:[%s9554_s9 + $0x1330] sm:$0xff] %v1463_v38  ;;  %v1469_v41 = vld [vmem:[%s9549_s6 + $0x2608] sm:$0xff]  ;;  %1466 = vst [vmem:[%s9554_s9 + $0x1338] sm:$0xff] %v1465_v39  ;;  %v1471_v42 = vld [vmem:[%s9549_s6 + $0x2610] sm:$0xff] }
 0x15d   : > { %1468 = vst [vmem:[%s9554_s9 + $0x1340] sm:$0xff] %v1467_v40  ;;  %1470 = vst [vmem:[%s9554_s9 + $0x1348] sm:$0xff] %v1469_v41  ;;  %v1473_v43 = vld [vmem:[%s9549_s6 + $0x2618] sm:$0xff]  ;;  %v1475_v44 = vld [vmem:[%s9549_s6 + $0x26c0] sm:$0xff] }
 0x15e   : > { %1472 = vst [vmem:[%s9554_s9 + $0x1350] sm:$0xff] %v1471_v42  ;;  %1474 = vst [vmem:[%s9554_s9 + $0x1358] sm:$0xff] %v1473_v43  ;;  %v1477_v45 = vld [vmem:[%s9549_s6 + $0x26c8] sm:$0xff]  ;;  %v1479_v46 = vld [vmem:[%s9549_s6 + $0x26d0] sm:$0xff] }
 0x15f   : > { %1476 = vst [vmem:[%s9554_s9 + $0x1360] sm:$0xff] %v1475_v44  ;;  %v1481_v47 = vld [vmem:[%s9549_s6 + $0x26d8] sm:$0xff]  ;;  %1478 = vst [vmem:[%s9554_s9 + $0x1368] sm:$0xff] %v1477_v45  ;;  %v1483_v48 = vld [vmem:[%s9549_s6 + $0x26e0] sm:$0xff] }
 0x160   : > { %1480 = vst [vmem:[%s9554_s9 + $0x1370] sm:$0xff] %v1479_v46  ;;  %1482 = vst [vmem:[%s9554_s9 + $0x1378] sm:$0xff] %v1481_v47  ;;  %v1485_v49 = vld [vmem:[%s9549_s6 + $0x26e8] sm:$0xff]  ;;  %v1487_v50 = vld [vmem:[%s9549_s6 + $0x26f0] sm:$0xff] }
 0x161   : > { %1484 = vst [vmem:[%s9554_s9 + $0x1380] sm:$0xff] %v1483_v48  ;;  %1486 = vst [vmem:[%s9554_s9 + $0x1388] sm:$0xff] %v1485_v49  ;;  %v1489_v51 = vld [vmem:[%s9549_s6 + $0x26f8] sm:$0xff]  ;;  %v1491_v52 = vld [vmem:[%s9549_s6 + $0x2700] sm:$0xff] }
 0x162   : > { %1488 = vst [vmem:[%s9554_s9 + $0x1390] sm:$0xff] %v1487_v50  ;;  %v1493_v53 = vld [vmem:[%s9549_s6 + $0x2708] sm:$0xff]  ;;  %1490 = vst [vmem:[%s9554_s9 + $0x1398] sm:$0xff] %v1489_v51  ;;  %v1495_v54 = vld [vmem:[%s9549_s6 + $0x2710] sm:$0xff] }
 0x163   : > { %1492 = vst [vmem:[%s9554_s9 + $0x13a0] sm:$0xff] %v1491_v52  ;;  %1494 = vst [vmem:[%s9554_s9 + $0x13a8] sm:$0xff] %v1493_v53  ;;  %v1497_v55 = vld [vmem:[%s9549_s6 + $0x2718] sm:$0xff]  ;;  %v1499_v56 = vld [vmem:[%s9549_s6 + $0x2720] sm:$0xff] }
 0x164   : > { %1496 = vst [vmem:[%s9554_s9 + $0x13b0] sm:$0xff] %v1495_v54  ;;  %1498 = vst [vmem:[%s9554_s9 + $0x13b8] sm:$0xff] %v1497_v55  ;;  %v1501_v57 = vld [vmem:[%s9549_s6 + $0x2728] sm:$0xff]  ;;  %v1503_v58 = vld [vmem:[%s9549_s6 + $0x2730] sm:$0xff] }
 0x165   : > { %1500 = vst [vmem:[%s9554_s9 + $0x13c0] sm:$0xff] %v1499_v56  ;;  %v1505_v59 = vld [vmem:[%s9549_s6 + $0x2738] sm:$0xff]  ;;  %1502 = vst [vmem:[%s9554_s9 + $0x13c8] sm:$0xff] %v1501_v57  ;;  %v1507_v60 = vld [vmem:[%s9549_s6 + $0x2740] sm:$0xff] }
 0x166   : > { %1504 = vst [vmem:[%s9554_s9 + $0x13d0] sm:$0xff] %v1503_v58  ;;  %1506 = vst [vmem:[%s9554_s9 + $0x13d8] sm:$0xff] %v1505_v59  ;;  %v1509_v61 = vld [vmem:[%s9549_s6 + $0x2748] sm:$0xff]  ;;  %v1511_v62 = vld [vmem:[%s9549_s6 + $0x2750] sm:$0xff] }
 0x167   : > { %1508 = vst [vmem:[%s9554_s9 + $0x13e0] sm:$0xff] %v1507_v60  ;;  %1510 = vst [vmem:[%s9554_s9 + $0x13e8] sm:$0xff] %v1509_v61  ;;  %v1513_v63 = vld [vmem:[%s9549_s6 + $0x2758] sm:$0xff]  ;;  %v1515_v0 = vld [vmem:[%s9549_s6 + $0x2800] sm:$0xff] }
 0x168   : > { %1512 = vst [vmem:[%s9554_s9 + $0x13f0] sm:$0xff] %v1511_v62  ;;  %v1517_v1 = vld [vmem:[%s9549_s6 + $0x2808] sm:$0xff]  ;;  %1514 = vst [vmem:[%s9554_s9 + $0x13f8] sm:$0xff] %v1513_v63  ;;  %v1519_v2 = vld [vmem:[%s9549_s6 + $0x2810] sm:$0xff] }
 0x169   : > { %1516 = vst [vmem:[%s9554_s9 + $0x1400] sm:$0xff] %v1515_v0  ;;  %1518 = vst [vmem:[%s9554_s9 + $0x1408] sm:$0xff] %v1517_v1  ;;  %v1521_v3 = vld [vmem:[%s9549_s6 + $0x2818] sm:$0xff]  ;;  %v1523_v4 = vld [vmem:[%s9549_s6 + $0x2820] sm:$0xff] }
 0x16a   : > { %1520 = vst [vmem:[%s9554_s9 + $0x1410] sm:$0xff] %v1519_v2  ;;  %1522 = vst [vmem:[%s9554_s9 + $0x1418] sm:$0xff] %v1521_v3  ;;  %v1525_v5 = vld [vmem:[%s9549_s6 + $0x2828] sm:$0xff]  ;;  %v1527_v6 = vld [vmem:[%s9549_s6 + $0x2830] sm:$0xff] }
 0x16b   : > { %1524 = vst [vmem:[%s9554_s9 + $0x1420] sm:$0xff] %v1523_v4  ;;  %v1529_v7 = vld [vmem:[%s9549_s6 + $0x2838] sm:$0xff]  ;;  %1526 = vst [vmem:[%s9554_s9 + $0x1428] sm:$0xff] %v1525_v5  ;;  %v1531_v8 = vld [vmem:[%s9549_s6 + $0x2840] sm:$0xff] }
 0x16c   : > { %1528 = vst [vmem:[%s9554_s9 + $0x1430] sm:$0xff] %v1527_v6  ;;  %1530 = vst [vmem:[%s9554_s9 + $0x1438] sm:$0xff] %v1529_v7  ;;  %v1533_v9 = vld [vmem:[%s9549_s6 + $0x2848] sm:$0xff]  ;;  %v1535_v10 = vld [vmem:[%s9549_s6 + $0x2850] sm:$0xff] }
 0x16d   : > { %1532 = vst [vmem:[%s9554_s9 + $0x1440] sm:$0xff] %v1531_v8  ;;  %1534 = vst [vmem:[%s9554_s9 + $0x1448] sm:$0xff] %v1533_v9  ;;  %v1537_v11 = vld [vmem:[%s9549_s6 + $0x2858] sm:$0xff]  ;;  %v1539_v12 = vld [vmem:[%s9549_s6 + $0x2860] sm:$0xff] }
 0x16e   : > { %1536 = vst [vmem:[%s9554_s9 + $0x1450] sm:$0xff] %v1535_v10  ;;  %v1541_v13 = vld [vmem:[%s9549_s6 + $0x2868] sm:$0xff]  ;;  %1538 = vst [vmem:[%s9554_s9 + $0x1458] sm:$0xff] %v1537_v11  ;;  %v1543_v14 = vld [vmem:[%s9549_s6 + $0x2870] sm:$0xff] }
 0x16f   : > { %1540 = vst [vmem:[%s9554_s9 + $0x1460] sm:$0xff] %v1539_v12  ;;  %1542 = vst [vmem:[%s9554_s9 + $0x1468] sm:$0xff] %v1541_v13  ;;  %v1545_v15 = vld [vmem:[%s9549_s6 + $0x2878] sm:$0xff]  ;;  %v1547_v16 = vld [vmem:[%s9549_s6 + $0x2880] sm:$0xff] }
 0x170   : > { %1544 = vst [vmem:[%s9554_s9 + $0x1470] sm:$0xff] %v1543_v14  ;;  %1546 = vst [vmem:[%s9554_s9 + $0x1478] sm:$0xff] %v1545_v15  ;;  %v1549_v17 = vld [vmem:[%s9549_s6 + $0x2888] sm:$0xff]  ;;  %v1551_v18 = vld [vmem:[%s9549_s6 + $0x2890] sm:$0xff] }
 0x171   : > { %1548 = vst [vmem:[%s9554_s9 + $0x1480] sm:$0xff] %v1547_v16  ;;  %v1553_v19 = vld [vmem:[%s9549_s6 + $0x2898] sm:$0xff]  ;;  %1550 = vst [vmem:[%s9554_s9 + $0x1488] sm:$0xff] %v1549_v17  ;;  %v1555_v20 = vld [vmem:[%s9549_s6 + $0x2940] sm:$0xff] }
 0x172   : > { %1552 = vst [vmem:[%s9554_s9 + $0x1490] sm:$0xff] %v1551_v18  ;;  %1554 = vst [vmem:[%s9554_s9 + $0x1498] sm:$0xff] %v1553_v19  ;;  %v1557_v21 = vld [vmem:[%s9549_s6 + $0x2948] sm:$0xff]  ;;  %v1559_v22 = vld [vmem:[%s9549_s6 + $0x2950] sm:$0xff] }
 0x173   : > { %1556 = vst [vmem:[%s9554_s9 + $0x14a0] sm:$0xff] %v1555_v20  ;;  %1558 = vst [vmem:[%s9554_s9 + $0x14a8] sm:$0xff] %v1557_v21  ;;  %v1561_v23 = vld [vmem:[%s9549_s6 + $0x2958] sm:$0xff]  ;;  %v1563_v24 = vld [vmem:[%s9549_s6 + $0x2960] sm:$0xff] }
 0x174   : > { %1560 = vst [vmem:[%s9554_s9 + $0x14b0] sm:$0xff] %v1559_v22  ;;  %v1565_v25 = vld [vmem:[%s9549_s6 + $0x2968] sm:$0xff]  ;;  %1562 = vst [vmem:[%s9554_s9 + $0x14b8] sm:$0xff] %v1561_v23  ;;  %v1567_v26 = vld [vmem:[%s9549_s6 + $0x2970] sm:$0xff] }
 0x175   : > { %1564 = vst [vmem:[%s9554_s9 + $0x14c0] sm:$0xff] %v1563_v24  ;;  %1566 = vst [vmem:[%s9554_s9 + $0x14c8] sm:$0xff] %v1565_v25  ;;  %v1569_v27 = vld [vmem:[%s9549_s6 + $0x2978] sm:$0xff]  ;;  %v1571_v28 = vld [vmem:[%s9549_s6 + $0x2980] sm:$0xff] }
 0x176   : > { %1568 = vst [vmem:[%s9554_s9 + $0x14d0] sm:$0xff] %v1567_v26  ;;  %1570 = vst [vmem:[%s9554_s9 + $0x14d8] sm:$0xff] %v1569_v27  ;;  %v1573_v29 = vld [vmem:[%s9549_s6 + $0x2988] sm:$0xff]  ;;  %v1575_v30 = vld [vmem:[%s9549_s6 + $0x2990] sm:$0xff] }
 0x177   : > { %1572 = vst [vmem:[%s9554_s9 + $0x14e0] sm:$0xff] %v1571_v28  ;;  %v1577_v31 = vld [vmem:[%s9549_s6 + $0x2998] sm:$0xff]  ;;  %1574 = vst [vmem:[%s9554_s9 + $0x14e8] sm:$0xff] %v1573_v29  ;;  %v1579_v32 = vld [vmem:[%s9549_s6 + $0x29a0] sm:$0xff] }
 0x178   : > { %1576 = vst [vmem:[%s9554_s9 + $0x14f0] sm:$0xff] %v1575_v30  ;;  %1578 = vst [vmem:[%s9554_s9 + $0x14f8] sm:$0xff] %v1577_v31  ;;  %v1581_v33 = vld [vmem:[%s9549_s6 + $0x29a8] sm:$0xff]  ;;  %v1583_v34 = vld [vmem:[%s9549_s6 + $0x29b0] sm:$0xff] }
 0x179   : > { %1580 = vst [vmem:[%s9554_s9 + $0x1500] sm:$0xff] %v1579_v32  ;;  %1582 = vst [vmem:[%s9554_s9 + $0x1508] sm:$0xff] %v1581_v33  ;;  %v1585_v35 = vld [vmem:[%s9549_s6 + $0x29b8] sm:$0xff]  ;;  %v1587_v36 = vld [vmem:[%s9549_s6 + $0x29c0] sm:$0xff] }
 0x17a   : > { %1584 = vst [vmem:[%s9554_s9 + $0x1510] sm:$0xff] %v1583_v34  ;;  %v1589_v37 = vld [vmem:[%s9549_s6 + $0x29c8] sm:$0xff]  ;;  %1586 = vst [vmem:[%s9554_s9 + $0x1518] sm:$0xff] %v1585_v35  ;;  %v1591_v38 = vld [vmem:[%s9549_s6 + $0x29d0] sm:$0xff] }
 0x17b   : > { %1588 = vst [vmem:[%s9554_s9 + $0x1520] sm:$0xff] %v1587_v36  ;;  %1590 = vst [vmem:[%s9554_s9 + $0x1528] sm:$0xff] %v1589_v37  ;;  %v1593_v39 = vld [vmem:[%s9549_s6 + $0x29d8] sm:$0xff]  ;;  %v1595_v40 = vld [vmem:[%s9549_s6 + $0x2a80] sm:$0xff] }
 0x17c   : > { %1592 = vst [vmem:[%s9554_s9 + $0x1530] sm:$0xff] %v1591_v38  ;;  %1594 = vst [vmem:[%s9554_s9 + $0x1538] sm:$0xff] %v1593_v39  ;;  %v1597_v41 = vld [vmem:[%s9549_s6 + $0x2a88] sm:$0xff]  ;;  %v1599_v42 = vld [vmem:[%s9549_s6 + $0x2a90] sm:$0xff] }
 0x17d   : > { %1596 = vst [vmem:[%s9554_s9 + $0x1540] sm:$0xff] %v1595_v40  ;;  %v1601_v43 = vld [vmem:[%s9549_s6 + $0x2a98] sm:$0xff]  ;;  %1598 = vst [vmem:[%s9554_s9 + $0x1548] sm:$0xff] %v1597_v41  ;;  %v1603_v44 = vld [vmem:[%s9549_s6 + $0x2aa0] sm:$0xff] }
 0x17e   : > { %1600 = vst [vmem:[%s9554_s9 + $0x1550] sm:$0xff] %v1599_v42  ;;  %1602 = vst [vmem:[%s9554_s9 + $0x1558] sm:$0xff] %v1601_v43  ;;  %v1605_v45 = vld [vmem:[%s9549_s6 + $0x2aa8] sm:$0xff]  ;;  %v1607_v46 = vld [vmem:[%s9549_s6 + $0x2ab0] sm:$0xff] }
 0x17f   : > { %1604 = vst [vmem:[%s9554_s9 + $0x1560] sm:$0xff] %v1603_v44  ;;  %1606 = vst [vmem:[%s9554_s9 + $0x1568] sm:$0xff] %v1605_v45  ;;  %v1609_v47 = vld [vmem:[%s9549_s6 + $0x2ab8] sm:$0xff]  ;;  %v1611_v48 = vld [vmem:[%s9549_s6 + $0x2ac0] sm:$0xff] }
 0x180   : > { %1608 = vst [vmem:[%s9554_s9 + $0x1570] sm:$0xff] %v1607_v46  ;;  %v1613_v49 = vld [vmem:[%s9549_s6 + $0x2ac8] sm:$0xff]  ;;  %1610 = vst [vmem:[%s9554_s9 + $0x1578] sm:$0xff] %v1609_v47  ;;  %v1615_v50 = vld [vmem:[%s9549_s6 + $0x2ad0] sm:$0xff] }
 0x181   : > { %1612 = vst [vmem:[%s9554_s9 + $0x1580] sm:$0xff] %v1611_v48  ;;  %1614 = vst [vmem:[%s9554_s9 + $0x1588] sm:$0xff] %v1613_v49  ;;  %v1617_v51 = vld [vmem:[%s9549_s6 + $0x2ad8] sm:$0xff]  ;;  %v1619_v52 = vld [vmem:[%s9549_s6 + $0x2ae0] sm:$0xff] }
 0x182   : > { %1616 = vst [vmem:[%s9554_s9 + $0x1590] sm:$0xff] %v1615_v50  ;;  %1618 = vst [vmem:[%s9554_s9 + $0x1598] sm:$0xff] %v1617_v51  ;;  %v1621_v53 = vld [vmem:[%s9549_s6 + $0x2ae8] sm:$0xff]  ;;  %v1623_v54 = vld [vmem:[%s9549_s6 + $0x2af0] sm:$0xff] }
 0x183   : > { %1620 = vst [vmem:[%s9554_s9 + $0x15a0] sm:$0xff] %v1619_v52  ;;  %v1625_v55 = vld [vmem:[%s9549_s6 + $0x2af8] sm:$0xff]  ;;  %1622 = vst [vmem:[%s9554_s9 + $0x15a8] sm:$0xff] %v1621_v53  ;;  %v1627_v56 = vld [vmem:[%s9549_s6 + $0x2b00] sm:$0xff] }
 0x184   : > { %1624 = vst [vmem:[%s9554_s9 + $0x15b0] sm:$0xff] %v1623_v54  ;;  %1626 = vst [vmem:[%s9554_s9 + $0x15b8] sm:$0xff] %v1625_v55  ;;  %v1629_v57 = vld [vmem:[%s9549_s6 + $0x2b08] sm:$0xff]  ;;  %v1631_v58 = vld [vmem:[%s9549_s6 + $0x2b10] sm:$0xff] }
 0x185   : > { %1628 = vst [vmem:[%s9554_s9 + $0x15c0] sm:$0xff] %v1627_v56  ;;  %1630 = vst [vmem:[%s9554_s9 + $0x15c8] sm:$0xff] %v1629_v57  ;;  %v1633_v59 = vld [vmem:[%s9549_s6 + $0x2b18] sm:$0xff]  ;;  %v1635_v60 = vld [vmem:[%s9549_s6 + $0x2bc0] sm:$0xff] }
 0x186   : > { %1632 = vst [vmem:[%s9554_s9 + $0x15d0] sm:$0xff] %v1631_v58  ;;  %v1637_v61 = vld [vmem:[%s9549_s6 + $0x2bc8] sm:$0xff]  ;;  %1634 = vst [vmem:[%s9554_s9 + $0x15d8] sm:$0xff] %v1633_v59  ;;  %v1639_v62 = vld [vmem:[%s9549_s6 + $0x2bd0] sm:$0xff] }
 0x187   : > { %1636 = vst [vmem:[%s9554_s9 + $0x15e0] sm:$0xff] %v1635_v60  ;;  %1638 = vst [vmem:[%s9554_s9 + $0x15e8] sm:$0xff] %v1637_v61  ;;  %v1641_v63 = vld [vmem:[%s9549_s6 + $0x2bd8] sm:$0xff]  ;;  %v1643_v0 = vld [vmem:[%s9549_s6 + $0x2be0] sm:$0xff] }
 0x188   : > { %1640 = vst [vmem:[%s9554_s9 + $0x15f0] sm:$0xff] %v1639_v62  ;;  %1642 = vst [vmem:[%s9554_s9 + $0x15f8] sm:$0xff] %v1641_v63  ;;  %v1645_v1 = vld [vmem:[%s9549_s6 + $0x2be8] sm:$0xff]  ;;  %v1647_v2 = vld [vmem:[%s9549_s6 + $0x2bf0] sm:$0xff] }
 0x189   : > { %1644 = vst [vmem:[%s9554_s9 + $0x1600] sm:$0xff] %v1643_v0  ;;  %v1649_v3 = vld [vmem:[%s9549_s6 + $0x2bf8] sm:$0xff]  ;;  %1646 = vst [vmem:[%s9554_s9 + $0x1608] sm:$0xff] %v1645_v1  ;;  %v1651_v4 = vld [vmem:[%s9549_s6 + $0x2c00] sm:$0xff] }
 0x18a   : > { %1648 = vst [vmem:[%s9554_s9 + $0x1610] sm:$0xff] %v1647_v2  ;;  %1650 = vst [vmem:[%s9554_s9 + $0x1618] sm:$0xff] %v1649_v3  ;;  %v1653_v5 = vld [vmem:[%s9549_s6 + $0x2c08] sm:$0xff]  ;;  %v1655_v6 = vld [vmem:[%s9549_s6 + $0x2c10] sm:$0xff] }
 0x18b   : > { %1652 = vst [vmem:[%s9554_s9 + $0x1620] sm:$0xff] %v1651_v4  ;;  %1654 = vst [vmem:[%s9554_s9 + $0x1628] sm:$0xff] %v1653_v5  ;;  %v1657_v7 = vld [vmem:[%s9549_s6 + $0x2c18] sm:$0xff]  ;;  %v1659_v8 = vld [vmem:[%s9549_s6 + $0x2c20] sm:$0xff] }
 0x18c   : > { %1656 = vst [vmem:[%s9554_s9 + $0x1630] sm:$0xff] %v1655_v6  ;;  %v1661_v9 = vld [vmem:[%s9549_s6 + $0x2c28] sm:$0xff]  ;;  %1658 = vst [vmem:[%s9554_s9 + $0x1638] sm:$0xff] %v1657_v7  ;;  %v1663_v10 = vld [vmem:[%s9549_s6 + $0x2c30] sm:$0xff] }
 0x18d   : > { %1660 = vst [vmem:[%s9554_s9 + $0x1640] sm:$0xff] %v1659_v8  ;;  %1662 = vst [vmem:[%s9554_s9 + $0x1648] sm:$0xff] %v1661_v9  ;;  %v1665_v11 = vld [vmem:[%s9549_s6 + $0x2c38] sm:$0xff]  ;;  %v1667_v12 = vld [vmem:[%s9549_s6 + $0x2c40] sm:$0xff] }
 0x18e   : > { %1664 = vst [vmem:[%s9554_s9 + $0x1650] sm:$0xff] %v1663_v10  ;;  %1666 = vst [vmem:[%s9554_s9 + $0x1658] sm:$0xff] %v1665_v11  ;;  %v1669_v13 = vld [vmem:[%s9549_s6 + $0x2c48] sm:$0xff]  ;;  %v1671_v14 = vld [vmem:[%s9549_s6 + $0x2c50] sm:$0xff] }
 0x18f   : > { %1668 = vst [vmem:[%s9554_s9 + $0x1660] sm:$0xff] %v1667_v12  ;;  %v1673_v15 = vld [vmem:[%s9549_s6 + $0x2c58] sm:$0xff]  ;;  %1670 = vst [vmem:[%s9554_s9 + $0x1668] sm:$0xff] %v1669_v13  ;;  %v1675_v16 = vld [vmem:[%s9549_s6 + $0x2d00] sm:$0xff] }
 0x190   : > { %1672 = vst [vmem:[%s9554_s9 + $0x1670] sm:$0xff] %v1671_v14  ;;  %1674 = vst [vmem:[%s9554_s9 + $0x1678] sm:$0xff] %v1673_v15  ;;  %v1677_v17 = vld [vmem:[%s9549_s6 + $0x2d08] sm:$0xff]  ;;  %v1679_v18 = vld [vmem:[%s9549_s6 + $0x2d10] sm:$0xff] }
 0x191   : > { %1676 = vst [vmem:[%s9554_s9 + $0x1680] sm:$0xff] %v1675_v16  ;;  %1678 = vst [vmem:[%s9554_s9 + $0x1688] sm:$0xff] %v1677_v17  ;;  %v1681_v19 = vld [vmem:[%s9549_s6 + $0x2d18] sm:$0xff]  ;;  %v1683_v20 = vld [vmem:[%s9549_s6 + $0x2d20] sm:$0xff] }
 0x192   : > { %1680 = vst [vmem:[%s9554_s9 + $0x1690] sm:$0xff] %v1679_v18  ;;  %v1685_v21 = vld [vmem:[%s9549_s6 + $0x2d28] sm:$0xff]  ;;  %1682 = vst [vmem:[%s9554_s9 + $0x1698] sm:$0xff] %v1681_v19  ;;  %v1687_v22 = vld [vmem:[%s9549_s6 + $0x2d30] sm:$0xff] }
 0x193   : > { %1684 = vst [vmem:[%s9554_s9 + $0x16a0] sm:$0xff] %v1683_v20  ;;  %1686 = vst [vmem:[%s9554_s9 + $0x16a8] sm:$0xff] %v1685_v21  ;;  %v1689_v23 = vld [vmem:[%s9549_s6 + $0x2d38] sm:$0xff]  ;;  %v1691_v24 = vld [vmem:[%s9549_s6 + $0x2d40] sm:$0xff] }
 0x194   : > { %1688 = vst [vmem:[%s9554_s9 + $0x16b0] sm:$0xff] %v1687_v22  ;;  %1690 = vst [vmem:[%s9554_s9 + $0x16b8] sm:$0xff] %v1689_v23  ;;  %v1693_v25 = vld [vmem:[%s9549_s6 + $0x2d48] sm:$0xff]  ;;  %v1695_v26 = vld [vmem:[%s9549_s6 + $0x2d50] sm:$0xff] }
 0x195   : > { %1692 = vst [vmem:[%s9554_s9 + $0x16c0] sm:$0xff] %v1691_v24  ;;  %v1697_v27 = vld [vmem:[%s9549_s6 + $0x2d58] sm:$0xff]  ;;  %1694 = vst [vmem:[%s9554_s9 + $0x16c8] sm:$0xff] %v1693_v25  ;;  %v1699_v28 = vld [vmem:[%s9549_s6 + $0x2d60] sm:$0xff] }
 0x196   : > { %1696 = vst [vmem:[%s9554_s9 + $0x16d0] sm:$0xff] %v1695_v26  ;;  %1698 = vst [vmem:[%s9554_s9 + $0x16d8] sm:$0xff] %v1697_v27  ;;  %v1701_v29 = vld [vmem:[%s9549_s6 + $0x2d68] sm:$0xff]  ;;  %v1703_v30 = vld [vmem:[%s9549_s6 + $0x2d70] sm:$0xff] }
 0x197   : > { %1700 = vst [vmem:[%s9554_s9 + $0x16e0] sm:$0xff] %v1699_v28  ;;  %1702 = vst [vmem:[%s9554_s9 + $0x16e8] sm:$0xff] %v1701_v29  ;;  %v1705_v31 = vld [vmem:[%s9549_s6 + $0x2d78] sm:$0xff]  ;;  %v1707_v32 = vld [vmem:[%s9549_s6 + $0x2d80] sm:$0xff] }
 0x198   : > { %1704 = vst [vmem:[%s9554_s9 + $0x16f0] sm:$0xff] %v1703_v30  ;;  %v1709_v33 = vld [vmem:[%s9549_s6 + $0x2d88] sm:$0xff]  ;;  %1706 = vst [vmem:[%s9554_s9 + $0x16f8] sm:$0xff] %v1705_v31  ;;  %v1711_v34 = vld [vmem:[%s9549_s6 + $0x2d90] sm:$0xff] }
 0x199   : > { %1708 = vst [vmem:[%s9554_s9 + $0x1700] sm:$0xff] %v1707_v32  ;;  %1710 = vst [vmem:[%s9554_s9 + $0x1708] sm:$0xff] %v1709_v33  ;;  %v1713_v35 = vld [vmem:[%s9549_s6 + $0x2d98] sm:$0xff]  ;;  %v1715_v36 = vld [vmem:[%s9549_s6 + $0x2e40] sm:$0xff] }
 0x19a   : > { %1712 = vst [vmem:[%s9554_s9 + $0x1710] sm:$0xff] %v1711_v34  ;;  %1714 = vst [vmem:[%s9554_s9 + $0x1718] sm:$0xff] %v1713_v35  ;;  %v1717_v37 = vld [vmem:[%s9549_s6 + $0x2e48] sm:$0xff]  ;;  %v1719_v38 = vld [vmem:[%s9549_s6 + $0x2e50] sm:$0xff] }
 0x19b   : > { %1716 = vst [vmem:[%s9554_s9 + $0x1720] sm:$0xff] %v1715_v36  ;;  %v1721_v39 = vld [vmem:[%s9549_s6 + $0x2e58] sm:$0xff]  ;;  %1718 = vst [vmem:[%s9554_s9 + $0x1728] sm:$0xff] %v1717_v37  ;;  %v1723_v40 = vld [vmem:[%s9549_s6 + $0x2e60] sm:$0xff] }
 0x19c   : > { %1720 = vst [vmem:[%s9554_s9 + $0x1730] sm:$0xff] %v1719_v38  ;;  %1722 = vst [vmem:[%s9554_s9 + $0x1738] sm:$0xff] %v1721_v39  ;;  %v1725_v41 = vld [vmem:[%s9549_s6 + $0x2e68] sm:$0xff]  ;;  %v1727_v42 = vld [vmem:[%s9549_s6 + $0x2e70] sm:$0xff] }
 0x19d   : > { %1724 = vst [vmem:[%s9554_s9 + $0x1740] sm:$0xff] %v1723_v40  ;;  %1726 = vst [vmem:[%s9554_s9 + $0x1748] sm:$0xff] %v1725_v41  ;;  %v1729_v43 = vld [vmem:[%s9549_s6 + $0x2e78] sm:$0xff]  ;;  %v1731_v44 = vld [vmem:[%s9549_s6 + $0x2e80] sm:$0xff] }
 0x19e   : > { %1728 = vst [vmem:[%s9554_s9 + $0x1750] sm:$0xff] %v1727_v42  ;;  %v1733_v45 = vld [vmem:[%s9549_s6 + $0x2e88] sm:$0xff]  ;;  %1730 = vst [vmem:[%s9554_s9 + $0x1758] sm:$0xff] %v1729_v43  ;;  %v1735_v46 = vld [vmem:[%s9549_s6 + $0x2e90] sm:$0xff] }
 0x19f   : > { %1732 = vst [vmem:[%s9554_s9 + $0x1760] sm:$0xff] %v1731_v44  ;;  %1734 = vst [vmem:[%s9554_s9 + $0x1768] sm:$0xff] %v1733_v45  ;;  %v1737_v47 = vld [vmem:[%s9549_s6 + $0x2e98] sm:$0xff]  ;;  %v1739_v48 = vld [vmem:[%s9549_s6 + $0x2ea0] sm:$0xff] }
 0x1a0   : > { %1736 = vst [vmem:[%s9554_s9 + $0x1770] sm:$0xff] %v1735_v46  ;;  %1738 = vst [vmem:[%s9554_s9 + $0x1778] sm:$0xff] %v1737_v47  ;;  %v1741_v49 = vld [vmem:[%s9549_s6 + $0x2ea8] sm:$0xff]  ;;  %v1743_v50 = vld [vmem:[%s9549_s6 + $0x2eb0] sm:$0xff] }
 0x1a1   : > { %1740 = vst [vmem:[%s9554_s9 + $0x1780] sm:$0xff] %v1739_v48  ;;  %v1745_v51 = vld [vmem:[%s9549_s6 + $0x2eb8] sm:$0xff]  ;;  %1742 = vst [vmem:[%s9554_s9 + $0x1788] sm:$0xff] %v1741_v49  ;;  %v1747_v52 = vld [vmem:[%s9549_s6 + $0x2ec0] sm:$0xff] }
 0x1a2   : > { %1744 = vst [vmem:[%s9554_s9 + $0x1790] sm:$0xff] %v1743_v50  ;;  %1746 = vst [vmem:[%s9554_s9 + $0x1798] sm:$0xff] %v1745_v51  ;;  %v1749_v53 = vld [vmem:[%s9549_s6 + $0x2ec8] sm:$0xff]  ;;  %v1751_v54 = vld [vmem:[%s9549_s6 + $0x2ed0] sm:$0xff] }
 0x1a3   : > { %1748 = vst [vmem:[%s9554_s9 + $0x17a0] sm:$0xff] %v1747_v52  ;;  %1750 = vst [vmem:[%s9554_s9 + $0x17a8] sm:$0xff] %v1749_v53  ;;  %v1753_v55 = vld [vmem:[%s9549_s6 + $0x2ed8] sm:$0xff]  ;;  %v1755_v56 = vld [vmem:[%s9549_s6 + $0x2f80] sm:$0xff] }
 0x1a4   : > { %1752 = vst [vmem:[%s9554_s9 + $0x17b0] sm:$0xff] %v1751_v54  ;;  %v1757_v57 = vld [vmem:[%s9549_s6 + $0x2f88] sm:$0xff]  ;;  %1754 = vst [vmem:[%s9554_s9 + $0x17b8] sm:$0xff] %v1753_v55  ;;  %v1759_v58 = vld [vmem:[%s9549_s6 + $0x2f90] sm:$0xff] }
 0x1a5   : > { %1756 = vst [vmem:[%s9554_s9 + $0x17c0] sm:$0xff] %v1755_v56  ;;  %1758 = vst [vmem:[%s9554_s9 + $0x17c8] sm:$0xff] %v1757_v57  ;;  %v1761_v59 = vld [vmem:[%s9549_s6 + $0x2f98] sm:$0xff]  ;;  %v1763_v60 = vld [vmem:[%s9549_s6 + $0x2fa0] sm:$0xff] }
 0x1a6   : > { %1760 = vst [vmem:[%s9554_s9 + $0x17d0] sm:$0xff] %v1759_v58  ;;  %1762 = vst [vmem:[%s9554_s9 + $0x17d8] sm:$0xff] %v1761_v59  ;;  %v1765_v61 = vld [vmem:[%s9549_s6 + $0x2fa8] sm:$0xff]  ;;  %v1767_v62 = vld [vmem:[%s9549_s6 + $0x2fb0] sm:$0xff] }
 0x1a7   : > { %1764 = vst [vmem:[%s9554_s9 + $0x17e0] sm:$0xff] %v1763_v60  ;;  %v1769_v63 = vld [vmem:[%s9549_s6 + $0x2fb8] sm:$0xff]  ;;  %1766 = vst [vmem:[%s9554_s9 + $0x17e8] sm:$0xff] %v1765_v61  ;;  %v1771_v0 = vld [vmem:[%s9549_s6 + $0x2fc0] sm:$0xff] }
 0x1a8   : > { %1768 = vst [vmem:[%s9554_s9 + $0x17f0] sm:$0xff] %v1767_v62  ;;  %1770 = vst [vmem:[%s9554_s9 + $0x17f8] sm:$0xff] %v1769_v63  ;;  %v1773_v1 = vld [vmem:[%s9549_s6 + $0x2fc8] sm:$0xff]  ;;  %v1775_v2 = vld [vmem:[%s9549_s6 + $0x2fd0] sm:$0xff] }
 0x1a9   : > { %1772 = vst [vmem:[%s9554_s9 + $0x1800] sm:$0xff] %v1771_v0  ;;  %1774 = vst [vmem:[%s9554_s9 + $0x1808] sm:$0xff] %v1773_v1  ;;  %v1777_v3 = vld [vmem:[%s9549_s6 + $0x2fd8] sm:$0xff]  ;;  %v1779_v4 = vld [vmem:[%s9549_s6 + $0x2fe0] sm:$0xff] }
 0x1aa   : > { %1776 = vst [vmem:[%s9554_s9 + $0x1810] sm:$0xff] %v1775_v2  ;;  %v1781_v5 = vld [vmem:[%s9549_s6 + $0x2fe8] sm:$0xff]  ;;  %1778 = vst [vmem:[%s9554_s9 + $0x1818] sm:$0xff] %v1777_v3  ;;  %v1783_v6 = vld [vmem:[%s9549_s6 + $0x2ff0] sm:$0xff] }
 0x1ab   : > { %1780 = vst [vmem:[%s9554_s9 + $0x1820] sm:$0xff] %v1779_v4  ;;  %1782 = vst [vmem:[%s9554_s9 + $0x1828] sm:$0xff] %v1781_v5  ;;  %v1785_v7 = vld [vmem:[%s9549_s6 + $0x2ff8] sm:$0xff]  ;;  %v1787_v8 = vld [vmem:[%s9549_s6 + $0x3000] sm:$0xff] }
 0x1ac   : > { %1784 = vst [vmem:[%s9554_s9 + $0x1830] sm:$0xff] %v1783_v6  ;;  %1786 = vst [vmem:[%s9554_s9 + $0x1838] sm:$0xff] %v1785_v7  ;;  %v1789_v9 = vld [vmem:[%s9549_s6 + $0x3008] sm:$0xff]  ;;  %v1791_v10 = vld [vmem:[%s9549_s6 + $0x3010] sm:$0xff] }
 0x1ad   : > { %1788 = vst [vmem:[%s9554_s9 + $0x1840] sm:$0xff] %v1787_v8  ;;  %v1793_v11 = vld [vmem:[%s9549_s6 + $0x3018] sm:$0xff]  ;;  %1790 = vst [vmem:[%s9554_s9 + $0x1848] sm:$0xff] %v1789_v9  ;;  %v1795_v12 = vld [vmem:[%s9549_s6 + $0x30c0] sm:$0xff] }
 0x1ae   : > { %1792 = vst [vmem:[%s9554_s9 + $0x1850] sm:$0xff] %v1791_v10  ;;  %1794 = vst [vmem:[%s9554_s9 + $0x1858] sm:$0xff] %v1793_v11  ;;  %v1797_v13 = vld [vmem:[%s9549_s6 + $0x30c8] sm:$0xff]  ;;  %v1799_v14 = vld [vmem:[%s9549_s6 + $0x30d0] sm:$0xff] }
 0x1af   : > { %1796 = vst [vmem:[%s9554_s9 + $0x1860] sm:$0xff] %v1795_v12  ;;  %1798 = vst [vmem:[%s9554_s9 + $0x1868] sm:$0xff] %v1797_v13  ;;  %v1801_v15 = vld [vmem:[%s9549_s6 + $0x30d8] sm:$0xff]  ;;  %v1803_v16 = vld [vmem:[%s9549_s6 + $0x30e0] sm:$0xff] }
 0x1b0   : > { %1800 = vst [vmem:[%s9554_s9 + $0x1870] sm:$0xff] %v1799_v14  ;;  %v1805_v17 = vld [vmem:[%s9549_s6 + $0x30e8] sm:$0xff]  ;;  %1802 = vst [vmem:[%s9554_s9 + $0x1878] sm:$0xff] %v1801_v15  ;;  %v1807_v18 = vld [vmem:[%s9549_s6 + $0x30f0] sm:$0xff] }
 0x1b1   : > { %1804 = vst [vmem:[%s9554_s9 + $0x1880] sm:$0xff] %v1803_v16  ;;  %1806 = vst [vmem:[%s9554_s9 + $0x1888] sm:$0xff] %v1805_v17  ;;  %v1809_v19 = vld [vmem:[%s9549_s6 + $0x30f8] sm:$0xff]  ;;  %v1811_v20 = vld [vmem:[%s9549_s6 + $0x3100] sm:$0xff] }
 0x1b2   : > { %1808 = vst [vmem:[%s9554_s9 + $0x1890] sm:$0xff] %v1807_v18  ;;  %1810 = vst [vmem:[%s9554_s9 + $0x1898] sm:$0xff] %v1809_v19  ;;  %v1813_v21 = vld [vmem:[%s9549_s6 + $0x3108] sm:$0xff]  ;;  %v1815_v22 = vld [vmem:[%s9549_s6 + $0x3110] sm:$0xff] }
 0x1b3   : > { %1812 = vst [vmem:[%s9554_s9 + $0x18a0] sm:$0xff] %v1811_v20  ;;  %v1817_v23 = vld [vmem:[%s9549_s6 + $0x3118] sm:$0xff]  ;;  %1814 = vst [vmem:[%s9554_s9 + $0x18a8] sm:$0xff] %v1813_v21  ;;  %v1819_v24 = vld [vmem:[%s9549_s6 + $0x3120] sm:$0xff] }
 0x1b4   : > { %1816 = vst [vmem:[%s9554_s9 + $0x18b0] sm:$0xff] %v1815_v22  ;;  %1818 = vst [vmem:[%s9554_s9 + $0x18b8] sm:$0xff] %v1817_v23  ;;  %v1821_v25 = vld [vmem:[%s9549_s6 + $0x3128] sm:$0xff]  ;;  %v1823_v26 = vld [vmem:[%s9549_s6 + $0x3130] sm:$0xff] }
 0x1b5   : > { %1820 = vst [vmem:[%s9554_s9 + $0x18c0] sm:$0xff] %v1819_v24  ;;  %1822 = vst [vmem:[%s9554_s9 + $0x18c8] sm:$0xff] %v1821_v25  ;;  %v1825_v27 = vld [vmem:[%s9549_s6 + $0x3138] sm:$0xff]  ;;  %v1827_v28 = vld [vmem:[%s9549_s6 + $0x3140] sm:$0xff] }
 0x1b6   : > { %1824 = vst [vmem:[%s9554_s9 + $0x18d0] sm:$0xff] %v1823_v26  ;;  %v1829_v29 = vld [vmem:[%s9549_s6 + $0x3148] sm:$0xff]  ;;  %1826 = vst [vmem:[%s9554_s9 + $0x18d8] sm:$0xff] %v1825_v27  ;;  %v1831_v30 = vld [vmem:[%s9549_s6 + $0x3150] sm:$0xff] }
 0x1b7   : > { %1828 = vst [vmem:[%s9554_s9 + $0x18e0] sm:$0xff] %v1827_v28  ;;  %1830 = vst [vmem:[%s9554_s9 + $0x18e8] sm:$0xff] %v1829_v29  ;;  %v1833_v31 = vld [vmem:[%s9549_s6 + $0x3158] sm:$0xff]  ;;  %v1835_v32 = vld [vmem:[%s9549_s6 + $0x3200] sm:$0xff] }
 0x1b8   : > { %1832 = vst [vmem:[%s9554_s9 + $0x18f0] sm:$0xff] %v1831_v30  ;;  %1834 = vst [vmem:[%s9554_s9 + $0x18f8] sm:$0xff] %v1833_v31  ;;  %v1837_v33 = vld [vmem:[%s9549_s6 + $0x3208] sm:$0xff]  ;;  %v1839_v34 = vld [vmem:[%s9549_s6 + $0x3210] sm:$0xff] }
 0x1b9   : > { %1836 = vst [vmem:[%s9554_s9 + $0x1900] sm:$0xff] %v1835_v32  ;;  %v1841_v35 = vld [vmem:[%s9549_s6 + $0x3218] sm:$0xff]  ;;  %1838 = vst [vmem:[%s9554_s9 + $0x1908] sm:$0xff] %v1837_v33  ;;  %v1843_v36 = vld [vmem:[%s9549_s6 + $0x3220] sm:$0xff] }
 0x1ba   : > { %1840 = vst [vmem:[%s9554_s9 + $0x1910] sm:$0xff] %v1839_v34  ;;  %1842 = vst [vmem:[%s9554_s9 + $0x1918] sm:$0xff] %v1841_v35  ;;  %v1845_v37 = vld [vmem:[%s9549_s6 + $0x3228] sm:$0xff]  ;;  %v1847_v38 = vld [vmem:[%s9549_s6 + $0x3230] sm:$0xff] }
 0x1bb   : > { %1844 = vst [vmem:[%s9554_s9 + $0x1920] sm:$0xff] %v1843_v36  ;;  %1846 = vst [vmem:[%s9554_s9 + $0x1928] sm:$0xff] %v1845_v37  ;;  %v1849_v39 = vld [vmem:[%s9549_s6 + $0x3238] sm:$0xff]  ;;  %v1851_v40 = vld [vmem:[%s9549_s6 + $0x3240] sm:$0xff] }
 0x1bc   : > { %1848 = vst [vmem:[%s9554_s9 + $0x1930] sm:$0xff] %v1847_v38  ;;  %v1853_v41 = vld [vmem:[%s9549_s6 + $0x3248] sm:$0xff]  ;;  %1850 = vst [vmem:[%s9554_s9 + $0x1938] sm:$0xff] %v1849_v39  ;;  %v1855_v42 = vld [vmem:[%s9549_s6 + $0x3250] sm:$0xff] }
 0x1bd   : > { %1852 = vst [vmem:[%s9554_s9 + $0x1940] sm:$0xff] %v1851_v40  ;;  %1854 = vst [vmem:[%s9554_s9 + $0x1948] sm:$0xff] %v1853_v41  ;;  %v1857_v43 = vld [vmem:[%s9549_s6 + $0x3258] sm:$0xff]  ;;  %v1859_v44 = vld [vmem:[%s9549_s6 + $0x3260] sm:$0xff] }
 0x1be   : > { %1856 = vst [vmem:[%s9554_s9 + $0x1950] sm:$0xff] %v1855_v42  ;;  %1858 = vst [vmem:[%s9554_s9 + $0x1958] sm:$0xff] %v1857_v43  ;;  %v1861_v45 = vld [vmem:[%s9549_s6 + $0x3268] sm:$0xff]  ;;  %v1863_v46 = vld [vmem:[%s9549_s6 + $0x3270] sm:$0xff] }
 0x1bf   : > { %1860 = vst [vmem:[%s9554_s9 + $0x1960] sm:$0xff] %v1859_v44  ;;  %v1865_v47 = vld [vmem:[%s9549_s6 + $0x3278] sm:$0xff]  ;;  %1862 = vst [vmem:[%s9554_s9 + $0x1968] sm:$0xff] %v1861_v45  ;;  %v1867_v48 = vld [vmem:[%s9549_s6 + $0x3280] sm:$0xff] }
 0x1c0   : > { %1864 = vst [vmem:[%s9554_s9 + $0x1970] sm:$0xff] %v1863_v46  ;;  %1866 = vst [vmem:[%s9554_s9 + $0x1978] sm:$0xff] %v1865_v47  ;;  %v1869_v49 = vld [vmem:[%s9549_s6 + $0x3288] sm:$0xff]  ;;  %v1871_v50 = vld [vmem:[%s9549_s6 + $0x3290] sm:$0xff] }
 0x1c1   : > { %1868 = vst [vmem:[%s9554_s9 + $0x1980] sm:$0xff] %v1867_v48  ;;  %1870 = vst [vmem:[%s9554_s9 + $0x1988] sm:$0xff] %v1869_v49  ;;  %v1873_v51 = vld [vmem:[%s9549_s6 + $0x3298] sm:$0xff]  ;;  %v1875_v52 = vld [vmem:[%s9549_s6 + $0x3340] sm:$0xff] }
 0x1c2   : > { %1872 = vst [vmem:[%s9554_s9 + $0x1990] sm:$0xff] %v1871_v50  ;;  %v1877_v53 = vld [vmem:[%s9549_s6 + $0x3348] sm:$0xff]  ;;  %1874 = vst [vmem:[%s9554_s9 + $0x1998] sm:$0xff] %v1873_v51  ;;  %v1879_v54 = vld [vmem:[%s9549_s6 + $0x3350] sm:$0xff] }
 0x1c3   : > { %1876 = vst [vmem:[%s9554_s9 + $0x19a0] sm:$0xff] %v1875_v52  ;;  %1878 = vst [vmem:[%s9554_s9 + $0x19a8] sm:$0xff] %v1877_v53  ;;  %v1881_v55 = vld [vmem:[%s9549_s6 + $0x3358] sm:$0xff]  ;;  %v1883_v56 = vld [vmem:[%s9549_s6 + $0x3360] sm:$0xff] }
 0x1c4   : > { %1880 = vst [vmem:[%s9554_s9 + $0x19b0] sm:$0xff] %v1879_v54  ;;  %1882 = vst [vmem:[%s9554_s9 + $0x19b8] sm:$0xff] %v1881_v55  ;;  %v1885_v57 = vld [vmem:[%s9549_s6 + $0x3368] sm:$0xff]  ;;  %v1887_v58 = vld [vmem:[%s9549_s6 + $0x3370] sm:$0xff] }
 0x1c5   : > { %1884 = vst [vmem:[%s9554_s9 + $0x19c0] sm:$0xff] %v1883_v56  ;;  %v1889_v59 = vld [vmem:[%s9549_s6 + $0x3378] sm:$0xff]  ;;  %1886 = vst [vmem:[%s9554_s9 + $0x19c8] sm:$0xff] %v1885_v57  ;;  %v1891_v60 = vld [vmem:[%s9549_s6 + $0x3380] sm:$0xff] }
 0x1c6   : > { %1888 = vst [vmem:[%s9554_s9 + $0x19d0] sm:$0xff] %v1887_v58  ;;  %1890 = vst [vmem:[%s9554_s9 + $0x19d8] sm:$0xff] %v1889_v59  ;;  %v1893_v61 = vld [vmem:[%s9549_s6 + $0x3388] sm:$0xff]  ;;  %v1895_v62 = vld [vmem:[%s9549_s6 + $0x3390] sm:$0xff] }
 0x1c7   : > { %1892 = vst [vmem:[%s9554_s9 + $0x19e0] sm:$0xff] %v1891_v60  ;;  %1894 = vst [vmem:[%s9554_s9 + $0x19e8] sm:$0xff] %v1893_v61  ;;  %v1897_v63 = vld [vmem:[%s9549_s6 + $0x3398] sm:$0xff]  ;;  %v1899_v0 = vld [vmem:[%s9549_s6 + $0x33a0] sm:$0xff] }
 0x1c8   : > { %1896 = vst [vmem:[%s9554_s9 + $0x19f0] sm:$0xff] %v1895_v62  ;;  %v1901_v1 = vld [vmem:[%s9549_s6 + $0x33a8] sm:$0xff]  ;;  %1898 = vst [vmem:[%s9554_s9 + $0x19f8] sm:$0xff] %v1897_v63  ;;  %v1903_v2 = vld [vmem:[%s9549_s6 + $0x33b0] sm:$0xff] }
 0x1c9   : > { %1900 = vst [vmem:[%s9554_s9 + $0x1a00] sm:$0xff] %v1899_v0  ;;  %1902 = vst [vmem:[%s9554_s9 + $0x1a08] sm:$0xff] %v1901_v1  ;;  %v1905_v3 = vld [vmem:[%s9549_s6 + $0x33b8] sm:$0xff]  ;;  %v1907_v4 = vld [vmem:[%s9549_s6 + $0x33c0] sm:$0xff] }
 0x1ca   : > { %1904 = vst [vmem:[%s9554_s9 + $0x1a10] sm:$0xff] %v1903_v2  ;;  %1906 = vst [vmem:[%s9554_s9 + $0x1a18] sm:$0xff] %v1905_v3  ;;  %v1909_v5 = vld [vmem:[%s9549_s6 + $0x33c8] sm:$0xff]  ;;  %v1911_v6 = vld [vmem:[%s9549_s6 + $0x33d0] sm:$0xff] }
 0x1cb   : > { %1908 = vst [vmem:[%s9554_s9 + $0x1a20] sm:$0xff] %v1907_v4  ;;  %v1913_v7 = vld [vmem:[%s9549_s6 + $0x33d8] sm:$0xff]  ;;  %1910 = vst [vmem:[%s9554_s9 + $0x1a28] sm:$0xff] %v1909_v5  ;;  %v1915_v8 = vld [vmem:[%s9549_s6 + $0x3480] sm:$0xff] }
 0x1cc   : > { %1912 = vst [vmem:[%s9554_s9 + $0x1a30] sm:$0xff] %v1911_v6  ;;  %1914 = vst [vmem:[%s9554_s9 + $0x1a38] sm:$0xff] %v1913_v7  ;;  %v1917_v9 = vld [vmem:[%s9549_s6 + $0x3488] sm:$0xff]  ;;  %v1919_v10 = vld [vmem:[%s9549_s6 + $0x3490] sm:$0xff] }
 0x1cd   : > { %1916 = vst [vmem:[%s9554_s9 + $0x1a40] sm:$0xff] %v1915_v8  ;;  %1918 = vst [vmem:[%s9554_s9 + $0x1a48] sm:$0xff] %v1917_v9  ;;  %v1921_v11 = vld [vmem:[%s9549_s6 + $0x3498] sm:$0xff]  ;;  %v1923_v12 = vld [vmem:[%s9549_s6 + $0x34a0] sm:$0xff] }
 0x1ce   : > { %1920 = vst [vmem:[%s9554_s9 + $0x1a50] sm:$0xff] %v1919_v10  ;;  %v1925_v13 = vld [vmem:[%s9549_s6 + $0x34a8] sm:$0xff]  ;;  %1922 = vst [vmem:[%s9554_s9 + $0x1a58] sm:$0xff] %v1921_v11  ;;  %v1927_v14 = vld [vmem:[%s9549_s6 + $0x34b0] sm:$0xff] }
 0x1cf   : > { %1924 = vst [vmem:[%s9554_s9 + $0x1a60] sm:$0xff] %v1923_v12  ;;  %1926 = vst [vmem:[%s9554_s9 + $0x1a68] sm:$0xff] %v1925_v13  ;;  %v1929_v15 = vld [vmem:[%s9549_s6 + $0x34b8] sm:$0xff]  ;;  %v1931_v16 = vld [vmem:[%s9549_s6 + $0x34c0] sm:$0xff] }
 0x1d0   : > { %1928 = vst [vmem:[%s9554_s9 + $0x1a70] sm:$0xff] %v1927_v14  ;;  %1930 = vst [vmem:[%s9554_s9 + $0x1a78] sm:$0xff] %v1929_v15  ;;  %v1933_v17 = vld [vmem:[%s9549_s6 + $0x34c8] sm:$0xff]  ;;  %v1935_v18 = vld [vmem:[%s9549_s6 + $0x34d0] sm:$0xff] }
 0x1d1   : > { %1932 = vst [vmem:[%s9554_s9 + $0x1a80] sm:$0xff] %v1931_v16  ;;  %v1937_v19 = vld [vmem:[%s9549_s6 + $0x34d8] sm:$0xff]  ;;  %1934 = vst [vmem:[%s9554_s9 + $0x1a88] sm:$0xff] %v1933_v17  ;;  %v1939_v20 = vld [vmem:[%s9549_s6 + $0x34e0] sm:$0xff] }
 0x1d2   : > { %1936 = vst [vmem:[%s9554_s9 + $0x1a90] sm:$0xff] %v1935_v18  ;;  %1938 = vst [vmem:[%s9554_s9 + $0x1a98] sm:$0xff] %v1937_v19  ;;  %v1941_v21 = vld [vmem:[%s9549_s6 + $0x34e8] sm:$0xff]  ;;  %v1943_v22 = vld [vmem:[%s9549_s6 + $0x34f0] sm:$0xff] }
 0x1d3   : > { %1940 = vst [vmem:[%s9554_s9 + $0x1aa0] sm:$0xff] %v1939_v20  ;;  %1942 = vst [vmem:[%s9554_s9 + $0x1aa8] sm:$0xff] %v1941_v21  ;;  %v1945_v23 = vld [vmem:[%s9549_s6 + $0x34f8] sm:$0xff]  ;;  %v1947_v24 = vld [vmem:[%s9549_s6 + $0x3500] sm:$0xff] }
 0x1d4   : > { %1944 = vst [vmem:[%s9554_s9 + $0x1ab0] sm:$0xff] %v1943_v22  ;;  %v1949_v25 = vld [vmem:[%s9549_s6 + $0x3508] sm:$0xff]  ;;  %1946 = vst [vmem:[%s9554_s9 + $0x1ab8] sm:$0xff] %v1945_v23  ;;  %v1951_v26 = vld [vmem:[%s9549_s6 + $0x3510] sm:$0xff] }
 0x1d5   : > { %1948 = vst [vmem:[%s9554_s9 + $0x1ac0] sm:$0xff] %v1947_v24  ;;  %1950 = vst [vmem:[%s9554_s9 + $0x1ac8] sm:$0xff] %v1949_v25  ;;  %v1953_v27 = vld [vmem:[%s9549_s6 + $0x3518] sm:$0xff]  ;;  %v1955_v28 = vld [vmem:[%s9549_s6 + $0x35c0] sm:$0xff] }
 0x1d6   : > { %1952 = vst [vmem:[%s9554_s9 + $0x1ad0] sm:$0xff] %v1951_v26  ;;  %1954 = vst [vmem:[%s9554_s9 + $0x1ad8] sm:$0xff] %v1953_v27  ;;  %v1957_v29 = vld [vmem:[%s9549_s6 + $0x35c8] sm:$0xff]  ;;  %v1959_v30 = vld [vmem:[%s9549_s6 + $0x35d0] sm:$0xff] }
 0x1d7   : > { %1956 = vst [vmem:[%s9554_s9 + $0x1ae0] sm:$0xff] %v1955_v28  ;;  %v1961_v31 = vld [vmem:[%s9549_s6 + $0x35d8] sm:$0xff]  ;;  %1958 = vst [vmem:[%s9554_s9 + $0x1ae8] sm:$0xff] %v1957_v29  ;;  %v1963_v32 = vld [vmem:[%s9549_s6 + $0x35e0] sm:$0xff] }
 0x1d8   : > { %1960 = vst [vmem:[%s9554_s9 + $0x1af0] sm:$0xff] %v1959_v30  ;;  %1962 = vst [vmem:[%s9554_s9 + $0x1af8] sm:$0xff] %v1961_v31  ;;  %v1965_v33 = vld [vmem:[%s9549_s6 + $0x35e8] sm:$0xff]  ;;  %v1967_v34 = vld [vmem:[%s9549_s6 + $0x35f0] sm:$0xff] }
 0x1d9   : > { %1964 = vst [vmem:[%s9554_s9 + $0x1b00] sm:$0xff] %v1963_v32  ;;  %1966 = vst [vmem:[%s9554_s9 + $0x1b08] sm:$0xff] %v1965_v33  ;;  %v1969_v35 = vld [vmem:[%s9549_s6 + $0x35f8] sm:$0xff]  ;;  %v1971_v36 = vld [vmem:[%s9549_s6 + $0x3600] sm:$0xff] }
 0x1da   : > { %1968 = vst [vmem:[%s9554_s9 + $0x1b10] sm:$0xff] %v1967_v34  ;;  %v1973_v37 = vld [vmem:[%s9549_s6 + $0x3608] sm:$0xff]  ;;  %1970 = vst [vmem:[%s9554_s9 + $0x1b18] sm:$0xff] %v1969_v35  ;;  %v1975_v38 = vld [vmem:[%s9549_s6 + $0x3610] sm:$0xff] }
 0x1db   : > { %1972 = vst [vmem:[%s9554_s9 + $0x1b20] sm:$0xff] %v1971_v36  ;;  %1974 = vst [vmem:[%s9554_s9 + $0x1b28] sm:$0xff] %v1973_v37  ;;  %v1977_v39 = vld [vmem:[%s9549_s6 + $0x3618] sm:$0xff]  ;;  %v1979_v40 = vld [vmem:[%s9549_s6 + $0x3620] sm:$0xff] }
 0x1dc   : > { %1976 = vst [vmem:[%s9554_s9 + $0x1b30] sm:$0xff] %v1975_v38  ;;  %1978 = vst [vmem:[%s9554_s9 + $0x1b38] sm:$0xff] %v1977_v39  ;;  %v1981_v41 = vld [vmem:[%s9549_s6 + $0x3628] sm:$0xff]  ;;  %v1983_v42 = vld [vmem:[%s9549_s6 + $0x3630] sm:$0xff] }
 0x1dd   : > { %1980 = vst [vmem:[%s9554_s9 + $0x1b40] sm:$0xff] %v1979_v40  ;;  %v1985_v43 = vld [vmem:[%s9549_s6 + $0x3638] sm:$0xff]  ;;  %1982 = vst [vmem:[%s9554_s9 + $0x1b48] sm:$0xff] %v1981_v41  ;;  %v1987_v44 = vld [vmem:[%s9549_s6 + $0x3640] sm:$0xff] }
 0x1de   : > { %1984 = vst [vmem:[%s9554_s9 + $0x1b50] sm:$0xff] %v1983_v42  ;;  %1986 = vst [vmem:[%s9554_s9 + $0x1b58] sm:$0xff] %v1985_v43  ;;  %v1989_v45 = vld [vmem:[%s9549_s6 + $0x3648] sm:$0xff]  ;;  %v1991_v46 = vld [vmem:[%s9549_s6 + $0x3650] sm:$0xff] }
 0x1df   : > { %1988 = vst [vmem:[%s9554_s9 + $0x1b60] sm:$0xff] %v1987_v44  ;;  %1990 = vst [vmem:[%s9554_s9 + $0x1b68] sm:$0xff] %v1989_v45  ;;  %v1993_v47 = vld [vmem:[%s9549_s6 + $0x3658] sm:$0xff]  ;;  %v1995_v48 = vld [vmem:[%s9549_s6 + $0x3700] sm:$0xff] }
 0x1e0   : > { %1992 = vst [vmem:[%s9554_s9 + $0x1b70] sm:$0xff] %v1991_v46  ;;  %v1997_v49 = vld [vmem:[%s9549_s6 + $0x3708] sm:$0xff]  ;;  %1994 = vst [vmem:[%s9554_s9 + $0x1b78] sm:$0xff] %v1993_v47  ;;  %v1999_v50 = vld [vmem:[%s9549_s6 + $0x3710] sm:$0xff] }
 0x1e1   : > { %1996 = vst [vmem:[%s9554_s9 + $0x1b80] sm:$0xff] %v1995_v48  ;;  %1998 = vst [vmem:[%s9554_s9 + $0x1b88] sm:$0xff] %v1997_v49  ;;  %v2001_v51 = vld [vmem:[%s9549_s6 + $0x3718] sm:$0xff]  ;;  %v2003_v52 = vld [vmem:[%s9549_s6 + $0x3720] sm:$0xff] }
 0x1e2   : > { %2000 = vst [vmem:[%s9554_s9 + $0x1b90] sm:$0xff] %v1999_v50  ;;  %2002 = vst [vmem:[%s9554_s9 + $0x1b98] sm:$0xff] %v2001_v51  ;;  %v2005_v53 = vld [vmem:[%s9549_s6 + $0x3728] sm:$0xff]  ;;  %v2007_v54 = vld [vmem:[%s9549_s6 + $0x3730] sm:$0xff] }
 0x1e3   : > { %2004 = vst [vmem:[%s9554_s9 + $0x1ba0] sm:$0xff] %v2003_v52  ;;  %v2009_v55 = vld [vmem:[%s9549_s6 + $0x3738] sm:$0xff]  ;;  %2006 = vst [vmem:[%s9554_s9 + $0x1ba8] sm:$0xff] %v2005_v53  ;;  %v2011_v56 = vld [vmem:[%s9549_s6 + $0x3740] sm:$0xff] }
 0x1e4   : > { %2008 = vst [vmem:[%s9554_s9 + $0x1bb0] sm:$0xff] %v2007_v54  ;;  %2010 = vst [vmem:[%s9554_s9 + $0x1bb8] sm:$0xff] %v2009_v55  ;;  %v2013_v57 = vld [vmem:[%s9549_s6 + $0x3748] sm:$0xff]  ;;  %v2015_v58 = vld [vmem:[%s9549_s6 + $0x3750] sm:$0xff] }
 0x1e5   : > { %2012 = vst [vmem:[%s9554_s9 + $0x1bc0] sm:$0xff] %v2011_v56  ;;  %2014 = vst [vmem:[%s9554_s9 + $0x1bc8] sm:$0xff] %v2013_v57  ;;  %v2017_v59 = vld [vmem:[%s9549_s6 + $0x3758] sm:$0xff]  ;;  %v2019_v60 = vld [vmem:[%s9549_s6 + $0x3760] sm:$0xff] }
 0x1e6   : > { %2016 = vst [vmem:[%s9554_s9 + $0x1bd0] sm:$0xff] %v2015_v58  ;;  %v2021_v61 = vld [vmem:[%s9549_s6 + $0x3768] sm:$0xff]  ;;  %2018 = vst [vmem:[%s9554_s9 + $0x1bd8] sm:$0xff] %v2017_v59  ;;  %v2023_v62 = vld [vmem:[%s9549_s6 + $0x3770] sm:$0xff] }
 0x1e7   : > { %2020 = vst [vmem:[%s9554_s9 + $0x1be0] sm:$0xff] %v2019_v60  ;;  %2022 = vst [vmem:[%s9554_s9 + $0x1be8] sm:$0xff] %v2021_v61  ;;  %v2025_v63 = vld [vmem:[%s9549_s6 + $0x3778] sm:$0xff]  ;;  %v2027_v0 = vld [vmem:[%s9549_s6 + $0x3780] sm:$0xff] }
 0x1e8   : > { %2024 = vst [vmem:[%s9554_s9 + $0x1bf0] sm:$0xff] %v2023_v62  ;;  %2026 = vst [vmem:[%s9554_s9 + $0x1bf8] sm:$0xff] %v2025_v63  ;;  %v2029_v1 = vld [vmem:[%s9549_s6 + $0x3788] sm:$0xff]  ;;  %v2031_v2 = vld [vmem:[%s9549_s6 + $0x3790] sm:$0xff] }
 0x1e9   : > { %2028 = vst [vmem:[%s9554_s9 + $0x1c00] sm:$0xff] %v2027_v0  ;;  %v2033_v3 = vld [vmem:[%s9549_s6 + $0x3798] sm:$0xff]  ;;  %2030 = vst [vmem:[%s9554_s9 + $0x1c08] sm:$0xff] %v2029_v1  ;;  %v2035_v4 = vld [vmem:[%s9549_s6 + $0x3840] sm:$0xff] }
 0x1ea   : > { %2032 = vst [vmem:[%s9554_s9 + $0x1c10] sm:$0xff] %v2031_v2  ;;  %2034 = vst [vmem:[%s9554_s9 + $0x1c18] sm:$0xff] %v2033_v3  ;;  %v2037_v5 = vld [vmem:[%s9549_s6 + $0x3848] sm:$0xff]  ;;  %v2039_v6 = vld [vmem:[%s9549_s6 + $0x3850] sm:$0xff] }
 0x1eb   : > { %2036 = vst [vmem:[%s9554_s9 + $0x1c20] sm:$0xff] %v2035_v4  ;;  %2038 = vst [vmem:[%s9554_s9 + $0x1c28] sm:$0xff] %v2037_v5  ;;  %v2041_v7 = vld [vmem:[%s9549_s6 + $0x3858] sm:$0xff]  ;;  %v2043_v8 = vld [vmem:[%s9549_s6 + $0x3860] sm:$0xff] }
 0x1ec   : > { %2040 = vst [vmem:[%s9554_s9 + $0x1c30] sm:$0xff] %v2039_v6  ;;  %v2045_v9 = vld [vmem:[%s9549_s6 + $0x3868] sm:$0xff]  ;;  %2042 = vst [vmem:[%s9554_s9 + $0x1c38] sm:$0xff] %v2041_v7  ;;  %v2047_v10 = vld [vmem:[%s9549_s6 + $0x3870] sm:$0xff] }
 0x1ed   : > { %2044 = vst [vmem:[%s9554_s9 + $0x1c40] sm:$0xff] %v2043_v8  ;;  %2046 = vst [vmem:[%s9554_s9 + $0x1c48] sm:$0xff] %v2045_v9  ;;  %v2049_v11 = vld [vmem:[%s9549_s6 + $0x3878] sm:$0xff]  ;;  %v2051_v12 = vld [vmem:[%s9549_s6 + $0x3880] sm:$0xff] }
 0x1ee   : > { %2048 = vst [vmem:[%s9554_s9 + $0x1c50] sm:$0xff] %v2047_v10  ;;  %2050 = vst [vmem:[%s9554_s9 + $0x1c58] sm:$0xff] %v2049_v11  ;;  %v2053_v13 = vld [vmem:[%s9549_s6 + $0x3888] sm:$0xff]  ;;  %v2055_v14 = vld [vmem:[%s9549_s6 + $0x3890] sm:$0xff] }
 0x1ef   : > { %2052 = vst [vmem:[%s9554_s9 + $0x1c60] sm:$0xff] %v2051_v12  ;;  %v2057_v15 = vld [vmem:[%s9549_s6 + $0x3898] sm:$0xff]  ;;  %2054 = vst [vmem:[%s9554_s9 + $0x1c68] sm:$0xff] %v2053_v13  ;;  %v2059_v16 = vld [vmem:[%s9549_s6 + $0x38a0] sm:$0xff] }
 0x1f0   : > { %2056 = vst [vmem:[%s9554_s9 + $0x1c70] sm:$0xff] %v2055_v14  ;;  %2058 = vst [vmem:[%s9554_s9 + $0x1c78] sm:$0xff] %v2057_v15  ;;  %v2061_v17 = vld [vmem:[%s9549_s6 + $0x38a8] sm:$0xff]  ;;  %v2063_v18 = vld [vmem:[%s9549_s6 + $0x38b0] sm:$0xff] }
 0x1f1   : > { %2060 = vst [vmem:[%s9554_s9 + $0x1c80] sm:$0xff] %v2059_v16  ;;  %2062 = vst [vmem:[%s9554_s9 + $0x1c88] sm:$0xff] %v2061_v17  ;;  %v2065_v19 = vld [vmem:[%s9549_s6 + $0x38b8] sm:$0xff]  ;;  %v2067_v20 = vld [vmem:[%s9549_s6 + $0x38c0] sm:$0xff] }
 0x1f2   : > { %2064 = vst [vmem:[%s9554_s9 + $0x1c90] sm:$0xff] %v2063_v18  ;;  %v2069_v21 = vld [vmem:[%s9549_s6 + $0x38c8] sm:$0xff]  ;;  %2066 = vst [vmem:[%s9554_s9 + $0x1c98] sm:$0xff] %v2065_v19  ;;  %v2071_v22 = vld [vmem:[%s9549_s6 + $0x38d0] sm:$0xff] }
 0x1f3   : > { %2068 = vst [vmem:[%s9554_s9 + $0x1ca0] sm:$0xff] %v2067_v20  ;;  %2070 = vst [vmem:[%s9554_s9 + $0x1ca8] sm:$0xff] %v2069_v21  ;;  %v2073_v23 = vld [vmem:[%s9549_s6 + $0x38d8] sm:$0xff]  ;;  %v2075_v24 = vld [vmem:[%s9549_s6 + $0x3980] sm:$0xff] }
 0x1f4   : > { %2072 = vst [vmem:[%s9554_s9 + $0x1cb0] sm:$0xff] %v2071_v22  ;;  %2074 = vst [vmem:[%s9554_s9 + $0x1cb8] sm:$0xff] %v2073_v23  ;;  %v2077_v25 = vld [vmem:[%s9549_s6 + $0x3988] sm:$0xff]  ;;  %v2079_v26 = vld [vmem:[%s9549_s6 + $0x3990] sm:$0xff] }
 0x1f5   : > { %2076 = vst [vmem:[%s9554_s9 + $0x1cc0] sm:$0xff] %v2075_v24  ;;  %v2081_v27 = vld [vmem:[%s9549_s6 + $0x3998] sm:$0xff]  ;;  %2078 = vst [vmem:[%s9554_s9 + $0x1cc8] sm:$0xff] %v2077_v25  ;;  %v2083_v28 = vld [vmem:[%s9549_s6 + $0x39a0] sm:$0xff] }
 0x1f6   : > { %2080 = vst [vmem:[%s9554_s9 + $0x1cd0] sm:$0xff] %v2079_v26  ;;  %2082 = vst [vmem:[%s9554_s9 + $0x1cd8] sm:$0xff] %v2081_v27  ;;  %v2085_v29 = vld [vmem:[%s9549_s6 + $0x39a8] sm:$0xff]  ;;  %v2087_v30 = vld [vmem:[%s9549_s6 + $0x39b0] sm:$0xff] }
 0x1f7   : > { %2084 = vst [vmem:[%s9554_s9 + $0x1ce0] sm:$0xff] %v2083_v28  ;;  %2086 = vst [vmem:[%s9554_s9 + $0x1ce8] sm:$0xff] %v2085_v29  ;;  %v2089_v31 = vld [vmem:[%s9549_s6 + $0x39b8] sm:$0xff]  ;;  %v2091_v32 = vld [vmem:[%s9549_s6 + $0x39c0] sm:$0xff] }
 0x1f8   : > { %2088 = vst [vmem:[%s9554_s9 + $0x1cf0] sm:$0xff] %v2087_v30  ;;  %v2093_v33 = vld [vmem:[%s9549_s6 + $0x39c8] sm:$0xff]  ;;  %2090 = vst [vmem:[%s9554_s9 + $0x1cf8] sm:$0xff] %v2089_v31  ;;  %v2095_v34 = vld [vmem:[%s9549_s6 + $0x39d0] sm:$0xff] }
 0x1f9   : > { %2092 = vst [vmem:[%s9554_s9 + $0x1d00] sm:$0xff] %v2091_v32  ;;  %2094 = vst [vmem:[%s9554_s9 + $0x1d08] sm:$0xff] %v2093_v33  ;;  %v2097_v35 = vld [vmem:[%s9549_s6 + $0x39d8] sm:$0xff]  ;;  %v2099_v36 = vld [vmem:[%s9549_s6 + $0x39e0] sm:$0xff] }
 0x1fa   : > { %2096 = vst [vmem:[%s9554_s9 + $0x1d10] sm:$0xff] %v2095_v34  ;;  %2098 = vst [vmem:[%s9554_s9 + $0x1d18] sm:$0xff] %v2097_v35  ;;  %v2101_v37 = vld [vmem:[%s9549_s6 + $0x39e8] sm:$0xff]  ;;  %v2103_v38 = vld [vmem:[%s9549_s6 + $0x39f0] sm:$0xff] }
 0x1fb   : > { %2100 = vst [vmem:[%s9554_s9 + $0x1d20] sm:$0xff] %v2099_v36  ;;  %v2105_v39 = vld [vmem:[%s9549_s6 + $0x39f8] sm:$0xff]  ;;  %2102 = vst [vmem:[%s9554_s9 + $0x1d28] sm:$0xff] %v2101_v37  ;;  %v2107_v40 = vld [vmem:[%s9549_s6 + $0x3a00] sm:$0xff] }
 0x1fc   : > { %2104 = vst [vmem:[%s9554_s9 + $0x1d30] sm:$0xff] %v2103_v38  ;;  %2106 = vst [vmem:[%s9554_s9 + $0x1d38] sm:$0xff] %v2105_v39  ;;  %v2109_v41 = vld [vmem:[%s9549_s6 + $0x3a08] sm:$0xff]  ;;  %v2111_v42 = vld [vmem:[%s9549_s6 + $0x3a10] sm:$0xff] }
 0x1fd   : > { %2108 = vst [vmem:[%s9554_s9 + $0x1d40] sm:$0xff] %v2107_v40  ;;  %2110 = vst [vmem:[%s9554_s9 + $0x1d48] sm:$0xff] %v2109_v41  ;;  %v2113_v43 = vld [vmem:[%s9549_s6 + $0x3a18] sm:$0xff]  ;;  %v2115_v44 = vld [vmem:[%s9549_s6 + $0x3ac0] sm:$0xff] }
 0x1fe   : > { %2112 = vst [vmem:[%s9554_s9 + $0x1d50] sm:$0xff] %v2111_v42  ;;  %v2117_v45 = vld [vmem:[%s9549_s6 + $0x3ac8] sm:$0xff]  ;;  %2114 = vst [vmem:[%s9554_s9 + $0x1d58] sm:$0xff] %v2113_v43  ;;  %v2119_v46 = vld [vmem:[%s9549_s6 + $0x3ad0] sm:$0xff] }
 0x1ff   : > { %2116 = vst [vmem:[%s9554_s9 + $0x1d60] sm:$0xff] %v2115_v44  ;;  %2118 = vst [vmem:[%s9554_s9 + $0x1d68] sm:$0xff] %v2117_v45  ;;  %v2121_v47 = vld [vmem:[%s9549_s6 + $0x3ad8] sm:$0xff]  ;;  %v2123_v48 = vld [vmem:[%s9549_s6 + $0x3ae0] sm:$0xff] }
 0x200   : > { %2120 = vst [vmem:[%s9554_s9 + $0x1d70] sm:$0xff] %v2119_v46  ;;  %2122 = vst [vmem:[%s9554_s9 + $0x1d78] sm:$0xff] %v2121_v47  ;;  %v2125_v49 = vld [vmem:[%s9549_s6 + $0x3ae8] sm:$0xff]  ;;  %v2127_v50 = vld [vmem:[%s9549_s6 + $0x3af0] sm:$0xff] }
 0x201   : > { %2124 = vst [vmem:[%s9554_s9 + $0x1d80] sm:$0xff] %v2123_v48  ;;  %v2129_v51 = vld [vmem:[%s9549_s6 + $0x3af8] sm:$0xff]  ;;  %2126 = vst [vmem:[%s9554_s9 + $0x1d88] sm:$0xff] %v2125_v49  ;;  %v2131_v52 = vld [vmem:[%s9549_s6 + $0x3b00] sm:$0xff] }
 0x202   : > { %2128 = vst [vmem:[%s9554_s9 + $0x1d90] sm:$0xff] %v2127_v50  ;;  %2130 = vst [vmem:[%s9554_s9 + $0x1d98] sm:$0xff] %v2129_v51  ;;  %v2133_v53 = vld [vmem:[%s9549_s6 + $0x3b08] sm:$0xff]  ;;  %v2135_v54 = vld [vmem:[%s9549_s6 + $0x3b10] sm:$0xff] }
 0x203   : > { %2132 = vst [vmem:[%s9554_s9 + $0x1da0] sm:$0xff] %v2131_v52  ;;  %2134 = vst [vmem:[%s9554_s9 + $0x1da8] sm:$0xff] %v2133_v53  ;;  %v2137_v55 = vld [vmem:[%s9549_s6 + $0x3b18] sm:$0xff]  ;;  %v2139_v56 = vld [vmem:[%s9549_s6 + $0x3b20] sm:$0xff] }
 0x204   : > { %2136 = vst [vmem:[%s9554_s9 + $0x1db0] sm:$0xff] %v2135_v54  ;;  %v2141_v57 = vld [vmem:[%s9549_s6 + $0x3b28] sm:$0xff]  ;;  %2138 = vst [vmem:[%s9554_s9 + $0x1db8] sm:$0xff] %v2137_v55  ;;  %v2143_v58 = vld [vmem:[%s9549_s6 + $0x3b30] sm:$0xff] }
 0x205   : > { %2140 = vst [vmem:[%s9554_s9 + $0x1dc0] sm:$0xff] %v2139_v56  ;;  %2142 = vst [vmem:[%s9554_s9 + $0x1dc8] sm:$0xff] %v2141_v57  ;;  %v2145_v59 = vld [vmem:[%s9549_s6 + $0x3b38] sm:$0xff]  ;;  %v2147_v60 = vld [vmem:[%s9549_s6 + $0x3b40] sm:$0xff] }
 0x206   : > { %2144 = vst [vmem:[%s9554_s9 + $0x1dd0] sm:$0xff] %v2143_v58  ;;  %2146 = vst [vmem:[%s9554_s9 + $0x1dd8] sm:$0xff] %v2145_v59  ;;  %v2149_v61 = vld [vmem:[%s9549_s6 + $0x3b48] sm:$0xff]  ;;  %v2151_v62 = vld [vmem:[%s9549_s6 + $0x3b50] sm:$0xff] }
 0x207   : > { %2148 = vst [vmem:[%s9554_s9 + $0x1de0] sm:$0xff] %v2147_v60  ;;  %v2153_v63 = vld [vmem:[%s9549_s6 + $0x3b58] sm:$0xff]  ;;  %2150 = vst [vmem:[%s9554_s9 + $0x1de8] sm:$0xff] %v2149_v61  ;;  %v2155_v0 = vld [vmem:[%s9549_s6 + $0x3c00] sm:$0xff] }
 0x208   : > { %2152 = vst [vmem:[%s9554_s9 + $0x1df0] sm:$0xff] %v2151_v62  ;;  %2154 = vst [vmem:[%s9554_s9 + $0x1df8] sm:$0xff] %v2153_v63  ;;  %v2157_v1 = vld [vmem:[%s9549_s6 + $0x3c08] sm:$0xff]  ;;  %v2159_v2 = vld [vmem:[%s9549_s6 + $0x3c10] sm:$0xff] }
 0x209   : > { %2156 = vst [vmem:[%s9554_s9 + $0x1e00] sm:$0xff] %v2155_v0  ;;  %2158 = vst [vmem:[%s9554_s9 + $0x1e08] sm:$0xff] %v2157_v1  ;;  %v2161_v3 = vld [vmem:[%s9549_s6 + $0x3c18] sm:$0xff]  ;;  %v2163_v4 = vld [vmem:[%s9549_s6 + $0x3c20] sm:$0xff] }
 0x20a   : > { %2160 = vst [vmem:[%s9554_s9 + $0x1e10] sm:$0xff] %v2159_v2  ;;  %v2165_v5 = vld [vmem:[%s9549_s6 + $0x3c28] sm:$0xff]  ;;  %2162 = vst [vmem:[%s9554_s9 + $0x1e18] sm:$0xff] %v2161_v3  ;;  %v2167_v6 = vld [vmem:[%s9549_s6 + $0x3c30] sm:$0xff] }
 0x20b   : > { %2164 = vst [vmem:[%s9554_s9 + $0x1e20] sm:$0xff] %v2163_v4  ;;  %2166 = vst [vmem:[%s9554_s9 + $0x1e28] sm:$0xff] %v2165_v5  ;;  %v2169_v7 = vld [vmem:[%s9549_s6 + $0x3c38] sm:$0xff]  ;;  %v2171_v8 = vld [vmem:[%s9549_s6 + $0x3c40] sm:$0xff] }
 0x20c   : > { %2168 = vst [vmem:[%s9554_s9 + $0x1e30] sm:$0xff] %v2167_v6  ;;  %2170 = vst [vmem:[%s9554_s9 + $0x1e38] sm:$0xff] %v2169_v7  ;;  %v2173_v9 = vld [vmem:[%s9549_s6 + $0x3c48] sm:$0xff]  ;;  %v2175_v10 = vld [vmem:[%s9549_s6 + $0x3c50] sm:$0xff] }
 0x20d   : > { %2172 = vst [vmem:[%s9554_s9 + $0x1e40] sm:$0xff] %v2171_v8  ;;  %v2177_v11 = vld [vmem:[%s9549_s6 + $0x3c58] sm:$0xff]  ;;  %2174 = vst [vmem:[%s9554_s9 + $0x1e48] sm:$0xff] %v2173_v9  ;;  %v2179_v12 = vld [vmem:[%s9549_s6 + $0x3c60] sm:$0xff] }
 0x20e   : > { %2176 = vst [vmem:[%s9554_s9 + $0x1e50] sm:$0xff] %v2175_v10  ;;  %2178 = vst [vmem:[%s9554_s9 + $0x1e58] sm:$0xff] %v2177_v11  ;;  %v2181_v13 = vld [vmem:[%s9549_s6 + $0x3c68] sm:$0xff]  ;;  %v2183_v14 = vld [vmem:[%s9549_s6 + $0x3c70] sm:$0xff] }
 0x20f   : > { %2180 = vst [vmem:[%s9554_s9 + $0x1e60] sm:$0xff] %v2179_v12  ;;  %2182 = vst [vmem:[%s9554_s9 + $0x1e68] sm:$0xff] %v2181_v13  ;;  %v2185_v15 = vld [vmem:[%s9549_s6 + $0x3c78] sm:$0xff]  ;;  %v2187_v16 = vld [vmem:[%s9549_s6 + $0x3c80] sm:$0xff] }
 0x210   : > { %2184 = vst [vmem:[%s9554_s9 + $0x1e70] sm:$0xff] %v2183_v14  ;;  %v2189_v17 = vld [vmem:[%s9549_s6 + $0x3c88] sm:$0xff]  ;;  %2186 = vst [vmem:[%s9554_s9 + $0x1e78] sm:$0xff] %v2185_v15  ;;  %v2191_v18 = vld [vmem:[%s9549_s6 + $0x3c90] sm:$0xff] }
 0x211   : > { %2188 = vst [vmem:[%s9554_s9 + $0x1e80] sm:$0xff] %v2187_v16  ;;  %2190 = vst [vmem:[%s9554_s9 + $0x1e88] sm:$0xff] %v2189_v17  ;;  %v2193_v19 = vld [vmem:[%s9549_s6 + $0x3c98] sm:$0xff]  ;;  %v2195_v20 = vld [vmem:[%s9549_s6 + $0x3d40] sm:$0xff] }
 0x212   : > { %2192 = vst [vmem:[%s9554_s9 + $0x1e90] sm:$0xff] %v2191_v18  ;;  %2194 = vst [vmem:[%s9554_s9 + $0x1e98] sm:$0xff] %v2193_v19  ;;  %v2197_v21 = vld [vmem:[%s9549_s6 + $0x3d48] sm:$0xff]  ;;  %v2199_v22 = vld [vmem:[%s9549_s6 + $0x3d50] sm:$0xff] }
 0x213   : > { %2196 = vst [vmem:[%s9554_s9 + $0x1ea0] sm:$0xff] %v2195_v20  ;;  %v2201_v23 = vld [vmem:[%s9549_s6 + $0x3d58] sm:$0xff]  ;;  %2198 = vst [vmem:[%s9554_s9 + $0x1ea8] sm:$0xff] %v2197_v21  ;;  %v2203_v24 = vld [vmem:[%s9549_s6 + $0x3d60] sm:$0xff] }
 0x214   : > { %2200 = vst [vmem:[%s9554_s9 + $0x1eb0] sm:$0xff] %v2199_v22  ;;  %2202 = vst [vmem:[%s9554_s9 + $0x1eb8] sm:$0xff] %v2201_v23  ;;  %v2205_v25 = vld [vmem:[%s9549_s6 + $0x3d68] sm:$0xff]  ;;  %v2207_v26 = vld [vmem:[%s9549_s6 + $0x3d70] sm:$0xff] }
 0x215   : > { %2204 = vst [vmem:[%s9554_s9 + $0x1ec0] sm:$0xff] %v2203_v24  ;;  %2206 = vst [vmem:[%s9554_s9 + $0x1ec8] sm:$0xff] %v2205_v25  ;;  %v2209_v27 = vld [vmem:[%s9549_s6 + $0x3d78] sm:$0xff]  ;;  %v2211_v28 = vld [vmem:[%s9549_s6 + $0x3d80] sm:$0xff] }
 0x216   : > { %2208 = vst [vmem:[%s9554_s9 + $0x1ed0] sm:$0xff] %v2207_v26  ;;  %v2213_v29 = vld [vmem:[%s9549_s6 + $0x3d88] sm:$0xff]  ;;  %2210 = vst [vmem:[%s9554_s9 + $0x1ed8] sm:$0xff] %v2209_v27  ;;  %v2215_v30 = vld [vmem:[%s9549_s6 + $0x3d90] sm:$0xff] }
 0x217   : > { %2212 = vst [vmem:[%s9554_s9 + $0x1ee0] sm:$0xff] %v2211_v28  ;;  %2214 = vst [vmem:[%s9554_s9 + $0x1ee8] sm:$0xff] %v2213_v29  ;;  %v2217_v31 = vld [vmem:[%s9549_s6 + $0x3d98] sm:$0xff]  ;;  %v2219_v32 = vld [vmem:[%s9549_s6 + $0x3da0] sm:$0xff] }
 0x218   : > { %2216 = vst [vmem:[%s9554_s9 + $0x1ef0] sm:$0xff] %v2215_v30  ;;  %2218 = vst [vmem:[%s9554_s9 + $0x1ef8] sm:$0xff] %v2217_v31  ;;  %v2221_v33 = vld [vmem:[%s9549_s6 + $0x3da8] sm:$0xff]  ;;  %v2223_v34 = vld [vmem:[%s9549_s6 + $0x3db0] sm:$0xff] }
 0x219   : > { %2220 = vst [vmem:[%s9554_s9 + $0x1f00] sm:$0xff] %v2219_v32  ;;  %v2225_v35 = vld [vmem:[%s9549_s6 + $0x3db8] sm:$0xff]  ;;  %2222 = vst [vmem:[%s9554_s9 + $0x1f08] sm:$0xff] %v2221_v33  ;;  %v2227_v36 = vld [vmem:[%s9549_s6 + $0x3dc0] sm:$0xff] }
 0x21a   : > { %2224 = vst [vmem:[%s9554_s9 + $0x1f10] sm:$0xff] %v2223_v34  ;;  %2226 = vst [vmem:[%s9554_s9 + $0x1f18] sm:$0xff] %v2225_v35  ;;  %v2229_v37 = vld [vmem:[%s9549_s6 + $0x3dc8] sm:$0xff]  ;;  %v2231_v38 = vld [vmem:[%s9549_s6 + $0x3dd0] sm:$0xff] }
 0x21b   : > { %2228 = vst [vmem:[%s9554_s9 + $0x1f20] sm:$0xff] %v2227_v36  ;;  %2230 = vst [vmem:[%s9554_s9 + $0x1f28] sm:$0xff] %v2229_v37  ;;  %v2233_v39 = vld [vmem:[%s9549_s6 + $0x3dd8] sm:$0xff]  ;;  %v2235_v40 = vld [vmem:[%s9549_s6 + $0x3e80] sm:$0xff] }
 0x21c   : > { %2232 = vst [vmem:[%s9554_s9 + $0x1f30] sm:$0xff] %v2231_v38  ;;  %v2237_v41 = vld [vmem:[%s9549_s6 + $0x3e88] sm:$0xff]  ;;  %2234 = vst [vmem:[%s9554_s9 + $0x1f38] sm:$0xff] %v2233_v39  ;;  %v2239_v42 = vld [vmem:[%s9549_s6 + $0x3e90] sm:$0xff] }
 0x21d   : > { %2236 = vst [vmem:[%s9554_s9 + $0x1f40] sm:$0xff] %v2235_v40  ;;  %2238 = vst [vmem:[%s9554_s9 + $0x1f48] sm:$0xff] %v2237_v41  ;;  %v2241_v43 = vld [vmem:[%s9549_s6 + $0x3e98] sm:$0xff]  ;;  %v2243_v44 = vld [vmem:[%s9549_s6 + $0x3ea0] sm:$0xff] }
 0x21e   : > { %2240 = vst [vmem:[%s9554_s9 + $0x1f50] sm:$0xff] %v2239_v42  ;;  %2242 = vst [vmem:[%s9554_s9 + $0x1f58] sm:$0xff] %v2241_v43  ;;  %v2245_v45 = vld [vmem:[%s9549_s6 + $0x3ea8] sm:$0xff]  ;;  %v2247_v46 = vld [vmem:[%s9549_s6 + $0x3eb0] sm:$0xff] }
 0x21f   : > { %2244 = vst [vmem:[%s9554_s9 + $0x1f60] sm:$0xff] %v2243_v44  ;;  %v2249_v47 = vld [vmem:[%s9549_s6 + $0x3eb8] sm:$0xff]  ;;  %2246 = vst [vmem:[%s9554_s9 + $0x1f68] sm:$0xff] %v2245_v45  ;;  %v2251_v48 = vld [vmem:[%s9549_s6 + $0x3ec0] sm:$0xff] }
 0x220   : > { %2248 = vst [vmem:[%s9554_s9 + $0x1f70] sm:$0xff] %v2247_v46  ;;  %2250 = vst [vmem:[%s9554_s9 + $0x1f78] sm:$0xff] %v2249_v47  ;;  %v2253_v49 = vld [vmem:[%s9549_s6 + $0x3ec8] sm:$0xff]  ;;  %v2255_v50 = vld [vmem:[%s9549_s6 + $0x3ed0] sm:$0xff] }
 0x221   : > { %2252 = vst [vmem:[%s9554_s9 + $0x1f80] sm:$0xff] %v2251_v48  ;;  %2254 = vst [vmem:[%s9554_s9 + $0x1f88] sm:$0xff] %v2253_v49  ;;  %v2257_v51 = vld [vmem:[%s9549_s6 + $0x3ed8] sm:$0xff]  ;;  %v2259_v52 = vld [vmem:[%s9549_s6 + $0x3ee0] sm:$0xff] }
 0x222   : > { %2256 = vst [vmem:[%s9554_s9 + $0x1f90] sm:$0xff] %v2255_v50  ;;  %v2261_v53 = vld [vmem:[%s9549_s6 + $0x3ee8] sm:$0xff]  ;;  %2258 = vst [vmem:[%s9554_s9 + $0x1f98] sm:$0xff] %v2257_v51  ;;  %v2263_v54 = vld [vmem:[%s9549_s6 + $0x3ef0] sm:$0xff] }
 0x223   : > { %2260 = vst [vmem:[%s9554_s9 + $0x1fa0] sm:$0xff] %v2259_v52  ;;  %2262 = vst [vmem:[%s9554_s9 + $0x1fa8] sm:$0xff] %v2261_v53  ;;  %v2265_v55 = vld [vmem:[%s9549_s6 + $0x3ef8] sm:$0xff]  ;;  %v2267_v56 = vld [vmem:[%s9549_s6 + $0x3f00] sm:$0xff] }
 0x224   : > { %2264 = vst [vmem:[%s9554_s9 + $0x1fb0] sm:$0xff] %v2263_v54  ;;  %2266 = vst [vmem:[%s9554_s9 + $0x1fb8] sm:$0xff] %v2265_v55  ;;  %v2269_v57 = vld [vmem:[%s9549_s6 + $0x3f08] sm:$0xff]  ;;  %v2271_v58 = vld [vmem:[%s9549_s6 + $0x3f10] sm:$0xff] }
 0x225   : > { %2268 = vst [vmem:[%s9554_s9 + $0x1fc0] sm:$0xff] %v2267_v56  ;;  %v2273_v59 = vld [vmem:[%s9549_s6 + $0x3f18] sm:$0xff]  ;;  %2270 = vst [vmem:[%s9554_s9 + $0x1fc8] sm:$0xff] %v2269_v57  ;;  %v2275_v60 = vld [vmem:[%s9549_s6 + $0x3fc0] sm:$0xff] }
 0x226   : > { %2272 = vst [vmem:[%s9554_s9 + $0x1fd0] sm:$0xff] %v2271_v58  ;;  %2274 = vst [vmem:[%s9554_s9 + $0x1fd8] sm:$0xff] %v2273_v59  ;;  %v2277_v61 = vld [vmem:[%s9549_s6 + $0x3fc8] sm:$0xff]  ;;  %v2279_v62 = vld [vmem:[%s9549_s6 + $0x3fd0] sm:$0xff] }
 0x227   : > { %2276 = vst [vmem:[%s9554_s9 + $0x1fe0] sm:$0xff] %v2275_v60  ;;  %2278 = vst [vmem:[%s9554_s9 + $0x1fe8] sm:$0xff] %v2277_v61  ;;  %v2281_v63 = vld [vmem:[%s9549_s6 + $0x3fd8] sm:$0xff]  ;;  %v2283_v0 = vld [vmem:[%s9549_s6 + $0x3fe0] sm:$0xff] }
 0x228   : > { %2280 = vst [vmem:[%s9554_s9 + $0x1ff0] sm:$0xff] %v2279_v62  ;;  %v2285_v1 = vld [vmem:[%s9549_s6 + $0x3fe8] sm:$0xff]  ;;  %2282 = vst [vmem:[%s9554_s9 + $0x1ff8] sm:$0xff] %v2281_v63  ;;  %v2287_v2 = vld [vmem:[%s9549_s6 + $0x3ff0] sm:$0xff] }
 0x229   : > { %2284 = vst [vmem:[%s9554_s9 + $0x2000] sm:$0xff] %v2283_v0  ;;  %2286 = vst [vmem:[%s9554_s9 + $0x2008] sm:$0xff] %v2285_v1  ;;  %v2289_v3 = vld [vmem:[%s9549_s6 + $0x3ff8] sm:$0xff]  ;;  %v2291_v4 = vld [vmem:[%s9549_s6 + $0x4000] sm:$0xff] }
 0x22a   : > { %2288 = vst [vmem:[%s9554_s9 + $0x2010] sm:$0xff] %v2287_v2  ;;  %2290 = vst [vmem:[%s9554_s9 + $0x2018] sm:$0xff] %v2289_v3  ;;  %v2293_v5 = vld [vmem:[%s9549_s6 + $0x4008] sm:$0xff]  ;;  %v2295_v6 = vld [vmem:[%s9549_s6 + $0x4010] sm:$0xff] }
 0x22b   : > { %2292 = vst [vmem:[%s9554_s9 + $0x2020] sm:$0xff] %v2291_v4  ;;  %v2297_v7 = vld [vmem:[%s9549_s6 + $0x4018] sm:$0xff]  ;;  %2294 = vst [vmem:[%s9554_s9 + $0x2028] sm:$0xff] %v2293_v5  ;;  %v2299_v8 = vld [vmem:[%s9549_s6 + $0x4020] sm:$0xff] }
 0x22c   : > { %2296 = vst [vmem:[%s9554_s9 + $0x2030] sm:$0xff] %v2295_v6  ;;  %2298 = vst [vmem:[%s9554_s9 + $0x2038] sm:$0xff] %v2297_v7  ;;  %v2301_v9 = vld [vmem:[%s9549_s6 + $0x4028] sm:$0xff]  ;;  %v2303_v10 = vld [vmem:[%s9549_s6 + $0x4030] sm:$0xff] }
 0x22d   : > { %2300 = vst [vmem:[%s9554_s9 + $0x2040] sm:$0xff] %v2299_v8  ;;  %2302 = vst [vmem:[%s9554_s9 + $0x2048] sm:$0xff] %v2301_v9  ;;  %v2305_v11 = vld [vmem:[%s9549_s6 + $0x4038] sm:$0xff]  ;;  %v2307_v12 = vld [vmem:[%s9549_s6 + $0x4040] sm:$0xff] }
 0x22e   : > { %2304 = vst [vmem:[%s9554_s9 + $0x2050] sm:$0xff] %v2303_v10  ;;  %v2309_v13 = vld [vmem:[%s9549_s6 + $0x4048] sm:$0xff]  ;;  %2306 = vst [vmem:[%s9554_s9 + $0x2058] sm:$0xff] %v2305_v11  ;;  %v2311_v14 = vld [vmem:[%s9549_s6 + $0x4050] sm:$0xff] }
 0x22f   : > { %2308 = vst [vmem:[%s9554_s9 + $0x2060] sm:$0xff] %v2307_v12  ;;  %2310 = vst [vmem:[%s9554_s9 + $0x2068] sm:$0xff] %v2309_v13  ;;  %v2313_v15 = vld [vmem:[%s9549_s6 + $0x4058] sm:$0xff]  ;;  %v2315_v16 = vld [vmem:[%s9549_s6 + $0x4100] sm:$0xff] }
 0x230   : > { %2312 = vst [vmem:[%s9554_s9 + $0x2070] sm:$0xff] %v2311_v14  ;;  %2314 = vst [vmem:[%s9554_s9 + $0x2078] sm:$0xff] %v2313_v15  ;;  %v2317_v17 = vld [vmem:[%s9549_s6 + $0x4108] sm:$0xff]  ;;  %v2319_v18 = vld [vmem:[%s9549_s6 + $0x4110] sm:$0xff] }
 0x231   : > { %2316 = vst [vmem:[%s9554_s9 + $0x2080] sm:$0xff] %v2315_v16  ;;  %v2321_v19 = vld [vmem:[%s9549_s6 + $0x4118] sm:$0xff]  ;;  %2318 = vst [vmem:[%s9554_s9 + $0x2088] sm:$0xff] %v2317_v17  ;;  %v2323_v20 = vld [vmem:[%s9549_s6 + $0x4120] sm:$0xff] }
 0x232   : > { %2320 = vst [vmem:[%s9554_s9 + $0x2090] sm:$0xff] %v2319_v18  ;;  %2322 = vst [vmem:[%s9554_s9 + $0x2098] sm:$0xff] %v2321_v19  ;;  %v2325_v21 = vld [vmem:[%s9549_s6 + $0x4128] sm:$0xff]  ;;  %v2327_v22 = vld [vmem:[%s9549_s6 + $0x4130] sm:$0xff] }
 0x233   : > { %2324 = vst [vmem:[%s9554_s9 + $0x20a0] sm:$0xff] %v2323_v20  ;;  %2326 = vst [vmem:[%s9554_s9 + $0x20a8] sm:$0xff] %v2325_v21  ;;  %v2329_v23 = vld [vmem:[%s9549_s6 + $0x4138] sm:$0xff]  ;;  %v2331_v24 = vld [vmem:[%s9549_s6 + $0x4140] sm:$0xff] }
 0x234   : > { %2328 = vst [vmem:[%s9554_s9 + $0x20b0] sm:$0xff] %v2327_v22  ;;  %v2333_v25 = vld [vmem:[%s9549_s6 + $0x4148] sm:$0xff]  ;;  %2330 = vst [vmem:[%s9554_s9 + $0x20b8] sm:$0xff] %v2329_v23  ;;  %v2335_v26 = vld [vmem:[%s9549_s6 + $0x4150] sm:$0xff] }
 0x235   : > { %2332 = vst [vmem:[%s9554_s9 + $0x20c0] sm:$0xff] %v2331_v24  ;;  %2334 = vst [vmem:[%s9554_s9 + $0x20c8] sm:$0xff] %v2333_v25  ;;  %v2337_v27 = vld [vmem:[%s9549_s6 + $0x4158] sm:$0xff]  ;;  %v2339_v28 = vld [vmem:[%s9549_s6 + $0x4160] sm:$0xff] }
 0x236   : > { %2336 = vst [vmem:[%s9554_s9 + $0x20d0] sm:$0xff] %v2335_v26  ;;  %2338 = vst [vmem:[%s9554_s9 + $0x20d8] sm:$0xff] %v2337_v27  ;;  %v2341_v29 = vld [vmem:[%s9549_s6 + $0x4168] sm:$0xff]  ;;  %v2343_v30 = vld [vmem:[%s9549_s6 + $0x4170] sm:$0xff] }
 0x237   : > { %2340 = vst [vmem:[%s9554_s9 + $0x20e0] sm:$0xff] %v2339_v28  ;;  %v2345_v31 = vld [vmem:[%s9549_s6 + $0x4178] sm:$0xff]  ;;  %2342 = vst [vmem:[%s9554_s9 + $0x20e8] sm:$0xff] %v2341_v29  ;;  %v2347_v32 = vld [vmem:[%s9549_s6 + $0x4180] sm:$0xff] }
 0x238   : > { %2344 = vst [vmem:[%s9554_s9 + $0x20f0] sm:$0xff] %v2343_v30  ;;  %2346 = vst [vmem:[%s9554_s9 + $0x20f8] sm:$0xff] %v2345_v31  ;;  %v2349_v33 = vld [vmem:[%s9549_s6 + $0x4188] sm:$0xff]  ;;  %v2351_v34 = vld [vmem:[%s9549_s6 + $0x4190] sm:$0xff] }
 0x239   : > { %2348 = vst [vmem:[%s9554_s9 + $0x2100] sm:$0xff] %v2347_v32  ;;  %2350 = vst [vmem:[%s9554_s9 + $0x2108] sm:$0xff] %v2349_v33  ;;  %v2353_v35 = vld [vmem:[%s9549_s6 + $0x4198] sm:$0xff]  ;;  %v2355_v36 = vld [vmem:[%s9549_s6 + $0x4240] sm:$0xff] }
 0x23a   : > { %2352 = vst [vmem:[%s9554_s9 + $0x2110] sm:$0xff] %v2351_v34  ;;  %v2357_v37 = vld [vmem:[%s9549_s6 + $0x4248] sm:$0xff]  ;;  %2354 = vst [vmem:[%s9554_s9 + $0x2118] sm:$0xff] %v2353_v35  ;;  %v2359_v38 = vld [vmem:[%s9549_s6 + $0x4250] sm:$0xff] }
 0x23b   : > { %2356 = vst [vmem:[%s9554_s9 + $0x2120] sm:$0xff] %v2355_v36  ;;  %2358 = vst [vmem:[%s9554_s9 + $0x2128] sm:$0xff] %v2357_v37  ;;  %v2361_v39 = vld [vmem:[%s9549_s6 + $0x4258] sm:$0xff]  ;;  %v2363_v40 = vld [vmem:[%s9549_s6 + $0x4260] sm:$0xff] }
 0x23c   : > { %2360 = vst [vmem:[%s9554_s9 + $0x2130] sm:$0xff] %v2359_v38  ;;  %2362 = vst [vmem:[%s9554_s9 + $0x2138] sm:$0xff] %v2361_v39  ;;  %v2365_v41 = vld [vmem:[%s9549_s6 + $0x4268] sm:$0xff]  ;;  %v2367_v42 = vld [vmem:[%s9549_s6 + $0x4270] sm:$0xff] }
 0x23d   : > { %2364 = vst [vmem:[%s9554_s9 + $0x2140] sm:$0xff] %v2363_v40  ;;  %v2369_v43 = vld [vmem:[%s9549_s6 + $0x4278] sm:$0xff]  ;;  %2366 = vst [vmem:[%s9554_s9 + $0x2148] sm:$0xff] %v2365_v41  ;;  %v2371_v44 = vld [vmem:[%s9549_s6 + $0x4280] sm:$0xff] }
 0x23e   : > { %2368 = vst [vmem:[%s9554_s9 + $0x2150] sm:$0xff] %v2367_v42  ;;  %2370 = vst [vmem:[%s9554_s9 + $0x2158] sm:$0xff] %v2369_v43  ;;  %v2373_v45 = vld [vmem:[%s9549_s6 + $0x4288] sm:$0xff]  ;;  %v2375_v46 = vld [vmem:[%s9549_s6 + $0x4290] sm:$0xff] }
 0x23f   : > { %2372 = vst [vmem:[%s9554_s9 + $0x2160] sm:$0xff] %v2371_v44  ;;  %2374 = vst [vmem:[%s9554_s9 + $0x2168] sm:$0xff] %v2373_v45  ;;  %v2377_v47 = vld [vmem:[%s9549_s6 + $0x4298] sm:$0xff]  ;;  %v2379_v48 = vld [vmem:[%s9549_s6 + $0x42a0] sm:$0xff] }
 0x240   : > { %2376 = vst [vmem:[%s9554_s9 + $0x2170] sm:$0xff] %v2375_v46  ;;  %v2381_v49 = vld [vmem:[%s9549_s6 + $0x42a8] sm:$0xff]  ;;  %2378 = vst [vmem:[%s9554_s9 + $0x2178] sm:$0xff] %v2377_v47  ;;  %v2383_v50 = vld [vmem:[%s9549_s6 + $0x42b0] sm:$0xff] }
 0x241   : > { %2380 = vst [vmem:[%s9554_s9 + $0x2180] sm:$0xff] %v2379_v48  ;;  %2382 = vst [vmem:[%s9554_s9 + $0x2188] sm:$0xff] %v2381_v49  ;;  %v2385_v51 = vld [vmem:[%s9549_s6 + $0x42b8] sm:$0xff]  ;;  %v2387_v52 = vld [vmem:[%s9549_s6 + $0x42c0] sm:$0xff] }
 0x242   : > { %2384 = vst [vmem:[%s9554_s9 + $0x2190] sm:$0xff] %v2383_v50  ;;  %2386 = vst [vmem:[%s9554_s9 + $0x2198] sm:$0xff] %v2385_v51  ;;  %v2389_v53 = vld [vmem:[%s9549_s6 + $0x42c8] sm:$0xff]  ;;  %v2391_v54 = vld [vmem:[%s9549_s6 + $0x42d0] sm:$0xff] }
 0x243   : > { %2388 = vst [vmem:[%s9554_s9 + $0x21a0] sm:$0xff] %v2387_v52  ;;  %v2393_v55 = vld [vmem:[%s9549_s6 + $0x42d8] sm:$0xff]  ;;  %2390 = vst [vmem:[%s9554_s9 + $0x21a8] sm:$0xff] %v2389_v53  ;;  %v2395_v56 = vld [vmem:[%s9549_s6 + $0x4380] sm:$0xff] }
 0x244   : > { %2392 = vst [vmem:[%s9554_s9 + $0x21b0] sm:$0xff] %v2391_v54  ;;  %2394 = vst [vmem:[%s9554_s9 + $0x21b8] sm:$0xff] %v2393_v55  ;;  %v2397_v57 = vld [vmem:[%s9549_s6 + $0x4388] sm:$0xff]  ;;  %v2399_v58 = vld [vmem:[%s9549_s6 + $0x4390] sm:$0xff] }
 0x245   : > { %2396 = vst [vmem:[%s9554_s9 + $0x21c0] sm:$0xff] %v2395_v56  ;;  %2398 = vst [vmem:[%s9554_s9 + $0x21c8] sm:$0xff] %v2397_v57  ;;  %v2401_v59 = vld [vmem:[%s9549_s6 + $0x4398] sm:$0xff]  ;;  %v2403_v60 = vld [vmem:[%s9549_s6 + $0x43a0] sm:$0xff] }
 0x246   : > { %2400 = vst [vmem:[%s9554_s9 + $0x21d0] sm:$0xff] %v2399_v58  ;;  %v2405_v61 = vld [vmem:[%s9549_s6 + $0x43a8] sm:$0xff]  ;;  %2402 = vst [vmem:[%s9554_s9 + $0x21d8] sm:$0xff] %v2401_v59  ;;  %v2407_v62 = vld [vmem:[%s9549_s6 + $0x43b0] sm:$0xff] }
 0x247   : > { %2404 = vst [vmem:[%s9554_s9 + $0x21e0] sm:$0xff] %v2403_v60  ;;  %2406 = vst [vmem:[%s9554_s9 + $0x21e8] sm:$0xff] %v2405_v61  ;;  %v2409_v63 = vld [vmem:[%s9549_s6 + $0x43b8] sm:$0xff]  ;;  %v2411_v0 = vld [vmem:[%s9549_s6 + $0x43c0] sm:$0xff] }
 0x248   : > { %2408 = vst [vmem:[%s9554_s9 + $0x21f0] sm:$0xff] %v2407_v62  ;;  %2410 = vst [vmem:[%s9554_s9 + $0x21f8] sm:$0xff] %v2409_v63  ;;  %v2413_v1 = vld [vmem:[%s9549_s6 + $0x43c8] sm:$0xff]  ;;  %v2415_v2 = vld [vmem:[%s9549_s6 + $0x43d0] sm:$0xff] }
 0x249   : > { %2412 = vst [vmem:[%s9554_s9 + $0x2200] sm:$0xff] %v2411_v0  ;;  %v2417_v3 = vld [vmem:[%s9549_s6 + $0x43d8] sm:$0xff]  ;;  %2414 = vst [vmem:[%s9554_s9 + $0x2208] sm:$0xff] %v2413_v1  ;;  %v2419_v4 = vld [vmem:[%s9549_s6 + $0x43e0] sm:$0xff] }
 0x24a   : > { %2416 = vst [vmem:[%s9554_s9 + $0x2210] sm:$0xff] %v2415_v2  ;;  %2418 = vst [vmem:[%s9554_s9 + $0x2218] sm:$0xff] %v2417_v3  ;;  %v2421_v5 = vld [vmem:[%s9549_s6 + $0x43e8] sm:$0xff]  ;;  %v2423_v6 = vld [vmem:[%s9549_s6 + $0x43f0] sm:$0xff] }
 0x24b   : > { %2420 = vst [vmem:[%s9554_s9 + $0x2220] sm:$0xff] %v2419_v4  ;;  %2422 = vst [vmem:[%s9554_s9 + $0x2228] sm:$0xff] %v2421_v5  ;;  %v2425_v7 = vld [vmem:[%s9549_s6 + $0x43f8] sm:$0xff]  ;;  %v2427_v8 = vld [vmem:[%s9549_s6 + $0x4400] sm:$0xff] }
 0x24c   : > { %2424 = vst [vmem:[%s9554_s9 + $0x2230] sm:$0xff] %v2423_v6  ;;  %v2429_v9 = vld [vmem:[%s9549_s6 + $0x4408] sm:$0xff]  ;;  %2426 = vst [vmem:[%s9554_s9 + $0x2238] sm:$0xff] %v2425_v7  ;;  %v2431_v10 = vld [vmem:[%s9549_s6 + $0x4410] sm:$0xff] }
 0x24d   : > { %2428 = vst [vmem:[%s9554_s9 + $0x2240] sm:$0xff] %v2427_v8  ;;  %2430 = vst [vmem:[%s9554_s9 + $0x2248] sm:$0xff] %v2429_v9  ;;  %v2433_v11 = vld [vmem:[%s9549_s6 + $0x4418] sm:$0xff]  ;;  %v2435_v12 = vld [vmem:[%s9549_s6 + $0x44c0] sm:$0xff] }
 0x24e   : > { %2432 = vst [vmem:[%s9554_s9 + $0x2250] sm:$0xff] %v2431_v10  ;;  %2434 = vst [vmem:[%s9554_s9 + $0x2258] sm:$0xff] %v2433_v11  ;;  %v2437_v13 = vld [vmem:[%s9549_s6 + $0x44c8] sm:$0xff]  ;;  %v2439_v14 = vld [vmem:[%s9549_s6 + $0x44d0] sm:$0xff] }
 0x24f   : > { %2436 = vst [vmem:[%s9554_s9 + $0x2260] sm:$0xff] %v2435_v12  ;;  %v2441_v15 = vld [vmem:[%s9549_s6 + $0x44d8] sm:$0xff]  ;;  %2438 = vst [vmem:[%s9554_s9 + $0x2268] sm:$0xff] %v2437_v13  ;;  %v2443_v16 = vld [vmem:[%s9549_s6 + $0x44e0] sm:$0xff] }
 0x250   : > { %2440 = vst [vmem:[%s9554_s9 + $0x2270] sm:$0xff] %v2439_v14  ;;  %2442 = vst [vmem:[%s9554_s9 + $0x2278] sm:$0xff] %v2441_v15  ;;  %v2445_v17 = vld [vmem:[%s9549_s6 + $0x44e8] sm:$0xff]  ;;  %v2447_v18 = vld [vmem:[%s9549_s6 + $0x44f0] sm:$0xff] }
 0x251   : > { %2444 = vst [vmem:[%s9554_s9 + $0x2280] sm:$0xff] %v2443_v16  ;;  %2446 = vst [vmem:[%s9554_s9 + $0x2288] sm:$0xff] %v2445_v17  ;;  %v2449_v19 = vld [vmem:[%s9549_s6 + $0x44f8] sm:$0xff]  ;;  %v2451_v20 = vld [vmem:[%s9549_s6 + $0x4500] sm:$0xff] }
 0x252   : > { %2448 = vst [vmem:[%s9554_s9 + $0x2290] sm:$0xff] %v2447_v18  ;;  %v2453_v21 = vld [vmem:[%s9549_s6 + $0x4508] sm:$0xff]  ;;  %2450 = vst [vmem:[%s9554_s9 + $0x2298] sm:$0xff] %v2449_v19  ;;  %v2455_v22 = vld [vmem:[%s9549_s6 + $0x4510] sm:$0xff] }
 0x253   : > { %2452 = vst [vmem:[%s9554_s9 + $0x22a0] sm:$0xff] %v2451_v20  ;;  %2454 = vst [vmem:[%s9554_s9 + $0x22a8] sm:$0xff] %v2453_v21  ;;  %v2457_v23 = vld [vmem:[%s9549_s6 + $0x4518] sm:$0xff]  ;;  %v2459_v24 = vld [vmem:[%s9549_s6 + $0x4520] sm:$0xff] }
 0x254   : > { %2456 = vst [vmem:[%s9554_s9 + $0x22b0] sm:$0xff] %v2455_v22  ;;  %2458 = vst [vmem:[%s9554_s9 + $0x22b8] sm:$0xff] %v2457_v23  ;;  %v2461_v25 = vld [vmem:[%s9549_s6 + $0x4528] sm:$0xff]  ;;  %v2463_v26 = vld [vmem:[%s9549_s6 + $0x4530] sm:$0xff] }
 0x255   : > { %2460 = vst [vmem:[%s9554_s9 + $0x22c0] sm:$0xff] %v2459_v24  ;;  %v2465_v27 = vld [vmem:[%s9549_s6 + $0x4538] sm:$0xff]  ;;  %2462 = vst [vmem:[%s9554_s9 + $0x22c8] sm:$0xff] %v2461_v25  ;;  %v2467_v28 = vld [vmem:[%s9549_s6 + $0x4540] sm:$0xff] }
 0x256   : > { %2464 = vst [vmem:[%s9554_s9 + $0x22d0] sm:$0xff] %v2463_v26  ;;  %2466 = vst [vmem:[%s9554_s9 + $0x22d8] sm:$0xff] %v2465_v27  ;;  %v2469_v29 = vld [vmem:[%s9549_s6 + $0x4548] sm:$0xff]  ;;  %v2471_v30 = vld [vmem:[%s9549_s6 + $0x4550] sm:$0xff] }
 0x257   : > { %2468 = vst [vmem:[%s9554_s9 + $0x22e0] sm:$0xff] %v2467_v28  ;;  %2470 = vst [vmem:[%s9554_s9 + $0x22e8] sm:$0xff] %v2469_v29  ;;  %v2473_v31 = vld [vmem:[%s9549_s6 + $0x4558] sm:$0xff]  ;;  %v2475_v32 = vld [vmem:[%s9549_s6 + $0x4600] sm:$0xff] }
 0x258   : > { %2472 = vst [vmem:[%s9554_s9 + $0x22f0] sm:$0xff] %v2471_v30  ;;  %v2477_v33 = vld [vmem:[%s9549_s6 + $0x4608] sm:$0xff]  ;;  %2474 = vst [vmem:[%s9554_s9 + $0x22f8] sm:$0xff] %v2473_v31  ;;  %v2479_v34 = vld [vmem:[%s9549_s6 + $0x4610] sm:$0xff] }
 0x259   : > { %2476 = vst [vmem:[%s9554_s9 + $0x2300] sm:$0xff] %v2475_v32  ;;  %2478 = vst [vmem:[%s9554_s9 + $0x2308] sm:$0xff] %v2477_v33  ;;  %v2481_v35 = vld [vmem:[%s9549_s6 + $0x4618] sm:$0xff]  ;;  %v2483_v36 = vld [vmem:[%s9549_s6 + $0x4620] sm:$0xff] }
 0x25a   : > { %2480 = vst [vmem:[%s9554_s9 + $0x2310] sm:$0xff] %v2479_v34  ;;  %2482 = vst [vmem:[%s9554_s9 + $0x2318] sm:$0xff] %v2481_v35  ;;  %v2485_v37 = vld [vmem:[%s9549_s6 + $0x4628] sm:$0xff]  ;;  %v2487_v38 = vld [vmem:[%s9549_s6 + $0x4630] sm:$0xff] }
 0x25b   : > { %2484 = vst [vmem:[%s9554_s9 + $0x2320] sm:$0xff] %v2483_v36  ;;  %v2489_v39 = vld [vmem:[%s9549_s6 + $0x4638] sm:$0xff]  ;;  %2486 = vst [vmem:[%s9554_s9 + $0x2328] sm:$0xff] %v2485_v37  ;;  %v2491_v40 = vld [vmem:[%s9549_s6 + $0x4640] sm:$0xff] }
 0x25c   : > { %2488 = vst [vmem:[%s9554_s9 + $0x2330] sm:$0xff] %v2487_v38  ;;  %2490 = vst [vmem:[%s9554_s9 + $0x2338] sm:$0xff] %v2489_v39  ;;  %v2493_v41 = vld [vmem:[%s9549_s6 + $0x4648] sm:$0xff]  ;;  %v2495_v42 = vld [vmem:[%s9549_s6 + $0x4650] sm:$0xff] }
 0x25d   : > { %2492 = vst [vmem:[%s9554_s9 + $0x2340] sm:$0xff] %v2491_v40  ;;  %2494 = vst [vmem:[%s9554_s9 + $0x2348] sm:$0xff] %v2493_v41  ;;  %v2497_v43 = vld [vmem:[%s9549_s6 + $0x4658] sm:$0xff]  ;;  %v2499_v44 = vld [vmem:[%s9549_s6 + $0x4660] sm:$0xff] }
 0x25e   : > { %2496 = vst [vmem:[%s9554_s9 + $0x2350] sm:$0xff] %v2495_v42  ;;  %v2501_v45 = vld [vmem:[%s9549_s6 + $0x4668] sm:$0xff]  ;;  %2498 = vst [vmem:[%s9554_s9 + $0x2358] sm:$0xff] %v2497_v43  ;;  %v2503_v46 = vld [vmem:[%s9549_s6 + $0x4670] sm:$0xff] }
 0x25f   : > { %2500 = vst [vmem:[%s9554_s9 + $0x2360] sm:$0xff] %v2499_v44  ;;  %2502 = vst [vmem:[%s9554_s9 + $0x2368] sm:$0xff] %v2501_v45  ;;  %v2505_v47 = vld [vmem:[%s9549_s6 + $0x4678] sm:$0xff]  ;;  %v2507_v48 = vld [vmem:[%s9549_s6 + $0x4680] sm:$0xff] }
 0x260   : > { %2504 = vst [vmem:[%s9554_s9 + $0x2370] sm:$0xff] %v2503_v46  ;;  %2506 = vst [vmem:[%s9554_s9 + $0x2378] sm:$0xff] %v2505_v47  ;;  %v2509_v49 = vld [vmem:[%s9549_s6 + $0x4688] sm:$0xff]  ;;  %v2511_v50 = vld [vmem:[%s9549_s6 + $0x4690] sm:$0xff] }
 0x261   : > { %2508 = vst [vmem:[%s9554_s9 + $0x2380] sm:$0xff] %v2507_v48  ;;  %v2513_v51 = vld [vmem:[%s9549_s6 + $0x4698] sm:$0xff]  ;;  %2510 = vst [vmem:[%s9554_s9 + $0x2388] sm:$0xff] %v2509_v49  ;;  %v2515_v52 = vld [vmem:[%s9549_s6 + $0x4740] sm:$0xff] }
 0x262   : > { %2512 = vst [vmem:[%s9554_s9 + $0x2390] sm:$0xff] %v2511_v50  ;;  %2514 = vst [vmem:[%s9554_s9 + $0x2398] sm:$0xff] %v2513_v51  ;;  %v2517_v53 = vld [vmem:[%s9549_s6 + $0x4748] sm:$0xff]  ;;  %v2519_v54 = vld [vmem:[%s9549_s6 + $0x4750] sm:$0xff] }
 0x263   : > { %2516 = vst [vmem:[%s9554_s9 + $0x23a0] sm:$0xff] %v2515_v52  ;;  %2518 = vst [vmem:[%s9554_s9 + $0x23a8] sm:$0xff] %v2517_v53  ;;  %v2521_v55 = vld [vmem:[%s9549_s6 + $0x4758] sm:$0xff]  ;;  %v2523_v56 = vld [vmem:[%s9549_s6 + $0x4760] sm:$0xff] }
 0x264   : > { %2520 = vst [vmem:[%s9554_s9 + $0x23b0] sm:$0xff] %v2519_v54  ;;  %v2525_v57 = vld [vmem:[%s9549_s6 + $0x4768] sm:$0xff]  ;;  %2522 = vst [vmem:[%s9554_s9 + $0x23b8] sm:$0xff] %v2521_v55  ;;  %v2527_v58 = vld [vmem:[%s9549_s6 + $0x4770] sm:$0xff] }
 0x265   : > { %2524 = vst [vmem:[%s9554_s9 + $0x23c0] sm:$0xff] %v2523_v56  ;;  %2526 = vst [vmem:[%s9554_s9 + $0x23c8] sm:$0xff] %v2525_v57  ;;  %v2529_v59 = vld [vmem:[%s9549_s6 + $0x4778] sm:$0xff]  ;;  %v2531_v60 = vld [vmem:[%s9549_s6 + $0x4780] sm:$0xff] }
 0x266   : > { %2528 = vst [vmem:[%s9554_s9 + $0x23d0] sm:$0xff] %v2527_v58  ;;  %2530 = vst [vmem:[%s9554_s9 + $0x23d8] sm:$0xff] %v2529_v59  ;;  %v2533_v61 = vld [vmem:[%s9549_s6 + $0x4788] sm:$0xff]  ;;  %v2535_v62 = vld [vmem:[%s9549_s6 + $0x4790] sm:$0xff] }
 0x267   : > { %2532 = vst [vmem:[%s9554_s9 + $0x23e0] sm:$0xff] %v2531_v60  ;;  %v2537_v63 = vld [vmem:[%s9549_s6 + $0x4798] sm:$0xff]  ;;  %2534 = vst [vmem:[%s9554_s9 + $0x23e8] sm:$0xff] %v2533_v61  ;;  %v2539_v0 = vld [vmem:[%s9549_s6 + $0x47a0] sm:$0xff] }
 0x268   : > { %2536 = vst [vmem:[%s9554_s9 + $0x23f0] sm:$0xff] %v2535_v62  ;;  %2538 = vst [vmem:[%s9554_s9 + $0x23f8] sm:$0xff] %v2537_v63  ;;  %v2541_v1 = vld [vmem:[%s9549_s6 + $0x47a8] sm:$0xff]  ;;  %v2543_v2 = vld [vmem:[%s9549_s6 + $0x47b0] sm:$0xff] }
 0x269   : > { %2540 = vst [vmem:[%s9554_s9 + $0x2400] sm:$0xff] %v2539_v0  ;;  %2542 = vst [vmem:[%s9554_s9 + $0x2408] sm:$0xff] %v2541_v1  ;;  %v2545_v3 = vld [vmem:[%s9549_s6 + $0x47b8] sm:$0xff]  ;;  %v2547_v4 = vld [vmem:[%s9549_s6 + $0x47c0] sm:$0xff] }
 0x26a   : > { %2544 = vst [vmem:[%s9554_s9 + $0x2410] sm:$0xff] %v2543_v2  ;;  %v2549_v5 = vld [vmem:[%s9549_s6 + $0x47c8] sm:$0xff]  ;;  %2546 = vst [vmem:[%s9554_s9 + $0x2418] sm:$0xff] %v2545_v3  ;;  %v2551_v6 = vld [vmem:[%s9549_s6 + $0x47d0] sm:$0xff] }
 0x26b   : > { %2548 = vst [vmem:[%s9554_s9 + $0x2420] sm:$0xff] %v2547_v4  ;;  %2550 = vst [vmem:[%s9554_s9 + $0x2428] sm:$0xff] %v2549_v5  ;;  %v2553_v7 = vld [vmem:[%s9549_s6 + $0x47d8] sm:$0xff]  ;;  %v2555_v8 = vld [vmem:[%s9549_s6 + $0x4880] sm:$0xff] }
 0x26c   : > { %2552 = vst [vmem:[%s9554_s9 + $0x2430] sm:$0xff] %v2551_v6  ;;  %2554 = vst [vmem:[%s9554_s9 + $0x2438] sm:$0xff] %v2553_v7  ;;  %v2557_v9 = vld [vmem:[%s9549_s6 + $0x4888] sm:$0xff]  ;;  %v2559_v10 = vld [vmem:[%s9549_s6 + $0x4890] sm:$0xff] }
 0x26d   : > { %2556 = vst [vmem:[%s9554_s9 + $0x2440] sm:$0xff] %v2555_v8  ;;  %v2561_v11 = vld [vmem:[%s9549_s6 + $0x4898] sm:$0xff]  ;;  %2558 = vst [vmem:[%s9554_s9 + $0x2448] sm:$0xff] %v2557_v9  ;;  %v2563_v12 = vld [vmem:[%s9549_s6 + $0x48a0] sm:$0xff] }
 0x26e   : > { %2560 = vst [vmem:[%s9554_s9 + $0x2450] sm:$0xff] %v2559_v10  ;;  %2562 = vst [vmem:[%s9554_s9 + $0x2458] sm:$0xff] %v2561_v11  ;;  %v2565_v13 = vld [vmem:[%s9549_s6 + $0x48a8] sm:$0xff]  ;;  %v2567_v14 = vld [vmem:[%s9549_s6 + $0x48b0] sm:$0xff] }
 0x26f   : > { %2564 = vst [vmem:[%s9554_s9 + $0x2460] sm:$0xff] %v2563_v12  ;;  %2566 = vst [vmem:[%s9554_s9 + $0x2468] sm:$0xff] %v2565_v13  ;;  %v2569_v15 = vld [vmem:[%s9549_s6 + $0x48b8] sm:$0xff]  ;;  %v2571_v16 = vld [vmem:[%s9549_s6 + $0x48c0] sm:$0xff] }
 0x270   : > { %2568 = vst [vmem:[%s9554_s9 + $0x2470] sm:$0xff] %v2567_v14  ;;  %v2573_v17 = vld [vmem:[%s9549_s6 + $0x48c8] sm:$0xff]  ;;  %2570 = vst [vmem:[%s9554_s9 + $0x2478] sm:$0xff] %v2569_v15  ;;  %v2575_v18 = vld [vmem:[%s9549_s6 + $0x48d0] sm:$0xff] }
 0x271   : > { %2572 = vst [vmem:[%s9554_s9 + $0x2480] sm:$0xff] %v2571_v16  ;;  %2574 = vst [vmem:[%s9554_s9 + $0x2488] sm:$0xff] %v2573_v17  ;;  %v2577_v19 = vld [vmem:[%s9549_s6 + $0x48d8] sm:$0xff]  ;;  %v2579_v20 = vld [vmem:[%s9549_s6 + $0x48e0] sm:$0xff] }
 0x272   : > { %2576 = vst [vmem:[%s9554_s9 + $0x2490] sm:$0xff] %v2575_v18  ;;  %2578 = vst [vmem:[%s9554_s9 + $0x2498] sm:$0xff] %v2577_v19  ;;  %v2581_v21 = vld [vmem:[%s9549_s6 + $0x48e8] sm:$0xff]  ;;  %v2583_v22 = vld [vmem:[%s9549_s6 + $0x48f0] sm:$0xff] }
 0x273   : > { %2580 = vst [vmem:[%s9554_s9 + $0x24a0] sm:$0xff] %v2579_v20  ;;  %v2585_v23 = vld [vmem:[%s9549_s6 + $0x48f8] sm:$0xff]  ;;  %2582 = vst [vmem:[%s9554_s9 + $0x24a8] sm:$0xff] %v2581_v21  ;;  %v2587_v24 = vld [vmem:[%s9549_s6 + $0x4900] sm:$0xff] }
 0x274   : > { %2584 = vst [vmem:[%s9554_s9 + $0x24b0] sm:$0xff] %v2583_v22  ;;  %2586 = vst [vmem:[%s9554_s9 + $0x24b8] sm:$0xff] %v2585_v23  ;;  %v2589_v25 = vld [vmem:[%s9549_s6 + $0x4908] sm:$0xff]  ;;  %v2591_v26 = vld [vmem:[%s9549_s6 + $0x4910] sm:$0xff] }
 0x275   : > { %2588 = vst [vmem:[%s9554_s9 + $0x24c0] sm:$0xff] %v2587_v24  ;;  %2590 = vst [vmem:[%s9554_s9 + $0x24c8] sm:$0xff] %v2589_v25  ;;  %v2593_v27 = vld [vmem:[%s9549_s6 + $0x4918] sm:$0xff]  ;;  %v2595_v28 = vld [vmem:[%s9549_s6 + $0x49c0] sm:$0xff] }
 0x276   : > { %2592 = vst [vmem:[%s9554_s9 + $0x24d0] sm:$0xff] %v2591_v26  ;;  %v2597_v29 = vld [vmem:[%s9549_s6 + $0x49c8] sm:$0xff]  ;;  %2594 = vst [vmem:[%s9554_s9 + $0x24d8] sm:$0xff] %v2593_v27  ;;  %v2599_v30 = vld [vmem:[%s9549_s6 + $0x49d0] sm:$0xff] }
 0x277   : > { %2596 = vst [vmem:[%s9554_s9 + $0x24e0] sm:$0xff] %v2595_v28  ;;  %2598 = vst [vmem:[%s9554_s9 + $0x24e8] sm:$0xff] %v2597_v29  ;;  %v2601_v31 = vld [vmem:[%s9549_s6 + $0x49d8] sm:$0xff]  ;;  %v2603_v32 = vld [vmem:[%s9549_s6 + $0x49e0] sm:$0xff] }
 0x278   : > { %2600 = vst [vmem:[%s9554_s9 + $0x24f0] sm:$0xff] %v2599_v30  ;;  %2602 = vst [vmem:[%s9554_s9 + $0x24f8] sm:$0xff] %v2601_v31  ;;  %v2605_v33 = vld [vmem:[%s9549_s6 + $0x49e8] sm:$0xff]  ;;  %v2607_v34 = vld [vmem:[%s9549_s6 + $0x49f0] sm:$0xff] }
 0x279   : > { %2604 = vst [vmem:[%s9554_s9 + $0x2500] sm:$0xff] %v2603_v32  ;;  %v2609_v35 = vld [vmem:[%s9549_s6 + $0x49f8] sm:$0xff]  ;;  %2606 = vst [vmem:[%s9554_s9 + $0x2508] sm:$0xff] %v2605_v33  ;;  %v2611_v36 = vld [vmem:[%s9549_s6 + $0x4a00] sm:$0xff] }
 0x27a   : > { %2608 = vst [vmem:[%s9554_s9 + $0x2510] sm:$0xff] %v2607_v34  ;;  %2610 = vst [vmem:[%s9554_s9 + $0x2518] sm:$0xff] %v2609_v35  ;;  %v2613_v37 = vld [vmem:[%s9549_s6 + $0x4a08] sm:$0xff]  ;;  %v2615_v38 = vld [vmem:[%s9549_s6 + $0x4a10] sm:$0xff] }
 0x27b   : > { %2612 = vst [vmem:[%s9554_s9 + $0x2520] sm:$0xff] %v2611_v36  ;;  %2614 = vst [vmem:[%s9554_s9 + $0x2528] sm:$0xff] %v2613_v37  ;;  %v2617_v39 = vld [vmem:[%s9549_s6 + $0x4a18] sm:$0xff]  ;;  %v2619_v40 = vld [vmem:[%s9549_s6 + $0x4a20] sm:$0xff] }
 0x27c   : > { %2616 = vst [vmem:[%s9554_s9 + $0x2530] sm:$0xff] %v2615_v38  ;;  %v2621_v41 = vld [vmem:[%s9549_s6 + $0x4a28] sm:$0xff]  ;;  %2618 = vst [vmem:[%s9554_s9 + $0x2538] sm:$0xff] %v2617_v39  ;;  %v2623_v42 = vld [vmem:[%s9549_s6 + $0x4a30] sm:$0xff] }
 0x27d   : > { %2620 = vst [vmem:[%s9554_s9 + $0x2540] sm:$0xff] %v2619_v40  ;;  %2622 = vst [vmem:[%s9554_s9 + $0x2548] sm:$0xff] %v2621_v41  ;;  %v2625_v43 = vld [vmem:[%s9549_s6 + $0x4a38] sm:$0xff]  ;;  %v2627_v44 = vld [vmem:[%s9549_s6 + $0x4a40] sm:$0xff] }
 0x27e   : > { %2624 = vst [vmem:[%s9554_s9 + $0x2550] sm:$0xff] %v2623_v42  ;;  %2626 = vst [vmem:[%s9554_s9 + $0x2558] sm:$0xff] %v2625_v43  ;;  %v2629_v45 = vld [vmem:[%s9549_s6 + $0x4a48] sm:$0xff]  ;;  %v2631_v46 = vld [vmem:[%s9549_s6 + $0x4a50] sm:$0xff] }
 0x27f   : > { %2628 = vst [vmem:[%s9554_s9 + $0x2560] sm:$0xff] %v2627_v44  ;;  %v2633_v47 = vld [vmem:[%s9549_s6 + $0x4a58] sm:$0xff]  ;;  %2630 = vst [vmem:[%s9554_s9 + $0x2568] sm:$0xff] %v2629_v45  ;;  %v2635_v48 = vld [vmem:[%s9549_s6 + $0x4b00] sm:$0xff] }
 0x280   : > { %2632 = vst [vmem:[%s9554_s9 + $0x2570] sm:$0xff] %v2631_v46  ;;  %2634 = vst [vmem:[%s9554_s9 + $0x2578] sm:$0xff] %v2633_v47  ;;  %v2637_v49 = vld [vmem:[%s9549_s6 + $0x4b08] sm:$0xff]  ;;  %v2639_v50 = vld [vmem:[%s9549_s6 + $0x4b10] sm:$0xff] }
 0x281   : > { %2636 = vst [vmem:[%s9554_s9 + $0x2580] sm:$0xff] %v2635_v48  ;;  %2638 = vst [vmem:[%s9554_s9 + $0x2588] sm:$0xff] %v2637_v49  ;;  %v2641_v51 = vld [vmem:[%s9549_s6 + $0x4b18] sm:$0xff]  ;;  %v2643_v52 = vld [vmem:[%s9549_s6 + $0x4b20] sm:$0xff] }
 0x282   : > { %2640 = vst [vmem:[%s9554_s9 + $0x2590] sm:$0xff] %v2639_v50  ;;  %v2645_v53 = vld [vmem:[%s9549_s6 + $0x4b28] sm:$0xff]  ;;  %2642 = vst [vmem:[%s9554_s9 + $0x2598] sm:$0xff] %v2641_v51  ;;  %v2647_v54 = vld [vmem:[%s9549_s6 + $0x4b30] sm:$0xff] }
 0x283   : > { %2644 = vst [vmem:[%s9554_s9 + $0x25a0] sm:$0xff] %v2643_v52  ;;  %2646 = vst [vmem:[%s9554_s9 + $0x25a8] sm:$0xff] %v2645_v53  ;;  %v2649_v55 = vld [vmem:[%s9549_s6 + $0x4b38] sm:$0xff]  ;;  %v2651_v56 = vld [vmem:[%s9549_s6 + $0x4b40] sm:$0xff] }
 0x284   : > { %2648 = vst [vmem:[%s9554_s9 + $0x25b0] sm:$0xff] %v2647_v54  ;;  %2650 = vst [vmem:[%s9554_s9 + $0x25b8] sm:$0xff] %v2649_v55  ;;  %v2653_v57 = vld [vmem:[%s9549_s6 + $0x4b48] sm:$0xff]  ;;  %v2655_v58 = vld [vmem:[%s9549_s6 + $0x4b50] sm:$0xff] }
 0x285   : > { %2652 = vst [vmem:[%s9554_s9 + $0x25c0] sm:$0xff] %v2651_v56  ;;  %v2657_v59 = vld [vmem:[%s9549_s6 + $0x4b58] sm:$0xff]  ;;  %2654 = vst [vmem:[%s9554_s9 + $0x25c8] sm:$0xff] %v2653_v57  ;;  %v2659_v60 = vld [vmem:[%s9549_s6 + $0x4b60] sm:$0xff] }
 0x286   : > { %2656 = vst [vmem:[%s9554_s9 + $0x25d0] sm:$0xff] %v2655_v58  ;;  %2658 = vst [vmem:[%s9554_s9 + $0x25d8] sm:$0xff] %v2657_v59  ;;  %v2661_v61 = vld [vmem:[%s9549_s6 + $0x4b68] sm:$0xff]  ;;  %v2663_v62 = vld [vmem:[%s9549_s6 + $0x4b70] sm:$0xff] }
 0x287   : > { %2660 = vst [vmem:[%s9554_s9 + $0x25e0] sm:$0xff] %v2659_v60  ;;  %2662 = vst [vmem:[%s9554_s9 + $0x25e8] sm:$0xff] %v2661_v61  ;;  %v2665_v63 = vld [vmem:[%s9549_s6 + $0x4b78] sm:$0xff]  ;;  %v2667_v0 = vld [vmem:[%s9549_s6 + $0x4b80] sm:$0xff] }
 0x288   : > { %2664 = vst [vmem:[%s9554_s9 + $0x25f0] sm:$0xff] %v2663_v62  ;;  %v2669_v1 = vld [vmem:[%s9549_s6 + $0x4b88] sm:$0xff]  ;;  %2666 = vst [vmem:[%s9554_s9 + $0x25f8] sm:$0xff] %v2665_v63  ;;  %v2671_v2 = vld [vmem:[%s9549_s6 + $0x4b90] sm:$0xff] }
 0x289   : > { %2668 = vst [vmem:[%s9554_s9 + $0x2600] sm:$0xff] %v2667_v0  ;;  %2670 = vst [vmem:[%s9554_s9 + $0x2608] sm:$0xff] %v2669_v1  ;;  %v2673_v3 = vld [vmem:[%s9549_s6 + $0x4b98] sm:$0xff]  ;;  %v2675_v4 = vld [vmem:[%s9549_s6 + $0x4c40] sm:$0xff] }
 0x28a   : > { %2672 = vst [vmem:[%s9554_s9 + $0x2610] sm:$0xff] %v2671_v2  ;;  %2674 = vst [vmem:[%s9554_s9 + $0x2618] sm:$0xff] %v2673_v3  ;;  %v2677_v5 = vld [vmem:[%s9549_s6 + $0x4c48] sm:$0xff]  ;;  %v2679_v6 = vld [vmem:[%s9549_s6 + $0x4c50] sm:$0xff] }
 0x28b   : > { %2676 = vst [vmem:[%s9554_s9 + $0x2620] sm:$0xff] %v2675_v4  ;;  %v2681_v7 = vld [vmem:[%s9549_s6 + $0x4c58] sm:$0xff]  ;;  %2678 = vst [vmem:[%s9554_s9 + $0x2628] sm:$0xff] %v2677_v5  ;;  %v2683_v8 = vld [vmem:[%s9549_s6 + $0x4c60] sm:$0xff] }
 0x28c   : > { %2680 = vst [vmem:[%s9554_s9 + $0x2630] sm:$0xff] %v2679_v6  ;;  %2682 = vst [vmem:[%s9554_s9 + $0x2638] sm:$0xff] %v2681_v7  ;;  %v2685_v9 = vld [vmem:[%s9549_s6 + $0x4c68] sm:$0xff]  ;;  %v2687_v10 = vld [vmem:[%s9549_s6 + $0x4c70] sm:$0xff] }
 0x28d   : > { %2684 = vst [vmem:[%s9554_s9 + $0x2640] sm:$0xff] %v2683_v8  ;;  %2686 = vst [vmem:[%s9554_s9 + $0x2648] sm:$0xff] %v2685_v9  ;;  %v2689_v11 = vld [vmem:[%s9549_s6 + $0x4c78] sm:$0xff]  ;;  %v2691_v12 = vld [vmem:[%s9549_s6 + $0x4c80] sm:$0xff] }
 0x28e   : > { %2688 = vst [vmem:[%s9554_s9 + $0x2650] sm:$0xff] %v2687_v10  ;;  %v2693_v13 = vld [vmem:[%s9549_s6 + $0x4c88] sm:$0xff]  ;;  %2690 = vst [vmem:[%s9554_s9 + $0x2658] sm:$0xff] %v2689_v11  ;;  %v2695_v14 = vld [vmem:[%s9549_s6 + $0x4c90] sm:$0xff] }
 0x28f   : > { %2692 = vst [vmem:[%s9554_s9 + $0x2660] sm:$0xff] %v2691_v12  ;;  %2694 = vst [vmem:[%s9554_s9 + $0x2668] sm:$0xff] %v2693_v13  ;;  %v2697_v15 = vld [vmem:[%s9549_s6 + $0x4c98] sm:$0xff]  ;;  %v2699_v16 = vld [vmem:[%s9549_s6 + $0x4ca0] sm:$0xff] }
 0x290   : > { %2696 = vst [vmem:[%s9554_s9 + $0x2670] sm:$0xff] %v2695_v14  ;;  %2698 = vst [vmem:[%s9554_s9 + $0x2678] sm:$0xff] %v2697_v15  ;;  %v2701_v17 = vld [vmem:[%s9549_s6 + $0x4ca8] sm:$0xff]  ;;  %v2703_v18 = vld [vmem:[%s9549_s6 + $0x4cb0] sm:$0xff] }
 0x291   : > { %2700 = vst [vmem:[%s9554_s9 + $0x2680] sm:$0xff] %v2699_v16  ;;  %v2705_v19 = vld [vmem:[%s9549_s6 + $0x4cb8] sm:$0xff]  ;;  %2702 = vst [vmem:[%s9554_s9 + $0x2688] sm:$0xff] %v2701_v17  ;;  %v2707_v20 = vld [vmem:[%s9549_s6 + $0x4cc0] sm:$0xff] }
 0x292   : > { %2704 = vst [vmem:[%s9554_s9 + $0x2690] sm:$0xff] %v2703_v18  ;;  %2706 = vst [vmem:[%s9554_s9 + $0x2698] sm:$0xff] %v2705_v19  ;;  %v2709_v21 = vld [vmem:[%s9549_s6 + $0x4cc8] sm:$0xff]  ;;  %v2711_v22 = vld [vmem:[%s9549_s6 + $0x4cd0] sm:$0xff] }
 0x293   : > { %2708 = vst [vmem:[%s9554_s9 + $0x26a0] sm:$0xff] %v2707_v20  ;;  %2710 = vst [vmem:[%s9554_s9 + $0x26a8] sm:$0xff] %v2709_v21  ;;  %v2713_v23 = vld [vmem:[%s9549_s6 + $0x4cd8] sm:$0xff]  ;;  %v2715_v24 = vld [vmem:[%s9549_s6 + $0x4d80] sm:$0xff] }
 0x294   : > { %2712 = vst [vmem:[%s9554_s9 + $0x26b0] sm:$0xff] %v2711_v22  ;;  %v2717_v25 = vld [vmem:[%s9549_s6 + $0x4d88] sm:$0xff]  ;;  %2714 = vst [vmem:[%s9554_s9 + $0x26b8] sm:$0xff] %v2713_v23  ;;  %v2719_v26 = vld [vmem:[%s9549_s6 + $0x4d90] sm:$0xff] }
 0x295   : > { %2716 = vst [vmem:[%s9554_s9 + $0x26c0] sm:$0xff] %v2715_v24  ;;  %2718 = vst [vmem:[%s9554_s9 + $0x26c8] sm:$0xff] %v2717_v25  ;;  %v2721_v27 = vld [vmem:[%s9549_s6 + $0x4d98] sm:$0xff]  ;;  %v2723_v28 = vld [vmem:[%s9549_s6 + $0x4da0] sm:$0xff] }
 0x296   : > { %2720 = vst [vmem:[%s9554_s9 + $0x26d0] sm:$0xff] %v2719_v26  ;;  %2722 = vst [vmem:[%s9554_s9 + $0x26d8] sm:$0xff] %v2721_v27  ;;  %v2725_v29 = vld [vmem:[%s9549_s6 + $0x4da8] sm:$0xff]  ;;  %v2727_v30 = vld [vmem:[%s9549_s6 + $0x4db0] sm:$0xff] }
 0x297   : > { %2724 = vst [vmem:[%s9554_s9 + $0x26e0] sm:$0xff] %v2723_v28  ;;  %v2729_v31 = vld [vmem:[%s9549_s6 + $0x4db8] sm:$0xff]  ;;  %2726 = vst [vmem:[%s9554_s9 + $0x26e8] sm:$0xff] %v2725_v29  ;;  %v2731_v32 = vld [vmem:[%s9549_s6 + $0x4dc0] sm:$0xff] }
 0x298   : > { %2728 = vst [vmem:[%s9554_s9 + $0x26f0] sm:$0xff] %v2727_v30  ;;  %2730 = vst [vmem:[%s9554_s9 + $0x26f8] sm:$0xff] %v2729_v31  ;;  %v2733_v33 = vld [vmem:[%s9549_s6 + $0x4dc8] sm:$0xff]  ;;  %v2735_v34 = vld [vmem:[%s9549_s6 + $0x4dd0] sm:$0xff] }
 0x299   : > { %2732 = vst [vmem:[%s9554_s9 + $0x2700] sm:$0xff] %v2731_v32  ;;  %2734 = vst [vmem:[%s9554_s9 + $0x2708] sm:$0xff] %v2733_v33  ;;  %v2737_v35 = vld [vmem:[%s9549_s6 + $0x4dd8] sm:$0xff]  ;;  %v2739_v36 = vld [vmem:[%s9549_s6 + $0x4de0] sm:$0xff] }
 0x29a   : > { %2736 = vst [vmem:[%s9554_s9 + $0x2710] sm:$0xff] %v2735_v34  ;;  %v2741_v37 = vld [vmem:[%s9549_s6 + $0x4de8] sm:$0xff]  ;;  %2738 = vst [vmem:[%s9554_s9 + $0x2718] sm:$0xff] %v2737_v35  ;;  %v2743_v38 = vld [vmem:[%s9549_s6 + $0x4df0] sm:$0xff] }
 0x29b   : > { %2740 = vst [vmem:[%s9554_s9 + $0x2720] sm:$0xff] %v2739_v36  ;;  %2742 = vst [vmem:[%s9554_s9 + $0x2728] sm:$0xff] %v2741_v37  ;;  %v2745_v39 = vld [vmem:[%s9549_s6 + $0x4df8] sm:$0xff]  ;;  %v2747_v40 = vld [vmem:[%s9549_s6 + $0x4e00] sm:$0xff] }
 0x29c   : > { %2744 = vst [vmem:[%s9554_s9 + $0x2730] sm:$0xff] %v2743_v38  ;;  %2746 = vst [vmem:[%s9554_s9 + $0x2738] sm:$0xff] %v2745_v39  ;;  %v2749_v41 = vld [vmem:[%s9549_s6 + $0x4e08] sm:$0xff]  ;;  %v2751_v42 = vld [vmem:[%s9549_s6 + $0x4e10] sm:$0xff] }
 0x29d   : > { %2748 = vst [vmem:[%s9554_s9 + $0x2740] sm:$0xff] %v2747_v40  ;;  %v2753_v43 = vld [vmem:[%s9549_s6 + $0x4e18] sm:$0xff]  ;;  %2750 = vst [vmem:[%s9554_s9 + $0x2748] sm:$0xff] %v2749_v41  ;;  %v2755_v44 = vld [vmem:[%s9549_s6 + $0x4ec0] sm:$0xff] }
 0x29e   : > { %2752 = vst [vmem:[%s9554_s9 + $0x2750] sm:$0xff] %v2751_v42  ;;  %2754 = vst [vmem:[%s9554_s9 + $0x2758] sm:$0xff] %v2753_v43  ;;  %v2757_v45 = vld [vmem:[%s9549_s6 + $0x4ec8] sm:$0xff]  ;;  %v2759_v46 = vld [vmem:[%s9549_s6 + $0x4ed0] sm:$0xff] }
 0x29f   : > { %2756 = vst [vmem:[%s9554_s9 + $0x2760] sm:$0xff] %v2755_v44  ;;  %2758 = vst [vmem:[%s9554_s9 + $0x2768] sm:$0xff] %v2757_v45  ;;  %v2761_v47 = vld [vmem:[%s9549_s6 + $0x4ed8] sm:$0xff]  ;;  %v2763_v48 = vld [vmem:[%s9549_s6 + $0x4ee0] sm:$0xff] }
 0x2a0   : > { %2760 = vst [vmem:[%s9554_s9 + $0x2770] sm:$0xff] %v2759_v46  ;;  %v2765_v49 = vld [vmem:[%s9549_s6 + $0x4ee8] sm:$0xff]  ;;  %2762 = vst [vmem:[%s9554_s9 + $0x2778] sm:$0xff] %v2761_v47  ;;  %v2767_v50 = vld [vmem:[%s9549_s6 + $0x4ef0] sm:$0xff] }
 0x2a1   : > { %2764 = vst [vmem:[%s9554_s9 + $0x2780] sm:$0xff] %v2763_v48  ;;  %2766 = vst [vmem:[%s9554_s9 + $0x2788] sm:$0xff] %v2765_v49  ;;  %v2769_v51 = vld [vmem:[%s9549_s6 + $0x4ef8] sm:$0xff]  ;;  %v2771_v52 = vld [vmem:[%s9549_s6 + $0x4f00] sm:$0xff] }
 0x2a2   : > { %2768 = vst [vmem:[%s9554_s9 + $0x2790] sm:$0xff] %v2767_v50  ;;  %2770 = vst [vmem:[%s9554_s9 + $0x2798] sm:$0xff] %v2769_v51  ;;  %v2773_v53 = vld [vmem:[%s9549_s6 + $0x4f08] sm:$0xff]  ;;  %v2775_v54 = vld [vmem:[%s9549_s6 + $0x4f10] sm:$0xff] }
 0x2a3   : > { %2772 = vst [vmem:[%s9554_s9 + $0x27a0] sm:$0xff] %v2771_v52  ;;  %v2777_v55 = vld [vmem:[%s9549_s6 + $0x4f18] sm:$0xff]  ;;  %2774 = vst [vmem:[%s9554_s9 + $0x27a8] sm:$0xff] %v2773_v53  ;;  %v2779_v56 = vld [vmem:[%s9549_s6 + $0x4f20] sm:$0xff] }
 0x2a4   : > { %2776 = vst [vmem:[%s9554_s9 + $0x27b0] sm:$0xff] %v2775_v54  ;;  %2778 = vst [vmem:[%s9554_s9 + $0x27b8] sm:$0xff] %v2777_v55  ;;  %v2781_v57 = vld [vmem:[%s9549_s6 + $0x4f28] sm:$0xff]  ;;  %v2783_v58 = vld [vmem:[%s9549_s6 + $0x4f30] sm:$0xff] }
 0x2a5   : > { %2780 = vst [vmem:[%s9554_s9 + $0x27c0] sm:$0xff] %v2779_v56  ;;  %2782 = vst [vmem:[%s9554_s9 + $0x27c8] sm:$0xff] %v2781_v57  ;;  %v2785_v59 = vld [vmem:[%s9549_s6 + $0x4f38] sm:$0xff]  ;;  %v2787_v60 = vld [vmem:[%s9549_s6 + $0x4f40] sm:$0xff] }
 0x2a6   : > { %2784 = vst [vmem:[%s9554_s9 + $0x27d0] sm:$0xff] %v2783_v58  ;;  %v2789_v61 = vld [vmem:[%s9549_s6 + $0x4f48] sm:$0xff]  ;;  %2786 = vst [vmem:[%s9554_s9 + $0x27d8] sm:$0xff] %v2785_v59  ;;  %v2791_v62 = vld [vmem:[%s9549_s6 + $0x4f50] sm:$0xff] }
 0x2a7   : > { %2788 = vst [vmem:[%s9554_s9 + $0x27e0] sm:$0xff] %v2787_v60  ;;  %2790 = vst [vmem:[%s9554_s9 + $0x27e8] sm:$0xff] %v2789_v61  ;;  %v2793_v63 = vld [vmem:[%s9549_s6 + $0x4f58] sm:$0xff] }
 0x2a8   : > { %2792 = vst [vmem:[%s9554_s9 + $0x27f0] sm:$0xff] %v2791_v62  ;;  %2794 = vst [vmem:[%s9554_s9 + $0x27f8] sm:$0xff] %v2793_v63 }
 0x2a9 PF: > { %s2801_s16 = sand.u32 1, %s9388_s20   ;;  %s7245_s17 = smul.u32 320, %s9412_s26 }
 0x2aa   : > { %s9218_s18 = smul.u32 20, %s2801_s16  ;;  %s14005_s2 = sld [smem:[#allocation10_spill]] }
 0x2ab   : > { %s2802_s6 = scalar_lea.sflag [#allocation5], %s2801_s16 }
 0x2ac   : > { %s2805_s12 = scalar_lea.vmem [#allocation4], %s9218_s18 }
 0x2ad   : > { %s2813_s8 = sshll.u32 %s2805_s12, 4  ;;  %s2814_s8 = int_to_ptr.vmem [resolvable:$true] %s2813_s8 }
 0x2b0   : > { %s12118_s11 = scalar_lea.hbm %s14005_s2, %s7245_s17  ;;  %s9310_s29 = scalar_lea.hbm %s14005_s2, 640 }
 0x2b1   : > { %s9306_s9 = scalar_lea.hbm %s12118_s11, 320  ;;  %p9311_p2 = scmp.lt.u32.totalorder %s12118_s11, %s14005_s2 }
 0x2b2   : > { %p9307_p13 = scmp.ne.s32.totalorder %s12118_s11, %s9306_s9  ;;  %p9312_p3 = scmp.lt.u32.totalorder %s9310_s29, %s9306_s9 }
 0x2b3   : > { %p9314_p5 = scmp.lt.u32.totalorder %s9306_s9, %s12118_s11 }
 0x2b4   : > { %p9308_p0 = pnand %p9307_p13, %p9522_p6  ;;  %p9313_p4 = por %p9312_p3, %p9311_p2 }
 0x2b6   : > { %p9309_p1 = pneg %p9308_p0  ;;  %p9315_p7 = por %p9314_p5, %p9313_p4 }
 0x2b8   : > { %p9316_p8 = pnand %p9315_p7, %p9309_p1 }
 0x2ba   : > { %9319 = shalt.err (!%p9316_p8)
}
 0x2bb   : > { %s9320_s16 = scalar_lea.vmem %s2814_s8, 320  ;;  %s9418_s18 = smov [#allocation4]  }
 0x2bc   : > { %p9321_p9 = scmp.ne.s32.totalorder %s2814_s8, %s9320_s16  ;;  %s9324_s7 = sshll.u32 %s9418_s18, 4  ;;  %s9325_s7 = int_to_ptr.vmem [resolvable:$false] %s9324_s7 }
 0x2bd   : > { %s9326_s1 = scalar_lea.vmem %s9325_s7, 640  ;;  %p9327_p13 = scmp.lt.s32.totalorder %s2814_s8, %s9325_s7 }
 0x2be   : > { %p9322_p10 = pnand %p9321_p9, %p9522_p6  ;;  %p9328_p0 = scmp.lt.s32.totalorder %s9326_s1, %s9320_s16 }
 0x2c0   : > { %p9323_p12 = pneg %p9322_p10  ;;  %p9329_p11 = por %p9328_p0, %p9327_p13 }
 0x2c2   : > { %p9330_p2 = pnand %p9329_p11, %p9323_p12 }
 0x2c4   : > { %9333 = shalt.err (!%p9330_p2)
}
 0x2c5   : > { %9221 = dma.hbm_to_vmem [thread:$0]  (%p9522_p6), %s12118_s11, 320, %s2814_s8, %s2802_s6  }
 0x2c6 PF: > { %p7236_p1 = scmp.ge.s32.totalorder %s9416_s27, 1  ;;  %p2827_p3 = scmp.lt.s32.totalorder %s9416_s27, 5 }
 0x2c8   : > { %p2828_p4 = pnand %p7236_p1, %p2827_p3 }
 0x2c9   : > { %s2834_s29 = sand.u32 (!%p2828_p4), 1, %s9392_s21   ;;  %s2840_s30 = sand.u32 (!%p2828_p4), 1, %s9384_s19  }
 0x2ca   : > { %2831 = sbr.rel (%p2828_p4) target bundleno = 1962 (0x7aa), region = 59  ;;  %s2841_s17 = scalar_lea.sflag (!%p2828_p4), [#allocation5], %s2840_s30 }
 0x2cb   : > { %s9219_s12 = smul.u32 (!%p2828_p4), 10240, %s2834_s29  ;;  %p14006_p6 = scmp.ne.s32.totalorder (!%p2828_p4), %s14003_s13, 0 }
 0x2cc   : > { %s9220_s9 = smul.u32 (!%p2828_p4), 20, %s2840_s30 }
 0x2cd   : > { %s12141_s28 = scalar_lea.vmem (!%p2828_p4), [#allocation3], %s9219_s12 }
 0x2ce   : > { %s12143_s10 = scalar_lea.vmem (!%p2828_p4), [#allocation4], %s9220_s9 }
 0x2d1   : > { %9375 = dma.done.wait (%p14006_p6), %s2841_s17, 320  }
 0x2d2   : > { %9377 = vsyncadd (%p14006_p6), %s2841_s17, 4294966976  ;;  %s7237_s11 = sshll.u32 %s9400_s23, 2  ;;  %s2893_s8 = smul.u32 320, %s9404_s24 }
 0x2d3   : > { %p2885_p11 = scmp.lt.s32.totalorder %s7237_s11, 7  ;;  %p2899_p7 = scmp.lt.s32.totalorder %s9404_s24, 1 }
 0x2d4   : > { %p2894_p5 = scmp.lt.s32.totalorder %s2893_s8, 639  ;;  %p7241_p8 = scmp.ne.s32.totalorder %s9400_s23, 0 }
 0x2d5   : > { %s14025_s11 = smov (!%p2885_p11, %s7237_s11), 7  ;;  %v9419_v0 = vmov (!%p7241_p8), 0.0  }
 0x2d6   : > { %s14027_s8 = smov (!%p2894_p5, %s2893_s8), 639  ;;  %s7238_s21 = sshll.u32 %s14025_s11, 1  ;;  %2907 = vst [vmem:[#allocation2] sm:$0xff] (!%p7241_p8), %v9419_v0  ;;  %2908 = vst [vmem:[#allocation2 + $0x8] sm:$0xff] (!%p7241_p8), %v9419_v0 }
 0x2d7   : > { %s12155_s18 = scalar_lea.vmem %s13988_s0, %s7238_s21  ;;  %s7239_s7 = sshll.u32 %s14027_s8, 3  ;;  %2909 = vst [vmem:[#allocation2 + $0x10] sm:$0xff] (!%p7241_p8), %v9419_v0  ;;  %2910 = vst [vmem:[#allocation2 + $0x18] sm:$0xff] (!%p7241_p8), %v9419_v0 }
 0x2d8   : > { %s12160_s29 = scalar_lea.vmem %s13991_s3, %s7239_s7  ;;  %2906 = sbr.rel (%p7241_p8) target bundleno = 735 (0x2df), region = 71  ;;  %2911 = vst [vmem:[#allocation2 + $0x20] sm:$0xff] (!%p7241_p8), %v9419_v0 }
 0x2d9   : > { %s2900_s30 = scalar_select %p2899_p7, %s9404_s24, 1 }
 0x2db   : > { %s7240_s12 = sshll.u32 %s2900_s30, 1 }
 0x2dc   : > { %s12166_s2 = scalar_lea.vmem %s13993_s5, %s7240_s12 }
 0x2df PF: > { %v2919_v1 = vld [vmem:[%s12141_s28 + $0x8] sm:$0xff]  ;;  %v2921_v3 = vld [vmem:[%s12141_s28 + $0x18] sm:$0xff]  ;;  %v2918_v6 = vld [vmem:[%s12141_s28] sm:$0xff]  ;;  %p7242_p9 = scmp.ne.s32.totalorder %s9400_s23, 1 }
 0x2e0   : > { %v2939_v2 = vld [vmem:[%s12141_s28 + $0xa8] sm:$0xff]  ;;  %v2941_v5 = vld [vmem:[%s12141_s28 + $0xb8] sm:$0xff]  ;;  %v2938_v7 = vld [vmem:[%s12141_s28 + $0xa0] sm:$0xff]  ;;  %p6286_p10 = scmp.eq.s32.totalorder (!%p7242_p9), %s9404_s24, 0 }
 0x2e1   : > { %v7596_v4 = vpack.c.bf16 %v2939_v2, %v2919_v1  ;;  %v7724_v8 = vpack.c.bf16 %v2941_v5, %v2921_v3  ;;  %v7598_v9 = vpack.c.bf16 %v2938_v7, %v2918_v6  ;;  %v2920_v10 = vld [vmem:[%s12141_s28 + $0x10] sm:$0xff]  ;;  %v2959_v12 = vld [vmem:[%s12141_s28 + $0x148] sm:$0xff]  ;;  %v2961_v15 = vld [vmem:[%s12141_s28 + $0x158] sm:$0xff] }
 0x2e2   : > { %v2940_v11 = vld [vmem:[%s12141_s28 + $0xb0] sm:$0xff]  ;;  %v2979_v14 = vld [vmem:[%s12141_s28 + $0x1e8] sm:$0xff]  ;;  %v2981_v16 = vld [vmem:[%s12141_s28 + $0x1f8] sm:$0xff] }
 0x2e3   : > { %7597 = vmatprep.subr.bf16.mxu0 %v7596_v4  ;;  %v7726_v13 = vpack.c.bf16 %v2940_v11, %v2920_v10  ;;  %7725 = vmatprep.subr.bf16.mxu1 %v7724_v8  ;;  %v7600_v17 = vpack.c.bf16 %v2979_v14, %v2959_v12  ;;  %v7728_v18 = vpack.c.bf16 %v2981_v16, %v2961_v15  ;;  %v2958_v19 = vld [vmem:[%s12141_s28 + $0x140] sm:$0xff]  ;;  %v2960_v21 = vld [vmem:[%s12141_s28 + $0x150] sm:$0xff]  ;;  %v2999_v24 = vld [vmem:[%s12141_s28 + $0x288] sm:$0xff] }
 0x2e4   : > { %7599 = vmatpush1.bf16.msra.mxu0 %v7598_v9  ;;  %v2978_v20 = vld [vmem:[%s12141_s28 + $0x1e0] sm:$0xff]  ;;  %v2980_v23 = vld [vmem:[%s12141_s28 + $0x1f0] sm:$0xff]  ;;  %v3019_v25 = vld [vmem:[%s12141_s28 + $0x328] sm:$0xff] }
 0x2e5   : > { %7727 = vmatpush1.bf16.msra.mxu1 %v7726_v13  ;;  %v7602_v22 = vpack.c.bf16 %v2978_v20, %v2958_v19  ;;  %7601 = vmatprep.subr.bf16.mxu0 %v7600_v17  ;;  %v7730_v26 = vpack.c.bf16 %v2980_v23, %v2960_v21  ;;  %v7604_v27 = vpack.c.bf16 %v3019_v25, %v2999_v24  ;;  %v3001_v28 = vld [vmem:[%s12141_s28 + $0x298] sm:$0xff]  ;;  %v2998_v30 = vld [vmem:[%s12141_s28 + $0x280] sm:$0xff]  ;;  %v3000_v33 = vld [vmem:[%s12141_s28 + $0x290] sm:$0xff] }
 0x2e6   : > { %7729 = vmatprep.subr.bf16.mxu1 %v7728_v18  ;;  %v3021_v29 = vld [vmem:[%s12141_s28 + $0x338] sm:$0xff]  ;;  %v3018_v32 = vld [vmem:[%s12141_s28 + $0x320] sm:$0xff]  ;;  %v3020_v34 = vld [vmem:[%s12141_s28 + $0x330] sm:$0xff] }
 0x2e7   : > { %v7732_v31 = vpack.c.bf16 %v3021_v29, %v3001_v28  ;;  %v7606_v35 = vpack.c.bf16 %v3018_v32, %v2998_v30  ;;  %v3039_v36 = vld [vmem:[%s12141_s28 + $0x3c8] sm:$0xff]  ;;  %v3041_v38 = vld [vmem:[%s12141_s28 + $0x3d8] sm:$0xff]  ;;  %v7734_v39 = vpack.c.bf16 %v3020_v34, %v3000_v33  ;;  %v3038_v42 = vld [vmem:[%s12141_s28 + $0x3c0] sm:$0xff] }
 0x2e8   : > { %7603 = vmatpush1.bf16.msra.mxu0 %v7602_v22  ;;  %v3059_v37 = vld [vmem:[%s12141_s28 + $0x468] sm:$0xff]  ;;  %v3061_v41 = vld [vmem:[%s12141_s28 + $0x478] sm:$0xff]  ;;  %v3058_v43 = vld [vmem:[%s12141_s28 + $0x460] sm:$0xff] }
 0x2e9   : > { %7731 = vmatpush1.bf16.msra.mxu1 %v7730_v26  ;;  %7605 = vmatprep.subr.bf16.mxu0 %v7604_v27  ;;  %v7608_v40 = vpack.c.bf16 %v3059_v37, %v3039_v36  ;;  %v7736_v44 = vpack.c.bf16 %v3061_v41, %v3041_v38  ;;  %v3040_v45 = vld [vmem:[%s12141_s28 + $0x3d0] sm:$0xff]  ;;  %v3079_v47 = vld [vmem:[%s12141_s28 + $0x508] sm:$0xff]  ;;  %v3081_v49 = vld [vmem:[%s12141_s28 + $0x518] sm:$0xff]  ;;  %v7610_v51 = vpack.c.bf16 %v3058_v43, %v3038_v42 }
 0x2ea   : > { %7733 = vmatprep.subr.bf16.mxu1 %v7732_v31  ;;  %v3060_v46 = vld [vmem:[%s12141_s28 + $0x470] sm:$0xff]  ;;  %v3099_v48 = vld [vmem:[%s12141_s28 + $0x5a8] sm:$0xff]  ;;  %v3101_v50 = vld [vmem:[%s12141_s28 + $0x5b8] sm:$0xff] }
 0x2eb   : > { %v7738_v52 = vpack.c.bf16 %v3060_v46, %v3040_v45  ;;  %v7612_v53 = vpack.c.bf16 %v3099_v48, %v3079_v47  ;;  %v3078_v54 = vld [vmem:[%s12141_s28 + $0x500] sm:$0xff]  ;;  %v3080_v56 = vld [vmem:[%s12141_s28 + $0x510] sm:$0xff]  ;;  %v7740_v57 = vpack.c.bf16 %v3101_v50, %v3081_v49  ;;  %v3119_v59 = vld [vmem:[%s12141_s28 + $0x648] sm:$0xff]  ;;  %v9420_v47 = vmov 1983009808  }
 0x2ec   : > { %7607 = vmatpush1.bf16.msra.mxu0 %v7606_v35  ;;  %v3098_v55 = vld [vmem:[%s12141_s28 + $0x5a0] sm:$0xff]  ;;  %v3100_v58 = vld [vmem:[%s12141_s28 + $0x5b0] sm:$0xff]  ;;  %v3139_v60 = vld [vmem:[%s12141_s28 + $0x6e8] sm:$0xff]  ;;  %v4201_v48 = vunpack.c.l.s4 %v9420_v47  ;;  %v4203_v49 = vlaneseq }
 0x2ed   : > { %7735 = vmatpush1.bf16.msra.mxu1 %v7734_v39  ;;  %7609 = vmatprep.subr.bf16.mxu0 %v7608_v40  ;;  %v3121_v61 = vld [vmem:[%s12141_s28 + $0x658] sm:$0xff]  ;;  %v7614_v63 = vpack.c.bf16 %v3098_v55, %v3078_v54  ;;  %v7742_v0 = vpack.c.bf16 %v3100_v58, %v3080_v56  ;;  %v7616_v1 = vpack.c.bf16 %v3139_v60, %v3119_v59  ;;  %v3118_v2 = vld [vmem:[%s12141_s28 + $0x640] sm:$0xff]  ;;  %v3120_v4 = vld [vmem:[%s12141_s28 + $0x650] sm:$0xff] }
 0x2ee   : > { %7737 = vmatprep.subr.bf16.mxu1 %v7736_v44  ;;  %v3141_v62 = vld [vmem:[%s12141_s28 + $0x6f8] sm:$0xff]  ;;  %v3138_v3 = vld [vmem:[%s12141_s28 + $0x6e0] sm:$0xff]  ;;  %v3140_v6 = vld [vmem:[%s12141_s28 + $0x6f0] sm:$0xff] }
 0x2ef   : > { %v7744_v5 = vpack.c.bf16 %v3141_v62, %v3121_v61  ;;  %v3159_v7 = vld [vmem:[%s12141_s28 + $0x788] sm:$0xff]  ;;  %v3161_v9 = vld [vmem:[%s12141_s28 + $0x798] sm:$0xff]  ;;  %v7618_v11 = vpack.c.bf16 %v3138_v3, %v3118_v2  ;;  %v7746_v12 = vpack.c.bf16 %v3140_v6, %v3120_v4  ;;  %v3158_v14 = vld [vmem:[%s12141_s28 + $0x780] sm:$0xff]  ;;  %v4202_v62 = vunpack.c.0.s8 %v4201_v48 }
 0x2f0   : > { %7611 = vmatpush1.bf16.msra.mxu0 %v7610_v51  ;;  %v3179_v8 = vld [vmem:[%s12141_s28 + $0x828] sm:$0xff]  ;;  %v3181_v10 = vld [vmem:[%s12141_s28 + $0x838] sm:$0xff]  ;;  %v3178_v15 = vld [vmem:[%s12141_s28 + $0x820] sm:$0xff] }
 0x2f1   : > { %7739 = vmatpush1.bf16.msra.mxu1 %v7738_v52  ;;  %7613 = vmatprep.subr.bf16.mxu0 %v7612_v53  ;;  %v7620_v13 = vpack.c.bf16 %v3179_v8, %v3159_v7  ;;  %v3160_v16 = vld [vmem:[%s12141_s28 + $0x790] sm:$0xff]  ;;  %v7748_v17 = vpack.c.bf16 %v3181_v10, %v3161_v9  ;;  %v3199_v19 = vld [vmem:[%s12141_s28 + $0x8c8] sm:$0xff]  ;;  %v3201_v21 = vld [vmem:[%s12141_s28 + $0x8d8] sm:$0xff]  ;;  %v7622_v23 = vpack.c.bf16 %v3178_v15, %v3158_v14 }
 0x2f2   : > { %7741 = vmatprep.subr.bf16.mxu1 %v7740_v57  ;;  %v3180_v18 = vld [vmem:[%s12141_s28 + $0x830] sm:$0xff]  ;;  %v3219_v20 = vld [vmem:[%s12141_s28 + $0x968] sm:$0xff]  ;;  %v3221_v22 = vld [vmem:[%s12141_s28 + $0x978] sm:$0xff] }
 0x2f3   : > { %v7750_v24 = vpack.c.bf16 %v3180_v18, %v3160_v16  ;;  %v7624_v25 = vpack.c.bf16 %v3219_v20, %v3199_v19  ;;  %v3198_v26 = vld [vmem:[%s12141_s28 + $0x8c0] sm:$0xff]  ;;  %v3200_v28 = vld [vmem:[%s12141_s28 + $0x8d0] sm:$0xff]  ;;  %v7752_v29 = vpack.c.bf16 %v3221_v22, %v3201_v21  ;;  %v3239_v31 = vld [vmem:[%s12141_s28 + $0xa08] sm:$0xff] }
 0x2f4   : > { %7615 = vmatpush1.bf16.msra.mxu0 %v7614_v63  ;;  %v3218_v27 = vld [vmem:[%s12141_s28 + $0x960] sm:$0xff]  ;;  %v3220_v30 = vld [vmem:[%s12141_s28 + $0x970] sm:$0xff]  ;;  %v3259_v32 = vld [vmem:[%s12141_s28 + $0xaa8] sm:$0xff]  ;;  %v12253_v63 = vshrl.u32 %v4203_v49, 7 }
 0x2f5   : > { %7743 = vmatpush1.bf16.msra.mxu1 %v7742_v0  ;;  %7617 = vmatprep.subr.bf16.mxu0 %v7616_v1  ;;  %v3241_v33 = vld [vmem:[%s12141_s28 + $0xa18] sm:$0xff]  ;;  %v7626_v35 = vpack.c.bf16 %v3218_v27, %v3198_v26  ;;  %v7754_v36 = vpack.c.bf16 %v3220_v30, %v3200_v28  ;;  %v7628_v37 = vpack.c.bf16 %v3259_v32, %v3239_v31  ;;  %v3238_v38 = vld [vmem:[%s12141_s28 + $0xa00] sm:$0xff]  ;;  %v3240_v40 = vld [vmem:[%s12141_s28 + $0xa10] sm:$0xff] }
 0x2f6   : > { %7745 = vmatprep.subr.bf16.mxu1 %v7744_v5  ;;  %v3261_v34 = vld [vmem:[%s12141_s28 + $0xab8] sm:$0xff]  ;;  %v3258_v39 = vld [vmem:[%s12141_s28 + $0xaa0] sm:$0xff]  ;;  %v3260_v42 = vld [vmem:[%s12141_s28 + $0xab0] sm:$0xff] }
 0x2f7   : > { %v7756_v41 = vpack.c.bf16 %v3261_v34, %v3241_v33  ;;  %v3279_v43 = vld [vmem:[%s12141_s28 + $0xb48] sm:$0xff]  ;;  %v3281_v45 = vld [vmem:[%s12141_s28 + $0xb58] sm:$0xff]  ;;  %v7630_v50 = vpack.c.bf16 %v3258_v39, %v3238_v38  ;;  %v7758_v51 = vpack.c.bf16 %v3260_v42, %v3240_v40  ;;  %v3278_v53 = vld [vmem:[%s12141_s28 + $0xb40] sm:$0xff] }
 0x2f8   : > { %7619 = vmatpush1.bf16.msra.mxu0 %v7618_v11  ;;  %v3299_v44 = vld [vmem:[%s12141_s28 + $0xbe8] sm:$0xff]  ;;  %v3301_v46 = vld [vmem:[%s12141_s28 + $0xbf8] sm:$0xff]  ;;  %v3298_v54 = vld [vmem:[%s12141_s28 + $0xbe0] sm:$0xff] }
 0x2f9   : > { %7747 = vmatpush1.bf16.msra.mxu1 %v7746_v12  ;;  %7621 = vmatprep.subr.bf16.mxu0 %v7620_v13  ;;  %v7632_v52 = vpack.c.bf16 %v3299_v44, %v3279_v43  ;;  %v3280_v55 = vld [vmem:[%s12141_s28 + $0xb50] sm:$0xff]  ;;  %v7760_v56 = vpack.c.bf16 %v3301_v46, %v3281_v45  ;;  %v3319_v58 = vld [vmem:[%s12141_s28 + $0xc88] sm:$0xff]  ;;  %v3321_v60 = vld [vmem:[%s12141_s28 + $0xc98] sm:$0xff]  ;;  %v7634_v0 = vpack.c.bf16 %v3298_v54, %v3278_v53 }
 0x2fa   : > { %7749 = vmatprep.subr.bf16.mxu1 %v7748_v17  ;;  %v3300_v57 = vld [vmem:[%s12141_s28 + $0xbf0] sm:$0xff]  ;;  %v3339_v59 = vld [vmem:[%s12141_s28 + $0xd28] sm:$0xff]  ;;  %v3341_v61 = vld [vmem:[%s12141_s28 + $0xd38] sm:$0xff]  ;;  %v12264_v12 = vsub.s32 %v4202_v62, %v12253_v63 }
 0x2fb   : > { %v7762_v1 = vpack.c.bf16 %v3300_v57, %v3280_v55  ;;  %v7636_v2 = vpack.c.bf16 %v3339_v59, %v3319_v58  ;;  %v3318_v3 = vld [vmem:[%s12141_s28 + $0xc80] sm:$0xff]  ;;  %v3320_v5 = vld [vmem:[%s12141_s28 + $0xc90] sm:$0xff]  ;;  %v7764_v6 = vpack.c.bf16 %v3341_v61, %v3321_v60  ;;  %v3359_v8 = vld [vmem:[%s12141_s28 + $0xdc8] sm:$0xff] }
 0x2fc   : > { %7623 = vmatpush1.bf16.msra.mxu0 %v7622_v23  ;;  %v3338_v4 = vld [vmem:[%s12141_s28 + $0xd20] sm:$0xff]  ;;  %v3340_v7 = vld [vmem:[%s12141_s28 + $0xd30] sm:$0xff]  ;;  %v3379_v9 = vld [vmem:[%s12141_s28 + $0xe68] sm:$0xff] }
 0x2fd   : > { %7751 = vmatpush1.bf16.msra.mxu1 %v7750_v24  ;;  %7625 = vmatprep.subr.bf16.mxu0 %v7624_v25  ;;  %v3361_v10 = vld [vmem:[%s12141_s28 + $0xdd8] sm:$0xff]  ;;  %v7638_v13 = vpack.c.bf16 %v3338_v4, %v3318_v3  ;;  %v3358_v14 = vld [vmem:[%s12141_s28 + $0xdc0] sm:$0xff]  ;;  %v7766_v15 = vpack.c.bf16 %v3340_v7, %v3320_v5  ;;  %v7640_v16 = vpack.c.bf16 %v3379_v9, %v3359_v8  ;;  %v3360_v18 = vld [vmem:[%s12141_s28 + $0xdd0] sm:$0xff] }
 0x2fe   : > { %7753 = vmatprep.subr.bf16.mxu1 %v7752_v29  ;;  %v3381_v11 = vld [vmem:[%s12141_s28 + $0xe78] sm:$0xff]  ;;  %v3378_v17 = vld [vmem:[%s12141_s28 + $0xe60] sm:$0xff]  ;;  %v3380_v19 = vld [vmem:[%s12141_s28 + $0xe70] sm:$0xff] }
 0x2ff   : > { %v7768_v20 = vpack.c.bf16 %v3381_v11, %v3361_v10  ;;  %v3399_v21 = vld [vmem:[%s12141_s28 + $0xf08] sm:$0xff]  ;;  %v12273_v23 = vld [vmem:[%s12155_s18] sm:$0xff]  ;;  %v7642_v27 = vpack.c.bf16 %v3378_v17, %v3358_v14  ;;  %v7770_v28 = vpack.c.bf16 %v3380_v19, %v3360_v18  ;;  %v3398_v30 = vld [vmem:[%s12141_s28 + $0xf00] sm:$0xff] }
 0x300   : > { %7627 = vmatpush1.bf16.msra.mxu0 %v7626_v35  ;;  %v3419_v22 = vld [vmem:[%s12141_s28 + $0xfa8] sm:$0xff]  ;;  %v3401_v24 = vld [vmem:[%s12141_s28 + $0xf18] sm:$0xff]  ;;  %v12279_v26 = vrot.slane %v12273_v23, %v12264_v12  ;;  %v3418_v31 = vld [vmem:[%s12141_s28 + $0xfa0] sm:$0xff]  ;;  %v4199_v11 = vcombine.high %v12273_v23, %v12273_v23 }
 0x301   : > { %7755 = vmatpush1.bf16.msra.mxu1 %v7754_v36  ;;  %7629 = vmatprep.subr.bf16.mxu0 %v7628_v37  ;;  %v3421_v25 = vld [vmem:[%s12141_s28 + $0xfb8] sm:$0xff]  ;;  %v7644_v29 = vpack.c.bf16 %v3419_v22, %v3399_v21  ;;  %v3400_v32 = vld [vmem:[%s12141_s28 + $0xf10] sm:$0xff]  ;;  %v3439_v36 = vld [vmem:[%s12141_s28 + $0x1048] sm:$0xff]  ;;  %v7646_v40 = vpack.c.bf16 %v3418_v31, %v3398_v30 }
 0x302   : > { %7757 = vmatprep.subr.bf16.mxu1 %v7756_v41  ;;  %v12286_v33 = vcombine.high %v12279_v26, %v12279_v26  ;;  %v7772_v34 = vpack.c.bf16 %v3421_v25, %v3401_v24  ;;  %v3420_v35 = vld [vmem:[%s12141_s28 + $0xfb0] sm:$0xff]  ;;  %v3459_v37 = vld [vmem:[%s12141_s28 + $0x10e8] sm:$0xff]  ;;  %v3441_v38 = vld [vmem:[%s12141_s28 + $0x1058] sm:$0xff]  ;;  %v12328_v25 = vrot.slane %v4199_v11, %v12264_v12 }
 0x303   : > { %v3461_v39 = vld [vmem:[%s12141_s28 + $0x10f8] sm:$0xff]  ;;  %v7774_v41 = vpack.c.bf16 %v3420_v35, %v3400_v32  ;;  %v7648_v42 = vpack.c.bf16 %v3459_v37, %v3439_v36  ;;  %v3438_v43 = vld [vmem:[%s12141_s28 + $0x1040] sm:$0xff]  ;;  %v3440_v45 = vld [vmem:[%s12141_s28 + $0x1050] sm:$0xff] }
 0x304   : > { %7631 = vmatpush1.bf16.msra.mxu0 %v7630_v50  ;;  %4284 = vmatprep.mubr.f32.mxu0 %v12286_v33  ;;  %v3458_v44 = vld [vmem:[%s12141_s28 + $0x10e0] sm:$0xff]  ;;  %v7776_v46 = vpack.c.bf16 %v3461_v39, %v3441_v38  ;;  %v3460_v47 = vld [vmem:[%s12141_s28 + $0x10f0] sm:$0xff]  ;;  %v3479_v48 = vld [vmem:[%s12141_s28 + $0x1188] sm:$0xff] }
 0x305   : > { %7759 = vmatpush1.bf16.msra.mxu1 %v7758_v51  ;;  %7633 = vmatprep.subr.bf16.mxu0 %v7632_v52  ;;  %v3499_v49 = vld [vmem:[%s12141_s28 + $0x1228] sm:$0xff]  ;;  %v3481_v50 = vld [vmem:[%s12141_s28 + $0x1198] sm:$0xff]  ;;  %v7650_v52 = vpack.c.bf16 %v3458_v44, %v3438_v43  ;;  %v7778_v53 = vpack.c.bf16 %v3460_v47, %v3440_v45  ;;  %v3478_v55 = vld [vmem:[%s12141_s28 + $0x1180] sm:$0xff] }
 0x306   : > { %7761 = vmatprep.subr.bf16.mxu1 %v7760_v56  ;;  %4426 = vmatprep.mubr.f32.mxu1 %v12286_v33  ;;  %v3501_v51 = vld [vmem:[%s12141_s28 + $0x1238] sm:$0xff]  ;;  %v7652_v54 = vpack.c.bf16 %v3499_v49, %v3479_v48  ;;  %v3498_v56 = vld [vmem:[%s12141_s28 + $0x1220] sm:$0xff]  ;;  %v3480_v57 = vld [vmem:[%s12141_s28 + $0x1190] sm:$0xff] }
 0x307   : > { %v7780_v58 = vpack.c.bf16 %v3501_v51, %v3481_v50  ;;  %v3500_v59 = vld [vmem:[%s12141_s28 + $0x1230] sm:$0xff]  ;;  %v3519_v60 = vld [vmem:[%s12141_s28 + $0x12c8] sm:$0xff]  ;;  %v3521_v62 = vld [vmem:[%s12141_s28 + $0x12d8] sm:$0xff] }
 0x308   : > { %7635 = vmatpush1.bf16.msra.mxu0 %v7634_v0  ;;  %v3539_v61 = vld [vmem:[%s12141_s28 + $0x1368] sm:$0xff]  ;;  %v3541_v0 = vld [vmem:[%s12141_s28 + $0x1378] sm:$0xff]  ;;  %v3518_v4 = vld [vmem:[%s12141_s28 + $0x12c0] sm:$0xff] }
 0x309   : > { %7763 = vmatpush1.bf16.msra.mxu1 %v7762_v1  ;;  %7637 = vmatprep.subr.bf16.mxu0 %v7636_v2  ;;  %v7654_v1 = vpack.c.bf16 %v3498_v56, %v3478_v55  ;;  %v7782_v2 = vpack.c.bf16 %v3500_v59, %v3480_v57  ;;  %v7656_v3 = vpack.c.bf16 %v3539_v61, %v3519_v60  ;;  %v3538_v5 = vld [vmem:[%s12141_s28 + $0x1360] sm:$0xff]  ;;  %v3540_v8 = vld [vmem:[%s12141_s28 + $0x1370] sm:$0xff]  ;;  %v3559_v9 = vld [vmem:[%s12141_s28 + $0x1408] sm:$0xff] }
 0x30a   : > { %7765 = vmatprep.subr.bf16.mxu1 %v7764_v6  ;;  %v3520_v6 = vld [vmem:[%s12141_s28 + $0x12d0] sm:$0xff]  ;;  %v7784_v7 = vpack.c.bf16 %v3541_v0, %v3521_v62  ;;  %v3579_v10 = vld [vmem:[%s12141_s28 + $0x14a8] sm:$0xff]  ;;  %v3581_v14 = vld [vmem:[%s12141_s28 + $0x14b8] sm:$0xff] }
 0x30b   : > { %v7660_v17 = vpack.c.bf16 %v3579_v10, %v3559_v9  ;;  %v3558_v18 = vld [vmem:[%s12141_s28 + $0x1400] sm:$0xff]  ;;  %v3580_v22 = vld [vmem:[%s12141_s28 + $0x14b0] sm:$0xff]  ;;  %v3599_v23 = vld [vmem:[%s12141_s28 + $0x1548] sm:$0xff] }
 0x30c   : > { %7639 = vmatpush1.bf16.msra.mxu0 %v7638_v13  ;;  %v3561_v13 = vld [vmem:[%s12141_s28 + $0x1418] sm:$0xff]  ;;  %v3578_v19 = vld [vmem:[%s12141_s28 + $0x14a0] sm:$0xff]  ;;  %v3619_v24 = vld [vmem:[%s12141_s28 + $0x15e8] sm:$0xff] }
 0x30d   : > { %7767 = vmatpush1.bf16.msra.mxu1 %v7766_v15  ;;  %7641 = vmatprep.subr.bf16.mxu0 %v7640_v16  ;;  %v7658_v15 = vpack.c.bf16 %v3538_v5, %v3518_v4  ;;  %v7786_v16 = vpack.c.bf16 %v3540_v8, %v3520_v6  ;;  %v7788_v21 = vpack.c.bf16 %v3581_v14, %v3561_v13  ;;  %v3598_v32 = vld [vmem:[%s12141_s28 + $0x1540] sm:$0xff]  ;;  %v3600_v35 = vld [vmem:[%s12141_s28 + $0x1550] sm:$0xff]  ;;  %v3639_v38 = vld [vmem:[%s12141_s28 + $0x1688] sm:$0xff] }
 0x30e   : > { %7769 = vmatprep.subr.bf16.mxu1 %v7768_v20  ;;  %v3560_v20 = vld [vmem:[%s12141_s28 + $0x1410] sm:$0xff]  ;;  %v7664_v31 = vpack.c.bf16 %v3619_v24, %v3599_v23  ;;  %v3659_v39 = vld [vmem:[%s12141_s28 + $0x1728] sm:$0xff]  ;;  %v3658_v47 = vld [vmem:[%s12141_s28 + $0x1720] sm:$0xff] }
 0x30f   : > { %v7790_v30 = vpack.c.bf16 %v3580_v22, %v3560_v20  ;;  %v3620_v37 = vld [vmem:[%s12141_s28 + $0x15f0] sm:$0xff]  ;;  %v7668_v45 = vpack.c.bf16 %v3659_v39, %v3639_v38  ;;  %v3679_v51 = vld [vmem:[%s12141_s28 + $0x17c8] sm:$0xff]  ;;  %v3698_v59 = vld [vmem:[%s12141_s28 + $0x1860] sm:$0xff] }
 0x310   : > { %7643 = vmatpush1.bf16.msra.mxu0 %v7642_v27  ;;  %v3601_v27 = vld [vmem:[%s12141_s28 + $0x1558] sm:$0xff]  ;;  %v7794_v44 = vpack.c.bf16 %v3620_v37, %v3600_v35  ;;  %v3640_v48 = vld [vmem:[%s12141_s28 + $0x1690] sm:$0xff]  ;;  %v3719_v0 = vld [vmem:[%s12141_s28 + $0x1908] sm:$0xff] }
 0x311   : > { %7771 = vmatpush1.bf16.msra.mxu1 %v7770_v28  ;;  %7645 = vmatprep.subr.bf16.mxu0 %v7644_v29  ;;  %v3621_v28 = vld [vmem:[%s12141_s28 + $0x15f8] sm:$0xff]  ;;  %v7662_v29 = vpack.c.bf16 %v3578_v19, %v3558_v18  ;;  %v3660_v50 = vld [vmem:[%s12141_s28 + $0x1730] sm:$0xff]  ;;  %v3738_v8 = vld [vmem:[%s12141_s28 + $0x19a0] sm:$0xff] }
 0x312   : > { %7773 = vmatprep.subr.bf16.mxu1 %v7772_v34  ;;  %v3618_v34 = vld [vmem:[%s12141_s28 + $0x15e0] sm:$0xff]  ;;  %v7792_v36 = vpack.c.bf16 %v3621_v28, %v3601_v27  ;;  %v7798_v56 = vpack.c.bf16 %v3660_v50, %v3640_v48  ;;  %v3680_v60 = vld [vmem:[%s12141_s28 + $0x17d0] sm:$0xff]  ;;  %v3759_v13 = vld [vmem:[%s12141_s28 + $0x1a48] sm:$0xff] }
 0x313   : > { %v7666_v43 = vpack.c.bf16 %v3618_v34, %v3598_v32  ;;  %v3700_v62 = vld [vmem:[%s12141_s28 + $0x1870] sm:$0xff]  ;;  %v3779_v14 = vld [vmem:[%s12141_s28 + $0x1ae8] sm:$0xff]  ;;  %v3758_v20 = vld [vmem:[%s12141_s28 + $0x1a40] sm:$0xff] }
 0x314   : > { %7647 = vmatpush1.bf16.msra.mxu0 %v7646_v40  ;;  %v12340_v40 = vcombine.high %v12328_v25, %v12328_v25  ;;  %v7802_v5 = vpack.c.bf16 %v3700_v62, %v3680_v60  ;;  %v3720_v9 = vld [vmem:[%s12141_s28 + $0x1910] sm:$0xff]  ;;  %v7680_v19 = vpack.c.bf16 %v3779_v14, %v3759_v13  ;;  %v3799_v27 = vld [vmem:[%s12141_s28 + $0x1b88] sm:$0xff]  ;;  %v3798_v35 = vld [vmem:[%s12141_s28 + $0x1b80] sm:$0xff] }
 0x315   : > { %7775 = vmatpush1.bf16.msra.mxu1 %v7774_v41  ;;  %7649 = vmatprep.subr.bf16.mxu0 %v7648_v42  ;;  %v3641_v41 = vld [vmem:[%s12141_s28 + $0x1698] sm:$0xff]  ;;  %v3740_v11 = vld [vmem:[%s12141_s28 + $0x19b0] sm:$0xff]  ;;  %v3819_v28 = vld [vmem:[%s12141_s28 + $0x1c28] sm:$0xff] }
 0x316   : > { %7777 = vmatprep.subr.bf16.mxu1 %v7776_v46  ;;  %v3661_v42 = vld [vmem:[%s12141_s28 + $0x1738] sm:$0xff]  ;;  %v3638_v46 = vld [vmem:[%s12141_s28 + $0x1680] sm:$0xff]  ;;  %v7806_v18 = vpack.c.bf16 %v3740_v11, %v3720_v9  ;;  %v3760_v22 = vld [vmem:[%s12141_s28 + $0x1a50] sm:$0xff]  ;;  %v7684_v34 = vpack.c.bf16 %v3819_v28, %v3799_v27 }
 0x317   : > { %v7796_v49 = vpack.c.bf16 %v3661_v42, %v3641_v41  ;;  %v7670_v55 = vpack.c.bf16 %v3658_v47, %v3638_v46  ;;  %v3780_v24 = vld [vmem:[%s12141_s28 + $0x1af0] sm:$0xff]  ;;  %v3839_v41 = vld [vmem:[%s12141_s28 + $0x1cc8] sm:$0xff]  ;;  %v3838_v48 = vld [vmem:[%s12141_s28 + $0x1cc0] sm:$0xff] }
 0x318   : > { %7651 = vmatpush1.bf16.msra.mxu0 %v7650_v52  ;;  %v3699_v52 = vld [vmem:[%s12141_s28 + $0x1868] sm:$0xff]  ;;  %v7810_v32 = vpack.c.bf16 %v3780_v24, %v3760_v22  ;;  %v3800_v37 = vld [vmem:[%s12141_s28 + $0x1b90] sm:$0xff]  ;;  %v3878_v60 = vld [vmem:[%s12141_s28 + $0x1e00] sm:$0xff] }
 0x319   : > { %7779 = vmatpush1.bf16.msra.mxu1 %v7778_v53  ;;  %7653 = vmatprep.subr.bf16.mxu0 %v7652_v54  ;;  %v3681_v53 = vld [vmem:[%s12141_s28 + $0x17d8] sm:$0xff]  ;;  %v7672_v57 = vpack.c.bf16 %v3699_v52, %v3679_v51  ;;  %v3820_v39 = vld [vmem:[%s12141_s28 + $0x1c30] sm:$0xff]  ;;  %v3859_v42 = vld [vmem:[%s12141_s28 + $0x1d68] sm:$0xff] }
 0x31a   : > { %7781 = vmatprep.subr.bf16.mxu1 %v7780_v58  ;;  %v3701_v54 = vld [vmem:[%s12141_s28 + $0x1878] sm:$0xff]  ;;  %v3678_v58 = vld [vmem:[%s12141_s28 + $0x17c0] sm:$0xff]  ;;  %v7814_v46 = vpack.c.bf16 %v3820_v39, %v3800_v37  ;;  %v7688_v47 = vpack.c.bf16 %v3859_v42, %v3839_v41  ;;  %v3840_v50 = vld [vmem:[%s12141_s28 + $0x1cd0] sm:$0xff] }
 0x31b   : > { %v7800_v61 = vpack.c.bf16 %v3701_v54, %v3681_v53  ;;  %v7674_v4 = vpack.c.bf16 %v3698_v59, %v3678_v58  ;;  %v3860_v52 = vld [vmem:[%s12141_s28 + $0x1d70] sm:$0xff]  ;;  %v3879_v53 = vld [vmem:[%s12141_s28 + $0x1e08] sm:$0xff]  ;;  %v3918_v9 = vld [vmem:[%s12141_s28 + $0x1f40] sm:$0xff] }
 0x31c   : > { %7655 = vmatpush1.bf16.msra.mxu0 %v7654_v1  ;;  %v3739_v1 = vld [vmem:[%s12141_s28 + $0x19a8] sm:$0xff]  ;;  %v7818_v58 = vpack.c.bf16 %v3860_v52, %v3840_v50  ;;  %v3880_v62 = vld [vmem:[%s12141_s28 + $0x1e10] sm:$0xff]  ;;  %v3958_v22 = vld [vmem:[%s12141_s28 + $0x2080] sm:$0xff] }
 0x31d   : > { %7783 = vmatpush1.bf16.msra.mxu1 %v7782_v2  ;;  %7657 = vmatprep.subr.bf16.mxu0 %v7656_v3  ;;  %v3721_v2 = vld [vmem:[%s12141_s28 + $0x1918] sm:$0xff]  ;;  %v7676_v6 = vpack.c.bf16 %v3739_v1, %v3719_v0  ;;  %v3899_v54 = vld [vmem:[%s12141_s28 + $0x1ea8] sm:$0xff]  ;;  %v3900_v1 = vld [vmem:[%s12141_s28 + $0x1eb0] sm:$0xff] }
 0x31e   : > { %7785 = vmatprep.subr.bf16.mxu1 %v7784_v7  ;;  %v3741_v3 = vld [vmem:[%s12141_s28 + $0x19b8] sm:$0xff]  ;;  %v3718_v7 = vld [vmem:[%s12141_s28 + $0x1900] sm:$0xff]  ;;  %v7692_v59 = vpack.c.bf16 %v3899_v54, %v3879_v53  ;;  %v3920_v11 = vld [vmem:[%s12141_s28 + $0x1f50] sm:$0xff] }
 0x31f   : > { %v7804_v10 = vpack.c.bf16 %v3741_v3, %v3721_v2  ;;  %v3919_v2 = vld [vmem:[%s12141_s28 + $0x1f48] sm:$0xff]  ;;  %v3940_v14 = vld [vmem:[%s12141_s28 + $0x1ff0] sm:$0xff]  ;;  %v3998_v37 = vld [vmem:[%s12141_s28 + $0x21c0] sm:$0xff] }
 0x320   : > { %7659 = vmatpush1.bf16.msra.mxu0 %v7658_v15  ;;  %v3761_v15 = vld [vmem:[%s12141_s28 + $0x1a58] sm:$0xff]  ;;  %v3939_v3 = vld [vmem:[%s12141_s28 + $0x1fe8] sm:$0xff]  ;;  %v3960_v24 = vld [vmem:[%s12141_s28 + $0x2090] sm:$0xff] }
 0x321   : > { %7787 = vmatpush1.bf16.msra.mxu1 %v7786_v16  ;;  %7661 = vmatprep.subr.bf16.mxu0 %v7660_v17  ;;  %v3781_v16 = vld [vmem:[%s12141_s28 + $0x1af8] sm:$0xff]  ;;  %v7678_v17 = vpack.c.bf16 %v3738_v8, %v3718_v7  ;;  %v7822_v7 = vpack.c.bf16 %v3900_v1, %v3880_v62  ;;  %v7696_v8 = vpack.c.bf16 %v3939_v3, %v3919_v2  ;;  %v3980_v28 = vld [vmem:[%s12141_s28 + $0x2130] sm:$0xff]  ;;  %v4038_v50 = vld [vmem:[%s12141_s28 + $0x2300] sm:$0xff] }
 0x322   : > { %7789 = vmatprep.subr.bf16.mxu1 %v7788_v21  ;;  %v3778_v21 = vld [vmem:[%s12141_s28 + $0x1ae0] sm:$0xff]  ;;  %v7808_v23 = vpack.c.bf16 %v3781_v16, %v3761_v15  ;;  %v3959_v15 = vld [vmem:[%s12141_s28 + $0x2088] sm:$0xff]  ;;  %v4000_v39 = vld [vmem:[%s12141_s28 + $0x21d0] sm:$0xff] }
 0x323   : > { %4285 = vmatmul.mubr.f32.vlgmr.msra.gmra.mrb[0].mxu0 %v12279_v26  ;;  %v3979_v16 = vld [vmem:[%s12141_s28 + $0x2128] sm:$0xff]  ;;  %v4020_v42 = vld [vmem:[%s12141_s28 + $0x2270] sm:$0xff]  ;;  %v4078_v62 = vld [vmem:[%s12141_s28 + $0x2440] sm:$0xff] }
 0x324   : > { %7663 = vmatpush1.bf16.msra.mxu0 %v7662_v29  ;;  %4427 = vmatmul.mubr.f32.vlgmr.msra.gmra.mrb[0].mxu1 %v12279_v26  ;;  %v3801_v29 = vld [vmem:[%s12141_s28 + $0x1b98] sm:$0xff]  ;;  %v4040_v52 = vld [vmem:[%s12141_s28 + $0x2310] sm:$0xff] }
 0x325   : > { %7791 = vmatpush1.bf16.msra.mxu1 %v7790_v30  ;;  %7665 = vmatprep.subr.bf16.mxu0 %v7664_v31  ;;  %v3821_v30 = vld [vmem:[%s12141_s28 + $0x1c38] sm:$0xff]  ;;  %v7682_v31 = vpack.c.bf16 %v3778_v21, %v3758_v20  ;;  %v7826_v20 = vpack.c.bf16 %v3940_v14, %v3920_v11  ;;  %v7700_v21 = vpack.c.bf16 %v3979_v16, %v3959_v15  ;;  %v4060_v54 = vld [vmem:[%s12141_s28 + $0x23b0] sm:$0xff]  ;;  %v4118_v11 = vld [vmem:[%s12141_s28 + $0x2580] sm:$0xff] }
 0x326   : > { %7793 = vmatprep.subr.bf16.mxu1 %v7792_v36  ;;  %4355 = vmatprep.mubr.f32.mxu0 %v12340_v40  ;;  %v3818_v36 = vld [vmem:[%s12141_s28 + $0x1c20] sm:$0xff]  ;;  %v7812_v38 = vpack.c.bf16 %v3821_v30, %v3801_v29  ;;  %v3999_v29 = vld [vmem:[%s12141_s28 + $0x21c8] sm:$0xff]  ;;  %v4080_v1 = vld [vmem:[%s12141_s28 + $0x2450] sm:$0xff] }
 0x327   : > { %4497 = vmatprep.mubr.f32.mxu1 %v12340_v40  ;;  %v4019_v30 = vld [vmem:[%s12141_s28 + $0x2268] sm:$0xff]  ;;  %v4100_v3 = vld [vmem:[%s12141_s28 + $0x24f0] sm:$0xff] }
 0x328   : > { %7667 = vmatpush1.bf16.msra.mxu0 %v7666_v43  ;;  %v3841_v43 = vld [vmem:[%s12141_s28 + $0x1cd8] sm:$0xff]  ;;  %v4120_v14 = vld [vmem:[%s12141_s28 + $0x2590] sm:$0xff] }
 0x329   : > { %7795 = vmatpush1.bf16.msra.mxu1 %v7794_v44  ;;  %7669 = vmatprep.subr.bf16.mxu0 %v7668_v45  ;;  %v3861_v44 = vld [vmem:[%s12141_s28 + $0x1d78] sm:$0xff]  ;;  %v7686_v45 = vpack.c.bf16 %v3818_v36, %v3798_v35  ;;  %v7830_v35 = vpack.c.bf16 %v3980_v28, %v3960_v24  ;;  %v7704_v36 = vpack.c.bf16 %v4019_v30, %v3999_v29  ;;  %v4140_v16 = vld [vmem:[%s12141_s28 + $0x2630] sm:$0xff]  ;;  %v4158_v24 = vld [vmem:[%s12141_s28 + $0x26c0] sm:$0xff] }
 0x32a   : > { %7797 = vmatprep.subr.bf16.mxu1 %v7796_v49  ;;  %v3858_v49 = vld [vmem:[%s12141_s28 + $0x1d60] sm:$0xff]  ;;  %v7816_v51 = vpack.c.bf16 %v3861_v44, %v3841_v43  ;;  %v4039_v43 = vld [vmem:[%s12141_s28 + $0x2308] sm:$0xff]  ;;  %v4160_v28 = vld [vmem:[%s12141_s28 + $0x26d0] sm:$0xff] }
 0x32b   : > { %v4059_v44 = vld [vmem:[%s12141_s28 + $0x23a8] sm:$0xff]  ;;  %v4180_v30 = vld [vmem:[%s12141_s28 + $0x2770] sm:$0xff] }
 0x32c   : > { %7671 = vmatpush1.bf16.msra.mxu0 %v7670_v55  ;;  %v3881_v55 = vld [vmem:[%s12141_s28 + $0x1e18] sm:$0xff] }
 0x32d   : > { %7799 = vmatpush1.bf16.msra.mxu1 %v7798_v56  ;;  %7673 = vmatprep.subr.bf16.mxu0 %v7672_v57  ;;  %v3901_v56 = vld [vmem:[%s12141_s28 + $0x1eb8] sm:$0xff]  ;;  %v7690_v57 = vpack.c.bf16 %v3858_v49, %v3838_v48  ;;  %v7834_v48 = vpack.c.bf16 %v4020_v42, %v4000_v39  ;;  %v7708_v49 = vpack.c.bf16 %v4059_v44, %v4039_v43  ;;  %v2922_v39 = vld [vmem:[%s12141_s28 + $0x20] sm:$0xff]  ;;  %v2924_v42 = vld [vmem:[%s12141_s28 + $0x30] sm:$0xff] }
 0x32e   : > { %7801 = vmatprep.subr.bf16.mxu1 %v7800_v61  ;;  %v3898_v61 = vld [vmem:[%s12141_s28 + $0x1ea0] sm:$0xff]  ;;  %v7820_v0 = vpack.c.bf16 %v3901_v56, %v3881_v55  ;;  %v4079_v55 = vld [vmem:[%s12141_s28 + $0x2448] sm:$0xff]  ;;  %v2944_v44 = vld [vmem:[%s12141_s28 + $0xd0] sm:$0xff] }
 0x32f   : > { %v4099_v56 = vld [vmem:[%s12141_s28 + $0x24e8] sm:$0xff] }
 0x330   : > { %7675 = vmatpush1.bf16.msra.mxu0 %v7674_v4  ;;  %v3921_v4 = vld [vmem:[%s12141_s28 + $0x1f58] sm:$0xff] }
 0x331   : > { %7803 = vmatpush1.bf16.msra.mxu1 %v7802_v5  ;;  %7677 = vmatprep.subr.bf16.mxu0 %v7676_v6  ;;  %v3941_v5 = vld [vmem:[%s12141_s28 + $0x1ff8] sm:$0xff]  ;;  %v7694_v6 = vpack.c.bf16 %v3898_v61, %v3878_v60  ;;  %v7838_v60 = vpack.c.bf16 %v4060_v54, %v4040_v52  ;;  %v7712_v61 = vpack.c.bf16 %v4099_v56, %v4079_v55  ;;  %v2962_v52 = vld [vmem:[%s12141_s28 + $0x160] sm:$0xff]  ;;  %v2964_v54 = vld [vmem:[%s12141_s28 + $0x170] sm:$0xff] }
 0x332   : > { %7805 = vmatprep.subr.bf16.mxu1 %v7804_v10  ;;  %v3938_v10 = vld [vmem:[%s12141_s28 + $0x1fe0] sm:$0xff]  ;;  %v7824_v13 = vpack.c.bf16 %v3941_v5, %v3921_v4  ;;  %v4119_v4 = vld [vmem:[%s12141_s28 + $0x2588] sm:$0xff]  ;;  %v2984_v56 = vld [vmem:[%s12141_s28 + $0x210] sm:$0xff] }
 0x333   : > { %v4139_v5 = vld [vmem:[%s12141_s28 + $0x2628] sm:$0xff] }
 0x334   : > { %7679 = vmatpush1.bf16.msra.mxu0 %v7678_v17  ;;  %v3961_v17 = vld [vmem:[%s12141_s28 + $0x2098] sm:$0xff] }
 0x335   : > { %7807 = vmatpush1.bf16.msra.mxu1 %v7806_v18  ;;  %7681 = vmatprep.subr.bf16.mxu0 %v7680_v19  ;;  %v3981_v18 = vld [vmem:[%s12141_s28 + $0x2138] sm:$0xff]  ;;  %v7698_v19 = vpack.c.bf16 %v3938_v10, %v3918_v9  ;;  %v7842_v9 = vpack.c.bf16 %v4100_v3, %v4080_v1  ;;  %v7716_v10 = vpack.c.bf16 %v4139_v5, %v4119_v4  ;;  %v3002_v1 = vld [vmem:[%s12141_s28 + $0x2a0] sm:$0xff]  ;;  %v3004_v3 = vld [vmem:[%s12141_s28 + $0x2b0] sm:$0xff] }
 0x336   : > { %7809 = vmatprep.subr.bf16.mxu1 %v7808_v23  ;;  %v3978_v23 = vld [vmem:[%s12141_s28 + $0x2120] sm:$0xff]  ;;  %v7828_v27 = vpack.c.bf16 %v3981_v18, %v3961_v17  ;;  %v4159_v17 = vld [vmem:[%s12141_s28 + $0x26c8] sm:$0xff]  ;;  %v3024_v5 = vld [vmem:[%s12141_s28 + $0x350] sm:$0xff] }
 0x337   : > { %v4179_v18 = vld [vmem:[%s12141_s28 + $0x2768] sm:$0xff] }
 0x338   : > { %7683 = vmatpush1.bf16.msra.mxu0 %v7682_v31  ;;  %v4001_v31 = vld [vmem:[%s12141_s28 + $0x21d8] sm:$0xff] }
 0x339   : > { %7811 = vmatpush1.bf16.msra.mxu1 %v7810_v32  ;;  %7685 = vmatprep.subr.bf16.mxu0 %v7684_v34  ;;  %v4021_v32 = vld [vmem:[%s12141_s28 + $0x2278] sm:$0xff]  ;;  %v7702_v34 = vpack.c.bf16 %v3978_v23, %v3958_v22  ;;  %v7846_v22 = vpack.c.bf16 %v4140_v16, %v4120_v14  ;;  %v7720_v23 = vpack.c.bf16 %v4179_v18, %v4159_v17  ;;  %v3042_v14 = vld [vmem:[%s12141_s28 + $0x3e0] sm:$0xff]  ;;  %v3044_v16 = vld [vmem:[%s12141_s28 + $0x3f0] sm:$0xff] }
 0x33a   : > { %7813 = vmatprep.subr.bf16.mxu1 %v7812_v38  ;;  %v4018_v38 = vld [vmem:[%s12141_s28 + $0x2260] sm:$0xff]  ;;  %v7832_v41 = vpack.c.bf16 %v4021_v32, %v4001_v31  ;;  %v2923_v31 = vld [vmem:[%s12141_s28 + $0x28] sm:$0xff]  ;;  %v3064_v18 = vld [vmem:[%s12141_s28 + $0x490] sm:$0xff] }
 0x33b   : > { %v2943_v32 = vld [vmem:[%s12141_s28 + $0xc8] sm:$0xff] }
 0x33c   : > { %7687 = vmatpush1.bf16.msra.mxu0 %v7686_v45  ;;  %v4041_v45 = vld [vmem:[%s12141_s28 + $0x2318] sm:$0xff] }
 0x33d   : > { %7815 = vmatpush1.bf16.msra.mxu1 %v7814_v46  ;;  %7689 = vmatprep.subr.bf16.mxu0 %v7688_v47  ;;  %v4061_v46 = vld [vmem:[%s12141_s28 + $0x23b8] sm:$0xff]  ;;  %v7706_v47 = vpack.c.bf16 %v4018_v38, %v3998_v37  ;;  %v7850_v37 = vpack.c.bf16 %v4180_v30, %v4160_v28  ;;  %v7852_v38 = vpack.c.bf16 %v2943_v32, %v2923_v31  ;;  %v3082_v28 = vld [vmem:[%s12141_s28 + $0x520] sm:$0xff]  ;;  %v3084_v30 = vld [vmem:[%s12141_s28 + $0x530] sm:$0xff] }
 0x33e   : > { %7817 = vmatprep.subr.bf16.mxu1 %v7816_v51  ;;  %v4058_v51 = vld [vmem:[%s12141_s28 + $0x23a0] sm:$0xff]  ;;  %v7836_v53 = vpack.c.bf16 %v4061_v46, %v4041_v45  ;;  %v2963_v45 = vld [vmem:[%s12141_s28 + $0x168] sm:$0xff]  ;;  %v3104_v32 = vld [vmem:[%s12141_s28 + $0x5d0] sm:$0xff] }
 0x33f   : > { %v2983_v46 = vld [vmem:[%s12141_s28 + $0x208] sm:$0xff] }
 0x340   : > { %7691 = vmatpush1.bf16.msra.mxu0 %v7690_v57  ;;  %v4081_v57 = vld [vmem:[%s12141_s28 + $0x2458] sm:$0xff] }
 0x341   : > { %7819 = vmatpush1.bf16.msra.mxu1 %v7818_v58  ;;  %7693 = vmatprep.subr.bf16.mxu0 %v7692_v59  ;;  %v4101_v58 = vld [vmem:[%s12141_s28 + $0x24f8] sm:$0xff]  ;;  %v7710_v59 = vpack.c.bf16 %v4058_v51, %v4038_v50  ;;  %v7982_v50 = vpack.c.bf16 %v2944_v44, %v2924_v42  ;;  %v7856_v51 = vpack.c.bf16 %v2983_v46, %v2963_v45  ;;  %v3122_v42 = vld [vmem:[%s12141_s28 + $0x660] sm:$0xff]  ;;  %v3124_v44 = vld [vmem:[%s12141_s28 + $0x670] sm:$0xff] }
 0x342   : > { %7821 = vmatprep.subr.bf16.mxu1 %v7820_v0  ;;  %v4098_v0 = vld [vmem:[%s12141_s28 + $0x24e0] sm:$0xff]  ;;  %v7840_v2 = vpack.c.bf16 %v4101_v58, %v4081_v57  ;;  %v3003_v57 = vld [vmem:[%s12141_s28 + $0x2a8] sm:$0xff]  ;;  %v3144_v46 = vld [vmem:[%s12141_s28 + $0x710] sm:$0xff] }
 0x343   : > { %v3023_v58 = vld [vmem:[%s12141_s28 + $0x348] sm:$0xff] }
 0x344   : > { %7695 = vmatpush1.bf16.msra.mxu0 %v7694_v6  ;;  %v4121_v6 = vld [vmem:[%s12141_s28 + $0x2598] sm:$0xff] }
 0x345   : > { %7823 = vmatpush1.bf16.msra.mxu1 %v7822_v7  ;;  %7697 = vmatprep.subr.bf16.mxu0 %v7696_v8  ;;  %v4141_v7 = vld [vmem:[%s12141_s28 + $0x2638] sm:$0xff]  ;;  %v7714_v8 = vpack.c.bf16 %v4098_v0, %v4078_v62  ;;  %v7986_v62 = vpack.c.bf16 %v2984_v56, %v2964_v54  ;;  %v7860_v0 = vpack.c.bf16 %v3023_v58, %v3003_v57  ;;  %v3162_v54 = vld [vmem:[%s12141_s28 + $0x7a0] sm:$0xff]  ;;  %v3164_v56 = vld [vmem:[%s12141_s28 + $0x7b0] sm:$0xff] }
 0x346   : > { %7825 = vmatprep.subr.bf16.mxu1 %v7824_v13  ;;  %v4138_v13 = vld [vmem:[%s12141_s28 + $0x2620] sm:$0xff]  ;;  %v7844_v15 = vpack.c.bf16 %v4141_v7, %v4121_v6  ;;  %v3043_v6 = vld [vmem:[%s12141_s28 + $0x3e8] sm:$0xff]  ;;  %v3184_v58 = vld [vmem:[%s12141_s28 + $0x850] sm:$0xff] }
 0x347   : > { %v3063_v7 = vld [vmem:[%s12141_s28 + $0x488] sm:$0xff] }
 0x348   : > { %7699 = vmatpush1.bf16.msra.mxu0 %v7698_v19  ;;  %v4161_v19 = vld [vmem:[%s12141_s28 + $0x26d8] sm:$0xff] }
 0x349   : > { %7827 = vmatpush1.bf16.msra.mxu1 %v7826_v20  ;;  %7701 = vmatprep.subr.bf16.mxu0 %v7700_v21  ;;  %v4181_v20 = vld [vmem:[%s12141_s28 + $0x2778] sm:$0xff]  ;;  %v7718_v21 = vpack.c.bf16 %v4138_v13, %v4118_v11  ;;  %v7990_v11 = vpack.c.bf16 %v3024_v5, %v3004_v3  ;;  %v7864_v13 = vpack.c.bf16 %v3063_v7, %v3043_v6  ;;  %v3202_v3 = vld [vmem:[%s12141_s28 + $0x8e0] sm:$0xff]  ;;  %v3204_v5 = vld [vmem:[%s12141_s28 + $0x8f0] sm:$0xff] }
 0x34a   : > { %7829 = vmatprep.subr.bf16.mxu1 %v7828_v27  ;;  %v4178_v27 = vld [vmem:[%s12141_s28 + $0x2760] sm:$0xff]  ;;  %v7848_v29 = vpack.c.bf16 %v4181_v20, %v4161_v19  ;;  %v3083_v19 = vld [vmem:[%s12141_s28 + $0x528] sm:$0xff]  ;;  %v3224_v7 = vld [vmem:[%s12141_s28 + $0x990] sm:$0xff] }
 0x34b   : > { %v3103_v20 = vld [vmem:[%s12141_s28 + $0x5c8] sm:$0xff] }
 0x34c   : > { %7703 = vmatpush1.bf16.msra.mxu0 %v7702_v34  ;;  %v2925_v34 = vld [vmem:[%s12141_s28 + $0x38] sm:$0xff] }
 0x34d   : > { %7831 = vmatpush1.bf16.msra.mxu1 %v7830_v35  ;;  %7705 = vmatprep.subr.bf16.mxu0 %v7704_v36  ;;  %v2945_v35 = vld [vmem:[%s12141_s28 + $0xd8] sm:$0xff]  ;;  %v7722_v36 = vpack.c.bf16 %v4178_v27, %v4158_v24  ;;  %v7994_v24 = vpack.c.bf16 %v3064_v18, %v3044_v16  ;;  %v7868_v27 = vpack.c.bf16 %v3103_v20, %v3083_v19  ;;  %v3242_v16 = vld [vmem:[%s12141_s28 + $0xa20] sm:$0xff]  ;;  %v3244_v18 = vld [vmem:[%s12141_s28 + $0xa30] sm:$0xff] }
 0x34e   : > { %7833 = vmatprep.subr.bf16.mxu1 %v7832_v41  ;;  %v2942_v41 = vld [vmem:[%s12141_s28 + $0xc0] sm:$0xff]  ;;  %v7980_v43 = vpack.c.bf16 %v2945_v35, %v2925_v34  ;;  %v3123_v34 = vld [vmem:[%s12141_s28 + $0x668] sm:$0xff]  ;;  %v3264_v20 = vld [vmem:[%s12141_s28 + $0xad0] sm:$0xff] }
 0x34f   : > { %v3143_v35 = vld [vmem:[%s12141_s28 + $0x708] sm:$0xff] }
 0x350   : > { %7707 = vmatpush1.bf16.msra.mxu0 %v7706_v47  ;;  %v2965_v47 = vld [vmem:[%s12141_s28 + $0x178] sm:$0xff] }
 0x351   : > { %7835 = vmatpush1.bf16.msra.mxu1 %v7834_v48  ;;  %7709 = vmatprep.subr.bf16.mxu0 %v7708_v49  ;;  %v2985_v48 = vld [vmem:[%s12141_s28 + $0x218] sm:$0xff]  ;;  %v7854_v49 = vpack.c.bf16 %v2942_v41, %v2922_v39  ;;  %v7998_v39 = vpack.c.bf16 %v3104_v32, %v3084_v30  ;;  %v7872_v41 = vpack.c.bf16 %v3143_v35, %v3123_v34  ;;  %v3282_v30 = vld [vmem:[%s12141_s28 + $0xb60] sm:$0xff]  ;;  %v3284_v32 = vld [vmem:[%s12141_s28 + $0xb70] sm:$0xff] }
 0x352   : > { %7837 = vmatprep.subr.bf16.mxu1 %v7836_v53  ;;  %v2982_v53 = vld [vmem:[%s12141_s28 + $0x200] sm:$0xff]  ;;  %v7984_v55 = vpack.c.bf16 %v2985_v48, %v2965_v47  ;;  %v3163_v47 = vld [vmem:[%s12141_s28 + $0x7a8] sm:$0xff]  ;;  %v3304_v35 = vld [vmem:[%s12141_s28 + $0xc10] sm:$0xff] }
 0x353   : > { %v3183_v48 = vld [vmem:[%s12141_s28 + $0x848] sm:$0xff] }
 0x354   : > { %7711 = vmatpush1.bf16.msra.mxu0 %v7710_v59  ;;  %v3005_v59 = vld [vmem:[%s12141_s28 + $0x2b8] sm:$0xff] }
 0x355   : > { %7839 = vmatpush1.bf16.msra.mxu1 %v7838_v60  ;;  %7713 = vmatprep.subr.bf16.mxu0 %v7712_v61  ;;  %v3025_v60 = vld [vmem:[%s12141_s28 + $0x358] sm:$0xff]  ;;  %v7858_v61 = vpack.c.bf16 %v2982_v53, %v2962_v52  ;;  %v8002_v52 = vpack.c.bf16 %v3144_v46, %v3124_v44  ;;  %v7876_v53 = vpack.c.bf16 %v3183_v48, %v3163_v47  ;;  %v3322_v44 = vld [vmem:[%s12141_s28 + $0xca0] sm:$0xff]  ;;  %v3324_v46 = vld [vmem:[%s12141_s28 + $0xcb0] sm:$0xff] }
 0x356   : > { %7841 = vmatprep.subr.bf16.mxu1 %v7840_v2  ;;  %v3022_v2 = vld [vmem:[%s12141_s28 + $0x340] sm:$0xff]  ;;  %v7988_v4 = vpack.c.bf16 %v3025_v60, %v3005_v59  ;;  %v3203_v59 = vld [vmem:[%s12141_s28 + $0x8e8] sm:$0xff]  ;;  %v3344_v48 = vld [vmem:[%s12141_s28 + $0xd50] sm:$0xff] }
 0x357   : > { %v3223_v60 = vld [vmem:[%s12141_s28 + $0x988] sm:$0xff] }
 0x358   : > { %7715 = vmatpush1.bf16.msra.mxu0 %v7714_v8  ;;  %v3045_v8 = vld [vmem:[%s12141_s28 + $0x3f8] sm:$0xff] }
 0x359   : > { %7843 = vmatpush1.bf16.msra.mxu1 %v7842_v9  ;;  %7717 = vmatprep.subr.bf16.mxu0 %v7716_v10  ;;  %v3065_v9 = vld [vmem:[%s12141_s28 + $0x498] sm:$0xff]  ;;  %v7862_v10 = vpack.c.bf16 %v3022_v2, %v3002_v1  ;;  %v8006_v1 = vpack.c.bf16 %v3184_v58, %v3164_v56  ;;  %v7880_v2 = vpack.c.bf16 %v3223_v60, %v3203_v59  ;;  %v3362_v56 = vld [vmem:[%s12141_s28 + $0xde0] sm:$0xff]  ;;  %v3364_v58 = vld [vmem:[%s12141_s28 + $0xdf0] sm:$0xff] }
 0x35a   : > { %7845 = vmatprep.subr.bf16.mxu1 %v7844_v15  ;;  %v3062_v15 = vld [vmem:[%s12141_s28 + $0x480] sm:$0xff]  ;;  %v7992_v17 = vpack.c.bf16 %v3065_v9, %v3045_v8  ;;  %v3243_v8 = vld [vmem:[%s12141_s28 + $0xa28] sm:$0xff]  ;;  %v3384_v60 = vld [vmem:[%s12141_s28 + $0xe90] sm:$0xff] }
 0x35b   : > { %v3263_v9 = vld [vmem:[%s12141_s28 + $0xac8] sm:$0xff] }
 0x35c   : > { %7719 = vmatpush1.bf16.msra.mxu0 %v7718_v21  ;;  %v3085_v21 = vld [vmem:[%s12141_s28 + $0x538] sm:$0xff] }
 0x35d   : > { %7847 = vmatpush1.bf16.msra.mxu1 %v7846_v22  ;;  %7721 = vmatprep.subr.bf16.mxu0 %v7720_v23  ;;  %v3105_v22 = vld [vmem:[%s12141_s28 + $0x5d8] sm:$0xff]  ;;  %v7866_v23 = vpack.c.bf16 %v3062_v15, %v3042_v14  ;;  %v8010_v14 = vpack.c.bf16 %v3224_v7, %v3204_v5  ;;  %v7884_v15 = vpack.c.bf16 %v3263_v9, %v3243_v8  ;;  %v3402_v5 = vld [vmem:[%s12141_s28 + $0xf20] sm:$0xff]  ;;  %v3404_v7 = vld [vmem:[%s12141_s28 + $0xf30] sm:$0xff] }
 0x35e   : > { %7849 = vmatprep.subr.bf16.mxu1 %v7848_v29  ;;  %v3102_v29 = vld [vmem:[%s12141_s28 + $0x5c0] sm:$0xff]  ;;  %v7996_v31 = vpack.c.bf16 %v3105_v22, %v3085_v21  ;;  %v3283_v21 = vld [vmem:[%s12141_s28 + $0xb68] sm:$0xff]  ;;  %v3424_v9 = vld [vmem:[%s12141_s28 + $0xfd0] sm:$0xff] }
 0x35f   : > { %v3303_v22 = vld [vmem:[%s12141_s28 + $0xc08] sm:$0xff] }
 0x360   : > { %7723 = vmatpush1.bf16.msra.mxu0 %v7722_v36  ;;  %v3125_v36 = vld [vmem:[%s12141_s28 + $0x678] sm:$0xff] }
 0x361   : > { %7851 = vmatpush1.bf16.msra.mxu1 %v7850_v37  ;;  %7853 = vmatprep.subr.bf16.mxu0 %v7852_v38  ;;  %v3145_v37 = vld [vmem:[%s12141_s28 + $0x718] sm:$0xff]  ;;  %v7870_v38 = vpack.c.bf16 %v3102_v29, %v3082_v28  ;;  %v8014_v28 = vpack.c.bf16 %v3264_v20, %v3244_v18  ;;  %v7888_v29 = vpack.c.bf16 %v3303_v22, %v3283_v21  ;;  %v3442_v18 = vld [vmem:[%s12141_s28 + $0x1060] sm:$0xff]  ;;  %v3444_v20 = vld [vmem:[%s12141_s28 + $0x1070] sm:$0xff] }
 0x362   : > { %7981 = vmatprep.subr.bf16.mxu1 %v7980_v43  ;;  %v3142_v43 = vld [vmem:[%s12141_s28 + $0x700] sm:$0xff]  ;;  %v8000_v45 = vpack.c.bf16 %v3145_v37, %v3125_v36  ;;  %v3323_v36 = vld [vmem:[%s12141_s28 + $0xca8] sm:$0xff]  ;;  %v3464_v22 = vld [vmem:[%s12141_s28 + $0x1110] sm:$0xff] }
 0x363   : > { %4356 = vmatmul.mubr.f32.vlgmr.msra.gmra.mrb[0].mxu0 %v12328_v25  ;;  %v3343_v37 = vld [vmem:[%s12141_s28 + $0xd48] sm:$0xff] }
 0x364   : > { %4498 = vmatmul.mubr.f32.vlgmr.msra.gmra.mrb[0].mxu1 %v12328_v25  ;;  %7855 = vmatpush1.bf16.msra.mxu0 %v7854_v49  ;;  %v3165_v49 = vld [vmem:[%s12141_s28 + $0x7b8] sm:$0xff] }
 0x365   : > { %7983 = vmatpush1.bf16.msra.mxu1 %v7982_v50  ;;  %7857 = vmatprep.subr.bf16.mxu0 %v7856_v51  ;;  %v3185_v50 = vld [vmem:[%s12141_s28 + $0x858] sm:$0xff]  ;;  %v7874_v51 = vpack.c.bf16 %v3142_v43, %v3122_v42  ;;  %v8018_v42 = vpack.c.bf16 %v3304_v35, %v3284_v32  ;;  %v7892_v43 = vpack.c.bf16 %v3343_v37, %v3323_v36  ;;  %v3482_v32 = vld [vmem:[%s12141_s28 + $0x11a0] sm:$0xff]  ;;  %v3484_v35 = vld [vmem:[%s12141_s28 + $0x11b0] sm:$0xff] }
 0x366   : > { %7985 = vmatprep.subr.bf16.mxu1 %v7984_v55  ;;  %4568 = vmatprep.mubr.f32.mxu0 %v12286_v33  ;;  %v3182_v55 = vld [vmem:[%s12141_s28 + $0x840] sm:$0xff]  ;;  %v8004_v57 = vpack.c.bf16 %v3185_v50, %v3165_v49  ;;  %v3363_v49 = vld [vmem:[%s12141_s28 + $0xde8] sm:$0xff]  ;;  %v3504_v37 = vld [vmem:[%s12141_s28 + $0x1250] sm:$0xff] }
 0x367   : > { %4710 = vmatprep.mubr.f32.mxu1 %v12286_v33  ;;  %v3383_v50 = vld [vmem:[%s12141_s28 + $0xe88] sm:$0xff] }
 0x368   : > { %7859 = vmatpush1.bf16.msra.mxu0 %v7858_v61  ;;  %v3205_v61 = vld [vmem:[%s12141_s28 + $0x8f8] sm:$0xff] }
 0x369   : > { %7987 = vmatpush1.bf16.msra.mxu1 %v7986_v62  ;;  %7861 = vmatprep.subr.bf16.mxu0 %v7860_v0  ;;  %v3225_v62 = vld [vmem:[%s12141_s28 + $0x998] sm:$0xff]  ;;  %v7878_v0 = vpack.c.bf16 %v3182_v55, %v3162_v54  ;;  %v8022_v54 = vpack.c.bf16 %v3344_v48, %v3324_v46  ;;  %v7896_v55 = vpack.c.bf16 %v3383_v50, %v3363_v49  ;;  %v3522_v46 = vld [vmem:[%s12141_s28 + $0x12e0] sm:$0xff]  ;;  %v3524_v48 = vld [vmem:[%s12141_s28 + $0x12f0] sm:$0xff] }
 0x36a   : > { %7989 = vmatprep.subr.bf16.mxu1 %v7988_v4  ;;  %v3222_v4 = vld [vmem:[%s12141_s28 + $0x980] sm:$0xff]  ;;  %v8008_v6 = vpack.c.bf16 %v3225_v62, %v3205_v61  ;;  %v3403_v61 = vld [vmem:[%s12141_s28 + $0xf28] sm:$0xff]  ;;  %v3544_v50 = vld [vmem:[%s12141_s28 + $0x1390] sm:$0xff] }
 0x36b   : > { %v3423_v62 = vld [vmem:[%s12141_s28 + $0xfc8] sm:$0xff] }
 0x36c   : > { %7863 = vmatpush1.bf16.msra.mxu0 %v7862_v10  ;;  %v3245_v10 = vld [vmem:[%s12141_s28 + $0xa38] sm:$0xff] }
 0x36d   : > { %7991 = vmatpush1.bf16.msra.mxu1 %v7990_v11  ;;  %7865 = vmatprep.subr.bf16.mxu0 %v7864_v13  ;;  %v3265_v11 = vld [vmem:[%s12141_s28 + $0xad8] sm:$0xff]  ;;  %v7882_v13 = vpack.c.bf16 %v3222_v4, %v3202_v3  ;;  %v8026_v3 = vpack.c.bf16 %v3384_v60, %v3364_v58  ;;  %v7900_v4 = vpack.c.bf16 %v3423_v62, %v3403_v61  ;;  %v3562_v58 = vld [vmem:[%s12141_s28 + $0x1420] sm:$0xff]  ;;  %v3564_v60 = vld [vmem:[%s12141_s28 + $0x1430] sm:$0xff] }
 0x36e   : > { %7993 = vmatprep.subr.bf16.mxu1 %v7992_v17  ;;  %v3262_v17 = vld [vmem:[%s12141_s28 + $0xac0] sm:$0xff]  ;;  %v8012_v19 = vpack.c.bf16 %v3265_v11, %v3245_v10  ;;  %v3443_v10 = vld [vmem:[%s12141_s28 + $0x1068] sm:$0xff]  ;;  %v3584_v62 = vld [vmem:[%s12141_s28 + $0x14d0] sm:$0xff] }
 0x36f   : > { %v3463_v11 = vld [vmem:[%s12141_s28 + $0x1108] sm:$0xff] }
 0x370   : > { %7867 = vmatpush1.bf16.msra.mxu0 %v7866_v23  ;;  %v3285_v23 = vld [vmem:[%s12141_s28 + $0xb78] sm:$0xff] }
 0x371   : > { %7995 = vmatpush1.bf16.msra.mxu1 %v7994_v24  ;;  %7869 = vmatprep.subr.bf16.mxu0 %v7868_v27  ;;  %v3305_v24 = vld [vmem:[%s12141_s28 + $0xc18] sm:$0xff]  ;;  %v7886_v27 = vpack.c.bf16 %v3262_v17, %v3242_v16  ;;  %v8030_v16 = vpack.c.bf16 %v3424_v9, %v3404_v7  ;;  %v7904_v17 = vpack.c.bf16 %v3463_v11, %v3443_v10  ;;  %v3602_v7 = vld [vmem:[%s12141_s28 + $0x1560] sm:$0xff]  ;;  %v3604_v9 = vld [vmem:[%s12141_s28 + $0x1570] sm:$0xff] }
 0x372   : > { %7997 = vmatprep.subr.bf16.mxu1 %v7996_v31  ;;  %v3302_v31 = vld [vmem:[%s12141_s28 + $0xc00] sm:$0xff]  ;;  %v8016_v34 = vpack.c.bf16 %v3305_v24, %v3285_v23  ;;  %v3483_v23 = vld [vmem:[%s12141_s28 + $0x11a8] sm:$0xff]  ;;  %v3624_v11 = vld [vmem:[%s12141_s28 + $0x1610] sm:$0xff] }
 0x373   : > { %v3503_v24 = vld [vmem:[%s12141_s28 + $0x1248] sm:$0xff] }
 0x374   : > { %7871 = vmatpush1.bf16.msra.mxu0 %v7870_v38  ;;  %v3325_v38 = vld [vmem:[%s12141_s28 + $0xcb8] sm:$0xff] }
 0x375   : > { %7999 = vmatpush1.bf16.msra.mxu1 %v7998_v39  ;;  %7873 = vmatprep.subr.bf16.mxu0 %v7872_v41  ;;  %v3345_v39 = vld [vmem:[%s12141_s28 + $0xd58] sm:$0xff]  ;;  %v7890_v41 = vpack.c.bf16 %v3302_v31, %v3282_v30  ;;  %v8034_v30 = vpack.c.bf16 %v3464_v22, %v3444_v20  ;;  %v7908_v31 = vpack.c.bf16 %v3503_v24, %v3483_v23  ;;  %v3642_v20 = vld [vmem:[%s12141_s28 + $0x16a0] sm:$0xff]  ;;  %v3644_v22 = vld [vmem:[%s12141_s28 + $0x16b0] sm:$0xff] }
 0x376   : > { %8001 = vmatprep.subr.bf16.mxu1 %v8000_v45  ;;  %v3342_v45 = vld [vmem:[%s12141_s28 + $0xd40] sm:$0xff]  ;;  %v8020_v47 = vpack.c.bf16 %v3345_v39, %v3325_v38  ;;  %v3523_v38 = vld [vmem:[%s12141_s28 + $0x12e8] sm:$0xff]  ;;  %v3664_v24 = vld [vmem:[%s12141_s28 + $0x1750] sm:$0xff] }
 0x377   : > { %v3543_v39 = vld [vmem:[%s12141_s28 + $0x1388] sm:$0xff] }
 0x378   : > { %7875 = vmatpush1.bf16.msra.mxu0 %v7874_v51  ;;  %v3365_v51 = vld [vmem:[%s12141_s28 + $0xdf8] sm:$0xff] }
 0x379   : > { %8003 = vmatpush1.bf16.msra.mxu1 %v8002_v52  ;;  %7877 = vmatprep.subr.bf16.mxu0 %v7876_v53  ;;  %v3385_v52 = vld [vmem:[%s12141_s28 + $0xe98] sm:$0xff]  ;;  %v7894_v53 = vpack.c.bf16 %v3342_v45, %v3322_v44  ;;  %v8038_v44 = vpack.c.bf16 %v3504_v37, %v3484_v35  ;;  %v7912_v45 = vpack.c.bf16 %v3543_v39, %v3523_v38  ;;  %v3682_v35 = vld [vmem:[%s12141_s28 + $0x17e0] sm:$0xff]  ;;  %v3684_v37 = vld [vmem:[%s12141_s28 + $0x17f0] sm:$0xff] }
 0x37a   : > { %8005 = vmatprep.subr.bf16.mxu1 %v8004_v57  ;;  %v3382_v57 = vld [vmem:[%s12141_s28 + $0xe80] sm:$0xff]  ;;  %v8024_v59 = vpack.c.bf16 %v3385_v52, %v3365_v51  ;;  %v3563_v51 = vld [vmem:[%s12141_s28 + $0x1428] sm:$0xff]  ;;  %v3704_v39 = vld [vmem:[%s12141_s28 + $0x1890] sm:$0xff] }
 0x37b   : > { %v3583_v52 = vld [vmem:[%s12141_s28 + $0x14c8] sm:$0xff] }
 0x37c   : > { %7879 = vmatpush1.bf16.msra.mxu0 %v7878_v0  ;;  %v3405_v0 = vld [vmem:[%s12141_s28 + $0xf38] sm:$0xff] }
 0x37d   : > { %8007 = vmatpush1.bf16.msra.mxu1 %v8006_v1  ;;  %7881 = vmatprep.subr.bf16.mxu0 %v7880_v2  ;;  %v3425_v1 = vld [vmem:[%s12141_s28 + $0xfd8] sm:$0xff]  ;;  %v7898_v2 = vpack.c.bf16 %v3382_v57, %v3362_v56  ;;  %v8042_v56 = vpack.c.bf16 %v3544_v50, %v3524_v48  ;;  %v7916_v57 = vpack.c.bf16 %v3583_v52, %v3563_v51  ;;  %v3722_v48 = vld [vmem:[%s12141_s28 + $0x1920] sm:$0xff]  ;;  %v3724_v50 = vld [vmem:[%s12141_s28 + $0x1930] sm:$0xff] }
 0x37e   : > { %8009 = vmatprep.subr.bf16.mxu1 %v8008_v6  ;;  %v3422_v6 = vld [vmem:[%s12141_s28 + $0xfc0] sm:$0xff]  ;;  %v8028_v8 = vpack.c.bf16 %v3425_v1, %v3405_v0  ;;  %v3603_v0 = vld [vmem:[%s12141_s28 + $0x1568] sm:$0xff]  ;;  %v3744_v52 = vld [vmem:[%s12141_s28 + $0x19d0] sm:$0xff] }
 0x37f   : > { %v3623_v1 = vld [vmem:[%s12141_s28 + $0x1608] sm:$0xff] }
 0x380   : > { %7883 = vmatpush1.bf16.msra.mxu0 %v7882_v13  ;;  %v3445_v13 = vld [vmem:[%s12141_s28 + $0x1078] sm:$0xff] }
 0x381   : > { %8011 = vmatpush1.bf16.msra.mxu1 %v8010_v14  ;;  %7885 = vmatprep.subr.bf16.mxu0 %v7884_v15  ;;  %v3465_v14 = vld [vmem:[%s12141_s28 + $0x1118] sm:$0xff]  ;;  %v7902_v15 = vpack.c.bf16 %v3422_v6, %v3402_v5  ;;  %v8046_v5 = vpack.c.bf16 %v3584_v62, %v3564_v60  ;;  %v7920_v6 = vpack.c.bf16 %v3623_v1, %v3603_v0  ;;  %v3762_v60 = vld [vmem:[%s12141_s28 + $0x1a60] sm:$0xff]  ;;  %v3764_v62 = vld [vmem:[%s12141_s28 + $0x1a70] sm:$0xff] }
 0x382   : > { %8013 = vmatprep.subr.bf16.mxu1 %v8012_v19  ;;  %v3462_v19 = vld [vmem:[%s12141_s28 + $0x1100] sm:$0xff]  ;;  %v8032_v21 = vpack.c.bf16 %v3465_v14, %v3445_v13  ;;  %v3643_v13 = vld [vmem:[%s12141_s28 + $0x16a8] sm:$0xff]  ;;  %v3784_v1 = vld [vmem:[%s12141_s28 + $0x1b10] sm:$0xff] }
 0x383   : > { %v3663_v14 = vld [vmem:[%s12141_s28 + $0x1748] sm:$0xff] }
 0x384   : > { %7887 = vmatpush1.bf16.msra.mxu0 %v7886_v27  ;;  %v3485_v27 = vld [vmem:[%s12141_s28 + $0x11b8] sm:$0xff] }
 0x385   : > { %8015 = vmatpush1.bf16.msra.mxu1 %v8014_v28  ;;  %7889 = vmatprep.subr.bf16.mxu0 %v7888_v29  ;;  %v3505_v28 = vld [vmem:[%s12141_s28 + $0x1258] sm:$0xff]  ;;  %v7906_v29 = vpack.c.bf16 %v3462_v19, %v3442_v18  ;;  %v8050_v18 = vpack.c.bf16 %v3624_v11, %v3604_v9  ;;  %v7924_v19 = vpack.c.bf16 %v3663_v14, %v3643_v13  ;;  %v3802_v9 = vld [vmem:[%s12141_s28 + $0x1ba0] sm:$0xff]  ;;  %v3804_v11 = vld [vmem:[%s12141_s28 + $0x1bb0] sm:$0xff] }
 0x386   : > { %8017 = vmatprep.subr.bf16.mxu1 %v8016_v34  ;;  %v3502_v34 = vld [vmem:[%s12141_s28 + $0x1240] sm:$0xff]  ;;  %v8036_v36 = vpack.c.bf16 %v3505_v28, %v3485_v27  ;;  %v3683_v27 = vld [vmem:[%s12141_s28 + $0x17e8] sm:$0xff]  ;;  %v3824_v14 = vld [vmem:[%s12141_s28 + $0x1c50] sm:$0xff] }
 0x387   : > { %v3703_v28 = vld [vmem:[%s12141_s28 + $0x1888] sm:$0xff] }
 0x388   : > { %7891 = vmatpush1.bf16.msra.mxu0 %v7890_v41  ;;  %v3525_v41 = vld [vmem:[%s12141_s28 + $0x12f8] sm:$0xff] }
 0x389   : > { %8019 = vmatpush1.bf16.msra.mxu1 %v8018_v42  ;;  %7893 = vmatprep.subr.bf16.mxu0 %v7892_v43  ;;  %v3545_v42 = vld [vmem:[%s12141_s28 + $0x1398] sm:$0xff]  ;;  %v7910_v43 = vpack.c.bf16 %v3502_v34, %v3482_v32  ;;  %v8054_v32 = vpack.c.bf16 %v3664_v24, %v3644_v22  ;;  %v7928_v34 = vpack.c.bf16 %v3703_v28, %v3683_v27  ;;  %v3842_v22 = vld [vmem:[%s12141_s28 + $0x1ce0] sm:$0xff]  ;;  %v3844_v24 = vld [vmem:[%s12141_s28 + $0x1cf0] sm:$0xff] }
 0x38a   : > { %8021 = vmatprep.subr.bf16.mxu1 %v8020_v47  ;;  %v3542_v47 = vld [vmem:[%s12141_s28 + $0x1380] sm:$0xff]  ;;  %v8040_v49 = vpack.c.bf16 %v3545_v42, %v3525_v41  ;;  %v3723_v41 = vld [vmem:[%s12141_s28 + $0x1928] sm:$0xff]  ;;  %v3864_v28 = vld [vmem:[%s12141_s28 + $0x1d90] sm:$0xff] }
 0x38b   : > { %v3743_v42 = vld [vmem:[%s12141_s28 + $0x19c8] sm:$0xff] }
 0x38c   : > { %7895 = vmatpush1.bf16.msra.mxu0 %v7894_v53  ;;  %v3565_v53 = vld [vmem:[%s12141_s28 + $0x1438] sm:$0xff] }
 0x38d   : > { %8023 = vmatpush1.bf16.msra.mxu1 %v8022_v54  ;;  %7897 = vmatprep.subr.bf16.mxu0 %v7896_v55  ;;  %v3585_v54 = vld [vmem:[%s12141_s28 + $0x14d8] sm:$0xff]  ;;  %v7914_v55 = vpack.c.bf16 %v3542_v47, %v3522_v46  ;;  %v8058_v46 = vpack.c.bf16 %v3704_v39, %v3684_v37  ;;  %v7932_v47 = vpack.c.bf16 %v3743_v42, %v3723_v41  ;;  %v3882_v37 = vld [vmem:[%s12141_s28 + $0x1e20] sm:$0xff]  ;;  %v3884_v39 = vld [vmem:[%s12141_s28 + $0x1e30] sm:$0xff] }
 0x38e   : > { %8025 = vmatprep.subr.bf16.mxu1 %v8024_v59  ;;  %v3582_v59 = vld [vmem:[%s12141_s28 + $0x14c0] sm:$0xff]  ;;  %v8044_v61 = vpack.c.bf16 %v3585_v54, %v3565_v53  ;;  %v3763_v53 = vld [vmem:[%s12141_s28 + $0x1a68] sm:$0xff]  ;;  %v3904_v42 = vld [vmem:[%s12141_s28 + $0x1ed0] sm:$0xff] }
 0x38f   : > { %v3783_v54 = vld [vmem:[%s12141_s28 + $0x1b08] sm:$0xff] }
 0x390   : > { %7899 = vmatpush1.bf16.msra.mxu0 %v7898_v2  ;;  %v3605_v2 = vld [vmem:[%s12141_s28 + $0x1578] sm:$0xff] }
 0x391   : > { %8027 = vmatpush1.bf16.msra.mxu1 %v8026_v3  ;;  %7901 = vmatprep.subr.bf16.mxu0 %v7900_v4  ;;  %v3625_v3 = vld [vmem:[%s12141_s28 + $0x1618] sm:$0xff]  ;;  %v7918_v4 = vpack.c.bf16 %v3582_v59, %v3562_v58  ;;  %v8062_v58 = vpack.c.bf16 %v3744_v52, %v3724_v50  ;;  %v7936_v59 = vpack.c.bf16 %v3783_v54, %v3763_v53  ;;  %v3922_v50 = vld [vmem:[%s12141_s28 + $0x1f60] sm:$0xff]  ;;  %v3924_v52 = vld [vmem:[%s12141_s28 + $0x1f70] sm:$0xff] }
 0x392   : > { %8029 = vmatprep.subr.bf16.mxu1 %v8028_v8  ;;  %v3622_v8 = vld [vmem:[%s12141_s28 + $0x1600] sm:$0xff]  ;;  %v8048_v10 = vpack.c.bf16 %v3625_v3, %v3605_v2  ;;  %v3803_v2 = vld [vmem:[%s12141_s28 + $0x1ba8] sm:$0xff]  ;;  %v3944_v54 = vld [vmem:[%s12141_s28 + $0x2010] sm:$0xff] }
 0x393   : > { %v3823_v3 = vld [vmem:[%s12141_s28 + $0x1c48] sm:$0xff] }
 0x394   : > { %7903 = vmatpush1.bf16.msra.mxu0 %v7902_v15  ;;  %v3645_v15 = vld [vmem:[%s12141_s28 + $0x16b8] sm:$0xff] }
 0x395   : > { %8031 = vmatpush1.bf16.msra.mxu1 %v8030_v16  ;;  %7905 = vmatprep.subr.bf16.mxu0 %v7904_v17  ;;  %v3665_v16 = vld [vmem:[%s12141_s28 + $0x1758] sm:$0xff]  ;;  %v7922_v17 = vpack.c.bf16 %v3622_v8, %v3602_v7  ;;  %v8066_v7 = vpack.c.bf16 %v3784_v1, %v3764_v62  ;;  %v7940_v8 = vpack.c.bf16 %v3823_v3, %v3803_v2  ;;  %v3962_v62 = vld [vmem:[%s12141_s28 + $0x20a0] sm:$0xff]  ;;  %v3964_v1 = vld [vmem:[%s12141_s28 + $0x20b0] sm:$0xff] }
 0x396   : > { %8033 = vmatprep.subr.bf16.mxu1 %v8032_v21  ;;  %v3662_v21 = vld [vmem:[%s12141_s28 + $0x1740] sm:$0xff]  ;;  %v8052_v23 = vpack.c.bf16 %v3665_v16, %v3645_v15  ;;  %v3843_v15 = vld [vmem:[%s12141_s28 + $0x1ce8] sm:$0xff]  ;;  %v3984_v3 = vld [vmem:[%s12141_s28 + $0x2150] sm:$0xff] }
 0x397   : > { %v3863_v16 = vld [vmem:[%s12141_s28 + $0x1d88] sm:$0xff] }
 0x398   : > { %7907 = vmatpush1.bf16.msra.mxu0 %v7906_v29  ;;  %v3685_v29 = vld [vmem:[%s12141_s28 + $0x17f8] sm:$0xff] }
 0x399   : > { %8035 = vmatpush1.bf16.msra.mxu1 %v8034_v30  ;;  %7909 = vmatprep.subr.bf16.mxu0 %v7908_v31  ;;  %v3705_v30 = vld [vmem:[%s12141_s28 + $0x1898] sm:$0xff]  ;;  %v7926_v31 = vpack.c.bf16 %v3662_v21, %v3642_v20  ;;  %v8070_v20 = vpack.c.bf16 %v3824_v14, %v3804_v11  ;;  %v7944_v21 = vpack.c.bf16 %v3863_v16, %v3843_v15  ;;  %v4002_v11 = vld [vmem:[%s12141_s28 + $0x21e0] sm:$0xff]  ;;  %v4004_v14 = vld [vmem:[%s12141_s28 + $0x21f0] sm:$0xff] }
 0x39a   : > { %8037 = vmatprep.subr.bf16.mxu1 %v8036_v36  ;;  %v3702_v36 = vld [vmem:[%s12141_s28 + $0x1880] sm:$0xff]  ;;  %v8056_v38 = vpack.c.bf16 %v3705_v30, %v3685_v29  ;;  %v3883_v29 = vld [vmem:[%s12141_s28 + $0x1e28] sm:$0xff]  ;;  %v4024_v16 = vld [vmem:[%s12141_s28 + $0x2290] sm:$0xff] }
 0x39b   : > { %v3903_v30 = vld [vmem:[%s12141_s28 + $0x1ec8] sm:$0xff] }
 0x39c   : > { %7911 = vmatpush1.bf16.msra.mxu0 %v7910_v43  ;;  %v3725_v43 = vld [vmem:[%s12141_s28 + $0x1938] sm:$0xff] }
 0x39d   : > { %8039 = vmatpush1.bf16.msra.mxu1 %v8038_v44  ;;  %7913 = vmatprep.subr.bf16.mxu0 %v7912_v45  ;;  %v3745_v44 = vld [vmem:[%s12141_s28 + $0x19d8] sm:$0xff]  ;;  %v7930_v45 = vpack.c.bf16 %v3702_v36, %v3682_v35  ;;  %v8074_v35 = vpack.c.bf16 %v3864_v28, %v3844_v24  ;;  %v7948_v36 = vpack.c.bf16 %v3903_v30, %v3883_v29  ;;  %v4042_v24 = vld [vmem:[%s12141_s28 + $0x2320] sm:$0xff]  ;;  %v4044_v28 = vld [vmem:[%s12141_s28 + $0x2330] sm:$0xff] }
 0x39e   : > { %8041 = vmatprep.subr.bf16.mxu1 %v8040_v49  ;;  %v3742_v49 = vld [vmem:[%s12141_s28 + $0x19c0] sm:$0xff]  ;;  %v8060_v51 = vpack.c.bf16 %v3745_v44, %v3725_v43  ;;  %v3923_v43 = vld [vmem:[%s12141_s28 + $0x1f68] sm:$0xff]  ;;  %v4064_v30 = vld [vmem:[%s12141_s28 + $0x23d0] sm:$0xff] }
 0x39f   : > { %v3943_v44 = vld [vmem:[%s12141_s28 + $0x2008] sm:$0xff] }
 0x3a0   : > { %7915 = vmatpush1.bf16.msra.mxu0 %v7914_v55  ;;  %v3765_v55 = vld [vmem:[%s12141_s28 + $0x1a78] sm:$0xff] }
 0x3a1   : > { %8043 = vmatpush1.bf16.msra.mxu1 %v8042_v56  ;;  %7917 = vmatprep.subr.bf16.mxu0 %v7916_v57  ;;  %v3785_v56 = vld [vmem:[%s12141_s28 + $0x1b18] sm:$0xff]  ;;  %v7934_v57 = vpack.c.bf16 %v3742_v49, %v3722_v48  ;;  %v8078_v48 = vpack.c.bf16 %v3904_v42, %v3884_v39  ;;  %v7952_v49 = vpack.c.bf16 %v3943_v44, %v3923_v43  ;;  %v4082_v39 = vld [vmem:[%s12141_s28 + $0x2460] sm:$0xff]  ;;  %v4084_v42 = vld [vmem:[%s12141_s28 + $0x2470] sm:$0xff] }
 0x3a2   : > { %8045 = vmatprep.subr.bf16.mxu1 %v8044_v61  ;;  %v3782_v61 = vld [vmem:[%s12141_s28 + $0x1b00] sm:$0xff]  ;;  %v8064_v0 = vpack.c.bf16 %v3785_v56, %v3765_v55  ;;  %v3963_v55 = vld [vmem:[%s12141_s28 + $0x20a8] sm:$0xff]  ;;  %v4104_v44 = vld [vmem:[%s12141_s28 + $0x2510] sm:$0xff] }
 0x3a3   : > { %4569 = vmatmul.mubr.f32.vlgmr.msra.gmra.mrb[2].mxu0 %v12279_v26  ;;  %v3983_v56 = vld [vmem:[%s12141_s28 + $0x2148] sm:$0xff] }
 0x3a4   : > { %7919 = vmatpush1.bf16.msra.mxu0 %v7918_v4  ;;  %4711 = vmatmul.mubr.f32.vlgmr.msra.gmra.mrb[2].mxu1 %v12279_v26  ;;  %v3805_v4 = vld [vmem:[%s12141_s28 + $0x1bb8] sm:$0xff] }
 0x3a5   : > { %8047 = vmatpush1.bf16.msra.mxu1 %v8046_v5  ;;  %7921 = vmatprep.subr.bf16.mxu0 %v7920_v6  ;;  %v3825_v5 = vld [vmem:[%s12141_s28 + $0x1c58] sm:$0xff]  ;;  %v7938_v6 = vpack.c.bf16 %v3782_v61, %v3762_v60  ;;  %v8082_v60 = vpack.c.bf16 %v3944_v54, %v3924_v52  ;;  %v7956_v61 = vpack.c.bf16 %v3983_v56, %v3963_v55  ;;  %v4122_v52 = vld [vmem:[%s12141_s28 + $0x25a0] sm:$0xff]  ;;  %v4124_v54 = vld [vmem:[%s12141_s28 + $0x25b0] sm:$0xff] }
 0x3a6   : > { %8049 = vmatprep.subr.bf16.mxu1 %v8048_v10  ;;  %4639 = vmatprep.mubr.f32.mxu0 %v12340_v40  ;;  %v3822_v10 = vld [vmem:[%s12141_s28 + $0x1c40] sm:$0xff]  ;;  %v8068_v13 = vpack.c.bf16 %v3825_v5, %v3805_v4  ;;  %v4003_v4 = vld [vmem:[%s12141_s28 + $0x21e8] sm:$0xff]  ;;  %v4144_v56 = vld [vmem:[%s12141_s28 + $0x2650] sm:$0xff] }
 0x3a7   : > { %4781 = vmatprep.mubr.f32.mxu1 %v12340_v40  ;;  %v4023_v5 = vld [vmem:[%s12141_s28 + $0x2288] sm:$0xff] }
 0x3a8   : > { %7923 = vmatpush1.bf16.msra.mxu0 %v7922_v17  ;;  %v3845_v17 = vld [vmem:[%s12141_s28 + $0x1cf8] sm:$0xff] }
 0x3a9   : > { %8051 = vmatpush1.bf16.msra.mxu1 %v8050_v18  ;;  %7925 = vmatprep.subr.bf16.mxu0 %v7924_v19  ;;  %v3865_v18 = vld [vmem:[%s12141_s28 + $0x1d98] sm:$0xff]  ;;  %v7942_v19 = vpack.c.bf16 %v3822_v10, %v3802_v9  ;;  %v8086_v9 = vpack.c.bf16 %v3984_v3, %v3964_v1  ;;  %v7960_v10 = vpack.c.bf16 %v4023_v5, %v4003_v4  ;;  %v4162_v1 = vld [vmem:[%s12141_s28 + $0x26e0] sm:$0xff]  ;;  %v4164_v3 = vld [vmem:[%s12141_s28 + $0x26f0] sm:$0xff] }
 0x3aa   : > { %8053 = vmatprep.subr.bf16.mxu1 %v8052_v23  ;;  %v3862_v23 = vld [vmem:[%s12141_s28 + $0x1d80] sm:$0xff]  ;;  %v8072_v27 = vpack.c.bf16 %v3865_v18, %v3845_v17  ;;  %v4043_v17 = vld [vmem:[%s12141_s28 + $0x2328] sm:$0xff]  ;;  %v4184_v5 = vld [vmem:[%s12141_s28 + $0x2790] sm:$0xff] }
 0x3ab   : > { %v4063_v18 = vld [vmem:[%s12141_s28 + $0x23c8] sm:$0xff] }
 0x3ac   : > { %7927 = vmatpush1.bf16.msra.mxu0 %v7926_v31  ;;  %v3885_v31 = vld [vmem:[%s12141_s28 + $0x1e38] sm:$0xff] }
 0x3ad   : > { %8055 = vmatpush1.bf16.msra.mxu1 %v8054_v32  ;;  %7929 = vmatprep.subr.bf16.mxu0 %v7928_v34  ;;  %v3905_v32 = vld [vmem:[%s12141_s28 + $0x1ed8] sm:$0xff]  ;;  %v7946_v34 = vpack.c.bf16 %v3862_v23, %v3842_v22  ;;  %v8090_v22 = vpack.c.bf16 %v4024_v16, %v4004_v14  ;;  %v7964_v23 = vpack.c.bf16 %v4063_v18, %v4043_v17  ;;  %v2926_v14 = vld [vmem:[%s12141_s28 + $0x40] sm:$0xff]  ;;  %v2928_v16 = vld [vmem:[%s12141_s28 + $0x50] sm:$0xff] }
 0x3ae   : > { %8057 = vmatprep.subr.bf16.mxu1 %v8056_v38  ;;  %v3902_v38 = vld [vmem:[%s12141_s28 + $0x1ec0] sm:$0xff]  ;;  %v8076_v41 = vpack.c.bf16 %v3905_v32, %v3885_v31  ;;  %v4083_v31 = vld [vmem:[%s12141_s28 + $0x2468] sm:$0xff]  ;;  %v2948_v18 = vld [vmem:[%s12141_s28 + $0xf0] sm:$0xff] }
 0x3af   : > { %v4103_v32 = vld [vmem:[%s12141_s28 + $0x2508] sm:$0xff] }
 0x3b0   : > { %7931 = vmatpush1.bf16.msra.mxu0 %v7930_v45  ;;  %v3925_v45 = vld [vmem:[%s12141_s28 + $0x1f78] sm:$0xff] }
 0x3b1   : > { %8059 = vmatpush1.bf16.msra.mxu1 %v8058_v46  ;;  %7933 = vmatprep.subr.bf16.mxu0 %v7932_v47  ;;  %v3945_v46 = vld [vmem:[%s12141_s28 + $0x2018] sm:$0xff]  ;;  %v7950_v47 = vpack.c.bf16 %v3902_v38, %v3882_v37  ;;  %v8094_v37 = vpack.c.bf16 %v4064_v30, %v4044_v28  ;;  %v7968_v38 = vpack.c.bf16 %v4103_v32, %v4083_v31  ;;  %v2966_v28 = vld [vmem:[%s12141_s28 + $0x180] sm:$0xff]  ;;  %v2968_v30 = vld [vmem:[%s12141_s28 + $0x190] sm:$0xff] }
 0x3b2   : > { %8061 = vmatprep.subr.bf16.mxu1 %v8060_v51  ;;  %v3942_v51 = vld [vmem:[%s12141_s28 + $0x2000] sm:$0xff]  ;;  %v8080_v53 = vpack.c.bf16 %v3945_v46, %v3925_v45  ;;  %v4123_v45 = vld [vmem:[%s12141_s28 + $0x25a8] sm:$0xff]  ;;  %v2988_v32 = vld [vmem:[%s12141_s28 + $0x230] sm:$0xff] }
 0x3b3   : > { %v4143_v46 = vld [vmem:[%s12141_s28 + $0x2648] sm:$0xff] }
 0x3b4   : > { %7935 = vmatpush1.bf16.msra.mxu0 %v7934_v57  ;;  %v3965_v57 = vld [vmem:[%s12141_s28 + $0x20b8] sm:$0xff] }
 0x3b5   : > { %8063 = vmatpush1.bf16.msra.mxu1 %v8062_v58  ;;  %7937 = vmatprep.subr.bf16.mxu0 %v7936_v59  ;;  %v3985_v58 = vld [vmem:[%s12141_s28 + $0x2158] sm:$0xff]  ;;  %v7954_v59 = vpack.c.bf16 %v3942_v51, %v3922_v50  ;;  %v8098_v50 = vpack.c.bf16 %v4104_v44, %v4084_v42  ;;  %v7972_v51 = vpack.c.bf16 %v4143_v46, %v4123_v45  ;;  %v3006_v42 = vld [vmem:[%s12141_s28 + $0x2c0] sm:$0xff]  ;;  %v3008_v44 = vld [vmem:[%s12141_s28 + $0x2d0] sm:$0xff] }
 0x3b6   : > { %8065 = vmatprep.subr.bf16.mxu1 %v8064_v0  ;;  %v3982_v0 = vld [vmem:[%s12141_s28 + $0x2140] sm:$0xff]  ;;  %v8084_v2 = vpack.c.bf16 %v3985_v58, %v3965_v57  ;;  %v4163_v57 = vld [vmem:[%s12141_s28 + $0x26e8] sm:$0xff]  ;;  %v3028_v46 = vld [vmem:[%s12141_s28 + $0x370] sm:$0xff] }
 0x3b7   : > { %v4183_v58 = vld [vmem:[%s12141_s28 + $0x2788] sm:$0xff] }
 0x3b8   : > { %7939 = vmatpush1.bf16.msra.mxu0 %v7938_v6  ;;  %v4005_v6 = vld [vmem:[%s12141_s28 + $0x21f8] sm:$0xff] }
 0x3b9   : > { %8067 = vmatpush1.bf16.msra.mxu1 %v8066_v7  ;;  %7941 = vmatprep.subr.bf16.mxu0 %v7940_v8  ;;  %v4025_v7 = vld [vmem:[%s12141_s28 + $0x2298] sm:$0xff]  ;;  %v7958_v8 = vpack.c.bf16 %v3982_v0, %v3962_v62  ;;  %v8102_v62 = vpack.c.bf16 %v4144_v56, %v4124_v54  ;;  %v7976_v0 = vpack.c.bf16 %v4183_v58, %v4163_v57  ;;  %v3046_v54 = vld [vmem:[%s12141_s28 + $0x400] sm:$0xff]  ;;  %v3048_v56 = vld [vmem:[%s12141_s28 + $0x410] sm:$0xff] }
 0x3ba   : > { %8069 = vmatprep.subr.bf16.mxu1 %v8068_v13  ;;  %v4022_v13 = vld [vmem:[%s12141_s28 + $0x2280] sm:$0xff]  ;;  %v8088_v15 = vpack.c.bf16 %v4025_v7, %v4005_v6  ;;  %v2927_v6 = vld [vmem:[%s12141_s28 + $0x48] sm:$0xff]  ;;  %v3068_v58 = vld [vmem:[%s12141_s28 + $0x4b0] sm:$0xff] }
 0x3bb   : > { %v2947_v7 = vld [vmem:[%s12141_s28 + $0xe8] sm:$0xff] }
 0x3bc   : > { %7943 = vmatpush1.bf16.msra.mxu0 %v7942_v19  ;;  %v4045_v19 = vld [vmem:[%s12141_s28 + $0x2338] sm:$0xff] }
 0x3bd   : > { %8071 = vmatpush1.bf16.msra.mxu1 %v8070_v20  ;;  %7945 = vmatprep.subr.bf16.mxu0 %v7944_v21  ;;  %v4065_v20 = vld [vmem:[%s12141_s28 + $0x23d8] sm:$0xff]  ;;  %v7962_v21 = vpack.c.bf16 %v4022_v13, %v4002_v11  ;;  %v8106_v11 = vpack.c.bf16 %v4184_v5, %v4164_v3  ;;  %v8108_v13 = vpack.c.bf16 %v2947_v7, %v2927_v6  ;;  %v3086_v3 = vld [vmem:[%s12141_s28 + $0x540] sm:$0xff]  ;;  %v3088_v5 = vld [vmem:[%s12141_s28 + $0x550] sm:$0xff] }
 0x3be   : > { %8073 = vmatprep.subr.bf16.mxu1 %v8072_v27  ;;  %v4062_v27 = vld [vmem:[%s12141_s28 + $0x23c0] sm:$0xff]  ;;  %v8092_v29 = vpack.c.bf16 %v4065_v20, %v4045_v19  ;;  %v2967_v19 = vld [vmem:[%s12141_s28 + $0x188] sm:$0xff]  ;;  %v3108_v7 = vld [vmem:[%s12141_s28 + $0x5f0] sm:$0xff] }
 0x3bf   : > { %v2987_v20 = vld [vmem:[%s12141_s28 + $0x228] sm:$0xff] }
 0x3c0   : > { %7947 = vmatpush1.bf16.msra.mxu0 %v7946_v34  ;;  %v4085_v34 = vld [vmem:[%s12141_s28 + $0x2478] sm:$0xff] }
 0x3c1   : > { %8075 = vmatpush1.bf16.msra.mxu1 %v8074_v35  ;;  %7949 = vmatprep.subr.bf16.mxu0 %v7948_v36  ;;  %v4105_v35 = vld [vmem:[%s12141_s28 + $0x2518] sm:$0xff]  ;;  %v7966_v36 = vpack.c.bf16 %v4062_v27, %v4042_v24  ;;  %v8238_v24 = vpack.c.bf16 %v2948_v18, %v2928_v16  ;;  %v8112_v27 = vpack.c.bf16 %v2987_v20, %v2967_v19  ;;  %v3126_v16 = vld [vmem:[%s12141_s28 + $0x680] sm:$0xff]  ;;  %v3128_v18 = vld [vmem:[%s12141_s28 + $0x690] sm:$0xff] }
 0x3c2   : > { %8077 = vmatprep.subr.bf16.mxu1 %v8076_v41  ;;  %v4102_v41 = vld [vmem:[%s12141_s28 + $0x2500] sm:$0xff]  ;;  %v8096_v43 = vpack.c.bf16 %v4105_v35, %v4085_v34  ;;  %v3007_v34 = vld [vmem:[%s12141_s28 + $0x2c8] sm:$0xff]  ;;  %v3148_v20 = vld [vmem:[%s12141_s28 + $0x730] sm:$0xff] }
 0x3c3   : > { %v3027_v35 = vld [vmem:[%s12141_s28 + $0x368] sm:$0xff] }
 0x3c4   : > { %7951 = vmatpush1.bf16.msra.mxu0 %v7950_v47  ;;  %v4125_v47 = vld [vmem:[%s12141_s28 + $0x25b8] sm:$0xff] }
 0x3c5   : > { %8079 = vmatpush1.bf16.msra.mxu1 %v8078_v48  ;;  %7953 = vmatprep.subr.bf16.mxu0 %v7952_v49  ;;  %v4145_v48 = vld [vmem:[%s12141_s28 + $0x2658] sm:$0xff]  ;;  %v7970_v49 = vpack.c.bf16 %v4102_v41, %v4082_v39  ;;  %v8242_v39 = vpack.c.bf16 %v2988_v32, %v2968_v30  ;;  %v8116_v41 = vpack.c.bf16 %v3027_v35, %v3007_v34  ;;  %v3166_v30 = vld [vmem:[%s12141_s28 + $0x7c0] sm:$0xff]  ;;  %v3168_v32 = vld [vmem:[%s12141_s28 + $0x7d0] sm:$0xff] }
 0x3c6   : > { %8081 = vmatprep.subr.bf16.mxu1 %v8080_v53  ;;  %v4142_v53 = vld [vmem:[%s12141_s28 + $0x2640] sm:$0xff]  ;;  %v8100_v55 = vpack.c.bf16 %v4145_v48, %v4125_v47  ;;  %v3047_v47 = vld [vmem:[%s12141_s28 + $0x408] sm:$0xff]  ;;  %v3188_v35 = vld [vmem:[%s12141_s28 + $0x870] sm:$0xff] }
 0x3c7   : > { %v3067_v48 = vld [vmem:[%s12141_s28 + $0x4a8] sm:$0xff] }
 0x3c8   : > { %7955 = vmatpush1.bf16.msra.mxu0 %v7954_v59  ;;  %v4165_v59 = vld [vmem:[%s12141_s28 + $0x26f8] sm:$0xff] }
 0x3c9   : > { %8083 = vmatpush1.bf16.msra.mxu1 %v8082_v60  ;;  %7957 = vmatprep.subr.bf16.mxu0 %v7956_v61  ;;  %v4185_v60 = vld [vmem:[%s12141_s28 + $0x2798] sm:$0xff]  ;;  %v7974_v61 = vpack.c.bf16 %v4142_v53, %v4122_v52  ;;  %v8246_v52 = vpack.c.bf16 %v3028_v46, %v3008_v44  ;;  %v8120_v53 = vpack.c.bf16 %v3067_v48, %v3047_v47  ;;  %v3206_v44 = vld [vmem:[%s12141_s28 + $0x900] sm:$0xff]  ;;  %v3208_v46 = vld [vmem:[%s12141_s28 + $0x910] sm:$0xff] }
 0x3ca   : > { %8085 = vmatprep.subr.bf16.mxu1 %v8084_v2  ;;  %v4182_v2 = vld [vmem:[%s12141_s28 + $0x2780] sm:$0xff]  ;;  %v8104_v4 = vpack.c.bf16 %v4185_v60, %v4165_v59  ;;  %v3087_v59 = vld [vmem:[%s12141_s28 + $0x548] sm:$0xff]  ;;  %v3228_v48 = vld [vmem:[%s12141_s28 + $0x9b0] sm:$0xff] }
 0x3cb   : > { %v3107_v60 = vld [vmem:[%s12141_s28 + $0x5e8] sm:$0xff] }
 0x3cc   : > { %7959 = vmatpush1.bf16.msra.mxu0 %v7958_v8  ;;  %v2929_v8 = vld [vmem:[%s12141_s28 + $0x58] sm:$0xff] }
 0x3cd   : > { %8087 = vmatpush1.bf16.msra.mxu1 %v8086_v9  ;;  %7961 = vmatprep.subr.bf16.mxu0 %v7960_v10  ;;  %v2949_v9 = vld [vmem:[%s12141_s28 + $0xf8] sm:$0xff]  ;;  %v7978_v10 = vpack.c.bf16 %v4182_v2, %v4162_v1  ;;  %v8250_v1 = vpack.c.bf16 %v3068_v58, %v3048_v56  ;;  %v8124_v2 = vpack.c.bf16 %v3107_v60, %v3087_v59  ;;  %v3246_v56 = vld [vmem:[%s12141_s28 + $0xa40] sm:$0xff]  ;;  %v3248_v58 = vld [vmem:[%s12141_s28 + $0xa50] sm:$0xff] }
 0x3ce   : > { %8089 = vmatprep.subr.bf16.mxu1 %v8088_v15  ;;  %v2946_v15 = vld [vmem:[%s12141_s28 + $0xe0] sm:$0xff]  ;;  %v8236_v17 = vpack.c.bf16 %v2949_v9, %v2929_v8  ;;  %v3127_v8 = vld [vmem:[%s12141_s28 + $0x688] sm:$0xff]  ;;  %v3268_v60 = vld [vmem:[%s12141_s28 + $0xaf0] sm:$0xff] }
 0x3cf   : > { %v3147_v9 = vld [vmem:[%s12141_s28 + $0x728] sm:$0xff] }
 0x3d0   : > { %7963 = vmatpush1.bf16.msra.mxu0 %v7962_v21  ;;  %v2969_v21 = vld [vmem:[%s12141_s28 + $0x198] sm:$0xff] }
 0x3d1   : > { %8091 = vmatpush1.bf16.msra.mxu1 %v8090_v22  ;;  %7965 = vmatprep.subr.bf16.mxu0 %v7964_v23  ;;  %v2989_v22 = vld [vmem:[%s12141_s28 + $0x238] sm:$0xff]  ;;  %v8110_v23 = vpack.c.bf16 %v2946_v15, %v2926_v14  ;;  %v8254_v14 = vpack.c.bf16 %v3108_v7, %v3088_v5  ;;  %v8128_v15 = vpack.c.bf16 %v3147_v9, %v3127_v8  ;;  %v3286_v5 = vld [vmem:[%s12141_s28 + $0xb80] sm:$0xff]  ;;  %v3288_v7 = vld [vmem:[%s12141_s28 + $0xb90] sm:$0xff] }
 0x3d2   : > { %8093 = vmatprep.subr.bf16.mxu1 %v8092_v29  ;;  %v2986_v29 = vld [vmem:[%s12141_s28 + $0x220] sm:$0xff]  ;;  %v8240_v31 = vpack.c.bf16 %v2989_v22, %v2969_v21  ;;  %v3167_v21 = vld [vmem:[%s12141_s28 + $0x7c8] sm:$0xff]  ;;  %v3308_v9 = vld [vmem:[%s12141_s28 + $0xc30] sm:$0xff] }
 0x3d3   : > { %v3187_v22 = vld [vmem:[%s12141_s28 + $0x868] sm:$0xff] }
 0x3d4   : > { %7967 = vmatpush1.bf16.msra.mxu0 %v7966_v36  ;;  %v3009_v36 = vld [vmem:[%s12141_s28 + $0x2d8] sm:$0xff] }
 0x3d5   : > { %8095 = vmatpush1.bf16.msra.mxu1 %v8094_v37  ;;  %7969 = vmatprep.subr.bf16.mxu0 %v7968_v38  ;;  %v3029_v37 = vld [vmem:[%s12141_s28 + $0x378] sm:$0xff]  ;;  %v8114_v38 = vpack.c.bf16 %v2986_v29, %v2966_v28  ;;  %v8258_v28 = vpack.c.bf16 %v3148_v20, %v3128_v18  ;;  %v8132_v29 = vpack.c.bf16 %v3187_v22, %v3167_v21  ;;  %v3326_v18 = vld [vmem:[%s12141_s28 + $0xcc0] sm:$0xff]  ;;  %v3328_v20 = vld [vmem:[%s12141_s28 + $0xcd0] sm:$0xff] }
 0x3d6   : > { %8097 = vmatprep.subr.bf16.mxu1 %v8096_v43  ;;  %v3026_v43 = vld [vmem:[%s12141_s28 + $0x360] sm:$0xff]  ;;  %v8244_v45 = vpack.c.bf16 %v3029_v37, %v3009_v36  ;;  %v3207_v36 = vld [vmem:[%s12141_s28 + $0x908] sm:$0xff]  ;;  %v3348_v22 = vld [vmem:[%s12141_s28 + $0xd70] sm:$0xff] }
 0x3d7   : > { %v3227_v37 = vld [vmem:[%s12141_s28 + $0x9a8] sm:$0xff] }
 0x3d8   : > { %7971 = vmatpush1.bf16.msra.mxu0 %v7970_v49  ;;  %v3049_v49 = vld [vmem:[%s12141_s28 + $0x418] sm:$0xff] }
 0x3d9   : > { %8099 = vmatpush1.bf16.msra.mxu1 %v8098_v50  ;;  %7973 = vmatprep.subr.bf16.mxu0 %v7972_v51  ;;  %v3069_v50 = vld [vmem:[%s12141_s28 + $0x4b8] sm:$0xff]  ;;  %v8118_v51 = vpack.c.bf16 %v3026_v43, %v3006_v42  ;;  %v8262_v42 = vpack.c.bf16 %v3188_v35, %v3168_v32  ;;  %v8136_v43 = vpack.c.bf16 %v3227_v37, %v3207_v36  ;;  %v3366_v32 = vld [vmem:[%s12141_s28 + $0xe00] sm:$0xff]  ;;  %v3368_v35 = vld [vmem:[%s12141_s28 + $0xe10] sm:$0xff] }
 0x3da   : > { %8101 = vmatprep.subr.bf16.mxu1 %v8100_v55  ;;  %v3066_v55 = vld [vmem:[%s12141_s28 + $0x4a0] sm:$0xff]  ;;  %v8248_v57 = vpack.c.bf16 %v3069_v50, %v3049_v49  ;;  %v3247_v49 = vld [vmem:[%s12141_s28 + $0xa48] sm:$0xff]  ;;  %v3388_v37 = vld [vmem:[%s12141_s28 + $0xeb0] sm:$0xff] }
 0x3db   : > { %v3267_v50 = vld [vmem:[%s12141_s28 + $0xae8] sm:$0xff] }
 0x3dc   : > { %7975 = vmatpush1.bf16.msra.mxu0 %v7974_v61  ;;  %v3089_v61 = vld [vmem:[%s12141_s28 + $0x558] sm:$0xff] }
 0x3dd   : > { %8103 = vmatpush1.bf16.msra.mxu1 %v8102_v62  ;;  %7977 = vmatprep.subr.bf16.mxu0 %v7976_v0  ;;  %v3109_v62 = vld [vmem:[%s12141_s28 + $0x5f8] sm:$0xff]  ;;  %v8122_v0 = vpack.c.bf16 %v3066_v55, %v3046_v54  ;;  %v8266_v54 = vpack.c.bf16 %v3228_v48, %v3208_v46  ;;  %v8140_v55 = vpack.c.bf16 %v3267_v50, %v3247_v49  ;;  %v3406_v46 = vld [vmem:[%s12141_s28 + $0xf40] sm:$0xff]  ;;  %v3408_v48 = vld [vmem:[%s12141_s28 + $0xf50] sm:$0xff] }
 0x3de   : > { %8105 = vmatprep.subr.bf16.mxu1 %v8104_v4  ;;  %v3106_v4 = vld [vmem:[%s12141_s28 + $0x5e0] sm:$0xff]  ;;  %v8252_v6 = vpack.c.bf16 %v3109_v62, %v3089_v61  ;;  %v3287_v61 = vld [vmem:[%s12141_s28 + $0xb88] sm:$0xff]  ;;  %v3428_v50 = vld [vmem:[%s12141_s28 + $0xff0] sm:$0xff] }
 0x3df   : > { %v3307_v62 = vld [vmem:[%s12141_s28 + $0xc28] sm:$0xff] }
 0x3e0   : > { %7979 = vmatpush1.bf16.msra.mxu0 %v7978_v10  ;;  %v3129_v10 = vld [vmem:[%s12141_s28 + $0x698] sm:$0xff] }
 0x3e1   : > { %8107 = vmatpush1.bf16.msra.mxu1 %v8106_v11  ;;  %8109 = vmatprep.subr.bf16.mxu0 %v8108_v13  ;;  %v3149_v11 = vld [vmem:[%s12141_s28 + $0x738] sm:$0xff]  ;;  %v8126_v13 = vpack.c.bf16 %v3106_v4, %v3086_v3  ;;  %v8270_v3 = vpack.c.bf16 %v3268_v60, %v3248_v58  ;;  %v8144_v4 = vpack.c.bf16 %v3307_v62, %v3287_v61  ;;  %v3446_v58 = vld [vmem:[%s12141_s28 + $0x1080] sm:$0xff]  ;;  %v3448_v60 = vld [vmem:[%s12141_s28 + $0x1090] sm:$0xff] }
 0x3e2   : > { %8237 = vmatprep.subr.bf16.mxu1 %v8236_v17  ;;  %v3146_v17 = vld [vmem:[%s12141_s28 + $0x720] sm:$0xff]  ;;  %v8256_v19 = vpack.c.bf16 %v3149_v11, %v3129_v10  ;;  %v3327_v10 = vld [vmem:[%s12141_s28 + $0xcc8] sm:$0xff]  ;;  %v3468_v62 = vld [vmem:[%s12141_s28 + $0x1130] sm:$0xff] }
 0x3e3   : > { %4640 = vmatmul.mubr.f32.vlgmr.msra.gmra.mrb[2].mxu0 %v12328_v25  ;;  %v3347_v11 = vld [vmem:[%s12141_s28 + $0xd68] sm:$0xff] }
 0x3e4   : > { %4782 = vmatmul.mubr.f32.vlgmr.msra.gmra.mrb[2].mxu1 %v12328_v25  ;;  %8111 = vmatpush1.bf16.msra.mxu0 %v8110_v23  ;;  %v3169_v23 = vld [vmem:[%s12141_s28 + $0x7d8] sm:$0xff] }
 0x3e5   : > { %8239 = vmatpush1.bf16.msra.mxu1 %v8238_v24  ;;  %8113 = vmatprep.subr.bf16.mxu0 %v8112_v27  ;;  %v3189_v24 = vld [vmem:[%s12141_s28 + $0x878] sm:$0xff]  ;;  %v8130_v27 = vpack.c.bf16 %v3146_v17, %v3126_v16  ;;  %v8274_v16 = vpack.c.bf16 %v3308_v9, %v3288_v7  ;;  %v8148_v17 = vpack.c.bf16 %v3347_v11, %v3327_v10  ;;  %v3486_v7 = vld [vmem:[%s12141_s28 + $0x11c0] sm:$0xff]  ;;  %v3488_v9 = vld [vmem:[%s12141_s28 + $0x11d0] sm:$0xff] }
 0x3e6   : > { %8241 = vmatprep.subr.bf16.mxu1 %v8240_v31  ;;  %4852 = vmatprep.mubr.f32.mxu0 %v12286_v33  ;;  %v3186_v31 = vld [vmem:[%s12141_s28 + $0x860] sm:$0xff]  ;;  %v8260_v34 = vpack.c.bf16 %v3189_v24, %v3169_v23  ;;  %v3367_v23 = vld [vmem:[%s12141_s28 + $0xe08] sm:$0xff]  ;;  %v3508_v11 = vld [vmem:[%s12141_s28 + $0x1270] sm:$0xff] }
 0x3e7   : > { %4994 = vmatprep.mubr.f32.mxu1 %v12286_v33  ;;  %v3387_v24 = vld [vmem:[%s12141_s28 + $0xea8] sm:$0xff] }
 0x3e8   : > { %8115 = vmatpush1.bf16.msra.mxu0 %v8114_v38  ;;  %v3209_v38 = vld [vmem:[%s12141_s28 + $0x918] sm:$0xff] }
 0x3e9   : > { %8243 = vmatpush1.bf16.msra.mxu1 %v8242_v39  ;;  %8117 = vmatprep.subr.bf16.mxu0 %v8116_v41  ;;  %v3229_v39 = vld [vmem:[%s12141_s28 + $0x9b8] sm:$0xff]  ;;  %v8134_v41 = vpack.c.bf16 %v3186_v31, %v3166_v30  ;;  %v8278_v30 = vpack.c.bf16 %v3348_v22, %v3328_v20  ;;  %v8152_v31 = vpack.c.bf16 %v3387_v24, %v3367_v23  ;;  %v3526_v20 = vld [vmem:[%s12141_s28 + $0x1300] sm:$0xff]  ;;  %v3528_v22 = vld [vmem:[%s12141_s28 + $0x1310] sm:$0xff] }
 0x3ea   : > { %8245 = vmatprep.subr.bf16.mxu1 %v8244_v45  ;;  %v3226_v45 = vld [vmem:[%s12141_s28 + $0x9a0] sm:$0xff]  ;;  %v8264_v47 = vpack.c.bf16 %v3229_v39, %v3209_v38  ;;  %v3407_v38 = vld [vmem:[%s12141_s28 + $0xf48] sm:$0xff]  ;;  %v3548_v24 = vld [vmem:[%s12141_s28 + $0x13b0] sm:$0xff] }
 0x3eb   : > { %v3427_v39 = vld [vmem:[%s12141_s28 + $0xfe8] sm:$0xff] }
 0x3ec   : > { %8119 = vmatpush1.bf16.msra.mxu0 %v8118_v51  ;;  %v3249_v51 = vld [vmem:[%s12141_s28 + $0xa58] sm:$0xff] }
 0x3ed   : > { %8247 = vmatpush1.bf16.msra.mxu1 %v8246_v52  ;;  %8121 = vmatprep.subr.bf16.mxu0 %v8120_v53  ;;  %v3269_v52 = vld [vmem:[%s12141_s28 + $0xaf8] sm:$0xff]  ;;  %v8138_v53 = vpack.c.bf16 %v3226_v45, %v3206_v44  ;;  %v8282_v44 = vpack.c.bf16 %v3388_v37, %v3368_v35  ;;  %v8156_v45 = vpack.c.bf16 %v3427_v39, %v3407_v38  ;;  %v3566_v35 = vld [vmem:[%s12141_s28 + $0x1440] sm:$0xff]  ;;  %v3568_v37 = vld [vmem:[%s12141_s28 + $0x1450] sm:$0xff] }
 0x3ee   : > { %8249 = vmatprep.subr.bf16.mxu1 %v8248_v57  ;;  %v3266_v57 = vld [vmem:[%s12141_s28 + $0xae0] sm:$0xff]  ;;  %v8268_v59 = vpack.c.bf16 %v3269_v52, %v3249_v51  ;;  %v3447_v51 = vld [vmem:[%s12141_s28 + $0x1088] sm:$0xff]  ;;  %v3588_v39 = vld [vmem:[%s12141_s28 + $0x14f0] sm:$0xff] }
 0x3ef   : > { %v3467_v52 = vld [vmem:[%s12141_s28 + $0x1128] sm:$0xff] }
 0x3f0   : > { %8123 = vmatpush1.bf16.msra.mxu0 %v8122_v0  ;;  %v3289_v0 = vld [vmem:[%s12141_s28 + $0xb98] sm:$0xff] }
 0x3f1   : > { %8251 = vmatpush1.bf16.msra.mxu1 %v8250_v1  ;;  %8125 = vmatprep.subr.bf16.mxu0 %v8124_v2  ;;  %v3309_v1 = vld [vmem:[%s12141_s28 + $0xc38] sm:$0xff]  ;;  %v8142_v2 = vpack.c.bf16 %v3266_v57, %v3246_v56  ;;  %v8286_v56 = vpack.c.bf16 %v3428_v50, %v3408_v48  ;;  %v8160_v57 = vpack.c.bf16 %v3467_v52, %v3447_v51  ;;  %v3606_v48 = vld [vmem:[%s12141_s28 + $0x1580] sm:$0xff]  ;;  %v3608_v50 = vld [vmem:[%s12141_s28 + $0x1590] sm:$0xff] }
 0x3f2   : > { %8253 = vmatprep.subr.bf16.mxu1 %v8252_v6  ;;  %v3306_v6 = vld [vmem:[%s12141_s28 + $0xc20] sm:$0xff]  ;;  %v8272_v8 = vpack.c.bf16 %v3309_v1, %v3289_v0  ;;  %v3487_v0 = vld [vmem:[%s12141_s28 + $0x11c8] sm:$0xff]  ;;  %v3628_v52 = vld [vmem:[%s12141_s28 + $0x1630] sm:$0xff] }
 0x3f3   : > { %v3507_v1 = vld [vmem:[%s12141_s28 + $0x1268] sm:$0xff] }
 0x3f4   : > { %8127 = vmatpush1.bf16.msra.mxu0 %v8126_v13  ;;  %v3329_v13 = vld [vmem:[%s12141_s28 + $0xcd8] sm:$0xff] }
 0x3f5   : > { %8255 = vmatpush1.bf16.msra.mxu1 %v8254_v14  ;;  %8129 = vmatprep.subr.bf16.mxu0 %v8128_v15  ;;  %v3349_v14 = vld [vmem:[%s12141_s28 + $0xd78] sm:$0xff]  ;;  %v8146_v15 = vpack.c.bf16 %v3306_v6, %v3286_v5  ;;  %v8290_v5 = vpack.c.bf16 %v3468_v62, %v3448_v60  ;;  %v8164_v6 = vpack.c.bf16 %v3507_v1, %v3487_v0  ;;  %v3646_v60 = vld [vmem:[%s12141_s28 + $0x16c0] sm:$0xff]  ;;  %v3648_v62 = vld [vmem:[%s12141_s28 + $0x16d0] sm:$0xff] }
 0x3f6   : > { %8257 = vmatprep.subr.bf16.mxu1 %v8256_v19  ;;  %v3346_v19 = vld [vmem:[%s12141_s28 + $0xd60] sm:$0xff]  ;;  %v8276_v21 = vpack.c.bf16 %v3349_v14, %v3329_v13  ;;  %v3527_v13 = vld [vmem:[%s12141_s28 + $0x1308] sm:$0xff]  ;;  %v3668_v1 = vld [vmem:[%s12141_s28 + $0x1770] sm:$0xff] }
 0x3f7   : > { %v3547_v14 = vld [vmem:[%s12141_s28 + $0x13a8] sm:$0xff] }
 0x3f8   : > { %8131 = vmatpush1.bf16.msra.mxu0 %v8130_v27  ;;  %v3369_v27 = vld [vmem:[%s12141_s28 + $0xe18] sm:$0xff] }
 0x3f9   : > { %8259 = vmatpush1.bf16.msra.mxu1 %v8258_v28  ;;  %8133 = vmatprep.subr.bf16.mxu0 %v8132_v29  ;;  %v3389_v28 = vld [vmem:[%s12141_s28 + $0xeb8] sm:$0xff]  ;;  %v8150_v29 = vpack.c.bf16 %v3346_v19, %v3326_v18  ;;  %v8294_v18 = vpack.c.bf16 %v3508_v11, %v3488_v9  ;;  %v8168_v19 = vpack.c.bf16 %v3547_v14, %v3527_v13  ;;  %v3686_v9 = vld [vmem:[%s12141_s28 + $0x1800] sm:$0xff]  ;;  %v3688_v11 = vld [vmem:[%s12141_s28 + $0x1810] sm:$0xff] }
 0x3fa   : > { %8261 = vmatprep.subr.bf16.mxu1 %v8260_v34  ;;  %v3386_v34 = vld [vmem:[%s12141_s28 + $0xea0] sm:$0xff]  ;;  %v8280_v36 = vpack.c.bf16 %v3389_v28, %v3369_v27  ;;  %v3567_v27 = vld [vmem:[%s12141_s28 + $0x1448] sm:$0xff]  ;;  %v3708_v14 = vld [vmem:[%s12141_s28 + $0x18b0] sm:$0xff] }
 0x3fb   : > { %v3587_v28 = vld [vmem:[%s12141_s28 + $0x14e8] sm:$0xff] }
 0x3fc   : > { %8135 = vmatpush1.bf16.msra.mxu0 %v8134_v41  ;;  %v3409_v41 = vld [vmem:[%s12141_s28 + $0xf58] sm:$0xff] }
 0x3fd   : > { %8263 = vmatpush1.bf16.msra.mxu1 %v8262_v42  ;;  %8137 = vmatprep.subr.bf16.mxu0 %v8136_v43  ;;  %v3429_v42 = vld [vmem:[%s12141_s28 + $0xff8] sm:$0xff]  ;;  %v8154_v43 = vpack.c.bf16 %v3386_v34, %v3366_v32  ;;  %v8298_v32 = vpack.c.bf16 %v3548_v24, %v3528_v22  ;;  %v8172_v34 = vpack.c.bf16 %v3587_v28, %v3567_v27  ;;  %v3726_v22 = vld [vmem:[%s12141_s28 + $0x1940] sm:$0xff]  ;;  %v3728_v24 = vld [vmem:[%s12141_s28 + $0x1950] sm:$0xff] }
 0x3fe   : > { %8265 = vmatprep.subr.bf16.mxu1 %v8264_v47  ;;  %v3426_v47 = vld [vmem:[%s12141_s28 + $0xfe0] sm:$0xff]  ;;  %v8284_v49 = vpack.c.bf16 %v3429_v42, %v3409_v41  ;;  %v3607_v41 = vld [vmem:[%s12141_s28 + $0x1588] sm:$0xff]  ;;  %v3748_v28 = vld [vmem:[%s12141_s28 + $0x19f0] sm:$0xff] }
 0x3ff   : > { %v3627_v42 = vld [vmem:[%s12141_s28 + $0x1628] sm:$0xff] }
 0x400   : > { %8139 = vmatpush1.bf16.msra.mxu0 %v8138_v53  ;;  %v3449_v53 = vld [vmem:[%s12141_s28 + $0x1098] sm:$0xff] }
 0x401   : > { %8267 = vmatpush1.bf16.msra.mxu1 %v8266_v54  ;;  %8141 = vmatprep.subr.bf16.mxu0 %v8140_v55  ;;  %v3469_v54 = vld [vmem:[%s12141_s28 + $0x1138] sm:$0xff]  ;;  %v8158_v55 = vpack.c.bf16 %v3426_v47, %v3406_v46  ;;  %v8302_v46 = vpack.c.bf16 %v3588_v39, %v3568_v37  ;;  %v8176_v47 = vpack.c.bf16 %v3627_v42, %v3607_v41  ;;  %v3766_v37 = vld [vmem:[%s12141_s28 + $0x1a80] sm:$0xff]  ;;  %v3768_v39 = vld [vmem:[%s12141_s28 + $0x1a90] sm:$0xff] }
 0x402   : > { %8269 = vmatprep.subr.bf16.mxu1 %v8268_v59  ;;  %v3466_v59 = vld [vmem:[%s12141_s28 + $0x1120] sm:$0xff]  ;;  %v8288_v61 = vpack.c.bf16 %v3469_v54, %v3449_v53  ;;  %v3647_v53 = vld [vmem:[%s12141_s28 + $0x16c8] sm:$0xff]  ;;  %v3788_v42 = vld [vmem:[%s12141_s28 + $0x1b30] sm:$0xff] }
 0x403   : > { %v3667_v54 = vld [vmem:[%s12141_s28 + $0x1768] sm:$0xff] }
 0x404   : > { %8143 = vmatpush1.bf16.msra.mxu0 %v8142_v2  ;;  %v3489_v2 = vld [vmem:[%s12141_s28 + $0x11d8] sm:$0xff] }
 0x405   : > { %8271 = vmatpush1.bf16.msra.mxu1 %v8270_v3  ;;  %8145 = vmatprep.subr.bf16.mxu0 %v8144_v4  ;;  %v3509_v3 = vld [vmem:[%s12141_s28 + $0x1278] sm:$0xff]  ;;  %v8162_v4 = vpack.c.bf16 %v3466_v59, %v3446_v58  ;;  %v8306_v58 = vpack.c.bf16 %v3628_v52, %v3608_v50  ;;  %v8180_v59 = vpack.c.bf16 %v3667_v54, %v3647_v53  ;;  %v3806_v50 = vld [vmem:[%s12141_s28 + $0x1bc0] sm:$0xff]  ;;  %v3808_v52 = vld [vmem:[%s12141_s28 + $0x1bd0] sm:$0xff] }
 0x406   : > { %8273 = vmatprep.subr.bf16.mxu1 %v8272_v8  ;;  %v3506_v8 = vld [vmem:[%s12141_s28 + $0x1260] sm:$0xff]  ;;  %v8292_v10 = vpack.c.bf16 %v3509_v3, %v3489_v2  ;;  %v3687_v2 = vld [vmem:[%s12141_s28 + $0x1808] sm:$0xff] }
 0x407   : > { %v3707_v3 = vld [vmem:[%s12141_s28 + $0x18a8] sm:$0xff] }
 0x408   : > { %8147 = vmatpush1.bf16.msra.mxu0 %v8146_v15  ;;  %v3529_v15 = vld [vmem:[%s12141_s28 + $0x1318] sm:$0xff] }
 0x409   : > { %8275 = vmatpush1.bf16.msra.mxu1 %v8274_v16  ;;  %8149 = vmatprep.subr.bf16.mxu0 %v8148_v17  ;;  %v3549_v16 = vld [vmem:[%s12141_s28 + $0x13b8] sm:$0xff]  ;;  %v8166_v17 = vpack.c.bf16 %v3506_v8, %v3486_v7  ;;  %v8310_v7 = vpack.c.bf16 %v3668_v1, %v3648_v62  ;;  %v8184_v8 = vpack.c.bf16 %v3707_v3, %v3687_v2 }
 0x40a   : > { %8277 = vmatprep.subr.bf16.mxu1 %v8276_v21  ;;  %v3546_v21 = vld [vmem:[%s12141_s28 + $0x13a0] sm:$0xff]  ;;  %v8296_v23 = vpack.c.bf16 %v3549_v16, %v3529_v15  ;;  %v3727_v15 = vld [vmem:[%s12141_s28 + $0x1948] sm:$0xff] }
 0x40b   : > { %v3747_v16 = vld [vmem:[%s12141_s28 + $0x19e8] sm:$0xff] }
 0x40c   : > { %8151 = vmatpush1.bf16.msra.mxu0 %v8150_v29  ;;  %v3569_v29 = vld [vmem:[%s12141_s28 + $0x1458] sm:$0xff] }
 0x40d   : > { %8279 = vmatpush1.bf16.msra.mxu1 %v8278_v30  ;;  %8153 = vmatprep.subr.bf16.mxu0 %v8152_v31  ;;  %v3589_v30 = vld [vmem:[%s12141_s28 + $0x14f8] sm:$0xff]  ;;  %v8170_v31 = vpack.c.bf16 %v3546_v21, %v3526_v20  ;;  %v8314_v20 = vpack.c.bf16 %v3708_v14, %v3688_v11  ;;  %v8188_v21 = vpack.c.bf16 %v3747_v16, %v3727_v15  ;;  %v3887_v11 = vld [vmem:[%s12141_s28 + $0x1e48] sm:$0xff] }
 0x40e   : > { %8281 = vmatprep.subr.bf16.mxu1 %v8280_v36  ;;  %v3586_v36 = vld [vmem:[%s12141_s28 + $0x14e0] sm:$0xff]  ;;  %v8300_v38 = vpack.c.bf16 %v3589_v30, %v3569_v29  ;;  %v3767_v29 = vld [vmem:[%s12141_s28 + $0x1a88] sm:$0xff]  ;;  %v3889_v15 = vld [vmem:[%s12141_s28 + $0x1e58] sm:$0xff] }
 0x40f   : > { %v3787_v30 = vld [vmem:[%s12141_s28 + $0x1b28] sm:$0xff]  ;;  %v3909_v16 = vld [vmem:[%s12141_s28 + $0x1ef8] sm:$0xff] }
 0x410   : > { %8155 = vmatpush1.bf16.msra.mxu0 %v8154_v43  ;;  %v3609_v43 = vld [vmem:[%s12141_s28 + $0x1598] sm:$0xff] }
 0x411   : > { %8283 = vmatpush1.bf16.msra.mxu1 %v8282_v44  ;;  %8157 = vmatprep.subr.bf16.mxu0 %v8156_v45  ;;  %v3629_v44 = vld [vmem:[%s12141_s28 + $0x1638] sm:$0xff]  ;;  %v8174_v45 = vpack.c.bf16 %v3586_v36, %v3566_v35  ;;  %v8318_v35 = vpack.c.bf16 %v3748_v28, %v3728_v24  ;;  %v8192_v36 = vpack.c.bf16 %v3787_v30, %v3767_v29  ;;  %v3888_v24 = vld [vmem:[%s12141_s28 + $0x1e50] sm:$0xff]  ;;  %v3927_v29 = vld [vmem:[%s12141_s28 + $0x1f88] sm:$0xff] }
 0x412   : > { %8285 = vmatprep.subr.bf16.mxu1 %v8284_v49  ;;  %v3626_v49 = vld [vmem:[%s12141_s28 + $0x1620] sm:$0xff]  ;;  %v8304_v51 = vpack.c.bf16 %v3629_v44, %v3609_v43  ;;  %v3807_v43 = vld [vmem:[%s12141_s28 + $0x1bc8] sm:$0xff]  ;;  %v3908_v28 = vld [vmem:[%s12141_s28 + $0x1ef0] sm:$0xff] }
 0x413   : > { %v3827_v44 = vld [vmem:[%s12141_s28 + $0x1c68] sm:$0xff] }
 0x414   : > { %8159 = vmatpush1.bf16.msra.mxu0 %v8158_v55  ;;  %v3649_v55 = vld [vmem:[%s12141_s28 + $0x16d8] sm:$0xff]  ;;  %v3947_v30 = vld [vmem:[%s12141_s28 + $0x2028] sm:$0xff] }
 0x415   : > { %8287 = vmatpush1.bf16.msra.mxu1 %v8286_v56  ;;  %8161 = vmatprep.subr.bf16.mxu0 %v8160_v57  ;;  %v3669_v56 = vld [vmem:[%s12141_s28 + $0x1778] sm:$0xff]  ;;  %v8178_v57 = vpack.c.bf16 %v3626_v49, %v3606_v48  ;;  %v8322_v48 = vpack.c.bf16 %v3788_v42, %v3768_v39  ;;  %v8196_v49 = vpack.c.bf16 %v3827_v44, %v3807_v43  ;;  %v3946_v39 = vld [vmem:[%s12141_s28 + $0x2020] sm:$0xff]  ;;  %v3948_v43 = vld [vmem:[%s12141_s28 + $0x2030] sm:$0xff] }
 0x416   : > { %8289 = vmatprep.subr.bf16.mxu1 %v8288_v61  ;;  %v3666_v61 = vld [vmem:[%s12141_s28 + $0x1760] sm:$0xff]  ;;  %v8308_v0 = vpack.c.bf16 %v3669_v56, %v3649_v55  ;;  %v3828_v55 = vld [vmem:[%s12141_s28 + $0x1c70] sm:$0xff]  ;;  %v3847_v56 = vld [vmem:[%s12141_s28 + $0x1d08] sm:$0xff] }
 0x417   : > { %v8326_v3 = vpack.c.bf16 %v3828_v55, %v3808_v52  ;;  %v3967_v44 = vld [vmem:[%s12141_s28 + $0x20c8] sm:$0xff]  ;;  %v3986_v52 = vld [vmem:[%s12141_s28 + $0x2160] sm:$0xff]  ;;  %v3988_v55 = vld [vmem:[%s12141_s28 + $0x2170] sm:$0xff] }
 0x418   : > { %8163 = vmatpush1.bf16.msra.mxu0 %v8162_v4  ;;  %v3689_v4 = vld [vmem:[%s12141_s28 + $0x1818] sm:$0xff] }
 0x419   : > { %8291 = vmatpush1.bf16.msra.mxu1 %v8290_v5  ;;  %8165 = vmatprep.subr.bf16.mxu0 %v8164_v6  ;;  %v3709_v5 = vld [vmem:[%s12141_s28 + $0x18b8] sm:$0xff]  ;;  %v8182_v6 = vpack.c.bf16 %v3666_v61, %v3646_v60 }
 0x41a   : > { %8293 = vmatprep.subr.bf16.mxu1 %v8292_v10  ;;  %v3706_v10 = vld [vmem:[%s12141_s28 + $0x18a0] sm:$0xff]  ;;  %v8312_v13 = vpack.c.bf16 %v3709_v5, %v3689_v4  ;;  %v3849_v60 = vld [vmem:[%s12141_s28 + $0x1d18] sm:$0xff] }
 0x41b   : > { %v3869_v61 = vld [vmem:[%s12141_s28 + $0x1db8] sm:$0xff]  ;;  %v3846_v5 = vld [vmem:[%s12141_s28 + $0x1d00] sm:$0xff] }
 0x41c   : > { %8167 = vmatpush1.bf16.msra.mxu0 %v8166_v17  ;;  %v3729_v17 = vld [vmem:[%s12141_s28 + $0x1958] sm:$0xff] }
 0x41d   : > { %8295 = vmatpush1.bf16.msra.mxu1 %v8294_v18  ;;  %8169 = vmatprep.subr.bf16.mxu0 %v8168_v19  ;;  %v3749_v18 = vld [vmem:[%s12141_s28 + $0x19f8] sm:$0xff]  ;;  %v8186_v19 = vpack.c.bf16 %v3706_v10, %v3686_v9  ;;  %v8328_v9 = vpack.c.bf16 %v3869_v61, %v3849_v60  ;;  %v3868_v10 = vld [vmem:[%s12141_s28 + $0x1db0] sm:$0xff] }
 0x41e   : > { %8297 = vmatprep.subr.bf16.mxu1 %v8296_v23  ;;  %v3746_v23 = vld [vmem:[%s12141_s28 + $0x19e0] sm:$0xff]  ;;  %v8316_v27 = vpack.c.bf16 %v3749_v18, %v3729_v17  ;;  %v2912_v17 = vld [vmem:[#allocation2] sm:$0xff] }
 0x420   : > { %8171 = vmatpush1.bf16.msra.mxu0 %v8170_v31  ;;  %v3769_v31 = vld [vmem:[%s12141_s28 + $0x1a98] sm:$0xff] }
 0x421   : > { %8299 = vmatpush1.bf16.msra.mxu1 %v8298_v32  ;;  %8173 = vmatprep.subr.bf16.mxu0 %v8172_v34  ;;  %v3789_v32 = vld [vmem:[%s12141_s28 + $0x1b38] sm:$0xff]  ;;  %v8190_v34 = vpack.c.bf16 %v3746_v23, %v3726_v22  ;;  %v3886_v22 = vld [vmem:[%s12141_s28 + $0x1e40] sm:$0xff] }
 0x422   : > { %8301 = vmatprep.subr.bf16.mxu1 %v8300_v38  ;;  %v3786_v38 = vld [vmem:[%s12141_s28 + $0x1b20] sm:$0xff]  ;;  %v8320_v41 = vpack.c.bf16 %v3789_v32, %v3769_v31  ;;  %v3929_v32 = vld [vmem:[%s12141_s28 + $0x1f98] sm:$0xff] }
 0x423   : > { %4853 = vmatmul.mubr.f32.vlgmr.msra.gmra.mrb[4].mxu0 %v12279_v26  ;;  %v3906_v23 = vld [vmem:[%s12141_s28 + $0x1ee0] sm:$0xff] }
 0x424   : > { %8175 = vmatpush1.bf16.msra.mxu0 %v8174_v45  ;;  %4995 = vmatmul.mubr.f32.vlgmr.msra.gmra.mrb[4].mxu1 %v12279_v26  ;;  %v3809_v45 = vld [vmem:[%s12141_s28 + $0x1bd8] sm:$0xff] }
 0x425   : > { %8303 = vmatpush1.bf16.msra.mxu1 %v8302_v46  ;;  %8177 = vmatprep.subr.bf16.mxu0 %v8176_v47  ;;  %v3829_v46 = vld [vmem:[%s12141_s28 + $0x1c78] sm:$0xff]  ;;  %v8194_v47 = vpack.c.bf16 %v3786_v38, %v3766_v37  ;;  %v8208_v37 = vpack.c.bf16 %v3947_v30, %v3927_v29  ;;  %v3926_v38 = vld [vmem:[%s12141_s28 + $0x1f80] sm:$0xff]  ;;  %v4088_v29 = vld [vmem:[%s12141_s28 + $0x2490] sm:$0xff] }
 0x426   : > { %8305 = vmatprep.subr.bf16.mxu1 %v8304_v51  ;;  %4923 = vmatprep.mubr.f32.mxu0 %v12340_v40  ;;  %v3826_v51 = vld [vmem:[%s12141_s28 + $0x1c60] sm:$0xff]  ;;  %v8324_v54 = vpack.c.bf16 %v3829_v46, %v3809_v45  ;;  %v3987_v45 = vld [vmem:[%s12141_s28 + $0x2168] sm:$0xff]  ;;  %v3969_v46 = vld [vmem:[%s12141_s28 + $0x20d8] sm:$0xff] }
 0x427   : > { %5065 = vmatprep.mubr.f32.mxu1 %v12340_v40  ;;  %v8198_v1 = vpack.c.bf16 %v3826_v51, %v3806_v50  ;;  %v8212_v50 = vpack.c.bf16 %v3987_v45, %v3967_v44  ;;  %v3966_v51 = vld [vmem:[%s12141_s28 + $0x20c0] sm:$0xff]  ;;  %v4148_v45 = vld [vmem:[%s12141_s28 + $0x2670] sm:$0xff] }
 0x428   : > { %8179 = vmatpush1.bf16.msra.mxu0 %v8178_v57  ;;  %v3867_v57 = vld [vmem:[%s12141_s28 + $0x1da8] sm:$0xff]  ;;  %v8214_v60 = vpack.c.bf16 %v3986_v52, %v3966_v51 }
 0x429   : > { %8307 = vmatpush1.bf16.msra.mxu1 %v8306_v58  ;;  %8181 = vmatprep.subr.bf16.mxu0 %v8180_v59  ;;  %v8200_v4 = vpack.c.bf16 %v3867_v57, %v3847_v56  ;;  %v4007_v56 = vld [vmem:[%s12141_s28 + $0x2208] sm:$0xff] }
 0x42a   : > { %8309 = vmatprep.subr.bf16.mxu1 %v8308_v0  ;;  %v4027_v57 = vld [vmem:[%s12141_s28 + $0x22a8] sm:$0xff] }
 0x42c   : > { %8183 = vmatpush1.bf16.msra.mxu0 %v8182_v6  ;;  %v3866_v6 = vld [vmem:[%s12141_s28 + $0x1da0] sm:$0xff] }
 0x42d   : > { %8311 = vmatpush1.bf16.msra.mxu1 %v8310_v7  ;;  %8185 = vmatprep.subr.bf16.mxu0 %v8184_v8  ;;  %v3848_v7 = vld [vmem:[%s12141_s28 + $0x1d10] sm:$0xff]  ;;  %v8202_v18 = vpack.c.bf16 %v3866_v6, %v3846_v5  ;;  %v4047_v5 = vld [vmem:[%s12141_s28 + $0x2348] sm:$0xff] }
 0x42e   : > { %8313 = vmatprep.subr.bf16.mxu1 %v8312_v13  ;;  %v3907_v13 = vld [vmem:[%s12141_s28 + $0x1ee8] sm:$0xff] }
 0x42f   : > { %v4067_v6 = vld [vmem:[%s12141_s28 + $0x23e8] sm:$0xff] }
 0x430   : > { %8187 = vmatpush1.bf16.msra.mxu0 %v8186_v19 }
 0x431   : > { %8315 = vmatpush1.bf16.msra.mxu1 %v8314_v20  ;;  %8189 = vmatprep.subr.bf16.mxu0 %v8188_v21  ;;  %v8330_v20 = vpack.c.bf16 %v3868_v10, %v3848_v7  ;;  %v8204_v21 = vpack.c.bf16 %v3907_v13, %v3887_v11  ;;  %v4049_v7 = vld [vmem:[%s12141_s28 + $0x2358] sm:$0xff]  ;;  %v8220_v11 = vpack.c.bf16 %v4067_v6, %v4047_v5  ;;  %v4046_v13 = vld [vmem:[%s12141_s28 + $0x2340] sm:$0xff]  ;;  %v2952_v6 = vld [vmem:[%s12141_s28 + $0x110] sm:$0xff] }
 0x432   : > { %8317 = vmatprep.subr.bf16.mxu1 %v8316_v27  ;;  %v8332_v27 = vpack.c.bf16 %v3909_v16, %v3889_v15  ;;  %v4048_v15 = vld [vmem:[%s12141_s28 + $0x2350] sm:$0xff] }
 0x434   : > { %8191 = vmatpush1.bf16.msra.mxu0 %v8190_v34  ;;  %v3949_v34 = vld [vmem:[%s12141_s28 + $0x2038] sm:$0xff] }
 0x435   : > { %8319 = vmatpush1.bf16.msra.mxu1 %v8318_v35  ;;  %8193 = vmatprep.subr.bf16.mxu0 %v8192_v36  ;;  %v8206_v35 = vpack.c.bf16 %v3906_v23, %v3886_v22  ;;  %v8334_v36 = vpack.c.bf16 %v3908_v28, %v3888_v24  ;;  %v8336_v42 = vpack.c.bf16 %v3949_v34, %v3929_v32  ;;  %v4106_v28 = vld [vmem:[%s12141_s28 + $0x2520] sm:$0xff]  ;;  %v4127_v32 = vld [vmem:[%s12141_s28 + $0x25c8] sm:$0xff] }
 0x436   : > { %v4357_v53 = vpop.f32.mrb[0].mxu0  ;;  %8321 = vmatprep.subr.bf16.mxu1 %v8320_v41  ;;  %v3928_v41 = vld [vmem:[%s12141_s28 + $0x1f90] sm:$0xff]  ;;  %v4147_v34 = vld [vmem:[%s12141_s28 + $0x2668] sm:$0xff] }
 0x437   : > { %v4499_v58 = vpop.f32.mrb[0].mxu1  ;;  %v4359_v59 = vpop.f32.mrb[1].mxu0 }
 0x438   : > { %v5660_v62 = vcombine.low %v4357_v53, %v4359_v59  ;;  %v4501_v0 = vpop.f32.mrb[1].mxu1  ;;  %8195 = vmatpush1.bf16.msra.mxu0 %v8194_v47  ;;  %v3989_v47 = vld [vmem:[%s12141_s28 + $0x2178] sm:$0xff]  ;;  %v3968_v53 = vld [vmem:[%s12141_s28 + $0x20d0] sm:$0xff] }
 0x439   : > { %v5661_v2 = vcombine.low %v4499_v58, %v4501_v0  ;;  %8323 = vmatpush1.bf16.msra.mxu1 %v8322_v48  ;;  %8197 = vmatprep.subr.bf16.mxu0 %v8196_v49  ;;  %v8210_v48 = vpack.c.bf16 %v3946_v39, %v3926_v38  ;;  %v8338_v49 = vpack.c.bf16 %v3948_v43, %v3928_v41  ;;  %v4009_v58 = vld [vmem:[%s12141_s28 + $0x2218] sm:$0xff]  ;;  %v4006_v0 = vld [vmem:[%s12141_s28 + $0x2200] sm:$0xff]  ;;  %v4128_v43 = vld [vmem:[%s12141_s28 + $0x25d0] sm:$0xff] }
 0x43a   : > { %v5668_v8 = vrot.slane %v5660_v62, %v12264_v12  ;;  %8325 = vmatprep.subr.bf16.mxu1 %v8324_v54  ;;  %v8340_v54 = vpack.c.bf16 %v3989_v47, %v3969_v46  ;;  %v4029_v59 = vld [vmem:[%s12141_s28 + $0x22b8] sm:$0xff]  ;;  %v8342_v61 = vpack.c.bf16 %v3988_v55, %v3968_v53  ;;  %v8216_v62 = vpack.c.bf16 %v4027_v57, %v4007_v56  ;;  %v4126_v41 = vld [vmem:[%s12141_s28 + $0x25c0] sm:$0xff]  ;;  %v4167_v46 = vld [vmem:[%s12141_s28 + $0x2708] sm:$0xff] }
 0x43b   : > { %v5675_v14 = vrot.slane %v5661_v2, %v12264_v12  ;;  %v4008_v2 = vld [vmem:[%s12141_s28 + $0x2210] sm:$0xff]  ;;  %v8228_v39 = vpack.c.bf16 %v4147_v34, %v4127_v32  ;;  %v4187_v47 = vld [vmem:[%s12141_s28 + $0x27a8] sm:$0xff]  ;;  %v8358_v51 = vpack.c.bf16 %v4148_v45, %v4128_v43  ;;  %v4166_v53 = vld [vmem:[%s12141_s28 + $0x2700] sm:$0xff] }
 0x43c   : > { %8199 = vmatpush1.bf16.msra.mxu0 %v8198_v1  ;;  %v4026_v1 = vld [vmem:[%s12141_s28 + $0x22a0] sm:$0xff]  ;;  %v8232_v52 = vpack.c.bf16 %v4187_v47, %v4167_v46  ;;  %v4168_v55 = vld [vmem:[%s12141_s28 + $0x2710] sm:$0xff] }
 0x43d   : > { %v5676_v19 = vcombine.low %v5668_v8, %v5675_v14  ;;  %8327 = vmatpush1.bf16.msra.mxu1 %v8326_v3  ;;  %8201 = vmatprep.subr.bf16.mxu0 %v8200_v4  ;;  %v8344_v3 = vpack.c.bf16 %v4029_v59, %v4009_v58  ;;  %v4028_v4 = vld [vmem:[%s12141_s28 + $0x22b0] sm:$0xff]  ;;  %v4069_v8 = vld [vmem:[%s12141_s28 + $0x23f8] sm:$0xff]  ;;  %v4066_v14 = vld [vmem:[%s12141_s28 + $0x23e0] sm:$0xff] }
 0x43e   : > { %8329 = vmatprep.subr.bf16.mxu1 %v8328_v9  ;;  %v8218_v9 = vpack.c.bf16 %v4026_v1, %v4006_v0  ;;  %v8346_v10 = vpack.c.bf16 %v4028_v4, %v4008_v2  ;;  %v8348_v16 = vpack.c.bf16 %v4069_v8, %v4049_v7  ;;  %v8222_v22 = vpack.c.bf16 %v4066_v14, %v4046_v13  ;;  %v4188_v57 = vld [vmem:[%s12141_s28 + $0x27b0] sm:$0xff]  ;;  %v2931_v58 = vld [vmem:[%s12141_s28 + $0x68] sm:$0xff]  ;;  %v2930_v2 = vld [vmem:[%s12141_s28 + $0x60] sm:$0xff] }
 0x43f   : > { %v5750_v31 = vadd.f32 %v5676_v19, %v2912_v17  ;;  %v4068_v17 = vld [vmem:[%s12141_s28 + $0x23f0] sm:$0xff]  ;;  %v4107_v19 = vld [vmem:[%s12141_s28 + $0x2528] sm:$0xff]  ;;  %v8362_v0 = vpack.c.bf16 %v4188_v57, %v4168_v55  ;;  %v3050_v43 = vld [vmem:[%s12141_s28 + $0x420] sm:$0xff] }
 0x440   : > { %8203 = vmatpush1.bf16.msra.mxu0 %v8202_v18  ;;  %v4087_v18 = vld [vmem:[%s12141_s28 + $0x2488] sm:$0xff]  ;;  %v8350_v23 = vpack.c.bf16 %v4068_v17, %v4048_v15  ;;  %v2932_v4 = vld [vmem:[%s12141_s28 + $0x70] sm:$0xff]  ;;  %v2970_v15 = vld [vmem:[%s12141_s28 + $0x1a0] sm:$0xff] }
 0x441   : > { %5755 = vst [vmem:[#allocation2] sm:$0xff] %v5750_v31  ;;  %8331 = vmatpush1.bf16.msra.mxu1 %v8330_v20  ;;  %8205 = vmatprep.subr.bf16.mxu0 %v8204_v21  ;;  %v4089_v20 = vld [vmem:[%s12141_s28 + $0x2498] sm:$0xff]  ;;  %v8224_v24 = vpack.c.bf16 %v4107_v19, %v4087_v18  ;;  %v4108_v31 = vld [vmem:[%s12141_s28 + $0x2530] sm:$0xff]  ;;  %v2951_v59 = vld [vmem:[%s12141_s28 + $0x108] sm:$0xff]  ;;  %v8494_v13 = vpack.c.bf16 %v2952_v6, %v2932_v4 }
 0x442   : > { %8333 = vmatprep.subr.bf16.mxu1 %v8332_v27  ;;  %v4109_v21 = vld [vmem:[%s12141_s28 + $0x2538] sm:$0xff]  ;;  %v4086_v27 = vld [vmem:[%s12141_s28 + $0x2480] sm:$0xff]  ;;  %v8354_v38 = vpack.c.bf16 %v4108_v31, %v4088_v29  ;;  %v8364_v1 = vpack.c.bf16 %v2951_v59, %v2931_v58  ;;  %v2971_v7 = vld [vmem:[%s12141_s28 + $0x1a8] sm:$0xff] }
 0x443   : > { %v8352_v30 = vpack.c.bf16 %v4109_v21, %v4089_v20  ;;  %v2991_v8 = vld [vmem:[%s12141_s28 + $0x248] sm:$0xff]  ;;  %v2972_v17 = vld [vmem:[%s12141_s28 + $0x1b0] sm:$0xff]  ;;  %v3010_v29 = vld [vmem:[%s12141_s28 + $0x2e0] sm:$0xff] }
 0x444   : > { %8207 = vmatpush1.bf16.msra.mxu0 %v8206_v35  ;;  %v4129_v35 = vld [vmem:[%s12141_s28 + $0x25d8] sm:$0xff]  ;;  %v8368_v14 = vpack.c.bf16 %v2991_v8, %v2971_v7  ;;  %v2992_v19 = vld [vmem:[%s12141_s28 + $0x250] sm:$0xff]  ;;  %v3011_v20 = vld [vmem:[%s12141_s28 + $0x2e8] sm:$0xff] }
 0x445   : > { %8335 = vmatpush1.bf16.msra.mxu1 %v8334_v36  ;;  %8209 = vmatprep.subr.bf16.mxu0 %v8208_v37  ;;  %v4149_v36 = vld [vmem:[%s12141_s28 + $0x2678] sm:$0xff]  ;;  %v8226_v37 = vpack.c.bf16 %v4106_v28, %v4086_v27  ;;  %v3031_v21 = vld [vmem:[%s12141_s28 + $0x388] sm:$0xff]  ;;  %v8498_v27 = vpack.c.bf16 %v2992_v19, %v2972_v17  ;;  %v3012_v31 = vld [vmem:[%s12141_s28 + $0x2f0] sm:$0xff] }
 0x446   : > { %8337 = vmatprep.subr.bf16.mxu1 %v8336_v42  ;;  %v4146_v42 = vld [vmem:[%s12141_s28 + $0x2660] sm:$0xff]  ;;  %v8356_v44 = vpack.c.bf16 %v4149_v36, %v4129_v35  ;;  %v8372_v28 = vpack.c.bf16 %v3031_v21, %v3011_v20  ;;  %v3032_v34 = vld [vmem:[%s12141_s28 + $0x390] sm:$0xff]  ;;  %v3051_v35 = vld [vmem:[%s12141_s28 + $0x428] sm:$0xff] }
 0x447   : > { %v3071_v36 = vld [vmem:[%s12141_s28 + $0x4c8] sm:$0xff]  ;;  %v3052_v45 = vld [vmem:[%s12141_s28 + $0x430] sm:$0xff]  ;;  %v3090_v55 = vld [vmem:[%s12141_s28 + $0x560] sm:$0xff] }
 0x448   : > { %8211 = vmatpush1.bf16.msra.mxu0 %v8210_v48  ;;  %v4169_v48 = vld [vmem:[%s12141_s28 + $0x2718] sm:$0xff]  ;;  %v3072_v47 = vld [vmem:[%s12141_s28 + $0x4d0] sm:$0xff]  ;;  %v3130_v4 = vld [vmem:[%s12141_s28 + $0x6a0] sm:$0xff] }
 0x449   : > { %8339 = vmatpush1.bf16.msra.mxu1 %v8338_v49  ;;  %8213 = vmatprep.subr.bf16.mxu0 %v8212_v50  ;;  %v4189_v49 = vld [vmem:[%s12141_s28 + $0x27b8] sm:$0xff]  ;;  %v8230_v50 = vpack.c.bf16 %v4146_v42, %v4126_v41  ;;  %v8502_v41 = vpack.c.bf16 %v3032_v34, %v3012_v31  ;;  %v8376_v42 = vpack.c.bf16 %v3071_v36, %v3051_v35  ;;  %v3092_v57 = vld [vmem:[%s12141_s28 + $0x570] sm:$0xff]  ;;  %v3170_v17 = vld [vmem:[%s12141_s28 + $0x7e0] sm:$0xff] }
 0x44a   : > { %8341 = vmatprep.subr.bf16.mxu1 %v8340_v54  ;;  %v4186_v54 = vld [vmem:[%s12141_s28 + $0x27a0] sm:$0xff]  ;;  %v8360_v56 = vpack.c.bf16 %v4189_v49, %v4169_v48  ;;  %v3091_v48 = vld [vmem:[%s12141_s28 + $0x568] sm:$0xff]  ;;  %v3112_v59 = vld [vmem:[%s12141_s28 + $0x610] sm:$0xff] }
 0x44b   : > { %v3111_v49 = vld [vmem:[%s12141_s28 + $0x608] sm:$0xff]  ;;  %v3132_v6 = vld [vmem:[%s12141_s28 + $0x6b0] sm:$0xff]  ;;  %v3210_v31 = vld [vmem:[%s12141_s28 + $0x920] sm:$0xff] }
 0x44c   : > { %8215 = vmatpush1.bf16.msra.mxu0 %v8214_v60  ;;  %v2933_v60 = vld [vmem:[%s12141_s28 + $0x78] sm:$0xff]  ;;  %v3152_v8 = vld [vmem:[%s12141_s28 + $0x750] sm:$0xff] }
 0x44d   : > { %8343 = vmatpush1.bf16.msra.mxu1 %v8342_v61  ;;  %8217 = vmatprep.subr.bf16.mxu0 %v8216_v62  ;;  %v2953_v61 = vld [vmem:[%s12141_s28 + $0x118] sm:$0xff]  ;;  %v8234_v62 = vpack.c.bf16 %v4186_v54, %v4166_v53  ;;  %v8506_v53 = vpack.c.bf16 %v3072_v47, %v3052_v45  ;;  %v8380_v54 = vpack.c.bf16 %v3111_v49, %v3091_v48  ;;  %v3172_v19 = vld [vmem:[%s12141_s28 + $0x7f0] sm:$0xff]  ;;  %v3250_v45 = vld [vmem:[%s12141_s28 + $0xa60] sm:$0xff] }
 0x44e   : > { %8345 = vmatprep.subr.bf16.mxu1 %v8344_v3  ;;  %v2950_v3 = vld [vmem:[%s12141_s28 + $0x100] sm:$0xff]  ;;  %v8492_v5 = vpack.c.bf16 %v2953_v61, %v2933_v60  ;;  %v3131_v60 = vld [vmem:[%s12141_s28 + $0x6a8] sm:$0xff]  ;;  %v3192_v21 = vld [vmem:[%s12141_s28 + $0x890] sm:$0xff] }
 0x44f   : > { %v3151_v61 = vld [vmem:[%s12141_s28 + $0x748] sm:$0xff]  ;;  %v3212_v34 = vld [vmem:[%s12141_s28 + $0x930] sm:$0xff] }
 0x450   : > { %8219 = vmatpush1.bf16.msra.mxu0 %v8218_v9  ;;  %v2973_v9 = vld [vmem:[%s12141_s28 + $0x1b8] sm:$0xff]  ;;  %v3232_v36 = vld [vmem:[%s12141_s28 + $0x9d0] sm:$0xff] }
 0x451   : > { %8347 = vmatpush1.bf16.msra.mxu1 %v8346_v10  ;;  %8221 = vmatprep.subr.bf16.mxu0 %v8220_v11  ;;  %v2993_v10 = vld [vmem:[%s12141_s28 + $0x258] sm:$0xff]  ;;  %v8366_v11 = vpack.c.bf16 %v2950_v3, %v2930_v2  ;;  %v8510_v2 = vpack.c.bf16 %v3112_v59, %v3092_v57  ;;  %v8384_v3 = vpack.c.bf16 %v3151_v61, %v3131_v60  ;;  %v3252_v47 = vld [vmem:[%s12141_s28 + $0xa70] sm:$0xff]  ;;  %v3290_v57 = vld [vmem:[%s12141_s28 + $0xba0] sm:$0xff] }
 0x452   : > { %8349 = vmatprep.subr.bf16.mxu1 %v8348_v16  ;;  %v2990_v16 = vld [vmem:[%s12141_s28 + $0x240] sm:$0xff]  ;;  %v8496_v18 = vpack.c.bf16 %v2993_v10, %v2973_v9  ;;  %v3171_v9 = vld [vmem:[%s12141_s28 + $0x7e8] sm:$0xff]  ;;  %v3272_v49 = vld [vmem:[%s12141_s28 + $0xb10] sm:$0xff] }
 0x453   : > { %v3191_v10 = vld [vmem:[%s12141_s28 + $0x888] sm:$0xff]  ;;  %v3292_v59 = vld [vmem:[%s12141_s28 + $0xbb0] sm:$0xff] }
 0x454   : > { %8223 = vmatpush1.bf16.msra.mxu0 %v8222_v22  ;;  %v3013_v22 = vld [vmem:[%s12141_s28 + $0x2f8] sm:$0xff]  ;;  %v3312_v61 = vld [vmem:[%s12141_s28 + $0xc50] sm:$0xff] }
 0x455   : > { %8351 = vmatpush1.bf16.msra.mxu1 %v8350_v23  ;;  %8225 = vmatprep.subr.bf16.mxu0 %v8224_v24  ;;  %v3033_v23 = vld [vmem:[%s12141_s28 + $0x398] sm:$0xff]  ;;  %v8370_v24 = vpack.c.bf16 %v2990_v16, %v2970_v15  ;;  %v8514_v15 = vpack.c.bf16 %v3152_v8, %v3132_v6  ;;  %v8388_v16 = vpack.c.bf16 %v3191_v10, %v3171_v9  ;;  %v3330_v6 = vld [vmem:[%s12141_s28 + $0xce0] sm:$0xff]  ;;  %v3332_v8 = vld [vmem:[%s12141_s28 + $0xcf0] sm:$0xff] }
 0x456   : > { %8353 = vmatprep.subr.bf16.mxu1 %v8352_v30  ;;  %v3030_v30 = vld [vmem:[%s12141_s28 + $0x380] sm:$0xff]  ;;  %v8500_v32 = vpack.c.bf16 %v3033_v23, %v3013_v22  ;;  %v3211_v22 = vld [vmem:[%s12141_s28 + $0x928] sm:$0xff]  ;;  %v3352_v10 = vld [vmem:[%s12141_s28 + $0xd90] sm:$0xff] }
 0x457   : > { %v3231_v23 = vld [vmem:[%s12141_s28 + $0x9c8] sm:$0xff] }
 0x458   : > { %8227 = vmatpush1.bf16.msra.mxu0 %v8226_v37  ;;  %v3053_v37 = vld [vmem:[%s12141_s28 + $0x438] sm:$0xff] }
 0x459   : > { %8355 = vmatpush1.bf16.msra.mxu1 %v8354_v38  ;;  %8229 = vmatprep.subr.bf16.mxu0 %v8228_v39  ;;  %v3073_v38 = vld [vmem:[%s12141_s28 + $0x4d8] sm:$0xff]  ;;  %v8374_v39 = vpack.c.bf16 %v3030_v30, %v3010_v29  ;;  %v8518_v29 = vpack.c.bf16 %v3192_v21, %v3172_v19  ;;  %v8392_v30 = vpack.c.bf16 %v3231_v23, %v3211_v22  ;;  %v3370_v19 = vld [vmem:[%s12141_s28 + $0xe20] sm:$0xff]  ;;  %v3372_v21 = vld [vmem:[%s12141_s28 + $0xe30] sm:$0xff] }
 0x45a   : > { %8357 = vmatprep.subr.bf16.mxu1 %v8356_v44  ;;  %v3070_v44 = vld [vmem:[%s12141_s28 + $0x4c0] sm:$0xff]  ;;  %v8504_v46 = vpack.c.bf16 %v3073_v38, %v3053_v37  ;;  %v3251_v37 = vld [vmem:[%s12141_s28 + $0xa68] sm:$0xff]  ;;  %v3392_v23 = vld [vmem:[%s12141_s28 + $0xed0] sm:$0xff] }
 0x45b   : > { %v3271_v38 = vld [vmem:[%s12141_s28 + $0xb08] sm:$0xff] }
 0x45c   : > { %8231 = vmatpush1.bf16.msra.mxu0 %v8230_v50  ;;  %v3093_v50 = vld [vmem:[%s12141_s28 + $0x578] sm:$0xff] }
 0x45d   : > { %8359 = vmatpush1.bf16.msra.mxu1 %v8358_v51  ;;  %8233 = vmatprep.subr.bf16.mxu0 %v8232_v52  ;;  %v3113_v51 = vld [vmem:[%s12141_s28 + $0x618] sm:$0xff]  ;;  %v8378_v52 = vpack.c.bf16 %v3070_v44, %v3050_v43  ;;  %v8522_v43 = vpack.c.bf16 %v3232_v36, %v3212_v34  ;;  %v8396_v44 = vpack.c.bf16 %v3271_v38, %v3251_v37  ;;  %v3410_v34 = vld [vmem:[%s12141_s28 + $0xf60] sm:$0xff]  ;;  %v3412_v36 = vld [vmem:[%s12141_s28 + $0xf70] sm:$0xff] }
 0x45e   : > { %8361 = vmatprep.subr.bf16.mxu1 %v8360_v56  ;;  %v3110_v56 = vld [vmem:[%s12141_s28 + $0x600] sm:$0xff]  ;;  %v8508_v58 = vpack.c.bf16 %v3113_v51, %v3093_v50  ;;  %v3291_v50 = vld [vmem:[%s12141_s28 + $0xba8] sm:$0xff]  ;;  %v3432_v38 = vld [vmem:[%s12141_s28 + $0x1010] sm:$0xff] }
 0x45f   : > { %v3311_v51 = vld [vmem:[%s12141_s28 + $0xc48] sm:$0xff] }
 0x460   : > { %8235 = vmatpush1.bf16.msra.mxu0 %v8234_v62  ;;  %v3133_v62 = vld [vmem:[%s12141_s28 + $0x6b8] sm:$0xff] }
 0x461   : > { %8363 = vmatpush1.bf16.msra.mxu1 %v8362_v0  ;;  %8365 = vmatprep.subr.bf16.mxu0 %v8364_v1  ;;  %v3153_v0 = vld [vmem:[%s12141_s28 + $0x758] sm:$0xff]  ;;  %v8382_v1 = vpack.c.bf16 %v3110_v56, %v3090_v55  ;;  %v8526_v55 = vpack.c.bf16 %v3272_v49, %v3252_v47  ;;  %v8400_v56 = vpack.c.bf16 %v3311_v51, %v3291_v50  ;;  %v3450_v47 = vld [vmem:[%s12141_s28 + $0x10a0] sm:$0xff]  ;;  %v3452_v49 = vld [vmem:[%s12141_s28 + $0x10b0] sm:$0xff] }
 0x462   : > { %8493 = vmatprep.subr.bf16.mxu1 %v8492_v5  ;;  %v3150_v5 = vld [vmem:[%s12141_s28 + $0x740] sm:$0xff]  ;;  %v8512_v7 = vpack.c.bf16 %v3153_v0, %v3133_v62  ;;  %v3331_v62 = vld [vmem:[%s12141_s28 + $0xce8] sm:$0xff]  ;;  %v3472_v51 = vld [vmem:[%s12141_s28 + $0x1150] sm:$0xff] }
 0x463   : > { %4924 = vmatmul.mubr.f32.vlgmr.msra.gmra.mrb[4].mxu0 %v12328_v25  ;;  %v3351_v0 = vld [vmem:[%s12141_s28 + $0xd88] sm:$0xff] }
 0x464   : > { %5066 = vmatmul.mubr.f32.vlgmr.msra.gmra.mrb[4].mxu1 %v12328_v25  ;;  %8367 = vmatpush1.bf16.msra.mxu0 %v8366_v11  ;;  %v3173_v11 = vld [vmem:[%s12141_s28 + $0x7f8] sm:$0xff] }
 0x465   : > { %8495 = vmatpush1.bf16.msra.mxu1 %v8494_v13  ;;  %8369 = vmatprep.subr.bf16.mxu0 %v8368_v14  ;;  %v3193_v13 = vld [vmem:[%s12141_s28 + $0x898] sm:$0xff]  ;;  %v8386_v14 = vpack.c.bf16 %v3150_v5, %v3130_v4  ;;  %v8530_v4 = vpack.c.bf16 %v3312_v61, %v3292_v59  ;;  %v8404_v5 = vpack.c.bf16 %v3351_v0, %v3331_v62  ;;  %v3490_v59 = vld [vmem:[%s12141_s28 + $0x11e0] sm:$0xff]  ;;  %v3492_v61 = vld [vmem:[%s12141_s28 + $0x11f0] sm:$0xff] }
 0x466   : > { %8497 = vmatprep.subr.bf16.mxu1 %v8496_v18  ;;  %5136 = vmatprep.mubr.f32.mxu0 %v12286_v33  ;;  %v3190_v18 = vld [vmem:[%s12141_s28 + $0x880] sm:$0xff]  ;;  %v8516_v20 = vpack.c.bf16 %v3193_v13, %v3173_v11  ;;  %v3371_v11 = vld [vmem:[%s12141_s28 + $0xe28] sm:$0xff]  ;;  %v3512_v0 = vld [vmem:[%s12141_s28 + $0x1290] sm:$0xff] }
 0x467   : > { %5278 = vmatprep.mubr.f32.mxu1 %v12286_v33  ;;  %v3391_v13 = vld [vmem:[%s12141_s28 + $0xec8] sm:$0xff] }
 0x468   : > { %8371 = vmatpush1.bf16.msra.mxu0 %v8370_v24  ;;  %v3213_v24 = vld [vmem:[%s12141_s28 + $0x938] sm:$0xff] }
 0x469   : > { %8499 = vmatpush1.bf16.msra.mxu1 %v8498_v27  ;;  %8373 = vmatprep.subr.bf16.mxu0 %v8372_v28  ;;  %v3233_v27 = vld [vmem:[%s12141_s28 + $0x9d8] sm:$0xff]  ;;  %v8390_v28 = vpack.c.bf16 %v3190_v18, %v3170_v17  ;;  %v8534_v17 = vpack.c.bf16 %v3352_v10, %v3332_v8  ;;  %v8408_v18 = vpack.c.bf16 %v3391_v13, %v3371_v11  ;;  %v3530_v8 = vld [vmem:[%s12141_s28 + $0x1320] sm:$0xff]  ;;  %v3532_v10 = vld [vmem:[%s12141_s28 + $0x1330] sm:$0xff] }
 0x46a   : > { %8501 = vmatprep.subr.bf16.mxu1 %v8500_v32  ;;  %v3230_v32 = vld [vmem:[%s12141_s28 + $0x9c0] sm:$0xff]  ;;  %v8520_v35 = vpack.c.bf16 %v3233_v27, %v3213_v24  ;;  %v3411_v24 = vld [vmem:[%s12141_s28 + $0xf68] sm:$0xff]  ;;  %v3552_v13 = vld [vmem:[%s12141_s28 + $0x13d0] sm:$0xff] }
 0x46b   : > { %v3431_v27 = vld [vmem:[%s12141_s28 + $0x1008] sm:$0xff] }
 0x46c   : > { %8375 = vmatpush1.bf16.msra.mxu0 %v8374_v39  ;;  %v3253_v39 = vld [vmem:[%s12141_s28 + $0xa78] sm:$0xff] }
 0x46d   : > { %8503 = vmatpush1.bf16.msra.mxu1 %v8502_v41  ;;  %8377 = vmatprep.subr.bf16.mxu0 %v8376_v42  ;;  %v3273_v41 = vld [vmem:[%s12141_s28 + $0xb18] sm:$0xff]  ;;  %v8394_v42 = vpack.c.bf16 %v3230_v32, %v3210_v31  ;;  %v8538_v31 = vpack.c.bf16 %v3392_v23, %v3372_v21  ;;  %v8412_v32 = vpack.c.bf16 %v3431_v27, %v3411_v24  ;;  %v3570_v21 = vld [vmem:[%s12141_s28 + $0x1460] sm:$0xff]  ;;  %v3572_v23 = vld [vmem:[%s12141_s28 + $0x1470] sm:$0xff] }
 0x46e   : > { %8505 = vmatprep.subr.bf16.mxu1 %v8504_v46  ;;  %v3270_v46 = vld [vmem:[%s12141_s28 + $0xb00] sm:$0xff]  ;;  %v8524_v48 = vpack.c.bf16 %v3273_v41, %v3253_v39  ;;  %v3451_v39 = vld [vmem:[%s12141_s28 + $0x10a8] sm:$0xff]  ;;  %v3592_v27 = vld [vmem:[%s12141_s28 + $0x1510] sm:$0xff] }
 0x46f   : > { %v3471_v41 = vld [vmem:[%s12141_s28 + $0x1148] sm:$0xff] }
 0x470   : > { %8379 = vmatpush1.bf16.msra.mxu0 %v8378_v52  ;;  %v3293_v52 = vld [vmem:[%s12141_s28 + $0xbb8] sm:$0xff] }
 0x471   : > { %8507 = vmatpush1.bf16.msra.mxu1 %v8506_v53  ;;  %8381 = vmatprep.subr.bf16.mxu0 %v8380_v54  ;;  %v3313_v53 = vld [vmem:[%s12141_s28 + $0xc58] sm:$0xff]  ;;  %v8398_v54 = vpack.c.bf16 %v3270_v46, %v3250_v45  ;;  %v8542_v45 = vpack.c.bf16 %v3432_v38, %v3412_v36  ;;  %v8416_v46 = vpack.c.bf16 %v3471_v41, %v3451_v39  ;;  %v3610_v36 = vld [vmem:[%s12141_s28 + $0x15a0] sm:$0xff]  ;;  %v3612_v38 = vld [vmem:[%s12141_s28 + $0x15b0] sm:$0xff] }
 0x472   : > { %8509 = vmatprep.subr.bf16.mxu1 %v8508_v58  ;;  %v3310_v58 = vld [vmem:[%s12141_s28 + $0xc40] sm:$0xff]  ;;  %v8528_v60 = vpack.c.bf16 %v3313_v53, %v3293_v52  ;;  %v3491_v52 = vld [vmem:[%s12141_s28 + $0x11e8] sm:$0xff]  ;;  %v3632_v41 = vld [vmem:[%s12141_s28 + $0x1650] sm:$0xff] }
 0x473   : > { %v3511_v53 = vld [vmem:[%s12141_s28 + $0x1288] sm:$0xff] }
 0x474   : > { %8383 = vmatpush1.bf16.msra.mxu0 %v8382_v1  ;;  %v3333_v1 = vld [vmem:[%s12141_s28 + $0xcf8] sm:$0xff] }
 0x475   : > { %8511 = vmatpush1.bf16.msra.mxu1 %v8510_v2  ;;  %8385 = vmatprep.subr.bf16.mxu0 %v8384_v3  ;;  %v3353_v2 = vld [vmem:[%s12141_s28 + $0xd98] sm:$0xff]  ;;  %v8402_v3 = vpack.c.bf16 %v3310_v58, %v3290_v57  ;;  %v8546_v57 = vpack.c.bf16 %v3472_v51, %v3452_v49  ;;  %v8420_v58 = vpack.c.bf16 %v3511_v53, %v3491_v52  ;;  %v3650_v49 = vld [vmem:[%s12141_s28 + $0x16e0] sm:$0xff]  ;;  %v3652_v51 = vld [vmem:[%s12141_s28 + $0x16f0] sm:$0xff] }
 0x476   : > { %8513 = vmatprep.subr.bf16.mxu1 %v8512_v7  ;;  %v3350_v7 = vld [vmem:[%s12141_s28 + $0xd80] sm:$0xff]  ;;  %v8532_v9 = vpack.c.bf16 %v3353_v2, %v3333_v1  ;;  %v3531_v1 = vld [vmem:[%s12141_s28 + $0x1328] sm:$0xff]  ;;  %v3672_v53 = vld [vmem:[%s12141_s28 + $0x1790] sm:$0xff] }
 0x477   : > { %v3551_v2 = vld [vmem:[%s12141_s28 + $0x13c8] sm:$0xff] }
 0x478   : > { %8387 = vmatpush1.bf16.msra.mxu0 %v8386_v14  ;;  %v3373_v14 = vld [vmem:[%s12141_s28 + $0xe38] sm:$0xff] }
 0x479   : > { %8515 = vmatpush1.bf16.msra.mxu1 %v8514_v15  ;;  %8389 = vmatprep.subr.bf16.mxu0 %v8388_v16  ;;  %v3393_v15 = vld [vmem:[%s12141_s28 + $0xed8] sm:$0xff]  ;;  %v8406_v16 = vpack.c.bf16 %v3350_v7, %v3330_v6  ;;  %v8550_v6 = vpack.c.bf16 %v3512_v0, %v3492_v61  ;;  %v8424_v7 = vpack.c.bf16 %v3551_v2, %v3531_v1  ;;  %v3690_v61 = vld [vmem:[%s12141_s28 + $0x1820] sm:$0xff]  ;;  %v3692_v0 = vld [vmem:[%s12141_s28 + $0x1830] sm:$0xff] }
 0x47a   : > { %8517 = vmatprep.subr.bf16.mxu1 %v8516_v20  ;;  %v3390_v20 = vld [vmem:[%s12141_s28 + $0xec0] sm:$0xff]  ;;  %v8536_v22 = vpack.c.bf16 %v3393_v15, %v3373_v14  ;;  %v3571_v14 = vld [vmem:[%s12141_s28 + $0x1468] sm:$0xff]  ;;  %v3712_v2 = vld [vmem:[%s12141_s28 + $0x18d0] sm:$0xff] }
 0x47b   : > { %v3591_v15 = vld [vmem:[%s12141_s28 + $0x1508] sm:$0xff] }
 0x47c   : > { %8391 = vmatpush1.bf16.msra.mxu0 %v8390_v28  ;;  %v3413_v28 = vld [vmem:[%s12141_s28 + $0xf78] sm:$0xff] }
 0x47d   : > { %8519 = vmatpush1.bf16.msra.mxu1 %v8518_v29  ;;  %8393 = vmatprep.subr.bf16.mxu0 %v8392_v30  ;;  %v3433_v29 = vld [vmem:[%s12141_s28 + $0x1018] sm:$0xff]  ;;  %v8410_v30 = vpack.c.bf16 %v3390_v20, %v3370_v19  ;;  %v8554_v19 = vpack.c.bf16 %v3552_v13, %v3532_v10  ;;  %v8428_v20 = vpack.c.bf16 %v3591_v15, %v3571_v14  ;;  %v3730_v10 = vld [vmem:[%s12141_s28 + $0x1960] sm:$0xff]  ;;  %v3732_v13 = vld [vmem:[%s12141_s28 + $0x1970] sm:$0xff] }
 0x47e   : > { %8521 = vmatprep.subr.bf16.mxu1 %v8520_v35  ;;  %v3430_v35 = vld [vmem:[%s12141_s28 + $0x1000] sm:$0xff]  ;;  %v8540_v37 = vpack.c.bf16 %v3433_v29, %v3413_v28  ;;  %v3611_v28 = vld [vmem:[%s12141_s28 + $0x15a8] sm:$0xff]  ;;  %v3752_v15 = vld [vmem:[%s12141_s28 + $0x1a10] sm:$0xff] }
 0x47f   : > { %v3631_v29 = vld [vmem:[%s12141_s28 + $0x1648] sm:$0xff] }
 0x480   : > { %8395 = vmatpush1.bf16.msra.mxu0 %v8394_v42  ;;  %v3453_v42 = vld [vmem:[%s12141_s28 + $0x10b8] sm:$0xff] }
 0x481   : > { %8523 = vmatpush1.bf16.msra.mxu1 %v8522_v43  ;;  %8397 = vmatprep.subr.bf16.mxu0 %v8396_v44  ;;  %v3473_v43 = vld [vmem:[%s12141_s28 + $0x1158] sm:$0xff]  ;;  %v8414_v44 = vpack.c.bf16 %v3430_v35, %v3410_v34  ;;  %v8558_v34 = vpack.c.bf16 %v3592_v27, %v3572_v23  ;;  %v8432_v35 = vpack.c.bf16 %v3631_v29, %v3611_v28  ;;  %v3770_v23 = vld [vmem:[%s12141_s28 + $0x1aa0] sm:$0xff]  ;;  %v3772_v27 = vld [vmem:[%s12141_s28 + $0x1ab0] sm:$0xff] }
 0x482   : > { %8525 = vmatprep.subr.bf16.mxu1 %v8524_v48  ;;  %v3470_v48 = vld [vmem:[%s12141_s28 + $0x1140] sm:$0xff]  ;;  %v8544_v50 = vpack.c.bf16 %v3473_v43, %v3453_v42  ;;  %v3651_v42 = vld [vmem:[%s12141_s28 + $0x16e8] sm:$0xff]  ;;  %v3792_v29 = vld [vmem:[%s12141_s28 + $0x1b50] sm:$0xff] }
 0x483   : > { %v3671_v43 = vld [vmem:[%s12141_s28 + $0x1788] sm:$0xff] }
 0x484   : > { %8399 = vmatpush1.bf16.msra.mxu0 %v8398_v54  ;;  %v3493_v54 = vld [vmem:[%s12141_s28 + $0x11f8] sm:$0xff] }
 0x485   : > { %8527 = vmatpush1.bf16.msra.mxu1 %v8526_v55  ;;  %8401 = vmatprep.subr.bf16.mxu0 %v8400_v56  ;;  %v3513_v55 = vld [vmem:[%s12141_s28 + $0x1298] sm:$0xff]  ;;  %v8418_v56 = vpack.c.bf16 %v3470_v48, %v3450_v47  ;;  %v8562_v47 = vpack.c.bf16 %v3632_v41, %v3612_v38  ;;  %v8436_v48 = vpack.c.bf16 %v3671_v43, %v3651_v42  ;;  %v3810_v38 = vld [vmem:[%s12141_s28 + $0x1be0] sm:$0xff]  ;;  %v3812_v41 = vld [vmem:[%s12141_s28 + $0x1bf0] sm:$0xff] }
 0x486   : > { %8529 = vmatprep.subr.bf16.mxu1 %v8528_v60  ;;  %v3510_v60 = vld [vmem:[%s12141_s28 + $0x1280] sm:$0xff]  ;;  %v8548_v62 = vpack.c.bf16 %v3513_v55, %v3493_v54  ;;  %v3691_v54 = vld [vmem:[%s12141_s28 + $0x1828] sm:$0xff] }
 0x487   : > { %v3711_v55 = vld [vmem:[%s12141_s28 + $0x18c8] sm:$0xff] }
 0x488   : > { %8403 = vmatpush1.bf16.msra.mxu0 %v8402_v3  ;;  %v3533_v3 = vld [vmem:[%s12141_s28 + $0x1338] sm:$0xff] }
 0x489   : > { %8531 = vmatpush1.bf16.msra.mxu1 %v8530_v4  ;;  %8405 = vmatprep.subr.bf16.mxu0 %v8404_v5  ;;  %v3553_v4 = vld [vmem:[%s12141_s28 + $0x13d8] sm:$0xff]  ;;  %v8422_v5 = vpack.c.bf16 %v3510_v60, %v3490_v59  ;;  %v8566_v59 = vpack.c.bf16 %v3672_v53, %v3652_v51  ;;  %v8440_v60 = vpack.c.bf16 %v3711_v55, %v3691_v54 }
 0x48a   : > { %8533 = vmatprep.subr.bf16.mxu1 %v8532_v9  ;;  %v3550_v9 = vld [vmem:[%s12141_s28 + $0x13c0] sm:$0xff]  ;;  %v8552_v11 = vpack.c.bf16 %v3553_v4, %v3533_v3  ;;  %v3731_v3 = vld [vmem:[%s12141_s28 + $0x1968] sm:$0xff] }
 0x48b   : > { %v3751_v4 = vld [vmem:[%s12141_s28 + $0x1a08] sm:$0xff] }
 0x48c   : > { %8407 = vmatpush1.bf16.msra.mxu0 %v8406_v16  ;;  %v3573_v16 = vld [vmem:[%s12141_s28 + $0x1478] sm:$0xff] }
 0x48d   : > { %8535 = vmatpush1.bf16.msra.mxu1 %v8534_v17  ;;  %8409 = vmatprep.subr.bf16.mxu0 %v8408_v18  ;;  %v3593_v17 = vld [vmem:[%s12141_s28 + $0x1518] sm:$0xff]  ;;  %v8426_v18 = vpack.c.bf16 %v3550_v9, %v3530_v8  ;;  %v8570_v8 = vpack.c.bf16 %v3712_v2, %v3692_v0  ;;  %v8444_v9 = vpack.c.bf16 %v3751_v4, %v3731_v3  ;;  %v3891_v0 = vld [vmem:[%s12141_s28 + $0x1e68] sm:$0xff] }
 0x48e   : > { %8537 = vmatprep.subr.bf16.mxu1 %v8536_v22  ;;  %v3590_v22 = vld [vmem:[%s12141_s28 + $0x1500] sm:$0xff]  ;;  %v8556_v24 = vpack.c.bf16 %v3593_v17, %v3573_v16  ;;  %v3771_v16 = vld [vmem:[%s12141_s28 + $0x1aa8] sm:$0xff]  ;;  %v3893_v3 = vld [vmem:[%s12141_s28 + $0x1e78] sm:$0xff] }
 0x48f   : > { %v3791_v17 = vld [vmem:[%s12141_s28 + $0x1b48] sm:$0xff]  ;;  %v3913_v4 = vld [vmem:[%s12141_s28 + $0x1f18] sm:$0xff] }
 0x490   : > { %8411 = vmatpush1.bf16.msra.mxu0 %v8410_v30  ;;  %v3613_v30 = vld [vmem:[%s12141_s28 + $0x15b8] sm:$0xff] }
 0x491   : > { %8539 = vmatpush1.bf16.msra.mxu1 %v8538_v31  ;;  %8413 = vmatprep.subr.bf16.mxu0 %v8412_v32  ;;  %v3633_v31 = vld [vmem:[%s12141_s28 + $0x1658] sm:$0xff]  ;;  %v8430_v32 = vpack.c.bf16 %v3590_v22, %v3570_v21  ;;  %v8574_v21 = vpack.c.bf16 %v3752_v15, %v3732_v13  ;;  %v8448_v22 = vpack.c.bf16 %v3791_v17, %v3771_v16  ;;  %v3892_v13 = vld [vmem:[%s12141_s28 + $0x1e70] sm:$0xff]  ;;  %v3931_v16 = vld [vmem:[%s12141_s28 + $0x1fa8] sm:$0xff] }
 0x492   : > { %8541 = vmatprep.subr.bf16.mxu1 %v8540_v37  ;;  %v3630_v37 = vld [vmem:[%s12141_s28 + $0x1640] sm:$0xff]  ;;  %v8560_v39 = vpack.c.bf16 %v3633_v31, %v3613_v30  ;;  %v3811_v30 = vld [vmem:[%s12141_s28 + $0x1be8] sm:$0xff]  ;;  %v3912_v15 = vld [vmem:[%s12141_s28 + $0x1f10] sm:$0xff] }
 0x493   : > { %v3831_v31 = vld [vmem:[%s12141_s28 + $0x1c88] sm:$0xff] }
 0x494   : > { %8415 = vmatpush1.bf16.msra.mxu0 %v8414_v44  ;;  %v3653_v44 = vld [vmem:[%s12141_s28 + $0x16f8] sm:$0xff]  ;;  %v3951_v17 = vld [vmem:[%s12141_s28 + $0x2048] sm:$0xff] }
 0x495   : > { %8543 = vmatpush1.bf16.msra.mxu1 %v8542_v45  ;;  %8417 = vmatprep.subr.bf16.mxu0 %v8416_v46  ;;  %v3673_v45 = vld [vmem:[%s12141_s28 + $0x1798] sm:$0xff]  ;;  %v8434_v46 = vpack.c.bf16 %v3630_v37, %v3610_v36  ;;  %v8578_v36 = vpack.c.bf16 %v3792_v29, %v3772_v27  ;;  %v8452_v37 = vpack.c.bf16 %v3831_v31, %v3811_v30  ;;  %v3950_v27 = vld [vmem:[%s12141_s28 + $0x2040] sm:$0xff]  ;;  %v3952_v30 = vld [vmem:[%s12141_s28 + $0x2050] sm:$0xff] }
 0x496   : > { %8545 = vmatprep.subr.bf16.mxu1 %v8544_v50  ;;  %v3670_v50 = vld [vmem:[%s12141_s28 + $0x1780] sm:$0xff]  ;;  %v8564_v52 = vpack.c.bf16 %v3673_v45, %v3653_v44  ;;  %v3832_v44 = vld [vmem:[%s12141_s28 + $0x1c90] sm:$0xff]  ;;  %v3851_v45 = vld [vmem:[%s12141_s28 + $0x1d28] sm:$0xff] }
 0x497   : > { %v8582_v55 = vpack.c.bf16 %v3832_v44, %v3812_v41  ;;  %v3971_v31 = vld [vmem:[%s12141_s28 + $0x20e8] sm:$0xff]  ;;  %v3990_v41 = vld [vmem:[%s12141_s28 + $0x2180] sm:$0xff]  ;;  %v3992_v44 = vld [vmem:[%s12141_s28 + $0x2190] sm:$0xff] }
 0x498   : > { %8419 = vmatpush1.bf16.msra.mxu0 %v8418_v56  ;;  %v3693_v56 = vld [vmem:[%s12141_s28 + $0x1838] sm:$0xff] }
 0x499   : > { %8547 = vmatpush1.bf16.msra.mxu1 %v8546_v57  ;;  %8421 = vmatprep.subr.bf16.mxu0 %v8420_v58  ;;  %v3713_v57 = vld [vmem:[%s12141_s28 + $0x18d8] sm:$0xff]  ;;  %v8438_v58 = vpack.c.bf16 %v3670_v50, %v3650_v49 }
 0x49a   : > { %8549 = vmatprep.subr.bf16.mxu1 %v8548_v62  ;;  %v3710_v62 = vld [vmem:[%s12141_s28 + $0x18c0] sm:$0xff]  ;;  %v8568_v1 = vpack.c.bf16 %v3713_v57, %v3693_v56  ;;  %v3853_v49 = vld [vmem:[%s12141_s28 + $0x1d38] sm:$0xff] }
 0x49b   : > { %v3873_v50 = vld [vmem:[%s12141_s28 + $0x1dd8] sm:$0xff]  ;;  %v3850_v57 = vld [vmem:[%s12141_s28 + $0x1d20] sm:$0xff] }
 0x49c   : > { %8423 = vmatpush1.bf16.msra.mxu0 %v8422_v5  ;;  %v3733_v5 = vld [vmem:[%s12141_s28 + $0x1978] sm:$0xff] }
 0x49d   : > { %8551 = vmatpush1.bf16.msra.mxu1 %v8550_v6  ;;  %8425 = vmatprep.subr.bf16.mxu0 %v8424_v7  ;;  %v3753_v6 = vld [vmem:[%s12141_s28 + $0x1a18] sm:$0xff]  ;;  %v8442_v7 = vpack.c.bf16 %v3710_v62, %v3690_v61  ;;  %v8584_v61 = vpack.c.bf16 %v3873_v50, %v3853_v49  ;;  %v3872_v62 = vld [vmem:[%s12141_s28 + $0x1dd0] sm:$0xff] }
 0x49e   : > { %8553 = vmatprep.subr.bf16.mxu1 %v8552_v11  ;;  %v3750_v11 = vld [vmem:[%s12141_s28 + $0x1a00] sm:$0xff]  ;;  %v8572_v14 = vpack.c.bf16 %v3753_v6, %v3733_v5 }
 0x49f   : > { %v2913_v5 = vld [vmem:[#allocation2 + $0x8] sm:$0xff] }
 0x4a0   : > { %8427 = vmatpush1.bf16.msra.mxu0 %v8426_v18  ;;  %v3773_v18 = vld [vmem:[%s12141_s28 + $0x1ab8] sm:$0xff] }
 0x4a1   : > { %8555 = vmatpush1.bf16.msra.mxu1 %v8554_v19  ;;  %8429 = vmatprep.subr.bf16.mxu0 %v8428_v20  ;;  %v3793_v19 = vld [vmem:[%s12141_s28 + $0x1b58] sm:$0xff]  ;;  %v8446_v20 = vpack.c.bf16 %v3750_v11, %v3730_v10  ;;  %v3890_v10 = vld [vmem:[%s12141_s28 + $0x1e60] sm:$0xff] }
 0x4a2   : > { %8557 = vmatprep.subr.bf16.mxu1 %v8556_v24  ;;  %v3790_v24 = vld [vmem:[%s12141_s28 + $0x1b40] sm:$0xff]  ;;  %v8576_v28 = vpack.c.bf16 %v3793_v19, %v3773_v18  ;;  %v3933_v19 = vld [vmem:[%s12141_s28 + $0x1fb8] sm:$0xff] }
 0x4a3   : > { %5137 = vmatmul.mubr.f32.vlgmr.msra.gmra.mrb[6].mxu0 %v12279_v26  ;;  %v3910_v11 = vld [vmem:[%s12141_s28 + $0x1f00] sm:$0xff] }
 0x4a4   : > { %8431 = vmatpush1.bf16.msra.mxu0 %v8430_v32  ;;  %5279 = vmatmul.mubr.f32.vlgmr.msra.gmra.mrb[6].mxu1 %v12279_v26  ;;  %v3813_v32 = vld [vmem:[%s12141_s28 + $0x1bf8] sm:$0xff] }
 0x4a5   : > { %8559 = vmatpush1.bf16.msra.mxu1 %v8558_v34  ;;  %8433 = vmatprep.subr.bf16.mxu0 %v8432_v35  ;;  %v3833_v34 = vld [vmem:[%s12141_s28 + $0x1c98] sm:$0xff]  ;;  %v8450_v35 = vpack.c.bf16 %v3790_v24, %v3770_v23  ;;  %v8464_v23 = vpack.c.bf16 %v3951_v17, %v3931_v16  ;;  %v3930_v24 = vld [vmem:[%s12141_s28 + $0x1fa0] sm:$0xff]  ;;  %v4092_v16 = vld [vmem:[%s12141_s28 + $0x24b0] sm:$0xff] }
 0x4a6   : > { %8561 = vmatprep.subr.bf16.mxu1 %v8560_v39  ;;  %5207 = vmatprep.mubr.f32.mxu0 %v12340_v40  ;;  %v3830_v39 = vld [vmem:[%s12141_s28 + $0x1c80] sm:$0xff]  ;;  %v8580_v43 = vpack.c.bf16 %v3833_v34, %v3813_v32  ;;  %v3991_v32 = vld [vmem:[%s12141_s28 + $0x2188] sm:$0xff]  ;;  %v3973_v34 = vld [vmem:[%s12141_s28 + $0x20f8] sm:$0xff] }
 0x4a7   : > { %5349 = vmatprep.mubr.f32.mxu1 %v12340_v40  ;;  %v8454_v53 = vpack.c.bf16 %v3830_v39, %v3810_v38  ;;  %v8468_v38 = vpack.c.bf16 %v3991_v32, %v3971_v31  ;;  %v3970_v39 = vld [vmem:[%s12141_s28 + $0x20e0] sm:$0xff]  ;;  %v4152_v32 = vld [vmem:[%s12141_s28 + $0x2690] sm:$0xff] }
 0x4a8   : > { %8435 = vmatpush1.bf16.msra.mxu0 %v8434_v46  ;;  %v3871_v46 = vld [vmem:[%s12141_s28 + $0x1dc8] sm:$0xff]  ;;  %v8470_v49 = vpack.c.bf16 %v3990_v41, %v3970_v39 }
 0x4a9   : > { %8563 = vmatpush1.bf16.msra.mxu1 %v8562_v47  ;;  %8437 = vmatprep.subr.bf16.mxu0 %v8436_v48  ;;  %v8456_v56 = vpack.c.bf16 %v3871_v46, %v3851_v45  ;;  %v4011_v45 = vld [vmem:[%s12141_s28 + $0x2228] sm:$0xff] }
 0x4aa   : > { %8565 = vmatprep.subr.bf16.mxu1 %v8564_v52  ;;  %v4031_v46 = vld [vmem:[%s12141_s28 + $0x22c8] sm:$0xff] }
 0x4ac   : > { %8439 = vmatpush1.bf16.msra.mxu0 %v8438_v58  ;;  %v3870_v58 = vld [vmem:[%s12141_s28 + $0x1dc0] sm:$0xff] }
 0x4ad   : > { %8567 = vmatpush1.bf16.msra.mxu1 %v8566_v59  ;;  %8441 = vmatprep.subr.bf16.mxu0 %v8440_v60  ;;  %v3852_v59 = vld [vmem:[%s12141_s28 + $0x1d30] sm:$0xff]  ;;  %v8458_v6 = vpack.c.bf16 %v3870_v58, %v3850_v57  ;;  %v4051_v57 = vld [vmem:[%s12141_s28 + $0x2368] sm:$0xff] }
 0x4ae   : > { %8569 = vmatprep.subr.bf16.mxu1 %v8568_v1  ;;  %v3911_v1 = vld [vmem:[%s12141_s28 + $0x1f08] sm:$0xff] }
 0x4af   : > { %v4071_v58 = vld [vmem:[%s12141_s28 + $0x2408] sm:$0xff] }
 0x4b0   : > { %8443 = vmatpush1.bf16.msra.mxu0 %v8442_v7 }
 0x4b1   : > { %8571 = vmatpush1.bf16.msra.mxu1 %v8570_v8  ;;  %8445 = vmatprep.subr.bf16.mxu0 %v8444_v9  ;;  %v8586_v8 = vpack.c.bf16 %v3872_v62, %v3852_v59  ;;  %v8460_v9 = vpack.c.bf16 %v3911_v1, %v3891_v0  ;;  %v4053_v59 = vld [vmem:[%s12141_s28 + $0x2378] sm:$0xff]  ;;  %v8476_v0 = vpack.c.bf16 %v4071_v58, %v4051_v57  ;;  %v4050_v1 = vld [vmem:[%s12141_s28 + $0x2360] sm:$0xff]  ;;  %v2956_v58 = vld [vmem:[%s12141_s28 + $0x130] sm:$0xff] }
 0x4b2   : > { %8573 = vmatprep.subr.bf16.mxu1 %v8572_v14  ;;  %v8588_v14 = vpack.c.bf16 %v3913_v4, %v3893_v3  ;;  %v4052_v3 = vld [vmem:[%s12141_s28 + $0x2370] sm:$0xff] }
 0x4b4   : > { %8447 = vmatpush1.bf16.msra.mxu0 %v8446_v20  ;;  %v3953_v20 = vld [vmem:[%s12141_s28 + $0x2058] sm:$0xff] }
 0x4b5   : > { %8575 = vmatpush1.bf16.msra.mxu1 %v8574_v21  ;;  %8449 = vmatprep.subr.bf16.mxu0 %v8448_v22  ;;  %v8462_v21 = vpack.c.bf16 %v3910_v11, %v3890_v10  ;;  %v8590_v22 = vpack.c.bf16 %v3912_v15, %v3892_v13  ;;  %v8592_v29 = vpack.c.bf16 %v3953_v20, %v3933_v19  ;;  %v4110_v15 = vld [vmem:[%s12141_s28 + $0x2540] sm:$0xff]  ;;  %v4131_v19 = vld [vmem:[%s12141_s28 + $0x25e8] sm:$0xff] }
 0x4b6   : > { %v4641_v42 = vpop.f32.mrb[2].mxu0  ;;  %8577 = vmatprep.subr.bf16.mxu1 %v8576_v28  ;;  %v3932_v28 = vld [vmem:[%s12141_s28 + $0x1fb0] sm:$0xff]  ;;  %v4151_v20 = vld [vmem:[%s12141_s28 + $0x2688] sm:$0xff] }
 0x4b7   : > { %v4783_v47 = vpop.f32.mrb[2].mxu1  ;;  %v4643_v48 = vpop.f32.mrb[3].mxu0 }
 0x4b8   : > { %v5677_v51 = vcombine.low %v4641_v42, %v4643_v48  ;;  %v4785_v52 = vpop.f32.mrb[3].mxu1  ;;  %8451 = vmatpush1.bf16.msra.mxu0 %v8450_v35  ;;  %v3993_v35 = vld [vmem:[%s12141_s28 + $0x2198] sm:$0xff]  ;;  %v3972_v42 = vld [vmem:[%s12141_s28 + $0x20f0] sm:$0xff] }
 0x4b9   : > { %v5678_v54 = vcombine.low %v4783_v47, %v4785_v52  ;;  %8579 = vmatpush1.bf16.msra.mxu1 %v8578_v36  ;;  %8453 = vmatprep.subr.bf16.mxu0 %v8452_v37  ;;  %v8466_v36 = vpack.c.bf16 %v3950_v27, %v3930_v24  ;;  %v8594_v37 = vpack.c.bf16 %v3952_v30, %v3932_v28  ;;  %v4013_v47 = vld [vmem:[%s12141_s28 + $0x2238] sm:$0xff]  ;;  %v4010_v52 = vld [vmem:[%s12141_s28 + $0x2220] sm:$0xff]  ;;  %v4132_v30 = vld [vmem:[%s12141_s28 + $0x25f0] sm:$0xff] }
 0x4ba   : > { %v5685_v60 = vrot.slane %v5677_v51, %v12264_v12  ;;  %8581 = vmatprep.subr.bf16.mxu1 %v8580_v43  ;;  %v8596_v43 = vpack.c.bf16 %v3993_v35, %v3973_v34  ;;  %v4033_v48 = vld [vmem:[%s12141_s28 + $0x22d8] sm:$0xff]  ;;  %v8598_v50 = vpack.c.bf16 %v3992_v44, %v3972_v42  ;;  %v8472_v51 = vpack.c.bf16 %v4031_v46, %v4011_v45  ;;  %v4130_v28 = vld [vmem:[%s12141_s28 + $0x25e0] sm:$0xff]  ;;  %v4171_v34 = vld [vmem:[%s12141_s28 + $0x2728] sm:$0xff] }
 0x4bb   : > { %v5692_v2 = vrot.slane %v5678_v54, %v12264_v12  ;;  %v4012_v54 = vld [vmem:[%s12141_s28 + $0x2230] sm:$0xff]  ;;  %v8484_v27 = vpack.c.bf16 %v4151_v20, %v4131_v19  ;;  %v4191_v35 = vld [vmem:[%s12141_s28 + $0x27c8] sm:$0xff]  ;;  %v8614_v39 = vpack.c.bf16 %v4152_v32, %v4132_v30  ;;  %v4170_v42 = vld [vmem:[%s12141_s28 + $0x2720] sm:$0xff] }
 0x4bc   : > { %8455 = vmatpush1.bf16.msra.mxu0 %v8454_v53  ;;  %v4030_v53 = vld [vmem:[%s12141_s28 + $0x22c0] sm:$0xff]  ;;  %v8488_v41 = vpack.c.bf16 %v4191_v35, %v4171_v34  ;;  %v4172_v44 = vld [vmem:[%s12141_s28 + $0x2730] sm:$0xff] }
 0x4bd   : > { %v5693_v7 = vcombine.low %v5685_v60, %v5692_v2  ;;  %8583 = vmatpush1.bf16.msra.mxu1 %v8582_v55  ;;  %8457 = vmatprep.subr.bf16.mxu0 %v8456_v56  ;;  %v8600_v55 = vpack.c.bf16 %v4033_v48, %v4013_v47  ;;  %v4032_v56 = vld [vmem:[%s12141_s28 + $0x22d0] sm:$0xff]  ;;  %v4073_v60 = vld [vmem:[%s12141_s28 + $0x2418] sm:$0xff]  ;;  %v4070_v2 = vld [vmem:[%s12141_s28 + $0x2400] sm:$0xff] }
 0x4be   : > { %8585 = vmatprep.subr.bf16.mxu1 %v8584_v61  ;;  %v8474_v61 = vpack.c.bf16 %v4030_v53, %v4010_v52  ;;  %v8602_v62 = vpack.c.bf16 %v4032_v56, %v4012_v54  ;;  %v8604_v4 = vpack.c.bf16 %v4073_v60, %v4053_v59  ;;  %v8478_v10 = vpack.c.bf16 %v4070_v2, %v4050_v1  ;;  %v4192_v46 = vld [vmem:[%s12141_s28 + $0x27d0] sm:$0xff]  ;;  %v2935_v47 = vld [vmem:[%s12141_s28 + $0x88] sm:$0xff]  ;;  %v2934_v54 = vld [vmem:[%s12141_s28 + $0x80] sm:$0xff] }
 0x4bf   : > { %v5751_v18 = vadd.f32 %v5693_v7, %v2913_v5  ;;  %v4072_v5 = vld [vmem:[%s12141_s28 + $0x2410] sm:$0xff]  ;;  %v4111_v7 = vld [vmem:[%s12141_s28 + $0x2548] sm:$0xff]  ;;  %v8618_v52 = vpack.c.bf16 %v4192_v46, %v4172_v44  ;;  %v3054_v30 = vld [vmem:[%s12141_s28 + $0x440] sm:$0xff] }
 0x4c0   : > { %8459 = vmatpush1.bf16.msra.mxu0 %v8458_v6  ;;  %v4091_v6 = vld [vmem:[%s12141_s28 + $0x24a8] sm:$0xff]  ;;  %v8606_v11 = vpack.c.bf16 %v4072_v5, %v4052_v3  ;;  %v2936_v56 = vld [vmem:[%s12141_s28 + $0x90] sm:$0xff]  ;;  %v2974_v3 = vld [vmem:[%s12141_s28 + $0x1c0] sm:$0xff] }
 0x4c1   : > { %5756 = vst [vmem:[#allocation2 + $0x8] sm:$0xff] %v5751_v18  ;;  %8587 = vmatpush1.bf16.msra.mxu1 %v8586_v8  ;;  %8461 = vmatprep.subr.bf16.mxu0 %v8460_v9  ;;  %v4093_v8 = vld [vmem:[%s12141_s28 + $0x24b8] sm:$0xff]  ;;  %v8480_v13 = vpack.c.bf16 %v4111_v7, %v4091_v6  ;;  %v4112_v18 = vld [vmem:[%s12141_s28 + $0x2550] sm:$0xff]  ;;  %v2955_v48 = vld [vmem:[%s12141_s28 + $0x128] sm:$0xff]  ;;  %v8750_v1 = vpack.c.bf16 %v2956_v58, %v2936_v56 }
 0x4c2   : > { %8589 = vmatprep.subr.bf16.mxu1 %v8588_v14  ;;  %v4113_v9 = vld [vmem:[%s12141_s28 + $0x2558] sm:$0xff]  ;;  %v4090_v14 = vld [vmem:[%s12141_s28 + $0x24a0] sm:$0xff]  ;;  %v8610_v24 = vpack.c.bf16 %v4112_v18, %v4092_v16  ;;  %v8620_v53 = vpack.c.bf16 %v2955_v48, %v2935_v47  ;;  %v2975_v59 = vld [vmem:[%s12141_s28 + $0x1c8] sm:$0xff] }
 0x4c3   : > { %v8608_v17 = vpack.c.bf16 %v4113_v9, %v4093_v8  ;;  %v2995_v60 = vld [vmem:[%s12141_s28 + $0x268] sm:$0xff]  ;;  %v2976_v5 = vld [vmem:[%s12141_s28 + $0x1d0] sm:$0xff]  ;;  %v3014_v16 = vld [vmem:[%s12141_s28 + $0x300] sm:$0xff] }
 0x4c4   : > { %8463 = vmatpush1.bf16.msra.mxu0 %v8462_v21  ;;  %v4133_v21 = vld [vmem:[%s12141_s28 + $0x25f8] sm:$0xff]  ;;  %v8624_v2 = vpack.c.bf16 %v2995_v60, %v2975_v59  ;;  %v2996_v7 = vld [vmem:[%s12141_s28 + $0x270] sm:$0xff]  ;;  %v3015_v8 = vld [vmem:[%s12141_s28 + $0x308] sm:$0xff] }
 0x4c5   : > { %8591 = vmatpush1.bf16.msra.mxu1 %v8590_v22  ;;  %8465 = vmatprep.subr.bf16.mxu0 %v8464_v23  ;;  %v4153_v22 = vld [vmem:[%s12141_s28 + $0x2698] sm:$0xff]  ;;  %v8482_v23 = vpack.c.bf16 %v4110_v15, %v4090_v14  ;;  %v3035_v9 = vld [vmem:[%s12141_s28 + $0x3a8] sm:$0xff]  ;;  %v8754_v14 = vpack.c.bf16 %v2996_v7, %v2976_v5  ;;  %v3016_v18 = vld [vmem:[%s12141_s28 + $0x310] sm:$0xff] }
 0x4c6   : > { %8593 = vmatprep.subr.bf16.mxu1 %v8592_v29  ;;  %v4150_v29 = vld [vmem:[%s12141_s28 + $0x2680] sm:$0xff]  ;;  %v8612_v31 = vpack.c.bf16 %v4153_v22, %v4133_v21  ;;  %v8628_v15 = vpack.c.bf16 %v3035_v9, %v3015_v8  ;;  %v3036_v20 = vld [vmem:[%s12141_s28 + $0x3b0] sm:$0xff]  ;;  %v3055_v21 = vld [vmem:[%s12141_s28 + $0x448] sm:$0xff] }
 0x4c7   : > { %v3075_v22 = vld [vmem:[%s12141_s28 + $0x4e8] sm:$0xff]  ;;  %v3056_v32 = vld [vmem:[%s12141_s28 + $0x450] sm:$0xff]  ;;  %v3114_v44 = vld [vmem:[%s12141_s28 + $0x620] sm:$0xff] }
 0x4c8   : > { %8467 = vmatpush1.bf16.msra.mxu0 %v8466_v36  ;;  %v4173_v36 = vld [vmem:[%s12141_s28 + $0x2738] sm:$0xff]  ;;  %v3076_v35 = vld [vmem:[%s12141_s28 + $0x4f0] sm:$0xff]  ;;  %v3135_v48 = vld [vmem:[%s12141_s28 + $0x6c8] sm:$0xff] }
 0x4c9   : > { %8595 = vmatpush1.bf16.msra.mxu1 %v8594_v37  ;;  %8469 = vmatprep.subr.bf16.mxu0 %v8468_v38  ;;  %v4193_v37 = vld [vmem:[%s12141_s28 + $0x27d8] sm:$0xff]  ;;  %v8486_v38 = vpack.c.bf16 %v4150_v29, %v4130_v28  ;;  %v8758_v28 = vpack.c.bf16 %v3036_v20, %v3016_v18  ;;  %v8632_v29 = vpack.c.bf16 %v3075_v22, %v3055_v21  ;;  %v3116_v47 = vld [vmem:[%s12141_s28 + $0x630] sm:$0xff]  ;;  %v3154_v56 = vld [vmem:[%s12141_s28 + $0x760] sm:$0xff] }
 0x4ca   : > { %8597 = vmatprep.subr.bf16.mxu1 %v8596_v43  ;;  %v4190_v43 = vld [vmem:[%s12141_s28 + $0x27c0] sm:$0xff]  ;;  %v8616_v45 = vpack.c.bf16 %v4193_v37, %v4173_v36  ;;  %v3095_v36 = vld [vmem:[%s12141_s28 + $0x588] sm:$0xff]  ;;  %v3097_v37 = vld [vmem:[%s12141_s28 + $0x598] sm:$0xff] }
 0x4cb   : > { %v3156_v59 = vld [vmem:[%s12141_s28 + $0x770] sm:$0xff]  ;;  %v3175_v60 = vld [vmem:[%s12141_s28 + $0x808] sm:$0xff]  ;;  %v3194_v5 = vld [vmem:[%s12141_s28 + $0x8a0] sm:$0xff] }
 0x4cc   : > { %8471 = vmatpush1.bf16.msra.mxu0 %v8470_v49  ;;  %v2937_v49 = vld [vmem:[%s12141_s28 + $0x98] sm:$0xff]  ;;  %v3196_v8 = vld [vmem:[%s12141_s28 + $0x8b0] sm:$0xff]  ;;  %v3215_v9 = vld [vmem:[%s12141_s28 + $0x948] sm:$0xff] }
 0x4cd   : > { %8599 = vmatpush1.bf16.msra.mxu1 %v8598_v50  ;;  %8473 = vmatprep.subr.bf16.mxu0 %v8472_v51  ;;  %v2957_v50 = vld [vmem:[%s12141_s28 + $0x138] sm:$0xff]  ;;  %v8490_v51 = vpack.c.bf16 %v4190_v43, %v4170_v42  ;;  %v3094_v43 = vld [vmem:[%s12141_s28 + $0x580] sm:$0xff]  ;;  %v3236_v21 = vld [vmem:[%s12141_s28 + $0x9f0] sm:$0xff] }
 0x4ce   : > { %8601 = vmatprep.subr.bf16.mxu1 %v8600_v55  ;;  %v2954_v55 = vld [vmem:[%s12141_s28 + $0x120] sm:$0xff]  ;;  %v8748_v57 = vpack.c.bf16 %v2957_v50, %v2937_v49  ;;  %v3155_v49 = vld [vmem:[%s12141_s28 + $0x768] sm:$0xff]  ;;  %v3137_v50 = vld [vmem:[%s12141_s28 + $0x6d8] sm:$0xff] }
 0x4cf   : > { %v3234_v18 = vld [vmem:[%s12141_s28 + $0x9e0] sm:$0xff]  ;;  %v3255_v22 = vld [vmem:[%s12141_s28 + $0xa88] sm:$0xff] }
 0x4d0   : > { %8475 = vmatpush1.bf16.msra.mxu0 %v8474_v61  ;;  %v2977_v61 = vld [vmem:[%s12141_s28 + $0x1d8] sm:$0xff] }
 0x4d1   : > { %8603 = vmatpush1.bf16.msra.mxu1 %v8602_v62  ;;  %8477 = vmatprep.subr.bf16.mxu0 %v8476_v0  ;;  %v2997_v62 = vld [vmem:[%s12141_s28 + $0x278] sm:$0xff]  ;;  %v8622_v0 = vpack.c.bf16 %v2954_v55, %v2934_v54  ;;  %v8640_v54 = vpack.c.bf16 %v3155_v49, %v3135_v48  ;;  %v3134_v55 = vld [vmem:[%s12141_s28 + $0x6c0] sm:$0xff]  ;;  %v3316_v48 = vld [vmem:[%s12141_s28 + $0xc70] sm:$0xff] }
 0x4d2   : > { %8605 = vmatprep.subr.bf16.mxu1 %v8604_v4  ;;  %v2994_v4 = vld [vmem:[%s12141_s28 + $0x260] sm:$0xff]  ;;  %v8752_v6 = vpack.c.bf16 %v2997_v62, %v2977_v61  ;;  %v3195_v61 = vld [vmem:[%s12141_s28 + $0x8a8] sm:$0xff]  ;;  %v3177_v62 = vld [vmem:[%s12141_s28 + $0x818] sm:$0xff] }
 0x4d3   : > { %v3335_v49 = vld [vmem:[%s12141_s28 + $0xd08] sm:$0xff] }
 0x4d4   : > { %8479 = vmatpush1.bf16.msra.mxu0 %v8478_v10  ;;  %v3017_v10 = vld [vmem:[%s12141_s28 + $0x318] sm:$0xff] }
 0x4d5   : > { %8607 = vmatpush1.bf16.msra.mxu1 %v8606_v11  ;;  %8481 = vmatprep.subr.bf16.mxu0 %v8480_v13  ;;  %v3037_v11 = vld [vmem:[%s12141_s28 + $0x3b8] sm:$0xff]  ;;  %v8626_v13 = vpack.c.bf16 %v2994_v4, %v2974_v3  ;;  %v8644_v3 = vpack.c.bf16 %v3195_v61, %v3175_v60  ;;  %v3174_v4 = vld [vmem:[%s12141_s28 + $0x800] sm:$0xff]  ;;  %v3356_v60 = vld [vmem:[%s12141_s28 + $0xdb0] sm:$0xff] }
 0x4d6   : > { %8609 = vmatprep.subr.bf16.mxu1 %v8608_v17  ;;  %v3034_v17 = vld [vmem:[%s12141_s28 + $0x3a0] sm:$0xff]  ;;  %v8756_v19 = vpack.c.bf16 %v3037_v11, %v3017_v10  ;;  %v3235_v10 = vld [vmem:[%s12141_s28 + $0x9e8] sm:$0xff]  ;;  %v3217_v11 = vld [vmem:[%s12141_s28 + $0x958] sm:$0xff] }
 0x4d7   : > { %v3375_v61 = vld [vmem:[%s12141_s28 + $0xe48] sm:$0xff] }
 0x4d8   : > { %8483 = vmatpush1.bf16.msra.mxu0 %v8482_v23  ;;  %v3057_v23 = vld [vmem:[%s12141_s28 + $0x458] sm:$0xff] }
 0x4d9   : > { %8611 = vmatpush1.bf16.msra.mxu1 %v8610_v24  ;;  %8485 = vmatprep.subr.bf16.mxu0 %v8484_v27  ;;  %v3077_v24 = vld [vmem:[%s12141_s28 + $0x4f8] sm:$0xff]  ;;  %v8630_v27 = vpack.c.bf16 %v3034_v17, %v3014_v16  ;;  %v8648_v16 = vpack.c.bf16 %v3235_v10, %v3215_v9  ;;  %v3214_v17 = vld [vmem:[%s12141_s28 + $0x940] sm:$0xff]  ;;  %v3396_v9 = vld [vmem:[%s12141_s28 + $0xef0] sm:$0xff] }
 0x4da   : > { %8613 = vmatprep.subr.bf16.mxu1 %v8612_v31  ;;  %v3074_v31 = vld [vmem:[%s12141_s28 + $0x4e0] sm:$0xff]  ;;  %v8760_v34 = vpack.c.bf16 %v3077_v24, %v3057_v23  ;;  %v3275_v23 = vld [vmem:[%s12141_s28 + $0xb28] sm:$0xff]  ;;  %v3257_v24 = vld [vmem:[%s12141_s28 + $0xa98] sm:$0xff] }
 0x4db   : > { %v3415_v10 = vld [vmem:[%s12141_s28 + $0xf88] sm:$0xff] }
 0x4dc   : > { %8487 = vmatpush1.bf16.msra.mxu0 %v8486_v38  ;;  %v3117_v38 = vld [vmem:[%s12141_s28 + $0x638] sm:$0xff] }
 0x4dd   : > { %8615 = vmatpush1.bf16.msra.mxu1 %v8614_v39  ;;  %8489 = vmatprep.subr.bf16.mxu0 %v8488_v41  ;;  %v8634_v39 = vpack.c.bf16 %v3074_v31, %v3054_v30  ;;  %v8762_v41 = vpack.c.bf16 %v3076_v35, %v3056_v32  ;;  %v8764_v46 = vpack.c.bf16 %v3117_v38, %v3097_v37  ;;  %v3254_v31 = vld [vmem:[%s12141_s28 + $0xa80] sm:$0xff]  ;;  %v3315_v37 = vld [vmem:[%s12141_s28 + $0xc68] sm:$0xff]  ;;  %v3297_v38 = vld [vmem:[%s12141_s28 + $0xbd8] sm:$0xff] }
 0x4de   : > { %8617 = vmatprep.subr.bf16.mxu1 %v8616_v45  ;;  %v3096_v45 = vld [vmem:[%s12141_s28 + $0x590] sm:$0xff]  ;;  %v8652_v30 = vpack.c.bf16 %v3275_v23, %v3255_v22  ;;  %v3274_v32 = vld [vmem:[%s12141_s28 + $0xb20] sm:$0xff]  ;;  %v3455_v23 = vld [vmem:[%s12141_s28 + $0x10c8] sm:$0xff] }
 0x4df   : > { %v3436_v22 = vld [vmem:[%s12141_s28 + $0x1030] sm:$0xff] }
 0x4e0   : > { %8491 = vmatpush1.bf16.msra.mxu0 %v8490_v51  ;;  %v3157_v51 = vld [vmem:[%s12141_s28 + $0x778] sm:$0xff] }
 0x4e1   : > { %8619 = vmatpush1.bf16.msra.mxu1 %v8618_v52  ;;  %8621 = vmatprep.subr.bf16.mxu0 %v8620_v53  ;;  %v8638_v52 = vpack.c.bf16 %v3114_v44, %v3094_v43  ;;  %v8766_v53 = vpack.c.bf16 %v3116_v47, %v3096_v45  ;;  %v8768_v58 = vpack.c.bf16 %v3157_v51, %v3137_v50  ;;  %v3294_v44 = vld [vmem:[%s12141_s28 + $0xbc0] sm:$0xff]  ;;  %v3355_v50 = vld [vmem:[%s12141_s28 + $0xda8] sm:$0xff]  ;;  %v3337_v51 = vld [vmem:[%s12141_s28 + $0xd18] sm:$0xff] }
 0x4e2   : > { %8749 = vmatprep.subr.bf16.mxu1 %v8748_v57  ;;  %v3136_v57 = vld [vmem:[%s12141_s28 + $0x6d0] sm:$0xff]  ;;  %v3314_v45 = vld [vmem:[%s12141_s28 + $0xc60] sm:$0xff] }
 0x4e3   : > { %5208 = vmatmul.mubr.f32.vlgmr.msra.gmra.mrb[6].mxu0 %v12328_v25 }
 0x4e4   : > { %5350 = vmatmul.mubr.f32.vlgmr.msra.gmra.mrb[6].mxu1 %v12328_v25  ;;  %8623 = vmatpush1.bf16.msra.mxu0 %v8622_v0  ;;  %v3197_v0 = vld [vmem:[%s12141_s28 + $0x8b8] sm:$0xff] }
 0x4e5   : > { %8751 = vmatpush1.bf16.msra.mxu1 %v8750_v1  ;;  %8625 = vmatprep.subr.bf16.mxu0 %v8624_v2  ;;  %v8642_v1 = vpack.c.bf16 %v3154_v56, %v3134_v55  ;;  %v8770_v2 = vpack.c.bf16 %v3156_v59, %v3136_v57  ;;  %v8772_v7 = vpack.c.bf16 %v3197_v0, %v3177_v62  ;;  %v3334_v56 = vld [vmem:[%s12141_s28 + $0xd00] sm:$0xff]  ;;  %v3395_v62 = vld [vmem:[%s12141_s28 + $0xee8] sm:$0xff]  ;;  %v3377_v0 = vld [vmem:[%s12141_s28 + $0xe58] sm:$0xff] }
 0x4e6   : > { %8753 = vmatprep.subr.bf16.mxu1 %v8752_v6  ;;  %5420 = vmatprep.mubr.f32.mxu0 %v12286_v33  ;;  %v3176_v6 = vld [vmem:[%s12141_s28 + $0x810] sm:$0xff]  ;;  %v8660_v55 = vpack.c.bf16 %v3355_v50, %v3335_v49  ;;  %v3354_v57 = vld [vmem:[%s12141_s28 + $0xda0] sm:$0xff]  ;;  %v3535_v50 = vld [vmem:[%s12141_s28 + $0x1348] sm:$0xff] }
 0x4e7   : > { %5562 = vmatprep.mubr.f32.mxu1 %v12286_v33  ;;  %v3115_v33 = vld [vmem:[%s12141_s28 + $0x628] sm:$0xff]  ;;  %v3516_v49 = vld [vmem:[%s12141_s28 + $0x12b0] sm:$0xff] }
 0x4e8   : > { %8627 = vmatpush1.bf16.msra.mxu0 %v8626_v13  ;;  %v8636_v42 = vpack.c.bf16 %v3115_v33, %v3095_v36  ;;  %v3237_v13 = vld [vmem:[%s12141_s28 + $0x9f8] sm:$0xff]  ;;  %v3276_v36 = vld [vmem:[%s12141_s28 + $0xb30] sm:$0xff]  ;;  %v3295_v33 = vld [vmem:[%s12141_s28 + $0xbc8] sm:$0xff] }
 0x4e9   : > { %8755 = vmatpush1.bf16.msra.mxu1 %v8754_v14  ;;  %8629 = vmatprep.subr.bf16.mxu0 %v8628_v15  ;;  %v8646_v14 = vpack.c.bf16 %v3194_v5, %v3174_v4  ;;  %v8774_v15 = vpack.c.bf16 %v3196_v8, %v3176_v6  ;;  %v8776_v20 = vpack.c.bf16 %v3237_v13, %v3217_v11  ;;  %v3374_v5 = vld [vmem:[%s12141_s28 + $0xe40] sm:$0xff]  ;;  %v3435_v11 = vld [vmem:[%s12141_s28 + $0x1028] sm:$0xff]  ;;  %v3417_v13 = vld [vmem:[%s12141_s28 + $0xf98] sm:$0xff] }
 0x4ea   : > { %8757 = vmatprep.subr.bf16.mxu1 %v8756_v19  ;;  %v3216_v19 = vld [vmem:[%s12141_s28 + $0x950] sm:$0xff]  ;;  %v8656_v43 = vpack.c.bf16 %v3315_v37, %v3295_v33  ;;  %v8664_v4 = vpack.c.bf16 %v3395_v62, %v3375_v61  ;;  %v3394_v6 = vld [vmem:[%s12141_s28 + $0xee0] sm:$0xff]  ;;  %v3495_v37 = vld [vmem:[%s12141_s28 + $0x1208] sm:$0xff] }
 0x4eb   : > { %v3476_v33 = vld [vmem:[%s12141_s28 + $0x1170] sm:$0xff]  ;;  %v3575_v62 = vld [vmem:[%s12141_s28 + $0x1488] sm:$0xff] }
 0x4ec   : > { %8631 = vmatpush1.bf16.msra.mxu0 %v8630_v27  ;;  %v3277_v27 = vld [vmem:[%s12141_s28 + $0xb38] sm:$0xff]  ;;  %v3556_v61 = vld [vmem:[%s12141_s28 + $0x13f0] sm:$0xff] }
 0x4ed   : > { %8759 = vmatpush1.bf16.msra.mxu1 %v8758_v28  ;;  %8633 = vmatprep.subr.bf16.mxu0 %v8632_v29  ;;  %v8650_v28 = vpack.c.bf16 %v3234_v18, %v3214_v17  ;;  %v8778_v29 = vpack.c.bf16 %v3236_v21, %v3216_v19  ;;  %v8780_v35 = vpack.c.bf16 %v3277_v27, %v3257_v24  ;;  %v3414_v18 = vld [vmem:[%s12141_s28 + $0xf80] sm:$0xff]  ;;  %v3475_v24 = vld [vmem:[%s12141_s28 + $0x1168] sm:$0xff]  ;;  %v3457_v27 = vld [vmem:[%s12141_s28 + $0x10d8] sm:$0xff] }
 0x4ee   : > { %8761 = vmatprep.subr.bf16.mxu1 %v8760_v34  ;;  %v3256_v34 = vld [vmem:[%s12141_s28 + $0xa90] sm:$0xff]  ;;  %v8668_v17 = vpack.c.bf16 %v3435_v11, %v3415_v10  ;;  %v3434_v19 = vld [vmem:[%s12141_s28 + $0x1020] sm:$0xff]  ;;  %v3615_v11 = vld [vmem:[%s12141_s28 + $0x15c8] sm:$0xff] }
 0x4ef   : > { %v3596_v10 = vld [vmem:[%s12141_s28 + $0x1530] sm:$0xff] }
 0x4f0   : > { %8635 = vmatpush1.bf16.msra.mxu0 %v8634_v39  ;;  %v3317_v39 = vld [vmem:[%s12141_s28 + $0xc78] sm:$0xff] }
 0x4f1   : > { %8763 = vmatpush1.bf16.msra.mxu1 %v8762_v41  ;;  %8637 = vmatprep.subr.bf16.mxu0 %v8636_v42  ;;  %v8654_v41 = vpack.c.bf16 %v3274_v32, %v3254_v31  ;;  %v8782_v42 = vpack.c.bf16 %v3276_v36, %v3256_v34  ;;  %v8784_v47 = vpack.c.bf16 %v3317_v39, %v3297_v38  ;;  %v3454_v32 = vld [vmem:[%s12141_s28 + $0x10c0] sm:$0xff]  ;;  %v3515_v38 = vld [vmem:[%s12141_s28 + $0x12a8] sm:$0xff]  ;;  %v3497_v39 = vld [vmem:[%s12141_s28 + $0x1218] sm:$0xff] }
 0x4f2   : > { %8765 = vmatprep.subr.bf16.mxu1 %v8764_v46  ;;  %v3296_v46 = vld [vmem:[%s12141_s28 + $0xbd0] sm:$0xff]  ;;  %v8672_v31 = vpack.c.bf16 %v3475_v24, %v3455_v23  ;;  %v3474_v34 = vld [vmem:[%s12141_s28 + $0x1160] sm:$0xff]  ;;  %v3655_v24 = vld [vmem:[%s12141_s28 + $0x1708] sm:$0xff] }
 0x4f3   : > { %v3636_v23 = vld [vmem:[%s12141_s28 + $0x1670] sm:$0xff] }
 0x4f4   : > { %8639 = vmatpush1.bf16.msra.mxu0 %v8638_v52  ;;  %v3357_v52 = vld [vmem:[%s12141_s28 + $0xdb8] sm:$0xff] }
 0x4f5   : > { %8767 = vmatpush1.bf16.msra.mxu1 %v8766_v53  ;;  %8641 = vmatprep.subr.bf16.mxu0 %v8640_v54  ;;  %v8658_v53 = vpack.c.bf16 %v3314_v45, %v3294_v44  ;;  %v8786_v54 = vpack.c.bf16 %v3316_v48, %v3296_v46  ;;  %v8788_v59 = vpack.c.bf16 %v3357_v52, %v3337_v51  ;;  %v3494_v45 = vld [vmem:[%s12141_s28 + $0x1200] sm:$0xff]  ;;  %v3555_v51 = vld [vmem:[%s12141_s28 + $0x13e8] sm:$0xff]  ;;  %v3537_v52 = vld [vmem:[%s12141_s28 + $0x1358] sm:$0xff] }
 0x4f6   : > { %8769 = vmatprep.subr.bf16.mxu1 %v8768_v58  ;;  %v3336_v58 = vld [vmem:[%s12141_s28 + $0xd10] sm:$0xff]  ;;  %v8676_v44 = vpack.c.bf16 %v3515_v38, %v3495_v37  ;;  %v3514_v46 = vld [vmem:[%s12141_s28 + $0x12a0] sm:$0xff]  ;;  %v3695_v38 = vld [vmem:[%s12141_s28 + $0x1848] sm:$0xff] }
 0x4f7   : > { %v3676_v37 = vld [vmem:[%s12141_s28 + $0x17b0] sm:$0xff] }
 0x4f8   : > { %8643 = vmatpush1.bf16.msra.mxu0 %v8642_v1  ;;  %v3397_v1 = vld [vmem:[%s12141_s28 + $0xef8] sm:$0xff] }
 0x4f9   : > { %8771 = vmatpush1.bf16.msra.mxu1 %v8770_v2  ;;  %8645 = vmatprep.subr.bf16.mxu0 %v8644_v3  ;;  %v8662_v2 = vpack.c.bf16 %v3354_v57, %v3334_v56  ;;  %v8790_v3 = vpack.c.bf16 %v3356_v60, %v3336_v58  ;;  %v8792_v8 = vpack.c.bf16 %v3397_v1, %v3377_v0  ;;  %v3534_v57 = vld [vmem:[%s12141_s28 + $0x1340] sm:$0xff]  ;;  %v3595_v0 = vld [vmem:[%s12141_s28 + $0x1528] sm:$0xff]  ;;  %v3577_v1 = vld [vmem:[%s12141_s28 + $0x1498] sm:$0xff] }
 0x4fa   : > { %8773 = vmatprep.subr.bf16.mxu1 %v8772_v7  ;;  %v3376_v7 = vld [vmem:[%s12141_s28 + $0xe50] sm:$0xff]  ;;  %v8680_v56 = vpack.c.bf16 %v3555_v51, %v3535_v50  ;;  %v3554_v58 = vld [vmem:[%s12141_s28 + $0x13e0] sm:$0xff]  ;;  %v3735_v50 = vld [vmem:[%s12141_s28 + $0x1988] sm:$0xff] }
 0x4fb   : > { %v3737_v51 = vld [vmem:[%s12141_s28 + $0x1998] sm:$0xff] }
 0x4fc   : > { %8647 = vmatpush1.bf16.msra.mxu0 %v8646_v14  ;;  %v3437_v14 = vld [vmem:[%s12141_s28 + $0x1038] sm:$0xff] }
 0x4fd   : > { %8775 = vmatpush1.bf16.msra.mxu1 %v8774_v15  ;;  %8649 = vmatprep.subr.bf16.mxu0 %v8648_v16  ;;  %v8666_v15 = vpack.c.bf16 %v3394_v6, %v3374_v5  ;;  %v8794_v16 = vpack.c.bf16 %v3396_v9, %v3376_v7  ;;  %v8796_v21 = vpack.c.bf16 %v3437_v14, %v3417_v13  ;;  %v3574_v6 = vld [vmem:[%s12141_s28 + $0x1480] sm:$0xff]  ;;  %v3635_v13 = vld [vmem:[%s12141_s28 + $0x1668] sm:$0xff]  ;;  %v3617_v14 = vld [vmem:[%s12141_s28 + $0x15d8] sm:$0xff] }
 0x4fe   : > { %8777 = vmatprep.subr.bf16.mxu1 %v8776_v20  ;;  %v3416_v20 = vld [vmem:[%s12141_s28 + $0xf90] sm:$0xff]  ;;  %v8684_v5 = vpack.c.bf16 %v3595_v0, %v3575_v62  ;;  %v3594_v7 = vld [vmem:[%s12141_s28 + $0x1520] sm:$0xff]  ;;  %v3795_v62 = vld [vmem:[%s12141_s28 + $0x1b68] sm:$0xff] }
 0x4ff   : > { %v3777_v0 = vld [vmem:[%s12141_s28 + $0x1ad8] sm:$0xff] }
 0x500   : > { %8651 = vmatpush1.bf16.msra.mxu0 %v8650_v28  ;;  %v3477_v28 = vld [vmem:[%s12141_s28 + $0x1178] sm:$0xff] }
 0x501   : > { %8779 = vmatpush1.bf16.msra.mxu1 %v8778_v29  ;;  %8653 = vmatprep.subr.bf16.mxu0 %v8652_v30  ;;  %v8670_v29 = vpack.c.bf16 %v3434_v19, %v3414_v18  ;;  %v8798_v30 = vpack.c.bf16 %v3436_v22, %v3416_v20  ;;  %v8800_v36 = vpack.c.bf16 %v3477_v28, %v3457_v27  ;;  %v3614_v19 = vld [vmem:[%s12141_s28 + $0x15c0] sm:$0xff]  ;;  %v3675_v27 = vld [vmem:[%s12141_s28 + $0x17a8] sm:$0xff]  ;;  %v3657_v28 = vld [vmem:[%s12141_s28 + $0x1718] sm:$0xff] }
 0x502   : > { %8781 = vmatprep.subr.bf16.mxu1 %v8780_v35  ;;  %v3456_v35 = vld [vmem:[%s12141_s28 + $0x10d0] sm:$0xff]  ;;  %v8688_v18 = vpack.c.bf16 %v3635_v13, %v3615_v11  ;;  %v3634_v20 = vld [vmem:[%s12141_s28 + $0x1660] sm:$0xff]  ;;  %v3835_v11 = vld [vmem:[%s12141_s28 + $0x1ca8] sm:$0xff] }
 0x503   : > { %v3817_v13 = vld [vmem:[%s12141_s28 + $0x1c18] sm:$0xff] }
 0x504   : > { %8655 = vmatpush1.bf16.msra.mxu0 %v8654_v41  ;;  %v3517_v41 = vld [vmem:[%s12141_s28 + $0x12b8] sm:$0xff] }
 0x505   : > { %8783 = vmatpush1.bf16.msra.mxu1 %v8782_v42  ;;  %8657 = vmatprep.subr.bf16.mxu0 %v8656_v43  ;;  %v8674_v42 = vpack.c.bf16 %v3474_v34, %v3454_v32  ;;  %v8802_v43 = vpack.c.bf16 %v3476_v33, %v3456_v35  ;;  %v8804_v48 = vpack.c.bf16 %v3517_v41, %v3497_v39  ;;  %v3654_v34 = vld [vmem:[%s12141_s28 + $0x1700] sm:$0xff]  ;;  %v3715_v39 = vld [vmem:[%s12141_s28 + $0x18e8] sm:$0xff]  ;;  %v3717_v41 = vld [vmem:[%s12141_s28 + $0x18f8] sm:$0xff] }
 0x506   : > { %8785 = vmatprep.subr.bf16.mxu1 %v8784_v47  ;;  %v3496_v47 = vld [vmem:[%s12141_s28 + $0x1210] sm:$0xff]  ;;  %v8692_v32 = vpack.c.bf16 %v3675_v27, %v3655_v24  ;;  %v3674_v35 = vld [vmem:[%s12141_s28 + $0x17a0] sm:$0xff]  ;;  %v3855_v24 = vld [vmem:[%s12141_s28 + $0x1d48] sm:$0xff] }
 0x507   : > { %v3875_v27 = vld [vmem:[%s12141_s28 + $0x1de8] sm:$0xff] }
 0x508   : > { %8659 = vmatpush1.bf16.msra.mxu0 %v8658_v53  ;;  %v3557_v53 = vld [vmem:[%s12141_s28 + $0x13f8] sm:$0xff] }
 0x509   : > { %8787 = vmatpush1.bf16.msra.mxu1 %v8786_v54  ;;  %8661 = vmatprep.subr.bf16.mxu0 %v8660_v55  ;;  %v8678_v54 = vpack.c.bf16 %v3514_v46, %v3494_v45  ;;  %v8806_v55 = vpack.c.bf16 %v3516_v49, %v3496_v47  ;;  %v8808_v60 = vpack.c.bf16 %v3557_v53, %v3537_v52  ;;  %v3694_v45 = vld [vmem:[%s12141_s28 + $0x1840] sm:$0xff]  ;;  %v3696_v47 = vld [vmem:[%s12141_s28 + $0x1850] sm:$0xff]  ;;  %v3757_v52 = vld [vmem:[%s12141_s28 + $0x1a38] sm:$0xff] }
 0x50a   : > { %8789 = vmatprep.subr.bf16.mxu1 %v8788_v59  ;;  %v3536_v59 = vld [vmem:[%s12141_s28 + $0x1350] sm:$0xff]  ;;  %v3714_v46 = vld [vmem:[%s12141_s28 + $0x18e0] sm:$0xff] }
 0x50b   : > { %v3716_v49 = vld [vmem:[%s12141_s28 + $0x18f0] sm:$0xff]  ;;  %v8698_v53 = vpack.c.bf16 %v3714_v46, %v3694_v45  ;;  %v3915_v45 = vld [vmem:[%s12141_s28 + $0x1f28] sm:$0xff] }
 0x50c   : > { %8663 = vmatpush1.bf16.msra.mxu0 %v8662_v2  ;;  %v3597_v2 = vld [vmem:[%s12141_s28 + $0x1538] sm:$0xff] }
 0x50d   : > { %8791 = vmatpush1.bf16.msra.mxu1 %v8790_v3  ;;  %8665 = vmatprep.subr.bf16.mxu0 %v8664_v4  ;;  %v8682_v3 = vpack.c.bf16 %v3554_v58, %v3534_v57  ;;  %v8810_v4 = vpack.c.bf16 %v3556_v61, %v3536_v59  ;;  %v8812_v9 = vpack.c.bf16 %v3597_v2, %v3577_v1  ;;  %v3754_v57 = vld [vmem:[%s12141_s28 + $0x1a20] sm:$0xff]  ;;  %v3736_v58 = vld [vmem:[%s12141_s28 + $0x1990] sm:$0xff]  ;;  %v3775_v61 = vld [vmem:[%s12141_s28 + $0x1ac8] sm:$0xff] }
 0x50e   : > { %8793 = vmatprep.subr.bf16.mxu1 %v8792_v8  ;;  %v3576_v8 = vld [vmem:[%s12141_s28 + $0x1490] sm:$0xff]  ;;  %v8828_v59 = vpack.c.bf16 %v3757_v52, %v3737_v51  ;;  %v3797_v1 = vld [vmem:[%s12141_s28 + $0x1b78] sm:$0xff] }
 0x510   : > { %8667 = vmatpush1.bf16.msra.mxu0 %v8666_v15  ;;  %v3637_v15 = vld [vmem:[%s12141_s28 + $0x1678] sm:$0xff] }
 0x511   : > { %8795 = vmatpush1.bf16.msra.mxu1 %v8794_v16  ;;  %8669 = vmatprep.subr.bf16.mxu0 %v8668_v17  ;;  %v8686_v16 = vpack.c.bf16 %v3594_v7, %v3574_v6  ;;  %v8814_v17 = vpack.c.bf16 %v3596_v10, %v3576_v8  ;;  %v8816_v22 = vpack.c.bf16 %v3637_v15, %v3617_v14  ;;  %v3794_v6 = vld [vmem:[%s12141_s28 + $0x1b60] sm:$0xff]  ;;  %v3776_v7 = vld [vmem:[%s12141_s28 + $0x1ad0] sm:$0xff]  ;;  %v3815_v10 = vld [vmem:[%s12141_s28 + $0x1c08] sm:$0xff] }
 0x512   : > { %8797 = vmatprep.subr.bf16.mxu1 %v8796_v21  ;;  %v3616_v21 = vld [vmem:[%s12141_s28 + $0x15d0] sm:$0xff]  ;;  %v8832_v8 = vpack.c.bf16 %v3797_v1, %v3777_v0  ;;  %v3837_v14 = vld [vmem:[%s12141_s28 + $0x1cb8] sm:$0xff] }
 0x514   : > { %8671 = vmatpush1.bf16.msra.mxu0 %v8670_v29  ;;  %v3677_v29 = vld [vmem:[%s12141_s28 + $0x17b8] sm:$0xff] }
 0x515   : > { %8799 = vmatpush1.bf16.msra.mxu1 %v8798_v30  ;;  %8673 = vmatprep.subr.bf16.mxu0 %v8672_v31  ;;  %v8690_v30 = vpack.c.bf16 %v3634_v20, %v3614_v19  ;;  %v8818_v31 = vpack.c.bf16 %v3636_v23, %v3616_v21  ;;  %v8820_v33 = vpack.c.bf16 %v3677_v29, %v3657_v28  ;;  %v3834_v19 = vld [vmem:[%s12141_s28 + $0x1ca0] sm:$0xff]  ;;  %v3816_v20 = vld [vmem:[%s12141_s28 + $0x1c10] sm:$0xff] }
 0x516   : > { %8801 = vmatprep.subr.bf16.mxu1 %v8800_v36  ;;  %v3656_v36 = vld [vmem:[%s12141_s28 + $0x1710] sm:$0xff] }
 0x517   : > { %v3836_v23 = vld [vmem:[%s12141_s28 + $0x1cb0] sm:$0xff] }
 0x518   : > { %8675 = vmatpush1.bf16.msra.mxu0 %v8674_v42  ;;  %v8694_v42 = vpack.c.bf16 %v3674_v35, %v3654_v34 }
 0x519   : > { %8803 = vmatpush1.bf16.msra.mxu1 %v8802_v43  ;;  %8677 = vmatprep.subr.bf16.mxu0 %v8676_v44  ;;  %v8822_v43 = vpack.c.bf16 %v3676_v37, %v3656_v36  ;;  %v8696_v44 = vpack.c.bf16 %v3715_v39, %v3695_v38  ;;  %v8712_v37 = vpack.c.bf16 %v3875_v27, %v3855_v24  ;;  %v3854_v38 = vld [vmem:[%s12141_s28 + $0x1d40] sm:$0xff]  ;;  %v4037_v24 = vld [vmem:[%s12141_s28 + $0x22f8] sm:$0xff] }
 0x51a   : > { %8805 = vmatprep.subr.bf16.mxu1 %v8804_v48  ;;  %v3874_v39 = vld [vmem:[%s12141_s28 + $0x1de0] sm:$0xff] }
 0x51c   : > { %8679 = vmatpush1.bf16.msra.mxu0 %v8678_v54  ;;  %v8826_v54 = vpack.c.bf16 %v3716_v49, %v3696_v47  ;;  %v3897_v47 = vld [vmem:[%s12141_s28 + $0x1e98] sm:$0xff]  ;;  %v2914_v49 = vld [vmem:[#allocation2 + $0x10] sm:$0xff] }
 0x51d   : > { %8807 = vmatpush1.bf16.msra.mxu1 %v8806_v55  ;;  %8681 = vmatprep.subr.bf16.mxu0 %v8680_v56  ;;  %v3734_v56 = vld [vmem:[%s12141_s28 + $0x1980] sm:$0xff] }
 0x51e   : > { %8809 = vmatprep.subr.bf16.mxu1 %v8808_v60  ;;  %v3756_v60 = vld [vmem:[%s12141_s28 + $0x1a30] sm:$0xff]  ;;  %v8702_v2 = vpack.c.bf16 %v3754_v57, %v3734_v56 }
 0x51f   : > { %v3916_v57 = vld [vmem:[%s12141_s28 + $0x1f30] sm:$0xff] }
 0x520   : > { %8683 = vmatpush1.bf16.msra.mxu0 %v8682_v3  ;;  %v8830_v3 = vpack.c.bf16 %v3756_v60, %v3736_v58  ;;  %v3935_v58 = vld [vmem:[%s12141_s28 + $0x1fc8] sm:$0xff] }
 0x521   : > { %8811 = vmatpush1.bf16.msra.mxu1 %v8810_v4  ;;  %8685 = vmatprep.subr.bf16.mxu0 %v8684_v5  ;;  %v8704_v4 = vpack.c.bf16 %v3795_v62, %v3775_v61  ;;  %v3774_v5 = vld [vmem:[%s12141_s28 + $0x1ac0] sm:$0xff]  ;;  %v3937_v61 = vld [vmem:[%s12141_s28 + $0x1fd8] sm:$0xff] }
 0x522   : > { %8813 = vmatprep.subr.bf16.mxu1 %v8812_v9  ;;  %v3796_v9 = vld [vmem:[%s12141_s28 + $0x1b70] sm:$0xff]  ;;  %v8706_v15 = vpack.c.bf16 %v3794_v6, %v3774_v5  ;;  %v3957_v62 = vld [vmem:[%s12141_s28 + $0x2078] sm:$0xff] }
 0x523   : > { %5421 = vmatmul.mubr.f32.vlgmr.msra.gmra.mrb[8].mxu0 %v12279_v26  ;;  %v3936_v5 = vld [vmem:[%s12141_s28 + $0x1fd0] sm:$0xff]  ;;  %v8848_v6 = vpack.c.bf16 %v3957_v62, %v3937_v61  ;;  %v4157_v61 = vld [vmem:[%s12141_s28 + $0x26b8] sm:$0xff] }
 0x524   : > { %8687 = vmatpush1.bf16.msra.mxu0 %v8686_v16  ;;  %5563 = vmatmul.mubr.f32.vlgmr.msra.gmra.mrb[8].mxu1 %v12279_v26  ;;  %v3697_v26 = vld [vmem:[%s12141_s28 + $0x1858] sm:$0xff]  ;;  %v8834_v16 = vpack.c.bf16 %v3796_v9, %v3776_v7  ;;  %v3956_v7 = vld [vmem:[%s12141_s28 + $0x2070] sm:$0xff]  ;;  %v3995_v9 = vld [vmem:[%s12141_s28 + $0x21a8] sm:$0xff] }
 0x525   : > { %8815 = vmatpush1.bf16.msra.mxu1 %v8814_v17  ;;  %8689 = vmatprep.subr.bf16.mxu0 %v8688_v18  ;;  %v8824_v48 = vpack.c.bf16 %v3717_v41, %v3697_v26  ;;  %v8708_v17 = vpack.c.bf16 %v3835_v11, %v3815_v10  ;;  %v3814_v18 = vld [vmem:[%s12141_s28 + $0x1c00] sm:$0xff]  ;;  %v3856_v26 = vld [vmem:[%s12141_s28 + $0x1d50] sm:$0xff]  ;;  %v3977_v10 = vld [vmem:[%s12141_s28 + $0x2118] sm:$0xff] }
 0x526   : > { %8817 = vmatprep.subr.bf16.mxu1 %v8816_v22  ;;  %5491 = vmatprep.mubr.f32.mxu0 %v12340_v40  ;;  %v8836_v22 = vpack.c.bf16 %v3837_v14, %v3817_v13  ;;  %v8710_v35 = vpack.c.bf16 %v3834_v19, %v3814_v18  ;;  %v3997_v11 = vld [vmem:[%s12141_s28 + $0x21b8] sm:$0xff]  ;;  %v8850_v14 = vpack.c.bf16 %v3956_v7, %v3936_v5  ;;  %v3976_v18 = vld [vmem:[%s12141_s28 + $0x2110] sm:$0xff]  ;;  %v4175_v7 = vld [vmem:[%s12141_s28 + $0x2748] sm:$0xff] }
 0x527   : > { %5633 = vmatprep.mubr.f32.mxu1 %v12340_v40  ;;  %v3755_v40 = vld [vmem:[%s12141_s28 + $0x1a28] sm:$0xff]  ;;  %v8852_v19 = vpack.c.bf16 %v3997_v11, %v3977_v10  ;;  %v4197_v10 = vld [vmem:[%s12141_s28 + $0x27f8] sm:$0xff] }
 0x528   : > { %8691 = vmatpush1.bf16.msra.mxu0 %v8690_v30  ;;  %v8700_v55 = vpack.c.bf16 %v3755_v40, %v3735_v50  ;;  %v3857_v30 = vld [vmem:[%s12141_s28 + $0x1d58] sm:$0xff]  ;;  %v8714_v50 = vpack.c.bf16 %v3874_v39, %v3854_v38 }
 0x529   : > { %8819 = vmatpush1.bf16.msra.mxu1 %v8818_v31  ;;  %8693 = vmatprep.subr.bf16.mxu0 %v8692_v32  ;;  %v3877_v31 = vld [vmem:[%s12141_s28 + $0x1df8] sm:$0xff] }
 0x52a   : > { %8821 = vmatprep.subr.bf16.mxu1 %v8820_v33  ;;  %v8838_v33 = vpack.c.bf16 %v3836_v23, %v3816_v20  ;;  %v3996_v20 = vld [vmem:[%s12141_s28 + $0x21b0] sm:$0xff]  ;;  %v4017_v23 = vld [vmem:[%s12141_s28 + $0x2258] sm:$0xff] }
 0x52b   : > { %v4077_v38 = vld [vmem:[%s12141_s28 + $0x2438] sm:$0xff] }
 0x52c   : > { %8695 = vmatpush1.bf16.msra.mxu0 %v8694_v42  ;;  %v8840_v42 = vpack.c.bf16 %v3877_v31, %v3857_v30  ;;  %v4014_v30 = vld [vmem:[%s12141_s28 + $0x2240] sm:$0xff] }
 0x52d   : > { %8823 = vmatpush1.bf16.msra.mxu1 %v8822_v43  ;;  %8697 = vmatprep.subr.bf16.mxu0 %v8696_v44  ;;  %v3876_v43 = vld [vmem:[%s12141_s28 + $0x1df0] sm:$0xff]  ;;  %v3895_v44 = vld [vmem:[%s12141_s28 + $0x1e88] sm:$0xff]  ;;  %v4034_v31 = vld [vmem:[%s12141_s28 + $0x22e0] sm:$0xff] }
 0x52e   : > { %8825 = vmatprep.subr.bf16.mxu1 %v8824_v48  ;;  %v3917_v48 = vld [vmem:[%s12141_s28 + $0x1f38] sm:$0xff]  ;;  %v8842_v51 = vpack.c.bf16 %v3876_v43, %v3856_v26  ;;  %v8716_v52 = vpack.c.bf16 %v3915_v45, %v3895_v44  ;;  %v8730_v39 = vpack.c.bf16 %v4034_v31, %v4014_v30  ;;  %v4074_v43 = vld [vmem:[%s12141_s28 + $0x2420] sm:$0xff]  ;;  %v4056_v44 = vld [vmem:[%s12141_s28 + $0x2390] sm:$0xff] }
 0x52f   : > { %v8844_v56 = vpack.c.bf16 %v3917_v48, %v3897_v47  ;;  %v4095_v47 = vld [vmem:[%s12141_s28 + $0x24c8] sm:$0xff] }
 0x530   : > { %8699 = vmatpush1.bf16.msra.mxu0 %v8698_v53  ;;  %v3894_v53 = vld [vmem:[%s12141_s28 + $0x1e80] sm:$0xff]  ;;  %v4115_v48 = vld [vmem:[%s12141_s28 + $0x2568] sm:$0xff] }
 0x531   : > { %8827 = vmatpush1.bf16.msra.mxu1 %v8826_v54  ;;  %8701 = vmatprep.subr.bf16.mxu0 %v8700_v55  ;;  %v3914_v54 = vld [vmem:[%s12141_s28 + $0x1f20] sm:$0xff]  ;;  %v3896_v55 = vld [vmem:[%s12141_s28 + $0x1e90] sm:$0xff] }
 0x532   : > { %8829 = vmatprep.subr.bf16.mxu1 %v8828_v59  ;;  %v3955_v59 = vld [vmem:[%s12141_s28 + $0x2068] sm:$0xff]  ;;  %v8718_v0 = vpack.c.bf16 %v3914_v54, %v3894_v53  ;;  %v8846_v1 = vpack.c.bf16 %v3916_v57, %v3896_v55  ;;  %v4094_v53 = vld [vmem:[%s12141_s28 + $0x24c0] sm:$0xff]  ;;  %v4096_v55 = vld [vmem:[%s12141_s28 + $0x24d0] sm:$0xff] }
 0x533   : > { %v4114_v54 = vld [vmem:[%s12141_s28 + $0x2560] sm:$0xff]  ;;  %v4116_v57 = vld [vmem:[%s12141_s28 + $0x2570] sm:$0xff] }
 0x534   : > { %8703 = vmatpush1.bf16.msra.mxu0 %v8702_v2  ;;  %v8720_v2 = vpack.c.bf16 %v3955_v59, %v3935_v58  ;;  %v4135_v58 = vld [vmem:[%s12141_s28 + $0x2608] sm:$0xff]  ;;  %v8738_v62 = vpack.c.bf16 %v4114_v54, %v4094_v53  ;;  %v5997_v53 = vld [vmem:[%s12160_s29 + $0x100] sm:$0xff] (!%p7242_p9)  ;;  %v5998_v54 = vld [vmem:[%s12160_s29 + $0x108] sm:$0xff] (!%p7242_p9) }
 0x535   : > { %8831 = vmatpush1.bf16.msra.mxu1 %v8830_v3  ;;  %8705 = vmatprep.subr.bf16.mxu0 %v8704_v4  ;;  %v3934_v3 = vld [vmem:[%s12141_s28 + $0x1fc0] sm:$0xff]  ;;  %v4155_v59 = vld [vmem:[%s12141_s28 + $0x26a8] sm:$0xff] }
 0x536   : > { %v4925_v21 = vpop.f32.mrb[4].mxu0  ;;  %8833 = vmatprep.subr.bf16.mxu1 %v8832_v8  ;;  %v3954_v4 = vld [vmem:[%s12141_s28 + $0x2060] sm:$0xff]  ;;  %v3975_v8 = vld [vmem:[%s12141_s28 + $0x2108] sm:$0xff] }
 0x537   : > { %v5067_v28 = vpop.f32.mrb[4].mxu1  ;;  %v4927_v29 = vpop.f32.mrb[5].mxu0  ;;  %v8722_v13 = vpack.c.bf16 %v3954_v4, %v3934_v3  ;;  %v4154_v3 = vld [vmem:[%s12141_s28 + $0x26a0] sm:$0xff]  ;;  %v4136_v4 = vld [vmem:[%s12141_s28 + $0x2610] sm:$0xff] }
 0x538   : > { %v5694_v32 = vcombine.low %v4925_v21, %v4927_v29  ;;  %v5069_v34 = vpop.f32.mrb[5].mxu1  ;;  %8707 = vmatpush1.bf16.msra.mxu0 %v8706_v15  ;;  %v8724_v15 = vpack.c.bf16 %v3995_v9, %v3975_v8  ;;  %v4015_v21 = vld [vmem:[%s12141_s28 + $0x2248] sm:$0xff]  ;;  %v4177_v9 = vld [vmem:[%s12141_s28 + $0x2758] sm:$0xff] }
 0x539   : > { %v5695_v36 = vcombine.low %v5067_v28, %v5069_v34  ;;  %8835 = vmatpush1.bf16.msra.mxu1 %v8834_v16  ;;  %8709 = vmatprep.subr.bf16.mxu0 %v8708_v17  ;;  %v3974_v16 = vld [vmem:[%s12141_s28 + $0x2100] sm:$0xff]  ;;  %v8854_v28 = vpack.c.bf16 %v3996_v20, %v3976_v18  ;;  %v8856_v34 = vpack.c.bf16 %v4037_v24, %v4017_v23  ;;  %v4195_v8 = vld [vmem:[%s12141_s28 + $0x27e8] sm:$0xff]  ;;  %v4176_v18 = vld [vmem:[%s12141_s28 + $0x2750] sm:$0xff] }
 0x53a   : > { %v5702_v41 = vrot.slane %v5694_v32, %v12264_v12  ;;  %8837 = vmatprep.subr.bf16.mxu1 %v8836_v22  ;;  %v3994_v17 = vld [vmem:[%s12141_s28 + $0x21a0] sm:$0xff]  ;;  %v4035_v22 = vld [vmem:[%s12141_s28 + $0x22e8] sm:$0xff]  ;;  %v4016_v32 = vld [vmem:[%s12141_s28 + $0x2250] sm:$0xff] }
 0x53b   : > { %v5709_v46 = vrot.slane %v5695_v36, %v12264_v12  ;;  %v8726_v27 = vpack.c.bf16 %v3994_v17, %v3974_v16  ;;  %v8728_v29 = vpack.c.bf16 %v4035_v22, %v4015_v21  ;;  %v4055_v36 = vld [vmem:[%s12141_s28 + $0x2388] sm:$0xff]  ;;  %v4194_v16 = vld [vmem:[%s12141_s28 + $0x27e0] sm:$0xff]  ;;  %v8872_v17 = vpack.c.bf16 %v4197_v10, %v4177_v9  ;;  %v6017_v10 = vld [vmem:[%s12160_s29 + $0x1a0] sm:$0xff] (!%p7242_p9) }
 0x53c   : > { %8711 = vmatpush1.bf16.msra.mxu0 %v8710_v35  ;;  %v4036_v35 = vld [vmem:[%s12141_s28 + $0x22f0] sm:$0xff]  ;;  %v5970_v9 = vld [vmem:[%s12160_s29 + $0x28] sm:$0xff] (!%p7242_p9) }
 0x53d   : > { %v5710_v40 = vcombine.low %v5702_v41, %v5709_v46  ;;  %8839 = vmatpush1.bf16.msra.mxu1 %v8838_v33  ;;  %8713 = vmatprep.subr.bf16.mxu0 %v8712_v37  ;;  %v4075_v33 = vld [vmem:[%s12141_s28 + $0x2428] sm:$0xff]  ;;  %v4057_v37 = vld [vmem:[%s12141_s28 + $0x2398] sm:$0xff]  ;;  %v8858_v26 = vpack.c.bf16 %v4036_v35, %v4016_v32  ;;  %v4076_v46 = vld [vmem:[%s12141_s28 + $0x2430] sm:$0xff] }
 0x53e   : > { %8841 = vmatprep.subr.bf16.mxu1 %v8840_v42  ;;  %v8732_v41 = vpack.c.bf16 %v4075_v33, %v4055_v36  ;;  %v4054_v42 = vld [vmem:[%s12141_s28 + $0x2380] sm:$0xff]  ;;  %v8860_v45 = vpack.c.bf16 %v4077_v38, %v4057_v37  ;;  %v2915_v32 = vld [vmem:[#allocation2 + $0x18] sm:$0xff] }
 0x53f   : > { %v5752_v60 = vadd.f32 %v5710_v40, %v2914_v49  ;;  %v4097_v49 = vld [vmem:[%s12141_s28 + $0x24d8] sm:$0xff]  ;;  %v8734_v40 = vpack.c.bf16 %v4074_v43, %v4054_v42 }
 0x540   : > { %8715 = vmatpush1.bf16.msra.mxu0 %v8714_v50  ;;  %v4117_v50 = vld [vmem:[%s12141_s28 + $0x2578] sm:$0xff] }
 0x541   : > { %5757 = vst [vmem:[#allocation2 + $0x10] sm:$0xff] %v5752_v60  ;;  %8843 = vmatpush1.bf16.msra.mxu1 %v8842_v51  ;;  %8717 = vmatprep.subr.bf16.mxu0 %v8716_v52  ;;  %v8862_v51 = vpack.c.bf16 %v4076_v46, %v4056_v44  ;;  %v8736_v52 = vpack.c.bf16 %v4115_v48, %v4095_v47  ;;  %v4137_v60 = vld [vmem:[%s12141_s28 + $0x2618] sm:$0xff]  ;;  %v5982_v46 = vld [vmem:[%s12160_s29 + $0x88] sm:$0xff] (!%p7242_p9) }
 0x542   : > { %8845 = vmatprep.subr.bf16.mxu1 %v8844_v56  ;;  %v8864_v56 = vpack.c.bf16 %v4117_v50, %v4097_v49  ;;  %v8868_v5 = vpack.c.bf16 %v4157_v61, %v4137_v60  ;;  %v2916_v42 = vld [vmem:[#allocation2 + $0x20] sm:$0xff]  ;;  %v5966_v49 = vld [vmem:[%s12160_s29 + $0x8] sm:$0xff] (!%p7242_p9) }
 0x543   : > { %v5965_v47 = vld [vmem:[%s12160_s29] sm:$0xff] (!%p7242_p9) }
 0x544   : > { %8719 = vmatpush1.bf16.msra.mxu0 %v8718_v0  ;;  %v8866_v0 = vpack.c.bf16 %v4116_v57, %v4096_v55  ;;  %v6013_v50 = vld [vmem:[%s12160_s29 + $0x180] sm:$0xff] (!%p7242_p9)  ;;  %v5983_v55 = vld [vmem:[%s12160_s29 + $0x90] sm:$0xff] (!%p7242_p9)  ;;  %v5984_v57 = vld [vmem:[%s12160_s29 + $0x98] sm:$0xff] (!%p7242_p9) }
 0x545   : > { %8847 = vmatpush1.bf16.msra.mxu1 %v8846_v1  ;;  %8721 = vmatprep.subr.bf16.mxu0 %v8720_v2  ;;  %v8740_v1 = vpack.c.bf16 %v4155_v59, %v4135_v58  ;;  %v4134_v2 = vld [vmem:[%s12141_s28 + $0x2600] sm:$0xff]  ;;  %v5967_v58 = vld [vmem:[%s12160_s29 + $0x10] sm:$0xff] (!%p7242_p9)  ;;  %v5968_v59 = vld [vmem:[%s12160_s29 + $0x18] sm:$0xff] (!%p7242_p9)  ;;  %v8880_v60 = vpack.c.bf16 (!%p7242_p9), %v5984_v57, %v5983_v55  ;;  %v13579_v55 = vsub.s32 (!%p7242_p9), 1, %v12253_v63 }
 0x546   : > { %8849 = vmatprep.subr.bf16.mxu1 %v8848_v6  ;;  %v4156_v6 = vld [vmem:[%s12141_s28 + $0x26b0] sm:$0xff]  ;;  %v8742_v11 = vpack.c.bf16 %v4154_v3, %v4134_v2  ;;  %v8882_v61 = vpack.c.bf16 (!%p7242_p9), %v5968_v59, %v5967_v58  ;;  %v6025_v57 = vld [vmem:[%s12160_s29 + $0x1e0] sm:$0xff] (!%p7242_p9)  ;;  %v6026_v58 = vld [vmem:[%s12160_s29 + $0x1e8] sm:$0xff] (!%p7242_p9)  ;;  %v13587_v59 = vsub.s32 (!%p7242_p9), 3, %v12253_v63 }
 0x547   : > { %v6000_v3 = vld [vmem:[%s12160_s29 + $0x118] sm:$0xff] (!%p7242_p9) }
 0x548   : > { %8723 = vmatpush1.bf16.msra.mxu0 %v8722_v13  ;;  %v8870_v13 = vpack.c.bf16 %v4156_v6, %v4136_v4  ;;  %v5985_v4 = vld [vmem:[%s12160_s29 + $0xa0] sm:$0xff] (!%p7242_p9) }
 0x549   : > { %8851 = vmatpush1.bf16.msra.mxu1 %v8850_v14  ;;  %8725 = vmatprep.subr.bf16.mxu0 %v8724_v15  ;;  %v8744_v14 = vpack.c.bf16 %v4195_v8, %v4175_v7  ;;  %v4174_v15 = vld [vmem:[%s12141_s28 + $0x2740] sm:$0xff]  ;;  %v5969_v8 = vld [vmem:[%s12160_s29 + $0x20] sm:$0xff] (!%p7242_p9) }
 0x54a   : > { %8853 = vmatprep.subr.bf16.mxu1 %v8852_v19  ;;  %v4196_v19 = vld [vmem:[%s12141_s28 + $0x27f0] sm:$0xff]  ;;  %v8746_v20 = vpack.c.bf16 %v4194_v16, %v4174_v15  ;;  %v8886_v15 = vpack.c.bf16 (!%p7242_p9), %v5970_v9, %v5969_v8 }
 0x54b   : > { %v8874_v21 = vpack.c.bf16 %v4196_v19, %v4176_v18  ;;  %v5988_v18 = vld [vmem:[%s12160_s29 + $0xb8] sm:$0xff] (!%p7242_p9)  ;;  %v5971_v19 = vld [vmem:[%s12160_s29 + $0x30] sm:$0xff] (!%p7242_p9) }
 0x54c   : > { %8727 = vmatpush1.bf16.msra.mxu0 %v8726_v27 }
 0x54d   : > { %8855 = vmatpush1.bf16.msra.mxu1 %v8854_v28  ;;  %8729 = vmatprep.subr.bf16.mxu0 %v8728_v29 }
 0x54e   : > { %8857 = vmatprep.subr.bf16.mxu1 %v8856_v34 }
 0x550   : > { %8731 = vmatpush1.bf16.msra.mxu0 %v8730_v39 }
 0x551   : > { %8859 = vmatpush1.bf16.msra.mxu1 %v8858_v26  ;;  %8733 = vmatprep.subr.bf16.mxu0 %v8732_v41 }
 0x552   : > { %8861 = vmatprep.subr.bf16.mxu1 %v8860_v45  ;;  %v5981_v45 = vld [vmem:[%s12160_s29 + $0x80] sm:$0xff] (!%p7242_p9) }
 0x553   : > { %v8876_v48 = vpack.c.bf16 (!%p7242_p9), %v5982_v46, %v5981_v45 }
 0x554   : > { %8735 = vmatpush1.bf16.msra.mxu0 %v8734_v40  ;;  %v6014_v40 = vld [vmem:[%s12160_s29 + $0x188] sm:$0xff] (!%p7242_p9) }
 0x555   : > { %8863 = vmatpush1.bf16.msra.mxu1 %v8862_v51  ;;  %8737 = vmatprep.subr.bf16.mxu0 %v8736_v52  ;;  %v8878_v51 = vpack.c.bf16 (!%p7242_p9), %v5966_v49, %v5965_v47  ;;  %v8908_v52 = vpack.c.bf16 (!%p7242_p9), %v6014_v40, %v6013_v50  ;;  %v5976_v49 = vld [vmem:[%s12160_s29 + $0x58] sm:$0xff] (!%p7242_p9)  ;;  %v6007_v50 = vld [vmem:[%s12160_s29 + $0x150] sm:$0xff] (!%p7242_p9) }
 0x556   : > { %8865 = vmatprep.subr.bf16.mxu1 %v8864_v56  ;;  %v8910_v56 = vpack.c.bf16 (!%p7242_p9), %v5998_v54, %v5997_v53  ;;  %v5994_v53 = vld [vmem:[%s12160_s29 + $0xe8] sm:$0xff] (!%p7242_p9)  ;;  %v13576_v54 = vsub.s32 (!%p7242_p9), 0, %v12253_v63 }
 0x558   : > { %8739 = vmatpush1.bf16.msra.mxu0 %v8738_v62  ;;  %v6015_v62 = vld [vmem:[%s12160_s29 + $0x190] sm:$0xff] (!%p7242_p9) }
 0x559   : > { %8867 = vmatpush1.bf16.msra.mxu1 %v8866_v0  ;;  %8741 = vmatprep.subr.bf16.mxu0 %v8740_v1  ;;  %v6016_v0 = vld [vmem:[%s12160_s29 + $0x198] sm:$0xff] (!%p7242_p9)  ;;  %v5999_v1 = vld [vmem:[%s12160_s29 + $0x110] sm:$0xff] (!%p7242_p9) }
 0x55a   : > { %8869 = vmatprep.subr.bf16.mxu1 %v8868_v5  ;;  %v8912_v2 = vpack.c.bf16 (!%p7242_p9), %v6016_v0, %v6015_v62  ;;  %v5986_v5 = vld [vmem:[%s12160_s29 + $0xa8] sm:$0xff] (!%p7242_p9)  ;;  %v8914_v6 = vpack.c.bf16 (!%p7242_p9), %v6000_v3, %v5999_v1 }
 0x55b   : > { %v8884_v7 = vpack.c.bf16 (!%p7242_p9), %v5986_v5, %v5985_v4  ;;  %v5978_v1 = vld [vmem:[%s12160_s29 + $0x68] sm:$0xff] (!%p7242_p9)  ;;  %v8932_v4 = vpack.c.bf16 (!%p7242_p9), %v6026_v58, %v6025_v57  ;;  %v6047_v57 = vld [vmem:[%s12160_s29 + $0x290] sm:$0xff] (!%p7242_p9)  ;;  %v6048_v58 = vld [vmem:[%s12160_s29 + $0x298] sm:$0xff] (!%p7242_p9) }
 0x55c   : > { %8743 = vmatpush1.bf16.msra.mxu0 %v8742_v11  ;;  %v6018_v11 = vld [vmem:[%s12160_s29 + $0x1a8] sm:$0xff] (!%p7242_p9) }
 0x55d   : > { %8871 = vmatpush1.bf16.msra.mxu1 %v8870_v13  ;;  %8745 = vmatprep.subr.bf16.mxu0 %v8744_v14  ;;  %v6001_v13 = vld [vmem:[%s12160_s29 + $0x120] sm:$0xff] (!%p7242_p9)  ;;  %v6002_v14 = vld [vmem:[%s12160_s29 + $0x128] sm:$0xff] (!%p7242_p9)  ;;  %v8916_v16 = vpack.c.bf16 (!%p7242_p9), %v6018_v11, %v6017_v10  ;;  %v6027_v11 = vld [vmem:[%s12160_s29 + $0x1f0] sm:$0xff] (!%p7242_p9) }
 0x55e   : > { %8873 = vmatprep.subr.bf16.mxu1 %v8872_v17  ;;  %v5987_v17 = vld [vmem:[%s12160_s29 + $0xb0] sm:$0xff] (!%p7242_p9)  ;;  %v5769_v3 = vld [vmem:[%s12143_s10] sm:$0xff] (!%p7242_p9) }
 0x55f   : > { %v6010_v5 = vld [vmem:[%s12160_s29 + $0x168] sm:$0xff] (!%p7242_p9)  ;;  %v5778_v8 = vrot.slane (!%p7242_p9), %v5769_v3, %v13576_v54  ;;  %v5782_v9 = vrot.slane (!%p7242_p9), %v5769_v3, %v13579_v55 }
 0x560   : > { %8747 = vmatpush1.bf16.msra.mxu0 %v8746_v20  ;;  %v8918_v20 = vpack.c.bf16 (!%p7242_p9), %v6002_v14, %v6001_v13  ;;  %v6028_v13 = vld [vmem:[%s12160_s29 + $0x1f8] sm:$0xff] (!%p7242_p9)  ;;  %v5790_v14 = vrot.slane (!%p7242_p9), %v5769_v3, %v13587_v59 }
 0x561   : > { %8875 = vmatpush1.bf16.msra.mxu1 %v8874_v21  ;;  %8877 = vmatprep.subr.bf16.mxu0 (!%p7242_p9), %v8876_v48  ;;  %v8888_v21 = vpack.c.bf16 (!%p7242_p9), %v5988_v18, %v5987_v17  ;;  %v5975_v48 = vld [vmem:[%s12160_s29 + $0x50] sm:$0xff] (!%p7242_p9) }
 0x562   : > { %8909 = vmatprep.subr.bf16.mxu1 (!%p7242_p9), %v8908_v52  ;;  %v5993_v52 = vld [vmem:[%s12160_s29 + $0xe0] sm:$0xff] (!%p7242_p9)  ;;  %v5979_v18 = vld [vmem:[%s12160_s29 + $0x70] sm:$0xff] (!%p7242_p9) }
 0x563   : > { %5492 = vmatmul.mubr.f32.vlgmr.msra.gmra.mrb[8].mxu0 %v12328_v25  ;;  %v8900_v0 = vpack.c.bf16 (!%p7242_p9), %v5994_v53, %v5993_v52 }
 0x564   : > { %5634 = vmatmul.mubr.f32.vlgmr.msra.gmra.mrb[8].mxu1 %v12328_v25  ;;  %8879 = vmatpush3.bf16.msra.mxu0 (!%p7242_p9), %v8878_v51  ;;  %v6008_v51 = vld [vmem:[%s12160_s29 + $0x158] sm:$0xff] (!%p7242_p9) }
 0x565   : > { %8911 = vmatpush3.bf16.msra.mxu1 (!%p7242_p9), %v8910_v56  ;;  %8881 = vmatprep.subr.bf16.mxu0 (!%p7242_p9), %v8880_v60  ;;  %v13582_v56 = vsub.s32 (!%p7242_p9), 2, %v12253_v63  ;;  %v8898_v60 = vpack.c.bf16 (!%p7242_p9), %v5976_v49, %v5975_v48  ;;  %v8930_v62 = vpack.c.bf16 (!%p7242_p9), %v6008_v51, %v6007_v50  ;;  %v6030_v51 = vld [vmem:[%s12160_s29 + $0x208] sm:$0xff] (!%p7242_p9) }
 0x566   : > { %8913 = vmatprep.subr.bf16.mxu1 (!%p7242_p9), %v8912_v2  ;;  %v6009_v2 = vld [vmem:[%s12160_s29 + $0x160] sm:$0xff] (!%p7242_p9) }
 0x567   : > { %v5786_v10 = vrot.slane (!%p7242_p9), %v5769_v3, %v13582_v56 }
 0x568   : > { %8883 = vmatpush3.bf16.msra.mxu0 (!%p7242_p9), %v8882_v61  ;;  %v5977_v61 = vld [vmem:[%s12160_s29 + $0x60] sm:$0xff] (!%p7242_p9) }
 0x569   : > { %8915 = vmatpush3.bf16.msra.mxu1 (!%p7242_p9), %v8914_v6  ;;  %8885 = vmatprep.subr.bf16.mxu0 (!%p7242_p9), %v8884_v7  ;;  %v5995_v6 = vld [vmem:[%s12160_s29 + $0xf0] sm:$0xff] (!%p7242_p9)  ;;  %v5996_v7 = vld [vmem:[%s12160_s29 + $0xf8] sm:$0xff] (!%p7242_p9)  ;;  %v8902_v17 = vpack.c.bf16 (!%p7242_p9), %v5978_v1, %v5977_v61 }
 0x56a   : > { %8917 = vmatprep.subr.bf16.mxu1 (!%p7242_p9), %v8916_v16  ;;  %v5797_v16 = vsub.s32 (!%p7242_p9), 5, %v12253_v63 }
 0x56c   : > { %8887 = vmatpush3.bf16.msra.mxu0 (!%p7242_p9), %v8886_v15  ;;  %v5793_v15 = vsub.s32 (!%p7242_p9), 4, %v12253_v63 }
 0x56d   : > { %8919 = vmatpush3.bf16.msra.mxu1 (!%p7242_p9), %v8918_v20  ;;  %8889 = vmatprep.subr.bf16.mxu0 (!%p7242_p9), %v8888_v21  ;;  %v5855_v20 = vcombine.low (!%p7242_p9), %v5778_v8, %v5782_v9  ;;  %v5801_v21 = vsub.s32 (!%p7242_p9), 6, %v12253_v63  ;;  %v6032_v8 = vld [vmem:[%s12160_s29 + $0x218] sm:$0xff] (!%p7242_p9) }
 0x5b6   : > { %v5209_v22 = vpop.f32.mrb[6].mxu0 }
 0x5b7   : > { %v5351_v23 = vpop.f32.mrb[6].mxu1  ;;  %v5211_v24 = vpop.f32.mrb[7].mxu0 }
 0x5b8   : > { %v5711_v27 = vcombine.low %v5209_v22, %v5211_v24  ;;  %v5353_v28 = vpop.f32.mrb[7].mxu1  ;;  %v5972_v22 = vld [vmem:[%s12160_s29 + $0x38] sm:$0xff] (!%p7242_p9) }
 0x5b9   : > { %v5712_v29 = vcombine.low %v5351_v23, %v5353_v28  ;;  %v6019_v23 = vld [vmem:[%s12160_s29 + $0x1b0] sm:$0xff] (!%p7242_p9)  ;;  %v6020_v24 = vld [vmem:[%s12160_s29 + $0x1b8] sm:$0xff] (!%p7242_p9) }
 0x5ba   : > { %v5719_v30 = vrot.slane %v5711_v27, %v12264_v12  ;;  %v8920_v27 = vpack.c.bf16 (!%p7242_p9), %v6020_v24, %v6019_v23  ;;  %v6003_v28 = vld [vmem:[%s12160_s29 + $0x130] sm:$0xff] (!%p7242_p9)  ;;  %v8934_v23 = vpack.c.bf16 (!%p7242_p9), %v6010_v5, %v6009_v2  ;;  %v8904_v24 = vpack.c.bf16 (!%p7242_p9), %v5996_v7, %v5995_v6  ;;  %v6080_v5 = vld [vmem:[%s12160_s29 + $0x398] sm:$0xff] (!%p7242_p9) }
 0x5bb   : > { %v5726_v31 = vrot.slane %v5712_v29, %v12264_v12  ;;  %v6004_v29 = vld [vmem:[%s12160_s29 + $0x138] sm:$0xff] (!%p7242_p9)  ;;  %v8944_v6 = vpack.c.bf16 (!%p7242_p9), %v6048_v58, %v6047_v57  ;;  %v6031_v7 = vld [vmem:[%s12160_s29 + $0x210] sm:$0xff] (!%p7242_p9)  ;;  %v6086_v57 = vld [vmem:[%s12160_s29 + $0x3c8] sm:$0xff] (!%p7242_p9) }
 0x5bc   : > { %8921 = vmatprep.subr.bf16.mxu1 (!%p7242_p9), %v8920_v27  ;;  %v6011_v27 = vld [vmem:[%s12160_s29 + $0x170] sm:$0xff] (!%p7242_p9) }
 0x5bd   : > { %v5727_v34 = vcombine.low %v5719_v30, %v5726_v31  ;;  %v5989_v30 = vld [vmem:[%s12160_s29 + $0xc0] sm:$0xff] (!%p7242_p9)  ;;  %v5990_v31 = vld [vmem:[%s12160_s29 + $0xc8] sm:$0xff] (!%p7242_p9) }
 0x5bf   : > { %v5753_v35 = vadd.f32 %v5727_v34, %v2915_v32  ;;  %v8890_v32 = vpack.c.bf16 (!%p7242_p9), %v5972_v22, %v5971_v19  ;;  %v6021_v34 = vld [vmem:[%s12160_s29 + $0x1c0] sm:$0xff] (!%p7242_p9)  ;;  %v5980_v19 = vld [vmem:[%s12160_s29 + $0x78] sm:$0xff] (!%p7242_p9)  ;;  %v5805_v22 = vsub.s32 (!%p7242_p9), 7, %v12253_v63 }
 0x5c0   : > { %v6097_v63 = vld [vmem:[%s12160_s29 + $0x420] sm:$0xff] (!%p7242_p9) }
 0x5c1   : > { %5758 = vst [vmem:[#allocation2 + $0x18] sm:$0xff] %v5753_v35  ;;  %v6022_v35 = vld [vmem:[%s12160_s29 + $0x1c8] sm:$0xff] (!%p7242_p9)  ;;  %8891 = vmatpush3.bf16.msra.mxu0 (!%p7242_p9), %v8890_v32  ;;  %v6045_v32 = vld [vmem:[%s12160_s29 + $0x280] sm:$0xff] (!%p7242_p9) }
 0x636   : > { %v5493_v36 = vpop.f32.mrb[8].mxu0 }
 0x637   : > { %v5635_v33 = vpop.f32.mrb[8].mxu1  ;;  %v5495_v37 = vpop.f32.mrb[9].mxu0 }
 0x638   : > { %v5728_v38 = vcombine.low %v5493_v36, %v5495_v37  ;;  %v5637_v39 = vpop.f32.mrb[9].mxu1  ;;  %v8922_v36 = vpack.c.bf16 (!%p7242_p9), %v6004_v29, %v6003_v28  ;;  %v5973_v37 = vld [vmem:[%s12160_s29 + $0x40] sm:$0xff] (!%p7242_p9)  ;;  %v5856_v28 = vcombine.low (!%p7242_p9), %v5786_v10, %v5790_v14  ;;  %v8936_v29 = vpack.c.bf16 (!%p7242_p9), %v6028_v13, %v6027_v11  ;;  %v6050_v13 = vld [vmem:[%s12160_s29 + $0x2a8] sm:$0xff] (!%p7242_p9) }
 0x639   : > { %v5729_v25 = vcombine.low %v5635_v33, %v5637_v39  ;;  %v8892_v33 = vpack.c.bf16 (!%p7242_p9), %v5990_v31, %v5989_v30  ;;  %v6005_v39 = vld [vmem:[%s12160_s29 + $0x140] sm:$0xff] (!%p7242_p9)  ;;  %v6012_v30 = vld [vmem:[%s12160_s29 + $0x178] sm:$0xff] (!%p7242_p9)  ;;  %v5863_v31 = vrot.slane (!%p7242_p9), %v5855_v20, %v12264_v12  ;;  %v8946_v20 = vpack.c.bf16 (!%p7242_p9), %v6032_v8, %v6031_v7 }
 0x63a   : > { %v5736_v26 = vrot.slane %v5728_v38, %v12264_v12  ;;  %v5974_v38 = vld [vmem:[%s12160_s29 + $0x48] sm:$0xff] (!%p7242_p9)  ;;  %8923 = vmatpush3.bf16.msra.mxu1 (!%p7242_p9), %v8922_v36  ;;  %v5870_v36 = vrot.slane (!%p7242_p9), %v5856_v28, %v12264_v12  ;;  %v6049_v11 = vld [vmem:[%s12160_s29 + $0x2a0] sm:$0xff] (!%p7242_p9) }
 0x63b   : > { %v5743_v41 = vrot.slane %v5729_v25, %v12264_v12  ;;  %5763 = sbr.rel (%p7242_p9) target bundleno = 1962 (0x7aa), region = 75  ;;  %v8924_v25 = vpack.c.bf16 (!%p7242_p9), %v6022_v35, %v6021_v34  ;;  %v8894_v45 = vpack.c.bf16 (!%p7242_p9), %v5974_v38, %v5973_v37  ;;  %8893 = vmatprep.subr.bf16.mxu0 (!%p7242_p9), %v8892_v33  ;;  %v6046_v34 = vld [vmem:[%s12160_s29 + $0x288] sm:$0xff] (!%p7242_p9)  ;;  %v8906_v35 = vpack.c.bf16 (!%p7242_p9), %v5980_v19, %v5979_v18  ;;  %v6077_v33 = vld [vmem:[%s12160_s29 + $0x380] sm:$0xff] (!%p7242_p9)  ;;  %v6063_v18 = vld [vmem:[%s12160_s29 + $0x310] sm:$0xff] (!%p7242_p9) }
 0x63c   : > { %v6078_v37 = vld [vmem:[%s12160_s29 + $0x388] sm:$0xff] (!%p7242_p9)  ;;  %v5764_v38 = vld [vmem:[#allocation2] sm:$0xff] (!%p7242_p9)  ;;  %v6064_v19 = vld [vmem:[%s12160_s29 + $0x318] sm:$0xff] (!%p7242_p9) }
 0x63d   : > { %v5744_v43 = vcombine.low %v5736_v26, %v5743_v41  ;;  %v6006_v26 = vld [vmem:[%s12160_s29 + $0x148] sm:$0xff] (!%p7242_p9)  ;;  %v5991_v41 = vld [vmem:[%s12160_s29 + $0xd0] sm:$0xff] (!%p7242_p9)  ;;  %8925 = vmatprep.subr.bf16.mxu1 (!%p7242_p9), %v8924_v25  ;;  %8895 = vmatpush3.bf16.msra.mxu0 (!%p7242_p9), %v8894_v45  ;;  %v5798_v25 = vrot.slane (!%p7242_p9), %v5769_v3, %v5797_v16  ;;  %v8972_v45 = vpack.c.bf16 (!%p7242_p9), %v6078_v37, %v6077_v33  ;;  %v6033_v28 = vld [vmem:[%s12160_s29 + $0x220] sm:$0xff] (!%p7242_p9) }
 0x63e   : > { %v8926_v46 = vpack.c.bf16 (!%p7242_p9), %v6006_v26, %v6005_v39  ;;  %v5794_v39 = vrot.slane (!%p7242_p9), %v5769_v3, %v5793_v15  ;;  %v5802_v26 = vrot.slane (!%p7242_p9), %v5769_v3, %v5801_v21  ;;  %v6065_v33 = vld [vmem:[%s12160_s29 + $0x320] sm:$0xff] (!%p7242_p9)  ;;  %v6066_v37 = vld [vmem:[%s12160_s29 + $0x328] sm:$0xff] (!%p7242_p9) }
 0x63f   : > { %v5754_v44 = vadd.f32 %v5744_v43, %v2916_v42  ;;  %v5992_v42 = vld [vmem:[%s12160_s29 + $0xd8] sm:$0xff] (!%p7242_p9)  ;;  %v6023_v43 = vld [vmem:[%s12160_s29 + $0x1d0] sm:$0xff] (!%p7242_p9) }
 0x640   : > { %v8896_v47 = vpack.c.bf16 (!%p7242_p9), %v5992_v42, %v5991_v41  ;;  %8927 = vmatpush3.bf16.msra.mxu1 (!%p7242_p9), %v8926_v46  ;;  %v5806_v41 = vrot.slane (!%p7242_p9), %v5769_v3, %v5805_v22  ;;  %v8938_v42 = vpack.c.bf16 (!%p7242_p9), %v6012_v30, %v6011_v27  ;;  %v8948_v27 = vpack.c.bf16 (!%p7242_p9), %v6050_v13, %v6049_v11  ;;  %v5765_v30 = vld [vmem:[#allocation2 + $0x8] sm:$0xff] (!%p7242_p9)  ;;  %v6039_v13 = vld [vmem:[%s12160_s29 + $0x250] sm:$0xff] (!%p7242_p9) }
 0x641   : > { %5759 = vst [vmem:[#allocation2 + $0x20] sm:$0xff] %v5754_v44  ;;  %v6024_v44 = vld [vmem:[%s12160_s29 + $0x1d8] sm:$0xff] (!%p7242_p9) }
 0x642   : > { %v8928_v40 = vpack.c.bf16 %v6024_v44, %v6023_v43  ;;  %8897 = vmatprep.subr.bf16.mxu0 %v8896_v47  ;;  %v5871_v43 = vcombine.low %v5863_v31, %v5870_v36  ;;  %v8940_v44 = vpack.c.bf16 %v6046_v34, %v6045_v32  ;;  %v5872_v47 = vcombine.low %v5794_v39, %v5798_v25  ;;  %v6051_v32 = vld [vmem:[%s12160_s29 + $0x2b0] sm:$0xff]  ;;  %v6052_v34 = vld [vmem:[%s12160_s29 + $0x2b8] sm:$0xff]  ;;  %s6287_s23 = scalar_select %p6286_p10, 1.0, 0.0 }
 0x643   : > { %8899 = vmatpush3.bf16.msra.mxu0 %v8898_v60  ;;  %v5873_v48 = vcombine.low %v5802_v26, %v5806_v41  ;;  %v8978_v31 = vpack.c.bf16 %v6064_v19, %v6063_v18  ;;  %v6083_v39 = vld [vmem:[%s12160_s29 + $0x3b0] sm:$0xff]  ;;  %v6084_v25 = vld [vmem:[%s12160_s29 + $0x3b8] sm:$0xff]  ;;  %v8952_v41 = vpack.c.bf16 %v6052_v34, %v6051_v32  ;;  %v6057_v18 = vld [vmem:[%s12160_s29 + $0x2e0] sm:$0xff] }
 0x644   : > { %8929 = vmatprep.subr.bf16.mxu1 %v8928_v40  ;;  %8901 = vmatprep.subr.bf16.mxu0 %v8900_v0  ;;  %v5945_v46 = vadd.f32 %v5871_v43, %v5764_v38  ;;  %v6029_v40 = vld [vmem:[%s12160_s29 + $0x200] sm:$0xff]  ;;  %v5880_v60 = vrot.slane %v5872_v47, %v12264_v12  ;;  %v6062_v0 = vld [vmem:[%s12160_s29 + $0x308] sm:$0xff]  ;;  %v6036_v43 = vld [vmem:[%s12160_s29 + $0x238] sm:$0xff] }
 0x645   : > { %8931 = vmatpush3.bf16.msra.mxu1 %v8930_v62  ;;  %v5887_v61 = vrot.slane %v5873_v48, %v12264_v12  ;;  %v6061_v62 = vld [vmem:[%s12160_s29 + $0x300] sm:$0xff]  ;;  %v8942_v3 = vpack.c.bf16 %v6030_v51, %v6029_v40  ;;  %v8984_v48 = vpack.c.bf16 %v6084_v25, %v6083_v39  ;;  %v6058_v19 = vld [vmem:[%s12160_s29 + $0x2e8] sm:$0xff]  ;;  %v6043_v39 = vld [vmem:[%s12160_s29 + $0x270] sm:$0xff] }
 0x646   : > { %8933 = vmatprep.subr.bf16.mxu1 %v8932_v4  ;;  %vm5950_vm0 = vcmp.ge.f32.partialorder %v5945_v46, 0.0  ;;  %v5955_v49 = vmul.f32 0.1, %v5945_v46  ;;  %v6079_v4 = vld [vmem:[%s12160_s29 + $0x390] sm:$0xff]  ;;  %v8974_v10 = vpack.c.bf16 %v6062_v0, %v6061_v62  ;;  %v6042_v32 = vld [vmem:[%s12160_s29 + $0x268] sm:$0xff] }
 0x647   : > { %8903 = vmatpush3.bf16.msra.mxu0 %v8902_v17  ;;  %v5888_v14 = vcombine.low %v5880_v60, %v5887_v61  ;;  %v8976_v17 = vpack.c.bf16 %v6080_v5, %v6079_v4  ;;  %v6037_v60 = vld [vmem:[%s12160_s29 + $0x240] sm:$0xff]  ;;  %v6038_v61 = vld [vmem:[%s12160_s29 + $0x248] sm:$0xff] }
 0x648   : > { %8905 = vmatprep.subr.bf16.mxu0 %v8904_v24  ;;  %v5960_v50 = vsel %vm5950_vm0, %v5945_v46, %v5955_v49  ;;  %v6082_v24 = vld [vmem:[%s12160_s29 + $0x3a8] sm:$0xff]  ;;  %v6067_v49 = vld [vmem:[%s12160_s29 + $0x330] sm:$0xff]  ;;  %v6069_v5 = vld [vmem:[%s12160_s29 + $0x340] sm:$0xff]  ;;  %v8958_v8 = vpack.c.bf16 %v6038_v61, %v6037_v60 }
 0x649   : > { %8935 = vmatpush3.bf16.msra.mxu1 %v8934_v23  ;;  %v6308_v52 = vrot.slane %v5960_v50, %v12264_v12  ;;  %v6301_v53 = vcombine.high %v5960_v50, %v5960_v50  ;;  %v6081_v23 = vld [vmem:[%s12160_s29 + $0x3a0] sm:$0xff]  ;;  %v6054_v46 = vld [vmem:[%s12160_s29 + $0x2c8] sm:$0xff]  ;;  %v6068_v50 = vld [vmem:[%s12160_s29 + $0x338] sm:$0xff] }
 0x64a   : > { %8937 = vmatprep.subr.bf16.mxu1 %v8936_v29  ;;  %v6034_v29 = vld [vmem:[%s12160_s29 + $0x228] sm:$0xff]  ;;  %v8980_v36 = vpack.c.bf16 %v6082_v24, %v6081_v23  ;;  %v6071_v23 = vld [vmem:[%s12160_s29 + $0x350] sm:$0xff]  ;;  %v6072_v24 = vld [vmem:[%s12160_s29 + $0x358] sm:$0xff] }
 0x64b   : > { %8907 = vmatpush3.bf16.msra.mxu0 %v8906_v35  ;;  %v6316_v1 = vcombine.high %v6308_v52, %v6308_v52  ;;  %v6315_v2 = vrot.slane %v6301_v53, %v12264_v12  ;;  %v5946_v35 = vadd.f32 %v5888_v14, %v5765_v30  ;;  %v8950_v38 = vpack.c.bf16 %v6034_v29, %v6033_v28  ;;  %v6085_v53 = vld [vmem:[%s12160_s29 + $0x3c0] sm:$0xff]  ;;  %v6040_v14 = vld [vmem:[%s12160_s29 + $0x258] sm:$0xff]  ;;  %v6090_v29 = vld [vmem:[%s12160_s29 + $0x3e8] sm:$0xff] }
 0x64c   : > { %8941 = vmatprep.subr.bf16.mxu0 %v8940_v44  ;;  %v8982_v44 = vpack.c.bf16 %v6066_v37, %v6065_v33  ;;  %v8988_v4 = vpack.c.bf16 %v6086_v57, %v6085_v53  ;;  %v6089_v28 = vld [vmem:[%s12160_s29 + $0x3e0] sm:$0xff]  ;;  %v8964_v30 = vpack.c.bf16 %v6058_v19, %v6057_v18  ;;  %v8994_v34 = vpack.c.bf16 %v6072_v24, %v6071_v23  ;;  %v6142_v53 = vld [vmem:[%s12160_s29 + $0x588] sm:$0xff]  ;;  %v6096_v24 = vld [vmem:[%s12160_s29 + $0x418] sm:$0xff] }
 0x64d   : > { %8939 = vmatpush3.bf16.msra.mxu1 %v8938_v42  ;;  %6470 = vmatprep.mubr.f32.mxu0 %v6316_v1  ;;  %v6317_v9 = vcombine.high %v6315_v2, %v6315_v2  ;;  %vm5951_vm1 = vcmp.ge.f32.partialorder %v5946_v35, 0.0  ;;  %v5956_v26 = vmul.f32 0.1, %v5946_v35  ;;  %v6035_v42 = vld [vmem:[%s12160_s29 + $0x230] sm:$0xff]  ;;  %v8986_v1 = vpack.c.bf16 %v6068_v50, %v6067_v49  ;;  %v6073_v37 = vld [vmem:[%s12160_s29 + $0x360] sm:$0xff]  ;;  %v6076_v50 = vld [vmem:[%s12160_s29 + $0x378] sm:$0xff] }
 0x64e   : > { %8973 = vmatprep.subr.bf16.mxu1 %v8972_v45  ;;  %6471 = vmatmul.mubr.f32.vlgmr.msra.gmra.mrb[0].mxu0 %v6308_v52  ;;  %v6053_v45 = vld [vmem:[%s12160_s29 + $0x2c0] sm:$0xff]  ;;  %v8954_v52 = vpack.c.bf16 %v6036_v43, %v6035_v42  ;;  %v8996_v33 = vpack.c.bf16 %v6090_v29, %v6089_v28  ;;  %v6092_v42 = vld [vmem:[%s12160_s29 + $0x3f8] sm:$0xff]  ;;  %v6075_v49 = vld [vmem:[%s12160_s29 + $0x370] sm:$0xff] }
 0x64f   : > { %6540 = vmatprep.mubr.f32.mxu1 %v6317_v9  ;;  %8943 = vmatpush3.bf16.msra.mxu0 %v8942_v3  ;;  %v5961_v47 = vsel %vm5951_vm1, %v5946_v35, %v5956_v26  ;;  %v8956_v58 = vpack.c.bf16 %v6054_v46, %v6053_v45  ;;  %v6056_v3 = vld [vmem:[%s12160_s29 + $0x2d8] sm:$0xff]  ;;  %v6087_v9 = vld [vmem:[%s12160_s29 + $0x3d0] sm:$0xff]  ;;  %v6109_v45 = vld [vmem:[%s12160_s29 + $0x480] sm:$0xff] }
 0x650   : > { %6541 = vmatmul.mubr.f32.vlgmr.msra.gmra.mrb[0].mxu1 %v6315_v2  ;;  %8945 = vmatprep.subr.bf16.mxu0 %v8944_v6  ;;  %v13659_v40 = vrot.slane %v5961_v47, %v12264_v12  ;;  %v6318_v51 = vcombine.high %v5961_v47, %v5961_v47  ;;  %v6055_v2 = vld [vmem:[%s12160_s29 + $0x2d0] sm:$0xff]  ;;  %v6070_v6 = vld [vmem:[%s12160_s29 + $0x348] sm:$0xff]  ;;  %v6044_v26 = vld [vmem:[%s12160_s29 + $0x278] sm:$0xff] }
 0x651   : > { %8975 = vmatpush3.bf16.msra.mxu1 %v8974_v10  ;;  %v6088_v10 = vld [vmem:[%s12160_s29 + $0x3d8] sm:$0xff]  ;;  %v8960_v11 = vpack.c.bf16 %v6056_v3, %v6055_v2  ;;  %v6059_v35 = vld [vmem:[%s12160_s29 + $0x2f0] sm:$0xff]  ;;  %v6110_v46 = vld [vmem:[%s12160_s29 + $0x488] sm:$0xff]  ;;  %v8970_v47 = vpack.c.bf16 %v6044_v26, %v6043_v39 }
 0x652   : > { %8977 = vmatprep.subr.bf16.mxu1 %v8976_v17  ;;  %v6333_v62 = vcombine.high %v13659_v40, %v13659_v40  ;;  %v13668_v0 = vrot.slane %v6318_v51, %v12264_v12  ;;  %v8990_v17 = vpack.c.bf16 %v6070_v6, %v6069_v5  ;;  %v5770_v51 = vld [vmem:[%s12143_s10 + $0x8] sm:$0xff]  ;;  %v6116_v26 = vld [vmem:[%s12160_s29 + $0x4b8] sm:$0xff] }
 0x653   : > { %8947 = vmatpush3.bf16.msra.mxu0 %v8946_v20  ;;  %v8992_v20 = vpack.c.bf16 %v6088_v10, %v6087_v9  ;;  %v5810_v57 = vrot.slane %v5770_v51, %v13576_v54  ;;  %v5818_v60 = vrot.slane %v5770_v51, %v13582_v56  ;;  %v5822_v61 = vrot.slane %v5770_v51, %v13587_v59  ;;  %v6094_v2 = vld [vmem:[%s12160_s29 + $0x408] sm:$0xff]  ;;  %v6125_v3 = vld [vmem:[%s12160_s29 + $0x500] sm:$0xff]  ;;  %v6111_v6 = vld [vmem:[%s12160_s29 + $0x490] sm:$0xff] }
 0x654   : > { %8949 = vmatprep.subr.bf16.mxu0 %v8948_v27  ;;  %6610 = vmatprep.mubr.f32.mxu0 %v6333_v62  ;;  %v6334_v7 = vcombine.high %v13668_v0, %v13668_v0  ;;  %v8962_v27 = vpack.c.bf16 %v6040_v14, %v6039_v13  ;;  %v9004_v62 = vpack.c.bf16 %v6110_v46, %v6109_v45  ;;  %v6126_v5 = vld [vmem:[%s12160_s29 + $0x508] sm:$0xff]  ;;  %v6095_v13 = vld [vmem:[%s12160_s29 + $0x410] sm:$0xff] }
 0x655   : > { %8979 = vmatpush3.bf16.msra.mxu1 %v8978_v31  ;;  %v6041_v31 = vld [vmem:[%s12160_s29 + $0x260] sm:$0xff]  ;;  %v5890_v9 = vcombine.low %v5818_v60, %v5822_v61  ;;  %v6143_v14 = vld [vmem:[%s12160_s29 + $0x590] sm:$0xff]  ;;  %v5826_v29 = vrot.slane %v5770_v51, %v5793_v15  ;;  %v6146_v39 = vld [vmem:[%s12160_s29 + $0x5a8] sm:$0xff] }
 0x656   : > { %8981 = vmatprep.subr.bf16.mxu1 %v8980_v36  ;;  %6680 = vmatprep.mubr.f32.mxu1 %v6334_v7  ;;  %v6060_v36 = vld [vmem:[%s12160_s29 + $0x2f8] sm:$0xff]  ;;  %v8966_v25 = vpack.c.bf16 %v6042_v32, %v6041_v31  ;;  %v5766_v28 = vld [vmem:[#allocation2 + $0x10] sm:$0xff]  ;;  %v6113_v31 = vld [vmem:[%s12160_s29 + $0x4a0] sm:$0xff] }
 0x657   : > { %8951 = vmatpush3.bf16.msra.mxu0 %v8950_v38  ;;  %v6074_v38 = vld [vmem:[%s12160_s29 + $0x368] sm:$0xff]  ;;  %v8968_v43 = vpack.c.bf16 %v6060_v36, %v6059_v35  ;;  %v6112_v7 = vld [vmem:[%s12160_s29 + $0x498] sm:$0xff]  ;;  %v5904_v19 = vrot.slane %v5890_v9, %v12264_v12  ;;  %v5830_v35 = vrot.slane %v5770_v51, %v5797_v16  ;;  %v5834_v36 = vrot.slane %v5770_v51, %v5801_v21  ;;  %v6117_v60 = vld [vmem:[%s12160_s29 + $0x4c0] sm:$0xff] }
 0x658   : > { %8953 = vmatprep.subr.bf16.mxu0 %v8952_v41  ;;  %v6091_v41 = vld [vmem:[%s12160_s29 + $0x3f0] sm:$0xff]  ;;  %v9008_v23 = vpack.c.bf16 %v6112_v7, %v6111_v6  ;;  %v6114_v32 = vld [vmem:[%s12160_s29 + $0x4a8] sm:$0xff] }
 0x659   : > { %8983 = vmatpush3.bf16.msra.mxu1 %v8982_v44  ;;  %v8998_v44 = vpack.c.bf16 %v6074_v38, %v6073_v37  ;;  %v9010_v37 = vpack.c.bf16 %v6096_v24, %v6095_v13  ;;  %v6145_v38 = vld [vmem:[%s12160_s29 + $0x5a0] sm:$0xff]  ;;  %v9012_v21 = vpack.c.bf16 %v6114_v32, %v6113_v31  ;;  %v6130_v45 = vld [vmem:[%s12160_s29 + $0x528] sm:$0xff]  ;;  %v6103_v32 = vld [vmem:[%s12160_s29 + $0x450] sm:$0xff] }
 0x65a   : > { %8985 = vmatprep.subr.bf16.mxu1 %v8984_v48  ;;  %v9000_v48 = vpack.c.bf16 %v6092_v42, %v6091_v41  ;;  %v5906_v42 = vcombine.low %v5826_v29, %v5830_v35  ;;  %v6118_v61 = vld [vmem:[%s12160_s29 + $0x4c8] sm:$0xff]  ;;  %v6133_v24 = vld [vmem:[%s12160_s29 + $0x540] sm:$0xff]  ;;  %v6151_v29 = vld [vmem:[%s12160_s29 + $0x5d0] sm:$0xff] }
 0x65b   : > { %8955 = vmatpush3.bf16.msra.mxu0 %v8954_v52  ;;  %v6141_v52 = vld [vmem:[%s12160_s29 + $0x580] sm:$0xff]  ;;  %v6150_v9 = vld [vmem:[%s12160_s29 + $0x5c8] sm:$0xff]  ;;  %v5767_v35 = vld [vmem:[#allocation2 + $0x18] sm:$0xff] }
 0x65c   : > { %8957 = vmatprep.subr.bf16.mxu0 %v8956_v58  ;;  %v5814_v58 = vrot.slane %v5770_v51, %v13579_v55  ;;  %v9036_v10 = vpack.c.bf16 %v6142_v53, %v6141_v52  ;;  %v6100_v52 = vld [vmem:[%s12160_s29 + $0x438] sm:$0xff]  ;;  %v6102_v13 = vld [vmem:[%s12160_s29 + $0x448] sm:$0xff] }
 0x65d   : > { %8987 = vmatpush3.bf16.msra.mxu1 %v8986_v1  ;;  %v6093_v1 = vld [vmem:[%s12160_s29 + $0x400] sm:$0xff] }
 0x65e   : > { %8989 = vmatprep.subr.bf16.mxu1 %v8988_v4  ;;  %v9002_v4 = vpack.c.bf16 %v6076_v50, %v6075_v49 }
 0x65f   : > { %8959 = vmatpush3.bf16.msra.mxu0 %v8958_v8  ;;  %v5889_v8 = vcombine.low %v5810_v57, %v5814_v58 }
 0x660   : > { %8961 = vmatprep.subr.bf16.mxu0 %v8960_v11  ;;  %v9006_v11 = vpack.c.bf16 %v6094_v2, %v6093_v1 }
 0x661   : > { %8991 = vmatpush3.bf16.msra.mxu1 %v8990_v17  ;;  %v6144_v17 = vld [vmem:[%s12160_s29 + $0x598] sm:$0xff]  ;;  %v5897_v18 = vrot.slane %v5889_v8, %v12264_v12  ;;  %v6149_v8 = vld [vmem:[%s12160_s29 + $0x5c0] sm:$0xff] }
 0x662   : > { %8993 = vmatprep.subr.bf16.mxu1 %v8992_v20  ;;  %v9038_v20 = vpack.c.bf16 %v6126_v5, %v6125_v3  ;;  %v9040_v15 = vpack.c.bf16 %v6144_v17, %v6143_v14  ;;  %v6131_v3 = vld [vmem:[%s12160_s29 + $0x530] sm:$0xff] }
 0x663   : > { %8963 = vmatpush3.bf16.msra.mxu0 %v8962_v27  ;;  %v6127_v27 = vld [vmem:[%s12160_s29 + $0x510] sm:$0xff] }
 0x664   : > { %8965 = vmatprep.subr.bf16.mxu0 %v8964_v30  ;;  %v6128_v30 = vld [vmem:[%s12160_s29 + $0x518] sm:$0xff] }
 0x665   : > { %8995 = vmatpush3.bf16.msra.mxu1 %v8994_v34  ;;  %v5905_v34 = vcombine.low %v5897_v18, %v5904_v19  ;;  %v9042_v16 = vpack.c.bf16 %v6128_v30, %v6127_v27  ;;  %v6119_v18 = vld [vmem:[%s12160_s29 + $0x4d0] sm:$0xff]  ;;  %v6120_v19 = vld [vmem:[%s12160_s29 + $0x4d8] sm:$0xff]  ;;  %v6134_v27 = vld [vmem:[%s12160_s29 + $0x548] sm:$0xff] }
 0x666   : > { %8997 = vmatprep.subr.bf16.mxu1 %v8996_v33  ;;  %v5838_v33 = vrot.slane %v5770_v51, %v5805_v22  ;;  %v6098_v22 = vld [vmem:[%s12160_s29 + $0x428] sm:$0xff]  ;;  %v6099_v51 = vld [vmem:[%s12160_s29 + $0x430] sm:$0xff]  ;;  %v6152_v30 = vld [vmem:[%s12160_s29 + $0x5d8] sm:$0xff]  ;;  %v9024_v31 = vpack.c.bf16 %v6120_v19, %v6119_v18 }
 0x667   : > { %8967 = vmatpush3.bf16.msra.mxu0 %v8966_v25  ;;  %v5947_v25 = vadd.f32 %v5905_v34, %v5766_v28  ;;  %v9014_v46 = vpack.c.bf16 %v6098_v22, %v6097_v63  ;;  %v9018_v7 = vpack.c.bf16 %v6100_v52, %v6099_v51  ;;  %v6104_v34 = vld [vmem:[%s12160_s29 + $0x458] sm:$0xff]  ;;  %v6154_v63 = vld [vmem:[%s12160_s29 + $0x5e8] sm:$0xff]  ;;  %v6107_v52 = vld [vmem:[%s12160_s29 + $0x470] sm:$0xff] }
 0x668   : > { %8969 = vmatprep.subr.bf16.mxu0 %v8968_v43  ;;  %v5907_v43 = vcombine.low %v5834_v36, %v5838_v33  ;;  %v9054_v36 = vpack.c.bf16 %v6134_v27, %v6133_v24  ;;  %v6121_v33 = vld [vmem:[%s12160_s29 + $0x4e0] sm:$0xff]  ;;  %v6207_v27 = vld [vmem:[%s12160_s29 + $0x790] sm:$0xff] }
 0x669   : > { %8999 = vmatpush3.bf16.msra.mxu1 %v8998_v44  ;;  %vm5952_vm2 = vcmp.ge.f32.partialorder %v5947_v25, 0.0  ;;  %v5957_v41 = vmul.f32 0.1, %v5947_v25  ;;  %v9044_v44 = vpack.c.bf16 %v6146_v39, %v6145_v38  ;;  %v9056_v38 = vpack.c.bf16 %v6152_v30, %v6151_v29  ;;  %v6135_v39 = vld [vmem:[%s12160_s29 + $0x550] sm:$0xff] }
 0x66a   : > { %9001 = vmatprep.subr.bf16.mxu1 %v9000_v48  ;;  %v6148_v48 = vld [vmem:[%s12160_s29 + $0x5b8] sm:$0xff]  ;;  %v5921_v1 = vrot.slane %v5907_v43, %v12264_v12  ;;  %v6123_v43 = vld [vmem:[%s12160_s29 + $0x4f0] sm:$0xff] }
 0x66b   : > { %8971 = vmatpush3.bf16.msra.mxu0 %v8970_v47  ;;  %v6147_v47 = vld [vmem:[%s12160_s29 + $0x5b0] sm:$0xff]  ;;  %v5962_v49 = vsel %vm5952_vm2, %v5947_v25, %v5957_v41  ;;  %v6136_v25 = vld [vmem:[%s12160_s29 + $0x558] sm:$0xff]  ;;  %v6106_v41 = vld [vmem:[%s12160_s29 + $0x468] sm:$0xff] }
 0x66c   : > { %9005 = vmatprep.subr.bf16.mxu0 %v9004_v62  ;;  %v13746_v53 = vrot.slane %v5962_v49, %v12264_v12  ;;  %v6335_v57 = vcombine.high %v5962_v49, %v5962_v49  ;;  %v5914_v62 = vrot.slane %v5906_v42, %v12264_v12  ;;  %v9048_v2 = vpack.c.bf16 %v6148_v48, %v6147_v47  ;;  %v6155_v49 = vld [vmem:[%s12160_s29 + $0x5f0] sm:$0xff] }
 0x66d   : > { %9003 = vmatpush3.bf16.msra.mxu1 %v9002_v4  ;;  %v6132_v4 = vld [vmem:[%s12160_s29 + $0x538] sm:$0xff]  ;;  %v9058_v42 = vpack.c.bf16 %v6136_v25, %v6135_v39  ;;  %v6161_v39 = vld [vmem:[%s12160_s29 + $0x620] sm:$0xff] }
 0x66e   : > { %6611 = vmatmul.mubr.f32.vlgmr.msra.gmra.mrb[2].mxu0 %v13659_v40  ;;  %9037 = vmatprep.subr.bf16.mxu1 %v9036_v10  ;;  %v6115_v40 = vld [vmem:[%s12160_s29 + $0x4b0] sm:$0xff]  ;;  %v6350_v5 = vcombine.high %v13746_v53, %v13746_v53  ;;  %v13757_v6 = vrot.slane %v6335_v57, %v12264_v12  ;;  %v9020_v10 = vpack.c.bf16 %v6118_v61, %v6117_v60  ;;  %v6108_v57 = vld [vmem:[%s12160_s29 + $0x478] sm:$0xff]  ;;  %v6173_v60 = vld [vmem:[%s12160_s29 + $0x680] sm:$0xff] }
 0x66f   : > { %9007 = vmatpush3.bf16.msra.mxu0 %v9006_v11  ;;  %v9016_v50 = vpack.c.bf16 %v6116_v26, %v6115_v40  ;;  %v6101_v11 = vld [vmem:[%s12160_s29 + $0x440] sm:$0xff]  ;;  %v9050_v17 = vpack.c.bf16 %v6132_v4, %v6131_v3  ;;  %v6174_v61 = vld [vmem:[%s12160_s29 + $0x688] sm:$0xff]  ;;  %v6140_v3 = vld [vmem:[%s12160_s29 + $0x578] sm:$0xff]  ;;  %v9034_v4 = vpack.c.bf16 %v6108_v57, %v6107_v52 }
 0x670   : > { %6681 = vmatmul.mubr.f32.vlgmr.msra.gmra.mrb[2].mxu1 %v13668_v0  ;;  %9009 = vmatprep.subr.bf16.mxu0 %v9008_v23  ;;  %v6129_v0 = vld [vmem:[%s12160_s29 + $0x520] sm:$0xff]  ;;  %v6351_v14 = vcombine.high %v13757_v6, %v13757_v6  ;;  %v9052_v23 = vpack.c.bf16 %v6150_v9, %v6149_v8  ;;  %v9022_v28 = vpack.c.bf16 %v6102_v13, %v6101_v11  ;;  %v6158_v11 = vld [vmem:[%s12160_s29 + $0x608] sm:$0xff]  ;;  %v6164_v52 = vld [vmem:[%s12160_s29 + $0x638] sm:$0xff] }
 0x671   : > { %9039 = vmatpush3.bf16.msra.mxu1 %v9038_v20  ;;  %v9046_v58 = vpack.c.bf16 %v6130_v45, %v6129_v0  ;;  %6750 = vmatprep.mubr.f32.mxu0 %v6350_v5  ;;  %v5922_v20 = vcombine.low %v5914_v62, %v5921_v1  ;;  %v6105_v26 = vld [vmem:[%s12160_s29 + $0x460] sm:$0xff]  ;;  %v9068_v9 = vpack.c.bf16 %v6174_v61, %v6173_v60  ;;  %v6182_v60 = vld [vmem:[%s12160_s29 + $0x6c8] sm:$0xff] }
 0x672   : > { %9041 = vmatprep.subr.bf16.mxu1 %v9040_v15  ;;  %6820 = vmatprep.mubr.f32.mxu1 %v6351_v14  ;;  %v6122_v15 = vld [vmem:[%s12160_s29 + $0x4e8] sm:$0xff]  ;;  %v6137_v45 = vld [vmem:[%s12160_s29 + $0x560] sm:$0xff]  ;;  %v9030_v48 = vpack.c.bf16 %v6106_v41, %v6105_v26  ;;  %v6175_v14 = vld [vmem:[%s12160_s29 + $0x690] sm:$0xff] }
 0x673   : > { %9011 = vmatpush3.bf16.msra.mxu0 %v9010_v37  ;;  %v5948_v37 = vadd.f32 %v5922_v20, %v5767_v35  ;;  %v9028_v40 = vpack.c.bf16 %v6122_v15, %v6121_v33  ;;  %v6205_v5 = vld [vmem:[%s12160_s29 + $0x780] sm:$0xff]  ;;  %v6180_v26 = vld [vmem:[%s12160_s29 + $0x6b8] sm:$0xff] }
 0x674   : > { %9013 = vmatprep.subr.bf16.mxu0 %v9012_v21  ;;  %v6153_v21 = vld [vmem:[%s12160_s29 + $0x5e0] sm:$0xff] }
 0x675   : > { %9043 = vmatpush3.bf16.msra.mxu1 %v9042_v16  ;;  %v9026_v16 = vpack.c.bf16 %v6104_v34, %v6103_v32  ;;  %vm5953_vm3 = vcmp.ge.f32.partialorder %v5948_v37, 0.0  ;;  %v5958_v22 = vmul.f32 0.1, %v5948_v37  ;;  %v9060_v0 = vpack.c.bf16 %v6154_v63, %v6153_v21  ;;  %v6189_v20 = vld [vmem:[%s12160_s29 + $0x700] sm:$0xff]  ;;  %v6160_v32 = vld [vmem:[%s12160_s29 + $0x618] sm:$0xff]  ;;  %v6210_v63 = vld [vmem:[%s12160_s29 + $0x7a8] sm:$0xff] }
 0x676   : > { %9045 = vmatprep.subr.bf16.mxu1 %v9044_v44  ;;  %v6124_v44 = vld [vmem:[%s12160_s29 + $0x4f8] sm:$0xff]  ;;  %v6177_v35 = vld [vmem:[%s12160_s29 + $0x6a0] sm:$0xff] }
 0x677   : > { %9015 = vmatpush3.bf16.msra.mxu0 %v9014_v46  ;;  %v6138_v46 = vld [vmem:[%s12160_s29 + $0x568] sm:$0xff]  ;;  %v5963_v47 = vsel %vm5953_vm3, %v5948_v37, %v5958_v22  ;;  %v9032_v51 = vpack.c.bf16 %v6124_v44, %v6123_v43  ;;  %v6191_v37 = vld [vmem:[%s12160_s29 + $0x710] sm:$0xff]  ;;  %v6209_v21 = vld [vmem:[%s12160_s29 + $0x7a0] sm:$0xff] }
 0x678   : > { %9017 = vmatprep.subr.bf16.mxu0 %v9016_v50  ;;  %v6156_v50 = vld [vmem:[%s12160_s29 + $0x5f8] sm:$0xff]  ;;  %v6352_v62 = vcombine.high %v5963_v47, %v5963_v47  ;;  %v13796_v8 = vrot.slane %v5963_v47, %v12264_v12  ;;  %v6193_v43 = vld [vmem:[%s12160_s29 + $0x720] sm:$0xff]  ;;  %v6194_v44 = vld [vmem:[%s12160_s29 + $0x728] sm:$0xff] }
 0x679   : > { %9047 = vmatpush3.bf16.msra.mxu1 %v9046_v58  ;;  %v9062_v58 = vpack.c.bf16 %v6138_v46, %v6137_v45  ;;  %v9064_v1 = vpack.c.bf16 %v6156_v50, %v6155_v49  ;;  %v6212_v45 = vld [vmem:[%s12160_s29 + $0x7b8] sm:$0xff]  ;;  %v9110_v57 = vpack.c.bf16 %v6194_v44, %v6193_v43  ;;  %v6201_v43 = vld [vmem:[%s12160_s29 + $0x760] sm:$0xff]  ;;  %v6202_v44 = vld [vmem:[%s12160_s29 + $0x768] sm:$0xff] }
 0x67a   : > { %9049 = vmatprep.subr.bf16.mxu1 %v9048_v2  ;;  %v6139_v2 = vld [vmem:[%s12160_s29 + $0x570] sm:$0xff]  ;;  %v13803_v18 = vrot.slane %v6352_v62, %v12264_v12  ;;  %v6367_v29 = vcombine.high %v13796_v8, %v13796_v8 }
 0x67b   : > { %9019 = vmatpush3.bf16.msra.mxu0 %v9018_v7  ;;  %v6206_v7 = vld [vmem:[%s12160_s29 + $0x788] sm:$0xff]  ;;  %v9066_v13 = vpack.c.bf16 %v6140_v3, %v6139_v2  ;;  %v6213_v2 = vld [vmem:[%s12160_s29 + $0x7c0] sm:$0xff] }
 0x67c   : > { %9021 = vmatprep.subr.bf16.mxu0 %v9020_v10  ;;  %v6157_v10 = vld [vmem:[%s12160_s29 + $0x600] sm:$0xff]  ;;  %v9100_v19 = vpack.c.bf16 %v6206_v7, %v6205_v5  ;;  %v6368_v33 = vcombine.high %v13803_v18, %v13803_v18  ;;  %v6214_v3 = vld [vmem:[%s12160_s29 + $0x7c8] sm:$0xff] }
 0x67d   : > { %9051 = vmatpush3.bf16.msra.mxu1 %v9050_v17  ;;  %v6176_v17 = vld [vmem:[%s12160_s29 + $0x698] sm:$0xff]  ;;  %v9070_v24 = vpack.c.bf16 %v6158_v11, %v6157_v10  ;;  %v6166_v10 = vld [vmem:[%s12160_s29 + $0x648] sm:$0xff]  ;;  %v5768_v11 = vld [vmem:[#allocation2 + $0x20] sm:$0xff] }
 0x67e   : > { %9053 = vmatprep.subr.bf16.mxu1 %v9052_v23  ;;  %v6190_v23 = vld [vmem:[%s12160_s29 + $0x708] sm:$0xff]  ;;  %v9072_v30 = vpack.c.bf16 %v6176_v17, %v6175_v14  ;;  %v6183_v14 = vld [vmem:[%s12160_s29 + $0x6d0] sm:$0xff]  ;;  %v6184_v17 = vld [vmem:[%s12160_s29 + $0x6d8] sm:$0xff] }
 0x67f   : > { %9023 = vmatpush3.bf16.msra.mxu0 %v9022_v28  ;;  %v6208_v28 = vld [vmem:[%s12160_s29 + $0x798] sm:$0xff]  ;;  %v9102_v34 = vpack.c.bf16 %v6190_v23, %v6189_v20  ;;  %v9116_v20 = vpack.c.bf16 %v6214_v3, %v6213_v2  ;;  %v6197_v23 = vld [vmem:[%s12160_s29 + $0x740] sm:$0xff]  ;;  %v6222_v3 = vld [vmem:[%s12160_s29 + $0x808] sm:$0xff] }
 0x680   : > { %9025 = vmatprep.subr.bf16.mxu0 %v9024_v31  ;;  %v6159_v31 = vld [vmem:[%s12160_s29 + $0x610] sm:$0xff]  ;;  %v9104_v15 = vpack.c.bf16 %v6208_v28, %v6207_v27  ;;  %v6221_v2 = vld [vmem:[%s12160_s29 + $0x800] sm:$0xff] }
 0x681   : > { %9055 = vmatpush3.bf16.msra.mxu1 %v9054_v36  ;;  %v6178_v36 = vld [vmem:[%s12160_s29 + $0x6a8] sm:$0xff]  ;;  %v9074_v25 = vpack.c.bf16 %v6160_v32, %v6159_v31  ;;  %v6215_v28 = vld [vmem:[%s12160_s29 + $0x7d0] sm:$0xff]  ;;  %v9088_v31 = vpack.c.bf16 %v6184_v17, %v6183_v14  ;;  %v9134_v14 = vpack.c.bf16 %v6222_v3, %v6221_v2 }
 0x682   : > { %9057 = vmatprep.subr.bf16.mxu1 %v9056_v38  ;;  %v6192_v38 = vld [vmem:[%s12160_s29 + $0x718] sm:$0xff]  ;;  %v6167_v32 = vld [vmem:[%s12160_s29 + $0x650] sm:$0xff] }
 0x683   : > { %9027 = vmatpush3.bf16.msra.mxu0 %v9026_v16  ;;  %v6162_v16 = vld [vmem:[%s12160_s29 + $0x628] sm:$0xff]  ;;  %v9106_v22 = vpack.c.bf16 %v6192_v38, %v6191_v37  ;;  %v6199_v37 = vld [vmem:[%s12160_s29 + $0x750] sm:$0xff]  ;;  %v6200_v38 = vld [vmem:[%s12160_s29 + $0x758] sm:$0xff] }
 0x684   : > { %9029 = vmatprep.subr.bf16.mxu0 %v9028_v40  ;;  %v6179_v40 = vld [vmem:[%s12160_s29 + $0x6b0] sm:$0xff]  ;;  %v9078_v41 = vpack.c.bf16 %v6162_v16, %v6161_v39  ;;  %v6217_v16 = vld [vmem:[%s12160_s29 + $0x7e0] sm:$0xff] }
 0x685   : > { %9059 = vmatpush3.bf16.msra.mxu1 %v9058_v42  ;;  %v9108_v42 = vpack.c.bf16 %v6210_v63, %v6209_v21  ;;  %v9080_v50 = vpack.c.bf16 %v6180_v26, %v6179_v40  ;;  %v6218_v21 = vld [vmem:[%s12160_s29 + $0x7e8] sm:$0xff]  ;;  %v9122_v40 = vpack.c.bf16 %v6200_v38, %v6199_v37  ;;  %v6187_v26 = vld [vmem:[%s12160_s29 + $0x6f0] sm:$0xff] }
 0x686   : > { %9061 = vmatprep.subr.bf16.mxu1 %v9060_v0  ;;  %v5771_v0 = vld [vmem:[%s12143_s10 + $0x10] sm:$0xf]  ;;  %v6271_v17 = vld [vmem:[%s12160_s29 + $0x990] sm:$0xff] }
 0x687   : > { %9031 = vmatpush3.bf16.msra.mxu0 %v9030_v48  ;;  %v5842_v46 = vrot.slane %v5771_v0, %v13576_v54  ;;  %v5846_v47 = vrot.slane %v5771_v0, %v13579_v55  ;;  %v5850_v48 = vrot.slane %v5771_v0, %v13582_v56  ;;  %v5854_v49 = vrot.slane %v5771_v0, %v13587_v59  ;;  %v6195_v56 = vld [vmem:[%s12160_s29 + $0x730] sm:$0xff]  ;;  %v6196_v59 = vld [vmem:[%s12160_s29 + $0x738] sm:$0xff]  ;;  %v6226_v37 = vld [vmem:[%s12160_s29 + $0x828] sm:$0xff] }
 0x688   : > { %9033 = vmatprep.subr.bf16.mxu0 %v9032_v51  ;;  %v6163_v51 = vld [vmem:[%s12160_s29 + $0x630] sm:$0xff] }
 0x689   : > { %9063 = vmatpush3.bf16.msra.mxu1 %v9062_v58  ;;  %v6181_v58 = vld [vmem:[%s12160_s29 + $0x6c0] sm:$0xff]  ;;  %v5923_v61 = vcombine.low %v5842_v46, %v5846_v47  ;;  %v5924_v62 = vcombine.low %v5850_v48, %v5854_v49  ;;  %v6220_v46 = vld [vmem:[%s12160_s29 + $0x7f8] sm:$0xff]  ;;  %v6171_v48 = vld [vmem:[%s12160_s29 + $0x670] sm:$0xff] }
 0x68a   : > { %9065 = vmatprep.subr.bf16.mxu1 %v9064_v1  ;;  %v9082_v1 = vpack.c.bf16 %v6164_v52, %v6163_v51  ;;  %v9084_v7 = vpack.c.bf16 %v6182_v60, %v6181_v58  ;;  %v6172_v49 = vld [vmem:[%s12160_s29 + $0x678] sm:$0xff]  ;;  %v6237_v51 = vld [vmem:[%s12160_s29 + $0x880] sm:$0xff]  ;;  %v6238_v52 = vld [vmem:[%s12160_s29 + $0x888] sm:$0xff] }
 0x68b   : > { %9035 = vmatpush3.bf16.msra.mxu0 %v9034_v4  ;;  %v5931_v4 = vrot.slane %v5923_v61, %v12264_v12  ;;  %v5938_v5 = vrot.slane %v5924_v62, %v12264_v12  ;;  %v6203_v60 = vld [vmem:[%s12160_s29 + $0x770] sm:$0xff]  ;;  %v6204_v61 = vld [vmem:[%s12160_s29 + $0x778] sm:$0xff]  ;;  %v9098_v62 = vpack.c.bf16 %v6172_v49, %v6171_v48  ;;  %v6278_v48 = vld [vmem:[%s12160_s29 + $0x9c8] sm:$0xff] }
 0x68c   : > { %9069 = vmatprep.subr.bf16.mxu0 %v9068_v9  ;;  %v6165_v9 = vld [vmem:[%s12160_s29 + $0x640] sm:$0xff]  ;;  %v6231_v3 = vld [vmem:[%s12160_s29 + $0x850] sm:$0xff] }
 0x68d   : > { %9067 = vmatpush3.bf16.msra.mxu1 %v9066_v13  ;;  %v9114_v13 = vpack.c.bf16 %v6196_v59, %v6195_v56  ;;  %v9086_v27 = vpack.c.bf16 %v6166_v10, %v6165_v9  ;;  %v6270_v56 = vld [vmem:[%s12160_s29 + $0x988] sm:$0xff] }
 0x68e   : > { %6751 = vmatmul.mubr.f32.vlgmr.msra.gmra.mrb[4].mxu0 %v13746_v53  ;;  %9101 = vmatprep.subr.bf16.mxu1 %v9100_v19  ;;  %v9076_v53 = vpack.c.bf16 %v6178_v36, %v6177_v35  ;;  %v5939_v19 = vcombine.low %v5931_v4, %v5938_v5  ;;  %v6185_v36 = vld [vmem:[%s12160_s29 + $0x6e0] sm:$0xff]  ;;  %v9130_v4 = vpack.c.bf16 %v6204_v61, %v6203_v60  ;;  %v6239_v5 = vld [vmem:[%s12160_s29 + $0x890] sm:$0xff] }
 0x68f   : > { %9071 = vmatpush3.bf16.msra.mxu0 %v9070_v24  ;;  %6890 = vmatprep.mubr.f32.mxu0 %v6367_v29  ;;  %v6198_v24 = vld [vmem:[%s12160_s29 + $0x748] sm:$0xff]  ;;  %v6216_v29 = vld [vmem:[%s12160_s29 + $0x7d8] sm:$0xff]  ;;  %v6261_v61 = vld [vmem:[%s12160_s29 + $0x940] sm:$0xff] }
 0x690   : > { %6821 = vmatmul.mubr.f32.vlgmr.msra.gmra.mrb[4].mxu1 %v13757_v6  ;;  %9073 = vmatprep.subr.bf16.mxu0 %v9072_v30  ;;  %v6211_v6 = vld [vmem:[%s12160_s29 + $0x7b0] sm:$0xff]  ;;  %v5949_v30 = vadd.f32 %v5939_v19, %v5768_v11  ;;  %v9118_v35 = vpack.c.bf16 %v6198_v24, %v6197_v23  ;;  %v6253_v11 = vld [vmem:[%s12160_s29 + $0x900] sm:$0xff]  ;;  %v6272_v19 = vld [vmem:[%s12160_s29 + $0x998] sm:$0xff] }
 0x691   : > { %9103 = vmatpush3.bf16.msra.mxu1 %v9102_v34  ;;  %6960 = vmatprep.mubr.f32.mxu1 %v6368_v33  ;;  %v9112_v55 = vpack.c.bf16 %v6212_v45, %v6211_v6  ;;  %v6168_v34 = vld [vmem:[%s12160_s29 + $0x658] sm:$0xff]  ;;  %v6186_v33 = vld [vmem:[%s12160_s29 + $0x6e8] sm:$0xff]  ;;  %v6219_v45 = vld [vmem:[%s12160_s29 + $0x7f0] sm:$0xff] }
 0x692   : > { %9105 = vmatprep.subr.bf16.mxu1 %v9104_v15  ;;  %v9120_v15 = vpack.c.bf16 %v6216_v29, %v6215_v28  ;;  %v5959_v39 = vmul.f32 0.1, %v5949_v30  ;;  %vm5954_vm4 = vcmp.ge.f32.partialorder %v5949_v30, 0.0  ;;  %v9092_v63 = vpack.c.bf16 %v6186_v33, %v6185_v36  ;;  %v6224_v24 = vld [vmem:[%s12160_s29 + $0x818] sm:$0xff]  ;;  %v6241_v28 = vld [vmem:[%s12160_s29 + $0x8a0] sm:$0xff]  ;;  %v6242_v29 = vld [vmem:[%s12160_s29 + $0x8a8] sm:$0xff] }
 0x693   : > { %9075 = vmatpush3.bf16.msra.mxu0 %v9074_v25  ;;  %v9090_v25 = vpack.c.bf16 %v6168_v34, %v6167_v32  ;;  %v9128_v58 = vpack.c.bf16 %v6220_v46, %v6219_v45  ;;  %v6255_v32 = vld [vmem:[%s12160_s29 + $0x910] sm:$0xff]  ;;  %v6256_v34 = vld [vmem:[%s12160_s29 + $0x918] sm:$0xff]  ;;  %v6273_v36 = vld [vmem:[%s12160_s29 + $0x9a0] sm:$0xff] }
 0x694   : > { %9077 = vmatprep.subr.bf16.mxu0 %v9076_v53  ;;  %v6169_v53 = vld [vmem:[%s12160_s29 + $0x660] sm:$0xff]  ;;  %v5964_v0 = vsel %vm5954_vm4, %v5949_v30, %v5959_v39  ;;  %v6274_v33 = vld [vmem:[%s12160_s29 + $0x9a8] sm:$0xff]  ;;  %v9170_v38 = vpack.c.bf16 %v6256_v34, %v6255_v32  ;;  %v6243_v39 = vld [vmem:[%s12160_s29 + $0x8b0] sm:$0xff] }
 0x695   : > { %9107 = vmatpush3.bf16.msra.mxu1 %v9106_v22  ;;  %v6170_v22 = vld [vmem:[%s12160_s29 + $0x668] sm:$0xff]  ;;  %v13879_v59 = vrot.slane %v5964_v0, %v12264_v12  ;;  %v6260_v45 = vld [vmem:[%s12160_s29 + $0x938] sm:$0xff] }
 0x696   : > { %9109 = vmatprep.subr.bf16.mxu1 %v9108_v42  ;;  %v9124_v42 = vpack.c.bf16 %v6218_v21, %v6217_v16  ;;  %v9094_v6 = vpack.c.bf16 %v6170_v22, %v6169_v53  ;;  %v9172_v16 = vpack.c.bf16 %v6274_v33, %v6273_v36  ;;  %v6257_v21 = vld [vmem:[%s12160_s29 + $0x920] sm:$0xff]  ;;  %v6275_v53 = vld [vmem:[%s12160_s29 + $0x9b0] sm:$0xff]  ;;  %v6276_v22 = vld [vmem:[%s12160_s29 + $0x9b8] sm:$0xff] }
 0x697   : > { %9079 = vmatpush3.bf16.msra.mxu0 %v9078_v41  ;;  %v6188_v41 = vld [vmem:[%s12160_s29 + $0x6f8] sm:$0xff]  ;;  %v6266_v32 = vld [vmem:[%s12160_s29 + $0x968] sm:$0xff] }
 0x698   : > { %9081 = vmatprep.subr.bf16.mxu0 %v9080_v50  ;;  %v9096_v47 = vpack.c.bf16 %v6188_v41, %v6187_v26  ;;  %v9126_v50 = vpack.c.bf16 %v6202_v44, %v6201_v43  ;;  %v6227_v26 = vld [vmem:[%s12160_s29 + $0x830] sm:$0xff]  ;;  %v6228_v41 = vld [vmem:[%s12160_s29 + $0x838] sm:$0xff]  ;;  %v6245_v43 = vld [vmem:[%s12160_s29 + $0x8c0] sm:$0xff] }
 0x699   : > { %9111 = vmatpush3.bf16.msra.mxu1 %v9110_v57  ;;  %v6369_v57 = vcombine.high %v5964_v0, %v5964_v0  ;;  %v6246_v44 = vld [vmem:[%s12160_s29 + $0x8c8] sm:$0xff]  ;;  %v9176_v0 = vpack.c.bf16 %v6276_v22, %v6275_v53  ;;  %v9146_v46 = vpack.c.bf16 %v6228_v41, %v6227_v26  ;;  %v6284_v36 = vld [vmem:[%s12160_s29 + $0x9f8] sm:$0xff] }
 0x69a   : > { %9113 = vmatprep.subr.bf16.mxu1 %v9112_v55  ;;  %v6269_v55 = vld [vmem:[%s12160_s29 + $0x980] sm:$0xff]  ;;  %v9148_v49 = vpack.c.bf16 %v6246_v44, %v6245_v43 }
 0x69b   : > { %9083 = vmatpush3.bf16.msra.mxu0 %v9082_v1  ;;  %v9132_v1 = vpack.c.bf16 %v6238_v52, %v6237_v51  ;;  %v13886_v9 = vrot.slane %v6369_v57, %v12264_v12  ;;  %v9164_v10 = vpack.c.bf16 %v6270_v56, %v6269_v55  ;;  %v6223_v12 = vld [vmem:[%s12160_s29 + $0x810] sm:$0xff]  ;;  %v6230_v51 = vld [vmem:[%s12160_s29 + $0x848] sm:$0xff] }
 0x69c   : > { %9085 = vmatprep.subr.bf16.mxu0 %v9084_v7  ;;  %v6240_v7 = vld [vmem:[%s12160_s29 + $0x898] sm:$0xff]  ;;  %v6247_v57 = vld [vmem:[%s12160_s29 + $0x8d0] sm:$0xff] }
 0x69d   : > { %9115 = vmatpush3.bf16.msra.mxu1 %v9114_v13  ;;  %v6254_v13 = vld [vmem:[%s12160_s29 + $0x908] sm:$0xff]  ;;  %v9136_v23 = vpack.c.bf16 %v6240_v7, %v6239_v5  ;;  %v6385_v30 = vcombine.high %v13886_v9, %v13886_v9  ;;  %v6279_v56 = vld [vmem:[%s12160_s29 + $0x9d0] sm:$0xff]  ;;  %v6249_v7 = vld [vmem:[%s12160_s29 + $0x8e0] sm:$0xff] }
 0x69e   : > { %9117 = vmatprep.subr.bf16.mxu1 %v9116_v20  ;;  %v6384_v20 = vcombine.high %v13879_v59, %v13879_v59 }
 0x69f   : > { %9087 = vmatpush3.bf16.msra.mxu0 %v9086_v27  ;;  %v9166_v27 = vpack.c.bf16 %v6254_v13, %v6253_v11  ;;  %v6263_v13 = vld [vmem:[%s12160_s29 + $0x950] sm:$0xff] }
 0x6a0   : > { %9089 = vmatprep.subr.bf16.mxu0 %v9088_v31  ;;  %v9168_v31 = vpack.c.bf16 %v6272_v19, %v6271_v17  ;;  %v6281_v19 = vld [vmem:[%s12160_s29 + $0x9e0] sm:$0xff] }
 0x6a1   : > { %9119 = vmatpush3.bf16.msra.mxu1 %v9118_v35  ;;  %v9138_v35 = vpack.c.bf16 %v6224_v24, %v6223_v12  ;;  %v6233_v12 = vld [vmem:[%s12160_s29 + $0x860] sm:$0xff]  ;;  %v6234_v24 = vld [vmem:[%s12160_s29 + $0x868] sm:$0xff] }
 0x6a2   : > { %9121 = vmatprep.subr.bf16.mxu1 %v9120_v15  ;;  %v9140_v15 = vpack.c.bf16 %v6242_v29, %v6241_v28  ;;  %v6251_v28 = vld [vmem:[%s12160_s29 + $0x8f0] sm:$0xff]  ;;  %v6252_v29 = vld [vmem:[%s12160_s29 + $0x8f8] sm:$0xff]  ;;  %v9158_v34 = vpack.c.bf16 %v6234_v24, %v6233_v12 }
 0x6a3   : > { %9091 = vmatpush3.bf16.msra.mxu0 %v9090_v25  ;;  %v6244_v25 = vld [vmem:[%s12160_s29 + $0x8b8] sm:$0xff]  ;;  %v9160_v33 = vpack.c.bf16 %v6252_v29, %v6251_v28 }
 0x6a4   : > { %9093 = vmatprep.subr.bf16.mxu0 %v9092_v63 }
 0x6a5   : > { %9123 = vmatpush3.bf16.msra.mxu1 %v9122_v40  ;;  %v9144_v40 = vpack.c.bf16 %v6244_v25, %v6243_v39  ;;  %v6267_v39 = vld [vmem:[%s12160_s29 + $0x970] sm:$0xff]  ;;  %v6268_v25 = vld [vmem:[%s12160_s29 + $0x978] sm:$0xff] }
 0x6a6   : > { %9125 = vmatprep.subr.bf16.mxu1 %v9124_v42 }
 0x6a7   : > { %9095 = vmatpush3.bf16.msra.mxu0 %v9094_v6  ;;  %v6259_v6 = vld [vmem:[%s12160_s29 + $0x930] sm:$0xff] }
 0x6a8   : > { %9097 = vmatprep.subr.bf16.mxu0 %v9096_v47  ;;  %v6277_v47 = vld [vmem:[%s12160_s29 + $0x9c0] sm:$0xff]  ;;  %v9178_v52 = vpack.c.bf16 %v6260_v45, %v6259_v6 }
 0x6a9   : > { %9127 = vmatpush3.bf16.msra.mxu1 %v9126_v50  ;;  %v6229_v50 = vld [vmem:[%s12160_s29 + $0x840] sm:$0xff]  ;;  %v9180_v60 = vpack.c.bf16 %v6278_v48, %v6277_v47 }
 0x6aa   : > { %9129 = vmatprep.subr.bf16.mxu1 %v9128_v58  ;;  %v6248_v58 = vld [vmem:[%s12160_s29 + $0x8d8] sm:$0xff]  ;;  %v9150_v55 = vpack.c.bf16 %v6230_v51, %v6229_v50 }
 0x6ab   : > { %9099 = vmatpush3.bf16.msra.mxu0 %v9098_v62  ;;  %v6262_v62 = vld [vmem:[%s12160_s29 + $0x948] sm:$0xff]  ;;  %v9152_v2 = vpack.c.bf16 %v6248_v58, %v6247_v57 }
 0x6ac   : > { %9133 = vmatprep.subr.bf16.mxu0 %v9132_v1  ;;  %v6280_v1 = vld [vmem:[%s12160_s29 + $0x9d8] sm:$0xff]  ;;  %v9182_v5 = vpack.c.bf16 %v6262_v62, %v6261_v61 }
 0x6ad   : > { %9131 = vmatpush3.bf16.msra.mxu1 %v9130_v4  ;;  %v6232_v4 = vld [vmem:[%s12160_s29 + $0x858] sm:$0xff]  ;;  %v9184_v11 = vpack.c.bf16 %v6280_v1, %v6279_v56 }
 0x6ae   : > { %6891 = vmatmul.mubr.f32.vlgmr.msra.gmra.mrb[6].mxu0 %v13796_v8  ;;  %9165 = vmatprep.subr.bf16.mxu1 %v9164_v10  ;;  %v6225_v8 = vld [vmem:[%s12160_s29 + $0x820] sm:$0xff]  ;;  %v6250_v10 = vld [vmem:[%s12160_s29 + $0x8e8] sm:$0xff]  ;;  %v9154_v17 = vpack.c.bf16 %v6232_v4, %v6231_v3 }
 0x6af   : > { %9135 = vmatpush3.bf16.msra.mxu0 %v9134_v14  ;;  %7030 = vmatprep.mubr.f32.mxu0 %v6384_v20  ;;  %v9142_v63 = vpack.c.bf16 %v6226_v37, %v6225_v8  ;;  %v6264_v14 = vld [vmem:[%s12160_s29 + $0x958] sm:$0xff]  ;;  %v6282_v20 = vld [vmem:[%s12160_s29 + $0x9e8] sm:$0xff] }
 0x6b0   : > { %6961 = vmatmul.mubr.f32.vlgmr.msra.gmra.mrb[6].mxu1 %v13803_v18  ;;  %9137 = vmatprep.subr.bf16.mxu0 %v9136_v23  ;;  %v6258_v18 = vld [vmem:[%s12160_s29 + $0x928] sm:$0xff]  ;;  %v9156_v23 = vpack.c.bf16 %v6250_v10, %v6249_v7  ;;  %v6236_v8 = vld [vmem:[%s12160_s29 + $0x878] sm:$0xff] }
 0x6b1   : > { %9167 = vmatpush3.bf16.msra.mxu1 %v9166_v27  ;;  %7100 = vmatprep.mubr.f32.mxu1 %v6385_v30  ;;  %v9174_v42 = vpack.c.bf16 %v6258_v18, %v6257_v21  ;;  %v9186_v27 = vpack.c.bf16 %v6264_v14, %v6263_v13  ;;  %v9188_v30 = vpack.c.bf16 %v6282_v20, %v6281_v19  ;;  %v6285_v18 = vld [vmem:[%s13992_s4] sm:$0x1] }
 0x6b2   : > { %9169 = vmatprep.subr.bf16.mxu1 %v9168_v31  ;;  %v6265_v31 = vld [vmem:[%s12160_s29 + $0x960] sm:$0xff]  ;;  %v9194_v21 = vpack.c.bf16 %v6268_v25, %v6267_v39 }
 0x6b3   : > { %9139 = vmatpush3.bf16.msra.mxu0 %v9138_v35  ;;  %v6283_v35 = vld [vmem:[%s12160_s29 + $0x9f0] sm:$0xff]  ;;  %v9190_v37 = vpack.c.bf16 %v6266_v32, %v6265_v31 }
 0x6b4   : > { %9141 = vmatprep.subr.bf16.mxu0 %v9140_v15  ;;  %v6235_v15 = vld [vmem:[%s12160_s29 + $0x870] sm:$0xff] }
 0x6b5   : > { %9171 = vmatpush3.bf16.msra.mxu1 %v9170_v38  ;;  %v9192_v38 = vpack.c.bf16 %v6284_v36, %v6283_v35 }
 0x6b6   : > { %9173 = vmatprep.subr.bf16.mxu1 %v9172_v16  ;;  %v9162_v16 = vpack.c.bf16 %v6236_v8, %v6235_v15 }
 0x6b7   : > { %9143 = vmatpush3.bf16.msra.mxu0 %v9142_v63  ;;  %v6288_v63 = vstv %s6287_s23 }
 0x6b8   : > { %9145 = vmatprep.subr.bf16.mxu0 %v9144_v40  ;;  %v6289_v53 = vmul.f32 %v6288_v63, %v6285_v18 }
 0x6b9   : > { %9175 = vmatpush3.bf16.msra.mxu1 %v9174_v42 }
 0x6ba   : > { %9177 = vmatprep.subr.bf16.mxu1 %v9176_v0  ;;  %v6294_v40 = vrot.slane %v6289_v53, %v13576_v54 }
 0x6bb   : > { %9147 = vmatpush3.bf16.msra.mxu0 %v9146_v46 }
 0x6bc   : > { %9149 = vmatprep.subr.bf16.mxu0 %v9148_v49 }
 0x6bd   : > { %9179 = vmatpush3.bf16.msra.mxu1 %v9178_v52 }
 0x6be   : > { %9181 = vmatprep.subr.bf16.mxu1 %v9180_v60 }
 0x6bf   : > { %9151 = vmatpush3.bf16.msra.mxu0 %v9150_v55 }
 0x6c0   : > { %9153 = vmatprep.subr.bf16.mxu0 %v9152_v2 }
 0x6c1   : > { %9183 = vmatpush3.bf16.msra.mxu1 %v9182_v5 }
 0x6c2   : > { %9185 = vmatprep.subr.bf16.mxu1 %v9184_v11 }
 0x6c3   : > { %9155 = vmatpush3.bf16.msra.mxu0 %v9154_v17 }
 0x6c4   : > { %9157 = vmatprep.subr.bf16.mxu0 %v9156_v23 }
 0x6c5   : > { %9187 = vmatpush3.bf16.msra.mxu1 %v9186_v27 }
 0x6c6   : > { %9189 = vmatprep.subr.bf16.mxu1 %v9188_v30 }
 0x6c7   : > { %9159 = vmatpush3.bf16.msra.mxu0 %v9158_v34 }
 0x6c8   : > { %9161 = vmatprep.subr.bf16.mxu0 %v9160_v33 }
 0x6c9   : > { %9191 = vmatpush3.bf16.msra.mxu1 %v9190_v37 }
 0x6ca   : > { %9193 = vmatprep.subr.bf16.mxu1 %v9192_v38 }
 0x6cb   : > { %9163 = vmatpush3.bf16.msra.mxu0 %v9162_v16 }
 0x6cd   : > { %9195 = vmatpush3.bf16.msra.mxu1 %v9194_v21 }
 0x6ce   : > { %7031 = vmatmul.mubr.f32.vlgmr.msra.gmra.mrb[8].mxu0 %v13879_v59 }
 0x6d0   : > { %7101 = vmatmul.mubr.f32.vlgmr.msra.gmra.mrb[8].mxu1 %v13886_v9 }
 0x721   : > { %v7278_v22 = vpop.f32.mrb[0].mxu0 }
 0x722   : > { %v7279_v26 = vpop.f32.mrb[1].mxu0 }
 0x723   : > { %v7280_v41 = vadd.f32 %v7279_v26, %v7278_v22  ;;  %v7313_v42 = vpop.f32.mrb[0].mxu1 }
 0x724   : > { %v7314_v43 = vpop.f32.mrb[1].mxu1 }
 0x725   : > { %v6473_v44 = vadd.f32 %v7280_v41, %v6294_v40  ;;  %v7315_v0 = vadd.f32 %v7314_v43, %v7313_v42 }
 0x727   : > { %v6543_v59 = vadd.f32 %v7315_v0, %v6473_v44 }
 0x741   : > { %v7348_v6 = vpop.f32.mrb[2].mxu0 }
 0x742   : > { %v7349_v9 = vpop.f32.mrb[3].mxu0 }
 0x743   : > { %v7350_v45 = vadd.f32 %v7349_v9, %v7348_v6  ;;  %v7383_v46 = vpop.f32.mrb[2].mxu1 }
 0x744   : > { %v7384_v47 = vpop.f32.mrb[3].mxu1 }
 0x745   : > { %v6613_v48 = vadd.f32 %v7350_v45, %v6543_v59  ;;  %v7385_v49 = vadd.f32 %v7384_v47, %v7383_v46 }
 0x747   : > { %v6683_v50 = vadd.f32 %v7385_v49, %v6613_v48 }
 0x761   : > { %v7418_v51 = vpop.f32.mrb[4].mxu0 }
 0x762   : > { %v7419_v52 = vpop.f32.mrb[5].mxu0 }
 0x763   : > { %v7420_v57 = vadd.f32 %v7419_v52, %v7418_v51  ;;  %v7453_v58 = vpop.f32.mrb[4].mxu1 }
 0x764   : > { %v7454_v54 = vpop.f32.mrb[5].mxu1 }
 0x765   : > { %v6753_v60 = vadd.f32 %v7420_v57, %v6683_v50  ;;  %v7455_v61 = vadd.f32 %v7454_v54, %v7453_v58 }
 0x767   : > { %v6823_v62 = vadd.f32 %v7455_v61, %v6753_v60 }
 0x781   : > { %v7488_v55 = vpop.f32.mrb[6].mxu0 }
 0x782   : > { %v7489_v56 = vpop.f32.mrb[7].mxu0 }
 0x783   : > { %v7490_v1 = vadd.f32 %v7489_v56, %v7488_v55  ;;  %v7523_v2 = vpop.f32.mrb[6].mxu1 }
 0x784   : > { %v7524_v3 = vpop.f32.mrb[7].mxu1 }
 0x785   : > { %v6893_v4 = vadd.f32 %v7490_v1, %v6823_v62  ;;  %v7525_v5 = vadd.f32 %v7524_v3, %v7523_v2 }
 0x787   : > { %v6963_v7 = vadd.f32 %v7525_v5, %v6893_v4 }
 0x7a1   : > { %v7558_v10 = vpop.f32.mrb[8].mxu0 }
 0x7a2   : > { %v7559_v11 = vpop.f32.mrb[9].mxu0 }
 0x7a3   : > { %v7560_v13 = vadd.f32 %v7559_v11, %v7558_v10  ;;  %v7593_v14 = vpop.f32.mrb[8].mxu1 }
 0x7a4   : > { %v7594_v17 = vpop.f32.mrb[9].mxu1 }
 0x7a5   : > { %v7033_v19 = vadd.f32 %v7560_v13, %v6963_v7  ;;  %v7595_v20 = vadd.f32 %v7594_v17, %v7593_v14 }
 0x7a7   : > { %v7103_v23 = vadd.f32 %v7595_v20, %v7033_v19 }
 0x7a9   : > { %7106 = vst [vmem:[%s12166_s2] sm:$0x3] %v7103_v23 }
 0x7aa PF: > { %s18_s27 = sadd.s32 1, %s9416_s27   ;;  %s14007_s11 = sld [smem:[#allocation7_spill]] }
 0x7ab   : > { %p15_p12 = scmp.ge.s32.totalorder %s18_s27, 6   ;;  %s14008_s8 = sld [smem:[#allocation8_spill]] }
 0x7ac   : > { %s14009_s18 = smov %s9384_s19  ;;  %s14010_s19 = smov %s9388_s20 }
 0x7ad   : > { %s14011_s20 = smov %s9535_s14  ;;  %s14012_s21 = smov %s9396_s22 }
 0x7ae   : > { %s14013_s22 = smov %s9538_s15  ;;  %s14014_s23 = smov %s9408_s25 }
 0x7af   : > { %s14015_s24 = smov %s9412_s26  ;;  %17 = sbr.rel (!%p15_p12) target bundleno = 9 (0x9), region = 125 }
 0x7b0   : > { %s14016_s25 = smov %s14007_s11 }
 0x7b1   : > { %s14017_s26 = smov %s14008_s8 }
 0x7b6   :  { %7126 = vsyncpa [#allocation5], 1 }
 0x7b7   :  { %7128 = vsyncpa [#allocation5 + $0x1], 1 }

</bundles_post_ra>
